<compile_context>
chip_gen: v7x
topology: tpu7x:2x2x1
jax: 0.10.0
libtpu: 0.0.40
codegen_flags: <defaults>
</compile_context>

<pallas_src>
import numpy as np
import jax
import jax.numpy as jnp
from jax import lax
from jax.experimental import pallas as pl
from jax.experimental.pallas import tpu as pltpu

# ----------------------------- configuration -------------------------------
D_MODEL = 32            # var_dim = area_dim = shot_dim = encode_dim
N_HEADS = 2
D_K = D_MODEL
D_V = D_MODEL
D_INNER = 2 * D_MODEL   # encode_dim * 2
SHOT_NUM = 12
PLAYER_NUM = 8
MAX_BALL_ROUND = 16     # n_position for the sinusoid table
LN_EPS = 1e-6
_INV_TEMP = 1.0 / (float(D_K) ** 0.5)
_NEG_INF = -1e9


# ------------------------------ small helpers ------------------------------
def _mm(a, b):
    # a @ b with f32 accumulation (MXU)
    return lax.dot_general(a, b, (((1,), (0,)), ((), ())),
                           preferred_element_type=jnp.float32)


def _mm_t(a, b):
    # a @ b.T with f32 accumulation (avoids explicit transpose)
    return lax.dot_general(a, b, (((1,), (1,)), ((), ())),
                           preferred_element_type=jnp.float32)


def _layer_norm(x, gamma, beta):
    mu = jnp.mean(x, axis=-1, keepdims=True)
    var = jnp.mean(jnp.square(x - mu), axis=-1, keepdims=True)
    return (x - mu) * lax.rsqrt(var + LN_EPS) * gamma + beta


def sinusoid_table(n_position, d_hid):
    position = np.arange(n_position, dtype=np.float64)[:, None]
    hid = np.arange(d_hid, dtype=np.float64)[None, :]
    angle = position / np.power(10000.0, 2.0 * (hid // 2) / d_hid)
    table = np.zeros((n_position, d_hid), dtype=np.float32)
    table[:, 0::2] = np.sin(angle[:, 0::2])
    table[:, 1::2] = np.cos(angle[:, 1::2])
    return jnp.asarray(table)


# ---------------------- in-kernel encoder layer body ------------------------
def _encoder_layer(cat, mask_add, wqkv, wfc, w1, b1, w2, vecs):
    """Disentangled type-area attention + position-wise FFN.

    cat      : (M, 2D) lane-packed [area | shot]
    mask_add : (M, M) additive mask (0 within group, -1e9 across groups)
    wqkv     : (2D, 3*H*dk) lanes = [q_h0|q_h1|k_h0|k_h1|v_h0|v_h1]
               (1/sqrt(d_k) already folded into the q columns)
    wfc      : (H*dv, D)
    vecs     : (5, D) rows = [ln1_g, ln1_b, b2, ln2_g, ln2_b]
    """
    D, H, dk = D_MODEL, N_HEADS, D_K
    qkv = _mm(cat, wqkv)                                        # (M, 3*H*dk)

    ctx = []
    for h in range(H):                                          # static, H = 2
        q = qkv[:, h * dk:(h + 1) * dk]                         # (M, dk)
        k = qkv[:, (H + h) * dk:(H + h + 1) * dk]
        v = qkv[:, (2 * H + h) * dk:(2 * H + h + 1) * dk]
        s = _mm_t(q, k) + mask_add                              # (M, M)
        s = s - jnp.max(s, axis=-1, keepdims=True)
        p = jnp.exp(s)
        p = p * pl.reciprocal(jnp.sum(p, axis=-1, keepdims=True), approx=True)
        ctx.append(_mm(p, v))                                   # (M, dv)
    attn = _mm(jnp.concatenate(ctx, axis=-1), wfc)              # (M, D)

    residual = cat[:, :D] + cat[:, D:]                          # area + shot
    x = _layer_norm(attn + residual, vecs[0:1], vecs[1:2])
    h1 = jax.nn.relu(_mm(x, w1) + b1)
    y = _mm(h1, w2) + vecs[2:3]
    return _layer_norm(y + x, vecs[3:4], vecs[4:5])


# --------------------------- fused forward kernel ---------------------------
def _fused_kernel(feats_ref,
                  w_cont_ref, b_cont_ref, emb_tab_ref,
                  pos_local_ref, pos_global_ref, sel_ref,
                  mask_local_ref, mask_global_ref,
                  l_wqkv_ref, l_wfc_ref, l_w1_ref, l_b1_ref, l_w2_ref, l_vecs_ref,
                  g_wqkv_ref, g_wfc_ref, g_w1_ref, g_b1_ref, g_w2_ref, g_vecs_ref,
                  out_ref):
    D = D_MODEL
    relu = jax.nn.relu
    feats = feats_ref[0]            # (M, 8): [lx, ly, time, angle, dist, type, player, 0]
    M = feats.shape[0]

    # ---------------- feature embedding (all TB*L tokens at once) ----------
    w_cont = w_cont_ref[...]        # (5, D): [wx, wy, wt, wang, wd]
    b_cont = b_cont_ref[...]        # (4, D): [b_area, b_time, b_angle, b_dist]
    emb_area = relu(feats[:, 0:1] * w_cont[0:1] + feats[:, 1:2] * w_cont[1:2]
                    + b_cont[0:1])
    emb_time = relu(feats[:, 2:3] * w_cont[2:3] + b_cont[1:2])
    emb_angle = relu(feats[:, 3:4] * w_cont[3:4] + b_cont[2:3])
    emb_dist = relu(feats[:, 4:5] * w_cont[4:5] + b_cont[3:4])

    # combined [type | player] embedding lookup: one-hot with two ones per row,
    # one matmul against the lane-block-diagonal table.
    tid = feats[:, 5:6].astype(jnp.int32)
    pid = feats[:, 6:7].astype(jnp.int32) + SHOT_NUM
    vocab = emb_tab_ref.shape[0]
    col = lax.broadcasted_iota(jnp.int32, (M, vocab), 1)
    onehot = ((col == tid) | (col == pid)).astype(jnp.float32)
    tp = _mm(onehot, emb_tab_ref[...])            # (M, 2D) = [emb_type | emb_player]

    common = emb_time + emb_angle + emb_dist + tp[:, D:]        # + emb_player
    # lane-packed [area stream | shot stream]
    h_cat = jnp.concatenate([emb_area + common, tp[:, :D] + common], axis=-1)

    # -------- positional encoding + even/odd (A/B) reorder (dropout = id) ---
    cat_local = h_cat + pos_local_ref[...]                      # (M, 2D)
    cat_global = _mm(sel_ref[...], h_cat) + pos_global_ref[...] # (M, 2D)

    # ---------------------------- encoder layers ----------------------------
    y_local = _encoder_layer(cat_local, mask_local_ref[...],
                             l_wqkv_ref[...], l_wfc_ref[...], l_w1_ref[...],
                             l_b1_ref[...], l_w2_ref[...], l_vecs_ref[...])
    y_global = _encoder_layer(cat_global, mask_global_ref[...],
                              g_wqkv_ref[...], g_wfc_ref[...], g_w1_ref[...],
                              g_b1_ref[...], g_w2_ref[...], g_vecs_ref[...])

    # lane-dense output: pack two 64-lane row-halves of [local | global] into
    # a 128-lane slab -> all stores are unmasked.
    cat_out = jnp.concatenate([y_local, y_global], axis=-1)     # (M, 2D)
    half = M // 2
    out_ref[0] = jnp.concatenate([cat_out[:half], cat_out[half:]], axis=-1)


# ---------------------------- parameter packing ------------------------------
def pack_layer(lp):
    wq = jnp.concatenate([lp['wqa'], lp['wqs']], axis=0) * _INV_TEMP  # (2D, H*dk)
    wk = jnp.concatenate([lp['wka'], lp['wks']], axis=0)
    wv = jnp.concatenate([lp['wva'], lp['wvs']], axis=0)
    wqkv = jnp.concatenate([wq, wk, wv], axis=1)                      # (2D, 3*H*dk)
    vecs = jnp.concatenate([lp['ln1_g'], lp['ln1_b'], lp['b2'],
                            lp['ln2_g'], lp['ln2_b']], axis=0)        # (5, D)
    return (wqkv, lp['wfc'], lp['w1'], lp['b1'], lp['w2'], vecs)


# ----------------------------- forward pass ---------------------------------
def shotgen_encoder_forward(input_dict, params, src_mask=None, block_batch=None):
    # TODO(synk): src_mask is accepted for API parity but not applied (the
    #             PyTorch module's default src_mask=None path is implemented).
    lx = input_dict['landing_x'].astype(jnp.float32)
    B, L = lx.shape
    D = D_MODEL
    assert L % 2 == 0, "even/odd player split requires an even sequence length"

    # Pack TB batch elements per grid step so M = TB*L fills the MXU/VPU
    # (M=128 is full width on v5e; pass block_batch to reach M=256 on v6e/v7x).
    TB = block_batch if block_batch is not None else max(1, 128 // L)
    Bb = -(-B // TB)                # grid length (grows with B; >=2 feeds both v7x TCs)
    B_pad = Bb * TB
    M = TB * L
    half_L = L // 2

    # ---- single (Bb, M, 8) feature slab: [lx, ly, time, angle, dist, type, player, 0]
    feats = jnp.stack(
        [lx,
         input_dict['landing_y'].astype(jnp.float32),
         input_dict['time_diff'].astype(jnp.float32),
         input_dict['shot_angle'].astype(jnp.float32),
         input_dict['distance'].astype(jnp.float32),
         input_dict['type'].astype(jnp.float32),
         input_dict['player'].astype(jnp.float32),
         jnp.zeros_like(lx)], axis=-1)                                # (B, L, 8)
    if B_pad != B:
        feats = jnp.concatenate(
            [feats, jnp.zeros((B_pad - B, L, feats.shape[-1]), jnp.float32)],
            axis=0)
    feats = feats.reshape(Bb, M, feats.shape[-1])

    # ---- grid-invariant constants (DMA'd once, block index never changes) --
    w_cont = jnp.concatenate([params['w_area'], params['w_time'],
                              params['w_angle'], params['w_dist']], axis=0)   # (5, D)
    b_cont = jnp.concatenate([params['b_area'], params['b_time'],
                              params['b_angle'], params['b_dist']], axis=0)   # (4, D)
    emb_tab = jnp.zeros((SHOT_NUM + PLAYER_NUM, 2 * D), jnp.float32)
    emb_tab = emb_tab.at[:SHOT_NUM, :D].set(params['e_type'])
    emb_tab = emb_tab.at[SHOT_NUM:, D:].set(params['e_player'])

    pos = params['pos_table']
    pos_l = jnp.tile(pos[:L], (TB, 1))                         # (M, D)
    pos_g = jnp.tile(pos[:half_L], (2 * TB, 1))                # (M, D)
    pos_local = jnp.concatenate([pos_l, pos_l], axis=1)        # (M, 2D)
    pos_global = jnp.concatenate([pos_g, pos_g], axis=1)       # (M, 2D)

    # even/odd permutation (per batch block) + additive block-diagonal masks
    sel_np = np.zeros((M, M), np.float32)
    for b in range(TB):
        base = b * L
        for r in range(half_L):
            sel_np[base + r, base + 2 * r] = 1.0               # A rows <- even tokens
            sel_np[base + half_L + r, base + 2 * r + 1] = 1.0  # B rows <- odd tokens
    idx = np.arange(M)
    mask_local = np.where((idx[:, None] // L) == (idx[None, :] // L),
                          0.0, _NEG_INF).astype(np.float32)
    mask_global = np.where((idx[:, None] // half_L) == (idx[None, :] // half_L),
                           0.0, _NEG_INF).astype(np.float32)

    consts = [w_cont, b_cont, emb_tab, pos_local, pos_global,
              jnp.asarray(sel_np), jnp.asarray(mask_local), jnp.asarray(mask_global),
              *pack_layer(params['local']), *pack_layer(params['global'])]

    def const_spec(arr):
        zeros = (0,) * arr.ndim
        return pl.BlockSpec(arr.shape, lambda b, _z=zeros: _z)

    in_specs = ([pl.BlockSpec((1, M, feats.shape[-1]), lambda b: (b, 0, 0))]
                + [const_spec(a) for a in consts])
    out_specs = pl.BlockSpec((1, M // 2, 4 * D), lambda b: (b, 0, 0))

    packed = pl.pallas_call(
        _fused_kernel,
        out_shape=jax.ShapeDtypeStruct((Bb, M // 2, 4 * D), jnp.float32),
        grid=(Bb,),
        in_specs=in_specs,
        out_specs=out_specs,
        compiler_params=pltpu.CompilerParams(dimension_semantics=("parallel",)),
    )(feats, *consts)

    # ---- unpack the lane-dense (M/2, 128) slabs ----------------------------
    cat_out = jnp.concatenate([packed[:, :, :2 * D], packed[:, :, 2 * D:]], axis=1)
    cat_out = cat_out.reshape(B_pad, L, 2 * D)[:B]              # drop batch padding
    encode_local = cat_out[:, :, :D]
    y_global = cat_out[:, :, D:]
    encode_global_A = y_global[:, :half_L, :]
    encode_global_B = y_global[:, half_L:, :]
    return encode_local, encode_global_A, encode_global_B


# ---------------------------- parameter init ---------------------------------
def init_layer(key):
    keys = jax.random.split(key, 11)

    def w(k, shape):
        return 0.1 * jax.random.normal(k, shape, jnp.float32)

    ones = jnp.ones((1, D_MODEL), jnp.float32)
    zeros = jnp.zeros((1, D_MODEL), jnp.float32)
    return {
        'wqa': w(keys[0], (D_MODEL, N_HEADS * D_K)),
        'wka': w(keys[1], (D_MODEL, N_HEADS * D_K)),
        'wva': w(keys[2], (D_MODEL, N_HEADS * D_V)),
        'wqs': w(keys[3], (D_MODEL, N_HEADS * D_K)),
        'wks': w(keys[4], (D_MODEL, N_HEADS * D_K)),
        'wvs': w(keys[5], (D_MODEL, N_HEADS * D_V)),
        'wfc': w(keys[6], (N_HEADS * D_V, D_MODEL)),
        'ln1_g': ones, 'ln1_b': zeros,
        'w1': w(keys[7], (D_MODEL, D_INNER)),
        'b1': 0.1 * jax.random.normal(keys[8], (1, D_INNER), jnp.float32),
        'w2': w(keys[9], (D_INNER, D_MODEL)),
        'b2': 0.1 * jax.random.normal(keys[10], (1, D_MODEL), jnp.float32),
        'ln2_g': ones, 'ln2_b': zeros,
    }


def init_params(key):
    keys = jax.random.split(key, 12)

    def w(k, shape):
        return 0.1 * jax.random.normal(k, shape, jnp.float32)

    e_type = w(keys[0], (SHOT_NUM, D_MODEL)).at[0].set(0.0)      # padding_idx=0
    e_player = w(keys[1], (PLAYER_NUM, D_MODEL)).at[0].set(0.0)  # padding_idx=0
    return {
        'w_area': w(keys[2], (2, D_MODEL)), 'b_area': w(keys[3], (1, D_MODEL)),
        'w_time': w(keys[4], (1, D_MODEL)), 'b_time': w(keys[5], (1, D_MODEL)),
        'w_angle': w(keys[6], (1, D_MODEL)), 'b_angle': w(keys[7], (1, D_MODEL)),
        'w_dist': w(keys[8], (1, D_MODEL)), 'b_dist': w(keys[9], (1, D_MODEL)),
        'e_type': e_type, 'e_player': e_player,
        'pos_table': sinusoid_table(MAX_BALL_ROUND, D_MODEL),
        'global': init_layer(keys[10]),
        'local': init_layer(keys[11]),
    }


# --------------------------------- main --------------------------------------
if __name__ == "__main__":
    key = jax.random.PRNGKey(0)
    kp, kd = jax.random.split(key)
    params = init_params(kp)

    B, L = 2, 8
    ks = jax.random.split(kd, 7)
    input_dict = {
        'landing_x': jax.random.uniform(ks[0], (B, L), jnp.float32),
        'landing_y': jax.random.uniform(ks[1], (B, L), jnp.float32),
        'time_diff': jax.random.uniform(ks[2], (B, L), jnp.float32),
        'shot_angle': jax.random.uniform(ks[3], (B, L), jnp.float32) * 3.14,
        'distance': jax.random.uniform(ks[4], (B, L), jnp.float32) * 5.0,
        'type': jax.random.randint(ks[5], (B, L), 1, SHOT_NUM),
        'player': jax.random.randint(ks[6], (B, L), 1, PLAYER_NUM),
    }

    local_out, global_A, global_B = shotgen_encoder_forward(input_dict, params)
    jax.block_until_ready((local_out, global_A, global_B))

    assert local_out.shape == (B, L, D_MODEL)
    assert global_A.shape == (B, L // 2, D_MODEL)
    assert global_B.shape == (B, L // 2, D_MODEL)
    assert jnp.all(jnp.isfinite(local_out))
    assert jnp.all(jnp.isfinite(global_A))
    assert jnp.all(jnp.isfinite(global_B))
    print("KERNEL_OK")
</pallas_src>

<mosaic_0001>
module attributes {stable_mosaic.version = 11 : i64} {
  func.func @_fused_kernel(%arg0: i32, %arg1: memref<1x128x8xf32, #tpu.memory_space<vmem>>, %arg2: memref<5x32xf32, #tpu.memory_space<vmem>>, %arg3: memref<4x32xf32, #tpu.memory_space<vmem>>, %arg4: memref<20x64xf32, #tpu.memory_space<vmem>>, %arg5: memref<128x64xf32, #tpu.memory_space<vmem>>, %arg6: memref<128x64xf32, #tpu.memory_space<vmem>>, %arg7: memref<128x128xf32, #tpu.memory_space<vmem>>, %arg8: memref<128x128xf32, #tpu.memory_space<vmem>>, %arg9: memref<128x128xf32, #tpu.memory_space<vmem>>, %arg10: memref<64x192xf32, #tpu.memory_space<vmem>>, %arg11: memref<64x32xf32, #tpu.memory_space<vmem>>, %arg12: memref<32x64xf32, #tpu.memory_space<vmem>>, %arg13: memref<1x64xf32, #tpu.memory_space<vmem>>, %arg14: memref<64x32xf32, #tpu.memory_space<vmem>>, %arg15: memref<5x32xf32, #tpu.memory_space<vmem>>, %arg16: memref<64x192xf32, #tpu.memory_space<vmem>>, %arg17: memref<64x32xf32, #tpu.memory_space<vmem>>, %arg18: memref<32x64xf32, #tpu.memory_space<vmem>>, %arg19: memref<1x64xf32, #tpu.memory_space<vmem>>, %arg20: memref<64x32xf32, #tpu.memory_space<vmem>>, %arg21: memref<5x32xf32, #tpu.memory_space<vmem>>, %arg22: memref<1x64x128xf32, #tpu.memory_space<vmem>>) attributes {dimension_semantics = [#tpu.dimension_semantics<parallel>], iteration_bounds = array<i64: 1>, scalar_prefetch = 0 : i64, scratch_operands = 0 : i64, tpu.core_type = #tpu.core_type<tc>, window_params = [{transform_indices = @transform_0, window_bounds = array<i64: 1, 128, 8>}, {pipeline_mode = #tpu.pipeline_mode<synchronous>, transform_indices = @transform_1, window_bounds = array<i64: 5, 32>}, {pipeline_mode = #tpu.pipeline_mode<synchronous>, transform_indices = @transform_2, window_bounds = array<i64: 4, 32>}, {pipeline_mode = #tpu.pipeline_mode<synchronous>, transform_indices = @transform_3, window_bounds = array<i64: 20, 64>}, {pipeline_mode = #tpu.pipeline_mode<synchronous>, transform_indices = @transform_4, window_bounds = array<i64: 128, 64>}, {pipeline_mode = #tpu.pipeline_mode<synchronous>, transform_indices = @transform_5, window_bounds = array<i64: 128, 64>}, {pipeline_mode = #tpu.pipeline_mode<synchronous>, transform_indices = @transform_6, window_bounds = array<i64: 128, 128>}, {pipeline_mode = #tpu.pipeline_mode<synchronous>, transform_indices = @transform_7, window_bounds = array<i64: 128, 128>}, {pipeline_mode = #tpu.pipeline_mode<synchronous>, transform_indices = @transform_8, window_bounds = array<i64: 128, 128>}, {pipeline_mode = #tpu.pipeline_mode<synchronous>, transform_indices = @transform_9, window_bounds = array<i64: 64, 192>}, {pipeline_mode = #tpu.pipeline_mode<synchronous>, transform_indices = @transform_10, window_bounds = array<i64: 64, 32>}, {pipeline_mode = #tpu.pipeline_mode<synchronous>, transform_indices = @transform_11, window_bounds = array<i64: 32, 64>}, {pipeline_mode = #tpu.pipeline_mode<synchronous>, transform_indices = @transform_12, window_bounds = array<i64: 1, 64>}, {pipeline_mode = #tpu.pipeline_mode<synchronous>, transform_indices = @transform_13, window_bounds = array<i64: 64, 32>}, {pipeline_mode = #tpu.pipeline_mode<synchronous>, transform_indices = @transform_14, window_bounds = array<i64: 5, 32>}, {pipeline_mode = #tpu.pipeline_mode<synchronous>, transform_indices = @transform_15, window_bounds = array<i64: 64, 192>}, {pipeline_mode = #tpu.pipeline_mode<synchronous>, transform_indices = @transform_16, window_bounds = array<i64: 64, 32>}, {pipeline_mode = #tpu.pipeline_mode<synchronous>, transform_indices = @transform_17, window_bounds = array<i64: 32, 64>}, {pipeline_mode = #tpu.pipeline_mode<synchronous>, transform_indices = @transform_18, window_bounds = array<i64: 1, 64>}, {pipeline_mode = #tpu.pipeline_mode<synchronous>, transform_indices = @transform_19, window_bounds = array<i64: 64, 32>}, {pipeline_mode = #tpu.pipeline_mode<synchronous>, transform_indices = @transform_20, window_bounds = array<i64: 5, 32>}, {transform_indices = @transform_21, window_bounds = array<i64: 1, 64, 128>}]} {
    %c0 = arith.constant 0 : index
    %c0_0 = arith.constant 0 : index
    %c0_1 = arith.constant 0 : index
    %0 = vector.load %arg1[%c0, %c0_0, %c0_1] : memref<1x128x8xf32, #tpu.memory_space<vmem>>, vector<1x128x8xf32>
    %1 = vector.shape_cast %0 : vector<1x128x8xf32> to vector<128x8xf32>
    %c0_2 = arith.constant 0 : index
    %c0_3 = arith.constant 0 : index
    %2 = vector.load %arg2[%c0_2, %c0_3] : memref<5x32xf32, #tpu.memory_space<vmem>>, vector<5x32xf32>
    %c0_4 = arith.constant 0 : index
    %c0_5 = arith.constant 0 : index
    %3 = vector.load %arg3[%c0_4, %c0_5] : memref<4x32xf32, #tpu.memory_space<vmem>>, vector<4x32xf32>
    %4 = vector.extract_strided_slice %1 {offsets = [0, 0], sizes = [128, 1], strides = [1, 1]} : vector<128x8xf32> to vector<128x1xf32>
    %5 = vector.extract_strided_slice %2 {offsets = [0, 0], sizes = [1, 32], strides = [1, 1]} : vector<5x32xf32> to vector<1x32xf32>
    %6 = vector.broadcast %4 : vector<128x1xf32> to vector<128x32xf32>
    %7 = vector.broadcast %5 : vector<1x32xf32> to vector<128x32xf32>
    %8 = arith.mulf %6, %7 : vector<128x32xf32>
    %9 = vector.extract_strided_slice %1 {offsets = [0, 1], sizes = [128, 1], strides = [1, 1]} : vector<128x8xf32> to vector<128x1xf32>
    %10 = vector.extract_strided_slice %2 {offsets = [1, 0], sizes = [1, 32], strides = [1, 1]} : vector<5x32xf32> to vector<1x32xf32>
    %11 = vector.broadcast %9 : vector<128x1xf32> to vector<128x32xf32>
    %12 = vector.broadcast %10 : vector<1x32xf32> to vector<128x32xf32>
    %13 = arith.mulf %11, %12 : vector<128x32xf32>
    %14 = arith.addf %8, %13 : vector<128x32xf32>
    %15 = vector.extract_strided_slice %3 {offsets = [0, 0], sizes = [1, 32], strides = [1, 1]} : vector<4x32xf32> to vector<1x32xf32>
    %16 = vector.broadcast %15 : vector<1x32xf32> to vector<128x32xf32>
    %17 = arith.addf %14, %16 : vector<128x32xf32>
    %cst = arith.constant 0.000000e+00 : f32
    %18 = vector.broadcast %cst : f32 to vector<128x32xf32>
    %19 = arith.maximumf %17, %18 : vector<128x32xf32>
    %20 = vector.extract_strided_slice %1 {offsets = [0, 2], sizes = [128, 1], strides = [1, 1]} : vector<128x8xf32> to vector<128x1xf32>
    %21 = vector.extract_strided_slice %2 {offsets = [2, 0], sizes = [1, 32], strides = [1, 1]} : vector<5x32xf32> to vector<1x32xf32>
    %22 = vector.broadcast %20 : vector<128x1xf32> to vector<128x32xf32>
    %23 = vector.broadcast %21 : vector<1x32xf32> to vector<128x32xf32>
    %24 = arith.mulf %22, %23 : vector<128x32xf32>
    %25 = vector.extract_strided_slice %3 {offsets = [1, 0], sizes = [1, 32], strides = [1, 1]} : vector<4x32xf32> to vector<1x32xf32>
    %26 = vector.broadcast %25 : vector<1x32xf32> to vector<128x32xf32>
    %27 = arith.addf %24, %26 : vector<128x32xf32>
    %cst_6 = arith.constant 0.000000e+00 : f32
    %28 = vector.broadcast %cst_6 : f32 to vector<128x32xf32>
    %29 = arith.maximumf %27, %28 : vector<128x32xf32>
    %30 = vector.extract_strided_slice %1 {offsets = [0, 3], sizes = [128, 1], strides = [1, 1]} : vector<128x8xf32> to vector<128x1xf32>
    %31 = vector.extract_strided_slice %2 {offsets = [3, 0], sizes = [1, 32], strides = [1, 1]} : vector<5x32xf32> to vector<1x32xf32>
    %32 = vector.broadcast %30 : vector<128x1xf32> to vector<128x32xf32>
    %33 = vector.broadcast %31 : vector<1x32xf32> to vector<128x32xf32>
    %34 = arith.mulf %32, %33 : vector<128x32xf32>
    %35 = vector.extract_strided_slice %3 {offsets = [2, 0], sizes = [1, 32], strides = [1, 1]} : vector<4x32xf32> to vector<1x32xf32>
    %36 = vector.broadcast %35 : vector<1x32xf32> to vector<128x32xf32>
    %37 = arith.addf %34, %36 : vector<128x32xf32>
    %cst_7 = arith.constant 0.000000e+00 : f32
    %38 = vector.broadcast %cst_7 : f32 to vector<128x32xf32>
    %39 = arith.maximumf %37, %38 : vector<128x32xf32>
    %40 = vector.extract_strided_slice %1 {offsets = [0, 4], sizes = [128, 1], strides = [1, 1]} : vector<128x8xf32> to vector<128x1xf32>
    %41 = vector.extract_strided_slice %2 {offsets = [4, 0], sizes = [1, 32], strides = [1, 1]} : vector<5x32xf32> to vector<1x32xf32>
    %42 = vector.broadcast %40 : vector<128x1xf32> to vector<128x32xf32>
    %43 = vector.broadcast %41 : vector<1x32xf32> to vector<128x32xf32>
    %44 = arith.mulf %42, %43 : vector<128x32xf32>
    %45 = vector.extract_strided_slice %3 {offsets = [3, 0], sizes = [1, 32], strides = [1, 1]} : vector<4x32xf32> to vector<1x32xf32>
    %46 = vector.broadcast %45 : vector<1x32xf32> to vector<128x32xf32>
    %47 = arith.addf %44, %46 : vector<128x32xf32>
    %cst_8 = arith.constant 0.000000e+00 : f32
    %48 = vector.broadcast %cst_8 : f32 to vector<128x32xf32>
    %49 = arith.maximumf %47, %48 : vector<128x32xf32>
    %50 = vector.extract_strided_slice %1 {offsets = [0, 5], sizes = [128, 1], strides = [1, 1]} : vector<128x8xf32> to vector<128x1xf32>
    %51 = arith.fptosi %50 : vector<128x1xf32> to vector<128x1xi32>
    %52 = vector.extract_strided_slice %1 {offsets = [0, 6], sizes = [128, 1], strides = [1, 1]} : vector<128x8xf32> to vector<128x1xf32>
    %53 = arith.fptosi %52 : vector<128x1xf32> to vector<128x1xi32>
    %c12_i32 = arith.constant 12 : i32
    %54 = vector.broadcast %c12_i32 : i32 to vector<128x1xi32>
    %55 = arith.addi %53, %54 : vector<128x1xi32>
    %56 = tpu.iota {dimensions = array<i32: 1>} : vector<128x20xi32>
    %57 = vector.broadcast %51 : vector<128x1xi32> to vector<128x20xi32>
    %58 = arith.cmpi eq, %56, %57 : vector<128x20xi32>
    %59 = vector.broadcast %55 : vector<128x1xi32> to vector<128x20xi32>
    %60 = arith.cmpi eq, %56, %59 : vector<128x20xi32>
    %61 = arith.ori %58, %60 : vector<128x20xi1>
    %62 = arith.extui %61 : vector<128x20xi1> to vector<128x20xi32>
    %63 = arith.sitofp %62 : vector<128x20xi32> to vector<128x20xf32>
    %c0_9 = arith.constant 0 : index
    %c0_10 = arith.constant 0 : index
    %64 = vector.load %arg4[%c0_9, %c0_10] : memref<20x64xf32, #tpu.memory_space<vmem>>, vector<20x64xf32>
    %cst_11 = arith.constant dense<0.000000e+00> : vector<128x64xf32>
    %65 = tpu.matmul %63, %64, %cst_11 {dimension_numbers = #tpu.dot_dimension_numbers<[1], [0], [0], [1], [0, 0, 1, 1], [], []>} : vector<128x20xf32>, vector<20x64xf32>, vector<128x64xf32> -> vector<128x64xf32>
    %66 = arith.addf %29, %39 : vector<128x32xf32>
    %67 = arith.addf %66, %49 : vector<128x32xf32>
    %68 = vector.extract_strided_slice %65 {offsets = [0, 32], sizes = [128, 32], strides = [1, 1]} : vector<128x64xf32> to vector<128x32xf32>
    %69 = arith.addf %67, %68 : vector<128x32xf32>
    %70 = arith.addf %19, %69 : vector<128x32xf32>
    %71 = vector.extract_strided_slice %65 {offsets = [0, 0], sizes = [128, 32], strides = [1, 1]} : vector<128x64xf32> to vector<128x32xf32>
    %72 = arith.addf %71, %69 : vector<128x32xf32>
    %73 = tpu.concatenate %70, %72 in 1 : vector<128x32xf32>, vector<128x32xf32> -> vector<128x64xf32>
    %c0_12 = arith.constant 0 : index
    %c0_13 = arith.constant 0 : index
    %74 = vector.load %arg5[%c0_12, %c0_13] : memref<128x64xf32, #tpu.memory_space<vmem>>, vector<128x64xf32>
    %75 = arith.addf %73, %74 : vector<128x64xf32>
    %c0_14 = arith.constant 0 : index
    %c0_15 = arith.constant 0 : index
    %76 = vector.load %arg7[%c0_14, %c0_15] : memref<128x128xf32, #tpu.memory_space<vmem>>, vector<128x128xf32>
    %cst_16 = arith.constant dense<0.000000e+00> : vector<128x64xf32>
    %77 = tpu.matmul %76, %73, %cst_16 {dimension_numbers = #tpu.dot_dimension_numbers<[1], [0], [0], [1], [0, 0, 1, 1], [], []>} : vector<128x128xf32>, vector<128x64xf32>, vector<128x64xf32> -> vector<128x64xf32>
    %c0_17 = arith.constant 0 : index
    %c0_18 = arith.constant 0 : index
    %78 = vector.load %arg6[%c0_17, %c0_18] : memref<128x64xf32, #tpu.memory_space<vmem>>, vector<128x64xf32>
    %79 = arith.addf %77, %78 : vector<128x64xf32>
    %c0_19 = arith.constant 0 : index
    %c0_20 = arith.constant 0 : index
    %80 = vector.load %arg8[%c0_19, %c0_20] : memref<128x128xf32, #tpu.memory_space<vmem>>, vector<128x128xf32>
    %c0_21 = arith.constant 0 : index
    %c0_22 = arith.constant 0 : index
    %81 = vector.load %arg10[%c0_21, %c0_22] : memref<64x192xf32, #tpu.memory_space<vmem>>, vector<64x192xf32>
    %c0_23 = arith.constant 0 : index
    %c0_24 = arith.constant 0 : index
    %82 = vector.load %arg11[%c0_23, %c0_24] : memref<64x32xf32, #tpu.memory_space<vmem>>, vector<64x32xf32>
    %c0_25 = arith.constant 0 : index
    %c0_26 = arith.constant 0 : index
    %83 = vector.load %arg12[%c0_25, %c0_26] : memref<32x64xf32, #tpu.memory_space<vmem>>, vector<32x64xf32>
    %c0_27 = arith.constant 0 : index
    %c0_28 = arith.constant 0 : index
    %84 = vector.load %arg13[%c0_27, %c0_28] : memref<1x64xf32, #tpu.memory_space<vmem>>, vector<1x64xf32>
    %c0_29 = arith.constant 0 : index
    %c0_30 = arith.constant 0 : index
    %85 = vector.load %arg14[%c0_29, %c0_30] : memref<64x32xf32, #tpu.memory_space<vmem>>, vector<64x32xf32>
    %c0_31 = arith.constant 0 : index
    %c0_32 = arith.constant 0 : index
    %86 = vector.load %arg15[%c0_31, %c0_32] : memref<5x32xf32, #tpu.memory_space<vmem>>, vector<5x32xf32>
    %cst_33 = arith.constant dense<0.000000e+00> : vector<128x192xf32>
    %87 = tpu.matmul %75, %81, %cst_33 {dimension_numbers = #tpu.dot_dimension_numbers<[1], [0], [0], [1], [0, 0, 1, 1], [], []>} : vector<128x64xf32>, vector<64x192xf32>, vector<128x192xf32> -> vector<128x192xf32>
    %88 = vector.extract_strided_slice %87 {offsets = [0, 0], sizes = [128, 32], strides = [1, 1]} : vector<128x192xf32> to vector<128x32xf32>
    %89 = vector.extract_strided_slice %87 {offsets = [0, 64], sizes = [128, 32], strides = [1, 1]} : vector<128x192xf32> to vector<128x32xf32>
    %90 = vector.extract_strided_slice %87 {offsets = [0, 128], sizes = [128, 32], strides = [1, 1]} : vector<128x192xf32> to vector<128x32xf32>
    %cst_34 = arith.constant dense<0.000000e+00> : vector<128x128xf32>
    %91 = tpu.matmul %88, %89, %cst_34 {dimension_numbers = #tpu.dot_dimension_numbers<[1], [1], [0], [0], [0, 0, 1, 0], [], []>} : vector<128x32xf32>, vector<128x32xf32>, vector<128x128xf32> -> vector<128x128xf32>
    %92 = arith.addf %91, %80 : vector<128x128xf32>
    %cst_35 = arith.constant dense<0xFF800000> : vector<128xf32>
    %93 = vector.multi_reduction <maximumf>, %92, %cst_35 [1] : vector<128x128xf32> to vector<128xf32>
    %94 = vector.shape_cast %93 : vector<128xf32> to vector<128x1xf32>
    %95 = vector.broadcast %94 : vector<128x1xf32> to vector<128x128xf32>
    %96 = arith.subf %92, %95 : vector<128x128xf32>
    %97 = math.exp %96 : vector<128x128xf32>
    %cst_36 = arith.constant dense<0.000000e+00> : vector<128xf32>
    %98 = vector.multi_reduction <add>, %97, %cst_36 [1] : vector<128x128xf32> to vector<128xf32>
    %99 = vector.shape_cast %98 : vector<128xf32> to vector<128x1xf32>
    %100 = tpu.reciprocal %99 {approx = true} : vector<128x1xf32> -> vector<128x1xf32>
    %101 = vector.broadcast %100 : vector<128x1xf32> to vector<128x128xf32>
    %102 = arith.mulf %97, %101 : vector<128x128xf32>
    %cst_37 = arith.constant dense<0.000000e+00> : vector<128x32xf32>
    %103 = tpu.matmul %102, %90, %cst_37 {dimension_numbers = #tpu.dot_dimension_numbers<[1], [0], [0], [1], [0, 0, 1, 1], [], []>} : vector<128x128xf32>, vector<128x32xf32>, vector<128x32xf32> -> vector<128x32xf32>
    %104 = vector.extract_strided_slice %87 {offsets = [0, 32], sizes = [128, 32], strides = [1, 1]} : vector<128x192xf32> to vector<128x32xf32>
    %105 = vector.extract_strided_slice %87 {offsets = [0, 96], sizes = [128, 32], strides = [1, 1]} : vector<128x192xf32> to vector<128x32xf32>
    %106 = vector.extract_strided_slice %87 {offsets = [0, 160], sizes = [128, 32], strides = [1, 1]} : vector<128x192xf32> to vector<128x32xf32>
    %cst_38 = arith.constant dense<0.000000e+00> : vector<128x128xf32>
    %107 = tpu.matmul %104, %105, %cst_38 {dimension_numbers = #tpu.dot_dimension_numbers<[1], [1], [0], [0], [0, 0, 1, 0], [], []>} : vector<128x32xf32>, vector<128x32xf32>, vector<128x128xf32> -> vector<128x128xf32>
    %108 = arith.addf %107, %80 : vector<128x128xf32>
    %cst_39 = arith.constant dense<0xFF800000> : vector<128xf32>
    %109 = vector.multi_reduction <maximumf>, %108, %cst_39 [1] : vector<128x128xf32> to vector<128xf32>
    %110 = vector.shape_cast %109 : vector<128xf32> to vector<128x1xf32>
    %111 = vector.broadcast %110 : vector<128x1xf32> to vector<128x128xf32>
    %112 = arith.subf %108, %111 : vector<128x128xf32>
    %113 = math.exp %112 : vector<128x128xf32>
    %cst_40 = arith.constant dense<0.000000e+00> : vector<128xf32>
    %114 = vector.multi_reduction <add>, %113, %cst_40 [1] : vector<128x128xf32> to vector<128xf32>
    %115 = vector.shape_cast %114 : vector<128xf32> to vector<128x1xf32>
    %116 = tpu.reciprocal %115 {approx = true} : vector<128x1xf32> -> vector<128x1xf32>
    %117 = vector.broadcast %116 : vector<128x1xf32> to vector<128x128xf32>
    %118 = arith.mulf %113, %117 : vector<128x128xf32>
    %cst_41 = arith.constant dense<0.000000e+00> : vector<128x32xf32>
    %119 = tpu.matmul %118, %106, %cst_41 {dimension_numbers = #tpu.dot_dimension_numbers<[1], [0], [0], [1], [0, 0, 1, 1], [], []>} : vector<128x128xf32>, vector<128x32xf32>, vector<128x32xf32> -> vector<128x32xf32>
    %120 = tpu.concatenate %103, %119 in 1 : vector<128x32xf32>, vector<128x32xf32> -> vector<128x64xf32>
    %cst_42 = arith.constant dense<0.000000e+00> : vector<128x32xf32>
    %121 = tpu.matmul %120, %82, %cst_42 {dimension_numbers = #tpu.dot_dimension_numbers<[1], [0], [0], [1], [0, 0, 1, 1], [], []>} : vector<128x64xf32>, vector<64x32xf32>, vector<128x32xf32> -> vector<128x32xf32>
    %122 = vector.extract_strided_slice %75 {offsets = [0, 0], sizes = [128, 32], strides = [1, 1]} : vector<128x64xf32> to vector<128x32xf32>
    %123 = vector.extract_strided_slice %75 {offsets = [0, 32], sizes = [128, 32], strides = [1, 1]} : vector<128x64xf32> to vector<128x32xf32>
    %124 = arith.addf %122, %123 : vector<128x32xf32>
    %125 = arith.addf %121, %124 : vector<128x32xf32>
    %126 = vector.extract_strided_slice %86 {offsets = [0, 0], sizes = [1, 32], strides = [1, 1]} : vector<5x32xf32> to vector<1x32xf32>
    %127 = vector.extract_strided_slice %86 {offsets = [1, 0], sizes = [1, 32], strides = [1, 1]} : vector<5x32xf32> to vector<1x32xf32>
    %cst_43 = arith.constant dense<0.000000e+00> : vector<128xf32>
    %128 = vector.multi_reduction <add>, %125, %cst_43 [1] : vector<128x32xf32> to vector<128xf32>
    %129 = vector.shape_cast %128 : vector<128xf32> to vector<128x1xf32>
    %cst_44 = arith.constant 3.200000e+01 : f32
    %130 = vector.broadcast %cst_44 : f32 to vector<128x1xf32>
    %131 = arith.divf %129, %130 : vector<128x1xf32>
    %132 = vector.broadcast %131 : vector<128x1xf32> to vector<128x32xf32>
    %133 = arith.subf %125, %132 : vector<128x32xf32>
    %134 = arith.mulf %133, %133 : vector<128x32xf32>
    %cst_45 = arith.constant dense<0.000000e+00> : vector<128xf32>
    %135 = vector.multi_reduction <add>, %134, %cst_45 [1] : vector<128x32xf32> to vector<128xf32>
    %136 = vector.shape_cast %135 : vector<128xf32> to vector<128x1xf32>
    %cst_46 = arith.constant 3.200000e+01 : f32
    %137 = vector.broadcast %cst_46 : f32 to vector<128x1xf32>
    %138 = arith.divf %136, %137 : vector<128x1xf32>
    %139 = vector.broadcast %131 : vector<128x1xf32> to vector<128x32xf32>
    %140 = arith.subf %125, %139 : vector<128x32xf32>
    %cst_47 = arith.constant 9.99999997E-7 : f32
    %141 = vector.broadcast %cst_47 : f32 to vector<128x1xf32>
    %142 = arith.addf %138, %141 : vector<128x1xf32>
    %143 = math.rsqrt %142 : vector<128x1xf32>
    %144 = vector.broadcast %143 : vector<128x1xf32> to vector<128x32xf32>
    %145 = arith.mulf %140, %144 : vector<128x32xf32>
    %146 = vector.broadcast %126 : vector<1x32xf32> to vector<128x32xf32>
    %147 = arith.mulf %145, %146 : vector<128x32xf32>
    %148 = vector.broadcast %127 : vector<1x32xf32> to vector<128x32xf32>
    %149 = arith.addf %147, %148 : vector<128x32xf32>
    %cst_48 = arith.constant dense<0.000000e+00> : vector<128x64xf32>
    %150 = tpu.matmul %149, %83, %cst_48 {dimension_numbers = #tpu.dot_dimension_numbers<[1], [0], [0], [1], [0, 0, 1, 1], [], []>} : vector<128x32xf32>, vector<32x64xf32>, vector<128x64xf32> -> vector<128x64xf32>
    %151 = vector.broadcast %84 : vector<1x64xf32> to vector<128x64xf32>
    %152 = arith.addf %150, %151 : vector<128x64xf32>
    %cst_49 = arith.constant 0.000000e+00 : f32
    %153 = vector.broadcast %cst_49 : f32 to vector<128x64xf32>
    %154 = arith.maximumf %152, %153 : vector<128x64xf32>
    %cst_50 = arith.constant dense<0.000000e+00> : vector<128x32xf32>
    %155 = tpu.matmul %154, %85, %cst_50 {dimension_numbers = #tpu.dot_dimension_numbers<[1], [0], [0], [1], [0, 0, 1, 1], [], []>} : vector<128x64xf32>, vector<64x32xf32>, vector<128x32xf32> -> vector<128x32xf32>
    %156 = vector.extract_strided_slice %86 {offsets = [2, 0], sizes = [1, 32], strides = [1, 1]} : vector<5x32xf32> to vector<1x32xf32>
    %157 = vector.broadcast %156 : vector<1x32xf32> to vector<128x32xf32>
    %158 = arith.addf %155, %157 : vector<128x32xf32>
    %159 = arith.addf %158, %149 : vector<128x32xf32>
    %160 = vector.extract_strided_slice %86 {offsets = [3, 0], sizes = [1, 32], strides = [1, 1]} : vector<5x32xf32> to vector<1x32xf32>
    %161 = vector.extract_strided_slice %86 {offsets = [4, 0], sizes = [1, 32], strides = [1, 1]} : vector<5x32xf32> to vector<1x32xf32>
    %cst_51 = arith.constant dense<0.000000e+00> : vector<128xf32>
    %162 = vector.multi_reduction <add>, %159, %cst_51 [1] : vector<128x32xf32> to vector<128xf32>
    %163 = vector.shape_cast %162 : vector<128xf32> to vector<128x1xf32>
    %cst_52 = arith.constant 3.200000e+01 : f32
    %164 = vector.broadcast %cst_52 : f32 to vector<128x1xf32>
    %165 = arith.divf %163, %164 : vector<128x1xf32>
    %166 = vector.broadcast %165 : vector<128x1xf32> to vector<128x32xf32>
    %167 = arith.subf %159, %166 : vector<128x32xf32>
    %168 = arith.mulf %167, %167 : vector<128x32xf32>
    %cst_53 = arith.constant dense<0.000000e+00> : vector<128xf32>
    %169 = vector.multi_reduction <add>, %168, %cst_53 [1] : vector<128x32xf32> to vector<128xf32>
    %170 = vector.shape_cast %169 : vector<128xf32> to vector<128x1xf32>
    %cst_54 = arith.constant 3.200000e+01 : f32
    %171 = vector.broadcast %cst_54 : f32 to vector<128x1xf32>
    %172 = arith.divf %170, %171 : vector<128x1xf32>
    %173 = vector.broadcast %165 : vector<128x1xf32> to vector<128x32xf32>
    %174 = arith.subf %159, %173 : vector<128x32xf32>
    %cst_55 = arith.constant 9.99999997E-7 : f32
    %175 = vector.broadcast %cst_55 : f32 to vector<128x1xf32>
    %176 = arith.addf %172, %175 : vector<128x1xf32>
    %177 = math.rsqrt %176 : vector<128x1xf32>
    %178 = vector.broadcast %177 : vector<128x1xf32> to vector<128x32xf32>
    %179 = arith.mulf %174, %178 : vector<128x32xf32>
    %180 = vector.broadcast %160 : vector<1x32xf32> to vector<128x32xf32>
    %181 = arith.mulf %179, %180 : vector<128x32xf32>
    %182 = vector.broadcast %161 : vector<1x32xf32> to vector<128x32xf32>
    %183 = arith.addf %181, %182 : vector<128x32xf32>
    %c0_56 = arith.constant 0 : index
    %c0_57 = arith.constant 0 : index
    %184 = vector.load %arg9[%c0_56, %c0_57] : memref<128x128xf32, #tpu.memory_space<vmem>>, vector<128x128xf32>
    %c0_58 = arith.constant 0 : index
    %c0_59 = arith.constant 0 : index
    %185 = vector.load %arg16[%c0_58, %c0_59] : memref<64x192xf32, #tpu.memory_space<vmem>>, vector<64x192xf32>
    %c0_60 = arith.constant 0 : index
    %c0_61 = arith.constant 0 : index
    %186 = vector.load %arg17[%c0_60, %c0_61] : memref<64x32xf32, #tpu.memory_space<vmem>>, vector<64x32xf32>
    %c0_62 = arith.constant 0 : index
    %c0_63 = arith.constant 0 : index
    %187 = vector.load %arg18[%c0_62, %c0_63] : memref<32x64xf32, #tpu.memory_space<vmem>>, vector<32x64xf32>
    %c0_64 = arith.constant 0 : index
    %c0_65 = arith.constant 0 : index
    %188 = vector.load %arg19[%c0_64, %c0_65] : memref<1x64xf32, #tpu.memory_space<vmem>>, vector<1x64xf32>
    %c0_66 = arith.constant 0 : index
    %c0_67 = arith.constant 0 : index
    %189 = vector.load %arg20[%c0_66, %c0_67] : memref<64x32xf32, #tpu.memory_space<vmem>>, vector<64x32xf32>
    %c0_68 = arith.constant 0 : index
    %c0_69 = arith.constant 0 : index
    %190 = vector.load %arg21[%c0_68, %c0_69] : memref<5x32xf32, #tpu.memory_space<vmem>>, vector<5x32xf32>
    %cst_70 = arith.constant dense<0.000000e+00> : vector<128x192xf32>
    %191 = tpu.matmul %79, %185, %cst_70 {dimension_numbers = #tpu.dot_dimension_numbers<[1], [0], [0], [1], [0, 0, 1, 1], [], []>} : vector<128x64xf32>, vector<64x192xf32>, vector<128x192xf32> -> vector<128x192xf32>
    %192 = vector.extract_strided_slice %191 {offsets = [0, 0], sizes = [128, 32], strides = [1, 1]} : vector<128x192xf32> to vector<128x32xf32>
    %193 = vector.extract_strided_slice %191 {offsets = [0, 64], sizes = [128, 32], strides = [1, 1]} : vector<128x192xf32> to vector<128x32xf32>
    %194 = vector.extract_strided_slice %191 {offsets = [0, 128], sizes = [128, 32], strides = [1, 1]} : vector<128x192xf32> to vector<128x32xf32>
    %cst_71 = arith.constant dense<0.000000e+00> : vector<128x128xf32>
    %195 = tpu.matmul %192, %193, %cst_71 {dimension_numbers = #tpu.dot_dimension_numbers<[1], [1], [0], [0], [0, 0, 1, 0], [], []>} : vector<128x32xf32>, vector<128x32xf32>, vector<128x128xf32> -> vector<128x128xf32>
    %196 = arith.addf %195, %184 : vector<128x128xf32>
    %cst_72 = arith.constant dense<0xFF800000> : vector<128xf32>
    %197 = vector.multi_reduction <maximumf>, %196, %cst_72 [1] : vector<128x128xf32> to vector<128xf32>
    %198 = vector.shape_cast %197 : vector<128xf32> to vector<128x1xf32>
    %199 = vector.broadcast %198 : vector<128x1xf32> to vector<128x128xf32>
    %200 = arith.subf %196, %199 : vector<128x128xf32>
    %201 = math.exp %200 : vector<128x128xf32>
    %cst_73 = arith.constant dense<0.000000e+00> : vector<128xf32>
    %202 = vector.multi_reduction <add>, %201, %cst_73 [1] : vector<128x128xf32> to vector<128xf32>
    %203 = vector.shape_cast %202 : vector<128xf32> to vector<128x1xf32>
    %204 = tpu.reciprocal %203 {approx = true} : vector<128x1xf32> -> vector<128x1xf32>
    %205 = vector.broadcast %204 : vector<128x1xf32> to vector<128x128xf32>
    %206 = arith.mulf %201, %205 : vector<128x128xf32>
    %cst_74 = arith.constant dense<0.000000e+00> : vector<128x32xf32>
    %207 = tpu.matmul %206, %194, %cst_74 {dimension_numbers = #tpu.dot_dimension_numbers<[1], [0], [0], [1], [0, 0, 1, 1], [], []>} : vector<128x128xf32>, vector<128x32xf32>, vector<128x32xf32> -> vector<128x32xf32>
    %208 = vector.extract_strided_slice %191 {offsets = [0, 32], sizes = [128, 32], strides = [1, 1]} : vector<128x192xf32> to vector<128x32xf32>
    %209 = vector.extract_strided_slice %191 {offsets = [0, 96], sizes = [128, 32], strides = [1, 1]} : vector<128x192xf32> to vector<128x32xf32>
    %210 = vector.extract_strided_slice %191 {offsets = [0, 160], sizes = [128, 32], strides = [1, 1]} : vector<128x192xf32> to vector<128x32xf32>
    %cst_75 = arith.constant dense<0.000000e+00> : vector<128x128xf32>
    %211 = tpu.matmul %208, %209, %cst_75 {dimension_numbers = #tpu.dot_dimension_numbers<[1], [1], [0], [0], [0, 0, 1, 0], [], []>} : vector<128x32xf32>, vector<128x32xf32>, vector<128x128xf32> -> vector<128x128xf32>
    %212 = arith.addf %211, %184 : vector<128x128xf32>
    %cst_76 = arith.constant dense<0xFF800000> : vector<128xf32>
    %213 = vector.multi_reduction <maximumf>, %212, %cst_76 [1] : vector<128x128xf32> to vector<128xf32>
    %214 = vector.shape_cast %213 : vector<128xf32> to vector<128x1xf32>
    %215 = vector.broadcast %214 : vector<128x1xf32> to vector<128x128xf32>
    %216 = arith.subf %212, %215 : vector<128x128xf32>
    %217 = math.exp %216 : vector<128x128xf32>
    %cst_77 = arith.constant dense<0.000000e+00> : vector<128xf32>
    %218 = vector.multi_reduction <add>, %217, %cst_77 [1] : vector<128x128xf32> to vector<128xf32>
    %219 = vector.shape_cast %218 : vector<128xf32> to vector<128x1xf32>
    %220 = tpu.reciprocal %219 {approx = true} : vector<128x1xf32> -> vector<128x1xf32>
    %221 = vector.broadcast %220 : vector<128x1xf32> to vector<128x128xf32>
    %222 = arith.mulf %217, %221 : vector<128x128xf32>
    %cst_78 = arith.constant dense<0.000000e+00> : vector<128x32xf32>
    %223 = tpu.matmul %222, %210, %cst_78 {dimension_numbers = #tpu.dot_dimension_numbers<[1], [0], [0], [1], [0, 0, 1, 1], [], []>} : vector<128x128xf32>, vector<128x32xf32>, vector<128x32xf32> -> vector<128x32xf32>
    %224 = tpu.concatenate %207, %223 in 1 : vector<128x32xf32>, vector<128x32xf32> -> vector<128x64xf32>
    %cst_79 = arith.constant dense<0.000000e+00> : vector<128x32xf32>
    %225 = tpu.matmul %224, %186, %cst_79 {dimension_numbers = #tpu.dot_dimension_numbers<[1], [0], [0], [1], [0, 0, 1, 1], [], []>} : vector<128x64xf32>, vector<64x32xf32>, vector<128x32xf32> -> vector<128x32xf32>
    %226 = vector.extract_strided_slice %79 {offsets = [0, 0], sizes = [128, 32], strides = [1, 1]} : vector<128x64xf32> to vector<128x32xf32>
    %227 = vector.extract_strided_slice %79 {offsets = [0, 32], sizes = [128, 32], strides = [1, 1]} : vector<128x64xf32> to vector<128x32xf32>
    %228 = arith.addf %226, %227 : vector<128x32xf32>
    %229 = arith.addf %225, %228 : vector<128x32xf32>
    %230 = vector.extract_strided_slice %190 {offsets = [0, 0], sizes = [1, 32], strides = [1, 1]} : vector<5x32xf32> to vector<1x32xf32>
    %231 = vector.extract_strided_slice %190 {offsets = [1, 0], sizes = [1, 32], strides = [1, 1]} : vector<5x32xf32> to vector<1x32xf32>
    %cst_80 = arith.constant dense<0.000000e+00> : vector<128xf32>
    %232 = vector.multi_reduction <add>, %229, %cst_80 [1] : vector<128x32xf32> to vector<128xf32>
    %233 = vector.shape_cast %232 : vector<128xf32> to vector<128x1xf32>
    %cst_81 = arith.constant 3.200000e+01 : f32
    %234 = vector.broadcast %cst_81 : f32 to vector<128x1xf32>
    %235 = arith.divf %233, %234 : vector<128x1xf32>
    %236 = vector.broadcast %235 : vector<128x1xf32> to vector<128x32xf32>
    %237 = arith.subf %229, %236 : vector<128x32xf32>
    %238 = arith.mulf %237, %237 : vector<128x32xf32>
    %cst_82 = arith.constant dense<0.000000e+00> : vector<128xf32>
    %239 = vector.multi_reduction <add>, %238, %cst_82 [1] : vector<128x32xf32> to vector<128xf32>
    %240 = vector.shape_cast %239 : vector<128xf32> to vector<128x1xf32>
    %cst_83 = arith.constant 3.200000e+01 : f32
    %241 = vector.broadcast %cst_83 : f32 to vector<128x1xf32>
    %242 = arith.divf %240, %241 : vector<128x1xf32>
    %243 = vector.broadcast %235 : vector<128x1xf32> to vector<128x32xf32>
    %244 = arith.subf %229, %243 : vector<128x32xf32>
    %cst_84 = arith.constant 9.99999997E-7 : f32
    %245 = vector.broadcast %cst_84 : f32 to vector<128x1xf32>
    %246 = arith.addf %242, %245 : vector<128x1xf32>
    %247 = math.rsqrt %246 : vector<128x1xf32>
    %248 = vector.broadcast %247 : vector<128x1xf32> to vector<128x32xf32>
    %249 = arith.mulf %244, %248 : vector<128x32xf32>
    %250 = vector.broadcast %230 : vector<1x32xf32> to vector<128x32xf32>
    %251 = arith.mulf %249, %250 : vector<128x32xf32>
    %252 = vector.broadcast %231 : vector<1x32xf32> to vector<128x32xf32>
    %253 = arith.addf %251, %252 : vector<128x32xf32>
    %cst_85 = arith.constant dense<0.000000e+00> : vector<128x64xf32>
    %254 = tpu.matmul %253, %187, %cst_85 {dimension_numbers = #tpu.dot_dimension_numbers<[1], [0], [0], [1], [0, 0, 1, 1], [], []>} : vector<128x32xf32>, vector<32x64xf32>, vector<128x64xf32> -> vector<128x64xf32>
    %255 = vector.broadcast %188 : vector<1x64xf32> to vector<128x64xf32>
    %256 = arith.addf %254, %255 : vector<128x64xf32>
    %cst_86 = arith.constant 0.000000e+00 : f32
    %257 = vector.broadcast %cst_86 : f32 to vector<128x64xf32>
    %258 = arith.maximumf %256, %257 : vector<128x64xf32>
    %cst_87 = arith.constant dense<0.000000e+00> : vector<128x32xf32>
    %259 = tpu.matmul %258, %189, %cst_87 {dimension_numbers = #tpu.dot_dimension_numbers<[1], [0], [0], [1], [0, 0, 1, 1], [], []>} : vector<128x64xf32>, vector<64x32xf32>, vector<128x32xf32> -> vector<128x32xf32>
    %260 = vector.extract_strided_slice %190 {offsets = [2, 0], sizes = [1, 32], strides = [1, 1]} : vector<5x32xf32> to vector<1x32xf32>
    %261 = vector.broadcast %260 : vector<1x32xf32> to vector<128x32xf32>
    %262 = arith.addf %259, %261 : vector<128x32xf32>
    %263 = arith.addf %262, %253 : vector<128x32xf32>
    %264 = vector.extract_strided_slice %190 {offsets = [3, 0], sizes = [1, 32], strides = [1, 1]} : vector<5x32xf32> to vector<1x32xf32>
    %265 = vector.extract_strided_slice %190 {offsets = [4, 0], sizes = [1, 32], strides = [1, 1]} : vector<5x32xf32> to vector<1x32xf32>
    %cst_88 = arith.constant dense<0.000000e+00> : vector<128xf32>
    %266 = vector.multi_reduction <add>, %263, %cst_88 [1] : vector<128x32xf32> to vector<128xf32>
    %267 = vector.shape_cast %266 : vector<128xf32> to vector<128x1xf32>
    %cst_89 = arith.constant 3.200000e+01 : f32
    %268 = vector.broadcast %cst_89 : f32 to vector<128x1xf32>
    %269 = arith.divf %267, %268 : vector<128x1xf32>
    %270 = vector.broadcast %269 : vector<128x1xf32> to vector<128x32xf32>
    %271 = arith.subf %263, %270 : vector<128x32xf32>
    %272 = arith.mulf %271, %271 : vector<128x32xf32>
    %cst_90 = arith.constant dense<0.000000e+00> : vector<128xf32>
    %273 = vector.multi_reduction <add>, %272, %cst_90 [1] : vector<128x32xf32> to vector<128xf32>
    %274 = vector.shape_cast %273 : vector<128xf32> to vector<128x1xf32>
    %cst_91 = arith.constant 3.200000e+01 : f32
    %275 = vector.broadcast %cst_91 : f32 to vector<128x1xf32>
    %276 = arith.divf %274, %275 : vector<128x1xf32>
    %277 = vector.broadcast %269 : vector<128x1xf32> to vector<128x32xf32>
    %278 = arith.subf %263, %277 : vector<128x32xf32>
    %cst_92 = arith.constant 9.99999997E-7 : f32
    %279 = vector.broadcast %cst_92 : f32 to vector<128x1xf32>
    %280 = arith.addf %276, %279 : vector<128x1xf32>
    %281 = math.rsqrt %280 : vector<128x1xf32>
    %282 = vector.broadcast %281 : vector<128x1xf32> to vector<128x32xf32>
    %283 = arith.mulf %278, %282 : vector<128x32xf32>
    %284 = vector.broadcast %264 : vector<1x32xf32> to vector<128x32xf32>
    %285 = arith.mulf %283, %284 : vector<128x32xf32>
    %286 = vector.broadcast %265 : vector<1x32xf32> to vector<128x32xf32>
    %287 = arith.addf %285, %286 : vector<128x32xf32>
    %288 = tpu.concatenate %183, %287 in 1 : vector<128x32xf32>, vector<128x32xf32> -> vector<128x64xf32>
    %289 = vector.extract_strided_slice %288 {offsets = [0, 0], sizes = [64, 64], strides = [1, 1]} : vector<128x64xf32> to vector<64x64xf32>
    %290 = vector.extract_strided_slice %288 {offsets = [64, 0], sizes = [64, 64], strides = [1, 1]} : vector<128x64xf32> to vector<64x64xf32>
    %291 = tpu.concatenate %289, %290 in 1 : vector<64x64xf32>, vector<64x64xf32> -> vector<64x128xf32>
    %c0_93 = arith.constant 0 : index
    %c0_94 = arith.constant 0 : index
    %c0_95 = arith.constant 0 : index
    %292 = vector.load %arg22[%c0_93, %c0_94, %c0_95] : memref<1x64x128xf32, #tpu.memory_space<vmem>>, vector<1x64x128xf32>
    %293 = vector.shape_cast %292 : vector<1x64x128xf32> to vector<64x128xf32>
    %294 = vector.shape_cast %291 : vector<64x128xf32> to vector<1x64x128xf32>
    tpu.vector_store %arg22[%c0_93, %c0_94, %c0_95], %294 {strides = array<i32>} : memref<1x64x128xf32, #tpu.memory_space<vmem>>, vector<1x64x128xf32>,
    return
  }
  func.func @transform_0(%arg0: i32) -> (i32, i32, i32) {
    %c0_i32 = arith.constant 0 : i32
    %c0_i32_0 = arith.constant 0 : i32
    %c0_i32_1 = arith.constant 0 : i32
    return %arg0, %c0_i32, %c0_i32_0 : i32, i32, i32
  }
  func.func @transform_1(%arg0: i32) -> (i32, i32) {
    %c0_i32 = arith.constant 0 : i32
    %c0_i32_0 = arith.constant 0 : i32
    %c0_i32_1 = arith.constant 0 : i32
    return %c0_i32, %c0_i32_0 : i32, i32
  }
  func.func @transform_2(%arg0: i32) -> (i32, i32) {
    %c0_i32 = arith.constant 0 : i32
    %c0_i32_0 = arith.constant 0 : i32
    %c0_i32_1 = arith.constant 0 : i32
    return %c0_i32, %c0_i32_0 : i32, i32
  }
  func.func @transform_3(%arg0: i32) -> (i32, i32) {
    %c0_i32 = arith.constant 0 : i32
    %c0_i32_0 = arith.constant 0 : i32
    %c0_i32_1 = arith.constant 0 : i32
    return %c0_i32, %c0_i32_0 : i32, i32
  }
  func.func @transform_4(%arg0: i32) -> (i32, i32) {
    %c0_i32 = arith.constant 0 : i32
    %c0_i32_0 = arith.constant 0 : i32
    %c0_i32_1 = arith.constant 0 : i32
    return %c0_i32, %c0_i32_0 : i32, i32
  }
  func.func @transform_5(%arg0: i32) -> (i32, i32) {
    %c0_i32 = arith.constant 0 : i32
    %c0_i32_0 = arith.constant 0 : i32
    %c0_i32_1 = arith.constant 0 : i32
    return %c0_i32, %c0_i32_0 : i32, i32
  }
  func.func @transform_6(%arg0: i32) -> (i32, i32) {
    %c0_i32 = arith.constant 0 : i32
    %c0_i32_0 = arith.constant 0 : i32
    %c0_i32_1 = arith.constant 0 : i32
    return %c0_i32, %c0_i32_0 : i32, i32
  }
  func.func @transform_7(%arg0: i32) -> (i32, i32) {
    %c0_i32 = arith.constant 0 : i32
    %c0_i32_0 = arith.constant 0 : i32
    %c0_i32_1 = arith.constant 0 : i32
    return %c0_i32, %c0_i32_0 : i32, i32
  }
  func.func @transform_8(%arg0: i32) -> (i32, i32) {
    %c0_i32 = arith.constant 0 : i32
    %c0_i32_0 = arith.constant 0 : i32
    %c0_i32_1 = arith.constant 0 : i32
    return %c0_i32, %c0_i32_0 : i32, i32
  }
  func.func @transform_9(%arg0: i32) -> (i32, i32) {
    %c0_i32 = arith.constant 0 : i32
    %c0_i32_0 = arith.constant 0 : i32
    %c0_i32_1 = arith.constant 0 : i32
    return %c0_i32, %c0_i32_0 : i32, i32
  }
  func.func @transform_10(%arg0: i32) -> (i32, i32) {
    %c0_i32 = arith.constant 0 : i32
    %c0_i32_0 = arith.constant 0 : i32
    %c0_i32_1 = arith.constant 0 : i32
    return %c0_i32, %c0_i32_0 : i32, i32
  }
  func.func @transform_11(%arg0: i32) -> (i32, i32) {
    %c0_i32 = arith.constant 0 : i32
    %c0_i32_0 = arith.constant 0 : i32
    %c0_i32_1 = arith.constant 0 : i32
    return %c0_i32, %c0_i32_0 : i32, i32
  }
  func.func @transform_12(%arg0: i32) -> (i32, i32) {
    %c0_i32 = arith.constant 0 : i32
    %c0_i32_0 = arith.constant 0 : i32
    %c0_i32_1 = arith.constant 0 : i32
    return %c0_i32, %c0_i32_0 : i32, i32
  }
  func.func @transform_13(%arg0: i32) -> (i32, i32) {
    %c0_i32 = arith.constant 0 : i32
    %c0_i32_0 = arith.constant 0 : i32
    %c0_i32_1 = arith.constant 0 : i32
    return %c0_i32, %c0_i32_0 : i32, i32
  }
  func.func @transform_14(%arg0: i32) -> (i32, i32) {
    %c0_i32 = arith.constant 0 : i32
    %c0_i32_0 = arith.constant 0 : i32
    %c0_i32_1 = arith.constant 0 : i32
    return %c0_i32, %c0_i32_0 : i32, i32
  }
  func.func @transform_15(%arg0: i32) -> (i32, i32) {
    %c0_i32 = arith.constant 0 : i32
    %c0_i32_0 = arith.constant 0 : i32
    %c0_i32_1 = arith.constant 0 : i32
    return %c0_i32, %c0_i32_0 : i32, i32
  }
  func.func @transform_16(%arg0: i32) -> (i32, i32) {
    %c0_i32 = arith.constant 0 : i32
    %c0_i32_0 = arith.constant 0 : i32
    %c0_i32_1 = arith.constant 0 : i32
    return %c0_i32, %c0_i32_0 : i32, i32
  }
  func.func @transform_17(%arg0: i32) -> (i32, i32) {
    %c0_i32 = arith.constant 0 : i32
    %c0_i32_0 = arith.constant 0 : i32
    %c0_i32_1 = arith.constant 0 : i32
    return %c0_i32, %c0_i32_0 : i32, i32
  }
  func.func @transform_18(%arg0: i32) -> (i32, i32) {
    %c0_i32 = arith.constant 0 : i32
    %c0_i32_0 = arith.constant 0 : i32
    %c0_i32_1 = arith.constant 0 : i32
    return %c0_i32, %c0_i32_0 : i32, i32
  }
  func.func @transform_19(%arg0: i32) -> (i32, i32) {
    %c0_i32 = arith.constant 0 : i32
    %c0_i32_0 = arith.constant 0 : i32
    %c0_i32_1 = arith.constant 0 : i32
    return %c0_i32, %c0_i32_0 : i32, i32
  }
  func.func @transform_20(%arg0: i32) -> (i32, i32) {
    %c0_i32 = arith.constant 0 : i32
    %c0_i32_0 = arith.constant 0 : i32
    %c0_i32_1 = arith.constant 0 : i32
    return %c0_i32, %c0_i32_0 : i32, i32
  }
  func.func @transform_21(%arg0: i32) -> (i32, i32, i32) {
    %c0_i32 = arith.constant 0 : i32
    %c0_i32_0 = arith.constant 0 : i32
    %c0_i32_1 = arith.constant 0 : i32
    return %arg0, %c0_i32, %c0_i32_0 : i32, i32, i32
  }
}

</mosaic_0001>

<bundles_post_ra>
// kernel: tpu_custom_call.1
= control target key start
LH: loop header
LB: loop body
LE: loop exit
PB: predicated region body
PF: predicated region fallthrough
CT: control target
= control target key end

     0   :  { %s14486_s0 = inlined_call_operand.vmem [shape: f32[1,128,8], index: 0, kind: input, shape index: {}]   ;;  %s14487_s1 = inlined_call_operand.vmem [shape: f32[5,32], index: 1, kind: input, shape index: {}]   ;;  %s14488_s2 = inlined_call_operand.hbm [shape: f32[4,32], index: 2, kind: input, shape index: {}]   ;;  %s14489_s3 = inlined_call_operand.hbm [shape: f32[20,64], index: 3, kind: input, shape index: {}]   ;;  %s14490_s4 = inlined_call_operand.vmem [shape: f32[128,64], index: 4, kind: input, shape index: {}]   ;;  %s14491_s5 = inlined_call_operand.vmem [shape: f32[128,64], index: 5, kind: input, shape index: {}]   ;;  %s14492_s6 = inlined_call_operand.vmem [shape: f32[128,128], index: 6, kind: input, shape index: {}]   ;;  %s14493_s7 = inlined_call_operand.vmem [shape: f32[128,128], index: 7, kind: input, shape index: {}]   ;;  %s14494_s8 = inlined_call_operand.vmem [shape: f32[128,128], index: 8, kind: input, shape index: {}]   ;;  %s14495_s9 = inlined_call_operand.vmem [shape: f32[64,192], index: 9, kind: input, shape index: {}]   ;;  %s14496_s10 = inlined_call_operand.vmem [shape: f32[64,32], index: 10, kind: input, shape index: {}]   ;;  %s14497_s11 = inlined_call_operand.vmem [shape: f32[32,64], index: 11, kind: input, shape index: {}]   ;;  %s14498_s12 = inlined_call_operand.vmem [shape: f32[1,64], index: 12, kind: input, shape index: {}]   ;;  %s14499_s13 = inlined_call_operand.vmem [shape: f32[64,32], index: 13, kind: input, shape index: {}]   ;;  %s14500_s14 = inlined_call_operand.vmem [shape: f32[5,32], index: 14, kind: input, shape index: {}]   ;;  %s14501_s15 = inlined_call_operand.vmem [shape: f32[64,192], index: 15, kind: input, shape index: {}]   ;;  %s14502_s16 = inlined_call_operand.vmem [shape: f32[64,32], index: 16, kind: input, shape index: {}]   ;;  %s14503_s17 = inlined_call_operand.hbm [shape: f32[32,64], index: 17, kind: input, shape index: {}]   ;;  %s14504_s18 = inlined_call_operand.vmem [shape: f32[1,64], index: 18, kind: input, shape index: {}]   ;;  %s14505_s19 = inlined_call_operand.vmem [shape: f32[64,32], index: 19, kind: input, shape index: {}]   ;;  %s14506_s20 = inlined_call_operand.vmem [shape: f32[5,32], index: 20, kind: input, shape index: {}]   ;;  %s14507_s21 = inlined_call_operand.hbm [shape: f32[1,64,128], index: 21, kind: output, shape index: {}]  }
   0x1   :  { %14597 = sst [smem:[#allocation57_spill]] %s14486_s0 }
   0x2   :  { %14598 = sst [smem:[#allocation58_spill]] %s14487_s1 }
   0x3   :  { %14599 = sst [smem:[#allocation59_spill]] %s14488_s2 }
   0x4   :  { %14600 = sst [smem:[#allocation60_spill]] %s14489_s3 }
   0x5   :  { %14601 = sst [smem:[#allocation61_spill]] %s14490_s4 }
   0x6   :  { %14602 = sst [smem:[#allocation62_spill]] %s14491_s5 }
   0x7   :  { %14603 = sst [smem:[#allocation63_spill]] %s14504_s18 }
   0x8   :  { %14604 = sst [smem:[#allocation64_spill]] %s14506_s20 }
   0x9   :  { %14605 = sst [smem:[#allocation65_spill]] %s14507_s21 }
   0xa   :  { %26 = vsyncpa [#allocation3], 0 }
   0xb   :  { %27 = vsyncpa [#allocation6], 0 }
   0xc   :  { %28 = vsyncpa [#allocation4], 0  ;;  %s9911_s2 = smov [#allocation5]   ;;  %s14606_s3 = sld [smem:[#allocation60_spill]] }
   0xd   :  { %s48_s25 = sshll.u32 %s9911_s2, 4  ;;  %s49_s25 = int_to_ptr.vmem [resolvable:$true] %s48_s25 }
  0x12   :  { %s9817_s28 = scalar_lea.hbm %s14606_s3, 384 }
  0x13   :  { %p9818_p0 = scmp.ne.s32.totalorder %s14606_s3, %s9817_s28  ;;  %p9821_p1 = scmp.lt.u32.totalorder %s9817_s28, %s14606_s3 }
  0x15   :  { %p9823_p2 = pnand %p9821_p1, %p9818_p0 }
  0x17   :  { %9826 = shalt.err (!%p9823_p2)
}
  0x18   :  { %s9827_s5 = scalar_lea.vmem %s49_s25, 384  ;;  %p9832_p4 = scmp.lt.s32.totalorder %s49_s25, %s49_s25 }
  0x19   :  { %p9828_p3 = scmp.ne.s32.totalorder %s49_s25, %s9827_s5  ;;  %p9833_p5 = scmp.lt.s32.totalorder %s9827_s5, %s9827_s5 }
  0x1b   :  { %p9834_p6 = por %p9833_p5, %p9832_p4 }
  0x1d   :  { %p9835_p7 = pnand %p9834_p6, %p9828_p3 }
  0x1f   :  { %9838 = shalt.err (!%p9835_p7)
}
  0x20   :  { %s9912_s22 = smov 128   ;;  %s9913_s23 = smov 8  }
  0x21   :  { %54 = dma.hbm_to_vmem [thread:$0]  %s14606_s3, 384, %s49_s25, [#allocation6], %s9912_s22, %s9912_s22, %s9913_s23  }
  0x22   :  { %s9914_s2 = smov [#allocation2]   ;;  %s9915_s27 = smov [#allocation7]  }
  0x23   :  { %s39_s26 = sshll.u32 %s9914_s2, 4  ;;  %s86_s28 = sshll.u32 %s9915_s27, 4  ;;  %s40_s26 = int_to_ptr.vmem [resolvable:$true] %s39_s26  ;;  %s87_s28 = int_to_ptr.vmem [resolvable:$true] %s86_s28 }
  0x24   :  { %s14607_s4 = sld [smem:[#allocation59_spill]] }
  0x2a   :  { %s9839_s30 = scalar_lea.hbm %s14607_s4, 64 }
  0x2b   :  { %p9840_p8 = scmp.ne.s32.totalorder %s14607_s4, %s9839_s30  ;;  %p9843_p9 = scmp.lt.u32.totalorder %s9839_s30, %s14607_s4 }
  0x2d   :  { %p9845_p10 = pnand %p9843_p9, %p9840_p8 }
  0x2f   :  { %9848 = shalt.err (!%p9845_p10)
}
  0x30   :  { %s9849_s25 = scalar_lea.vmem %s40_s26, 64  ;;  %p9854_p12 = scmp.lt.s32.totalorder %s40_s26, %s40_s26 }
  0x31   :  { %p9850_p11 = scmp.ne.s32.totalorder %s40_s26, %s9849_s25  ;;  %p9855_p13 = scmp.lt.s32.totalorder %s9849_s25, %s9849_s25 }
  0x33   :  { %p9856_p0 = por %p9855_p13, %p9854_p12 }
  0x35   :  { %p9857_p1 = pnand %p9856_p0, %p9850_p11 }
  0x37   :  { %9860 = shalt.err (!%p9857_p1)
}
  0x38   :  { %42 = dma.hbm_to_vmem [thread:$0]  %s14607_s4, 64, %s40_s26, [#allocation3]  }
  0x39   :  { %s9861_s2 = scalar_lea.hbm %s14503_s17, 512 }
  0x3a   :  { %p9862_p2 = scmp.ne.s32.totalorder %s14503_s17, %s9861_s2  ;;  %p9865_p3 = scmp.lt.u32.totalorder %s9861_s2, %s14503_s17 }
  0x3c   :  { %p9867_p4 = pnand %p9865_p3, %p9862_p2 }
  0x3e   :  { %9870 = shalt.err (!%p9867_p4)
}
  0x3f   :  { %s9871_s0 = scalar_lea.vmem %s87_s28, 512  ;;  %p9876_p6 = scmp.lt.s32.totalorder %s87_s28, %s87_s28 }
  0x40   :  { %p9872_p5 = scmp.ne.s32.totalorder %s87_s28, %s9871_s0  ;;  %p9877_p7 = scmp.lt.s32.totalorder %s9871_s0, %s9871_s0 }
  0x42   :  { %p9878_p8 = por %p9877_p7, %p9876_p6 }
  0x44   :  { %p9879_p9 = pnand %p9878_p8, %p9872_p5 }
  0x46   :  { %9882 = shalt.err (!%p9879_p9)
}
  0x47   :  { %92 = dma.hbm_to_vmem [thread:$0]  %s14503_s17, 512, %s87_s28, [#allocation6], %s9912_s22, %s9912_s22, %s9913_s23  }
  0x48   :  { %9905 = dma.done.wait [#allocation3], 64  }
  0x49   :  { %9906 = vsyncadd [#allocation3], 4294967232 }
  0x4a   :  { %9907 = dma.done.wait [#allocation6], 896  }
  0x4b   :  { %9908 = vsyncadd [#allocation6], 4294966400  ;;  %v9916_v0 = vmov 5   ;;  %s14608_s25 = sld [smem:[#allocation57_spill]]  ;;  %v14517_v15 = vmov 6   ;;  %v932_v19 = vld [vmem:[#allocation5] sm:$0xff] }
  0x4c   :  { %9134 = vset.pattern.permute.xlu1 %v9916_v0  ;;  %9132 = vset.pattern.permute.xlu0 %v9916_v0  ;;  %v933_v20 = vld [vmem:[#allocation5 + $0x8] sm:$0xff]  ;;  %v934_v26 = vld [vmem:[#allocation5 + $0x10] sm:$0xf]  ;;  %vm984_vm0 = vcmask 1043456   ;;  %vm935_vm6 = vcmask 162816   ;;  %s9924_s30 = smov 96  }
  0x4d   :  { %v8599_v22 = vpack.c.bf16 %v933_v20, %v932_v19  ;;  %s14639_s29 = sld [smem:[#allocation58_spill]]  ;;  %s14685_s21 = sld [smem:[#allocation61_spill]] }
  0x4e   :  { %s14747_s4 = sld [smem:[#allocation62_spill]]  ;;  %s14805_s28 = sld [smem:[#allocation64_spill]] }
  0x4f   :  { %8600 = vmatprep.subr.bf16.mxu0 %v8599_v22  ;;  %s14808_s20 = sld [smem:[#allocation63_spill]] }
  0x50   :  { %8602 = vmatpush3.bf16.msra.mxu0 %v8599_v22  ;;  %v14521_v22 = vmov 1  }
  0x51   :  { %v10083_v1 = vld [vmem:[%s14608_s25 + $0x8] sm:$0xff]  ;;  %v10088_v2 = vld [vmem:[%s14608_s25] sm:$0xff]  ;;  %v10093_v3 = vld [vmem:[%s14608_s25 + $0x10] sm:$0xff]  ;;  %7845 = vmatprep.subr.msk.mxu0 %vm984_vm0, %v934_v26 }
  0x52   :  { %v9085_v4 = vtrunc.f32 %v10083_v1  ;;  %v9083_v5 = vtrunc.f32 %v10088_v2  ;;  %v9087_v6 = vtrunc.f32 %v10093_v3  ;;  %v10101_v9 = vld [vmem:[%s14608_s25 + $0x18] sm:$0xff]  ;;  %v10107_v14 = vld [vmem:[%s14608_s25 + $0x20] sm:$0xff]  ;;  %v10115_v21 = vld [vmem:[%s14608_s25 + $0x28] sm:$0xff] }
  0x53   :  { %v9089_v13 = vtrunc.f32 %v10101_v9  ;;  %v9091_v18 = vtrunc.f32 %v10107_v14  ;;  %v9093_v25 = vtrunc.f32 %v10115_v21  ;;  %v10121_v27 = vld [vmem:[%s14608_s25 + $0x30] sm:$0xff]  ;;  %v10127_v31 = vld [vmem:[%s14608_s25 + $0x38] sm:$0xff]  ;;  %v10133_v35 = vld [vmem:[%s14608_s25 + $0x40] sm:$0xff] }
  0x54   :  { %v9086_v7 = vcvt.f32.s32 %v9085_v4  ;;  %v9084_v8 = vcvt.f32.s32 %v9083_v5  ;;  %v9088_v12 = vcvt.f32.s32 %v9087_v6  ;;  %v9095_v30 = vtrunc.f32 %v10121_v27  ;;  %7846 = vmatpush3.msk.msra.mxu0 %vm984_vm0, %v934_v26  ;;  %v10139_v39 = vld [vmem:[%s14608_s25 + $0x48] sm:$0xff]  ;;  %v10145_v43 = vld [vmem:[%s14608_s25 + $0x50] sm:$0xff]  ;;  %v10151_v47 = vld [vmem:[%s14608_s25 + $0x58] sm:$0xff] }
  0x55   :  { %v9090_v17 = vcvt.f32.s32 %v9089_v13  ;;  %v9092_v24 = vcvt.f32.s32 %v9091_v18  ;;  %v9094_v29 = vcvt.f32.s32 %v9093_v25  ;;  %v9097_v34 = vtrunc.f32 %v10127_v31  ;;  %v10157_v51 = vld [vmem:[%s14608_s25 + $0x60] sm:$0xff]  ;;  %v10163_v55 = vld [vmem:[%s14608_s25 + $0x68] sm:$0xff]  ;;  %v10169_v59 = vld [vmem:[%s14608_s25 + $0x70] sm:$0xff] }
  0x56   :  { %760 = vperm.xlu1 %9134, %v9086_v7   ;;  %757 = vperm.xlu0 %9132, %v9084_v8   ;;  %v739_v10 = vadd.s32 12, %v9086_v7  ;;  %v738_v11 = vadd.s32 12, %v9084_v8  ;;  %v740_v16 = vadd.s32 12, %v9088_v12  ;;  %v9096_v33 = vcvt.f32.s32 %v9095_v30  ;;  %v10175_v63 = vld [vmem:[%s14608_s25 + $0x78] sm:$0xff] }
  0x57   :  { %v741_v23 = vadd.s32 12, %v9090_v17  ;;  %v742_v28 = vadd.s32 12, %v9092_v24  ;;  %v743_v32 = vadd.s32 12, %v9094_v29  ;;  %v9098_v37 = vcvt.f32.s32 %v9097_v34 }
  0x58   :  { %v744_v36 = vadd.s32 12, %v9096_v33  ;;  %v9099_v38 = vtrunc.f32 %v10133_v35  ;;  %v9101_v42 = vtrunc.f32 %v10139_v39  ;;  %v9103_v46 = vtrunc.f32 %v10145_v43 }
  0x59   :  { %v745_v40 = vadd.s32 12, %v9098_v37  ;;  %v9105_v50 = vtrunc.f32 %v10151_v47  ;;  %v9107_v54 = vtrunc.f32 %v10157_v51  ;;  %v9109_v58 = vtrunc.f32 %v10163_v55 }
  0x5a   :  { %9135 = vset.pattern.permute.xlu1 %v14517_v15  ;;  %9133 = vset.pattern.permute.xlu0 %v14517_v15  ;;  %v9100_v41 = vcvt.f32.s32 %v9099_v38  ;;  %v9102_v45 = vcvt.f32.s32 %v9101_v42  ;;  %v9104_v49 = vcvt.f32.s32 %v9103_v46  ;;  %v9111_v62 = vtrunc.f32 %v10169_v59 }
  0x5b   :  { %824 = vperm.xlu1 %9135, %v739_v10   ;;  %821 = vperm.xlu0 %9133, %v738_v11   ;;  %v9106_v53 = vcvt.f32.s32 %v9105_v50  ;;  %v9108_v57 = vcvt.f32.s32 %v9107_v54  ;;  %v9110_v61 = vcvt.f32.s32 %v9109_v58  ;;  %v9113_v5 = vtrunc.f32 %v10175_v63 }
  0x5c   :  { %v746_v44 = vadd.s32 12, %v9100_v41  ;;  %v747_v48 = vadd.s32 12, %v9102_v45  ;;  %v748_v52 = vadd.s32 12, %v9104_v49  ;;  %v9112_v4 = vcvt.f32.s32 %v9111_v62 }
  0x5d   :  { %v749_v56 = vadd.s32 12, %v9106_v53  ;;  %v750_v60 = vadd.s32 12, %v9108_v57  ;;  %v9114_v7 = vcvt.f32.s32 %v9113_v5  ;;  %v9918_v10 = vmov 3  }
  0x5e   :  { %v752_v6 = vadd.s32 12, %v9112_v4  ;;  %v9919_v11 = vmov 2   ;;  %v14520_v13 = vlaneseq }
  0x5f   :  { %9136 = vset.pattern.permute.xlu1 %v9916_v0  ;;  %827 = vperm.xlu0 %9133, %v740_v16   ;;  %v751_v0 = vadd.s32 12, %v9110_v61  ;;  %v753_v8 = vadd.s32 12, %v9114_v7 }
  0x60   :  { %763 = vperm.xlu1 %9136, %v9088_v12   ;;  %v9920_v12 = vmov 4   ;;  %v10224_v18 = vand.u32 127, %v14520_v13 }
  0x63   :  { %830 = vperm.xlu0 %9133, %v741_v23   ;;  %v14515_v23 = vmov 0.0  }
  0x64   :  { %766 = vperm.xlu1 %9136, %v9090_v17  }
  0x67   :  { %833 = vperm.xlu0 %9133, %v742_v28  }
  0x68   :  { %769 = vperm.xlu1 %9136, %v9092_v24  }
  0x6b   :  { %836 = vperm.xlu0 %9133, %v743_v32  }
  0x6c   :  { %772 = vperm.xlu1 %9136, %v9094_v29  }
  0x6f   :  { %839 = vperm.xlu0 %9133, %v744_v36  }
  0x70   :  { %775 = vperm.xlu1 %9136, %v9096_v33  }
  0x73   :  { %842 = vperm.xlu0 %9133, %v745_v40  }
  0x74   :  { %778 = vperm.xlu1 %9136, %v9098_v37  }
  0x77   :  { %845 = vperm.xlu0 %9133, %v746_v44  }
  0x78   :  { %781 = vperm.xlu1 %9136, %v9100_v41  }
  0x7b   :  { %848 = vperm.xlu0 %9133, %v747_v48  }
  0x7c   :  { %784 = vperm.xlu1 %9136, %v9102_v45  }
  0x7f   :  { %851 = vperm.xlu0 %9133, %v748_v52  }
  0x80   :  { %787 = vperm.xlu1 %9136, %v9104_v49  }
  0x83   :  { %854 = vperm.xlu0 %9133, %v749_v56  }
  0x84   :  { %790 = vperm.xlu1 %9136, %v9106_v53  }
  0x87   :  { %857 = vperm.xlu0 %9133, %v750_v60  }
  0x88   :  { %793 = vperm.xlu1 %9136, %v9108_v57  }
  0x8b   :  { %860 = vperm.xlu0 %9133, %v751_v0  }
  0x8c   :  { %796 = vperm.xlu1 %9136, %v9110_v61  }
  0x8f   :  { %863 = vperm.xlu0 %9133, %v752_v6  }
  0x90   :  { %799 = vperm.xlu1 %9136, %v9112_v4  }
  0x93   :  { %866 = vperm.xlu0 %9133, %v753_v8  }
  0x94   :  { %802 = vperm.xlu1 %9136, %v9114_v7  }
  0x97   :  { %9138 = vset.pattern.permute.xlu0 %v9918_v10 }
  0x98   :  { %9137 = vset.pattern.permute.xlu1 %v9919_v11  ;;  %483 = vperm.xlu0 %9138, %v10088_v2  }
  0x99   :  { %363 = vperm.xlu1 %9137, %v10088_v2  }
  0x9c   :  { %487 = vperm.xlu0 %9138, %v10083_v1  }
  0x9d   :  { %9139 = vset.pattern.permute.xlu1 %v9920_v12 }
  0x9e   :  { %603 = vperm.xlu1 %9139, %v10088_v2  }
  0xa0   :  { %9145 = vset.pattern.permute.xlu0 %v9920_v12 }
  0xa1   :  { %615 = vperm.xlu0 %9145, %v10101_v9  }
  0xa2   :  { %9140 = vset.pattern.permute.xlu1 %v9919_v11 }
  0xa3   :  { %367 = vperm.xlu1 %9140, %v10083_v1  }
  0xa5   :  { %623 = vperm.xlu0 %9145, %v10115_v21  }
  0xa7   :  { %9141 = vset.pattern.permute.xlu1 %v9920_v12 }
  0xa8   :  { %607 = vperm.xlu1 %9141, %v10083_v1  }
  0xa9   :  { %631 = vperm.xlu0 %9145, %v10127_v31  }
  0xac   :  { %9142 = vset.pattern.permute.xlu1 %v9918_v10 }
  0xad   :  { %491 = vperm.xlu1 %9142, %v10093_v3   ;;  %639 = vperm.xlu0 %9145, %v10139_v39  }
  0xb1   :  { %9143 = vset.pattern.permute.xlu1 %v9920_v12  ;;  %647 = vperm.xlu0 %9145, %v10151_v47  }
  0xb2   :  { %611 = vperm.xlu1 %9143, %v10093_v3  }
  0xb5   :  { %655 = vperm.xlu0 %9145, %v10163_v55  }
  0xb6   :  { %9144 = vset.pattern.permute.xlu1 %v9918_v10 }
  0xb7   :  { %495 = vperm.xlu1 %9144, %v10101_v9  }
  0xb9   :  { %9166 = vset.pattern.permute.xlu0 %v9919_v11 }
  0xba   :  { %371 = vperm.xlu0 %9166, %v10093_v3  }
  0xbb   :  { %9146 = vset.pattern.permute.xlu1 %v9919_v11 }
  0xbc   :  { %379 = vperm.xlu1 %9146, %v10107_v14  }
  0xbe   :  { %375 = vperm.xlu0 %9166, %v10101_v9  }
  0xc0   :  { %9147 = vset.pattern.permute.xlu1 %v9918_v10 }
  0xc1   :  { %499 = vperm.xlu1 %9147, %v10107_v14  }
  0xc2   :  { %383 = vperm.xlu0 %9166, %v10115_v21  }
  0xc5   :  { %9148 = vset.pattern.permute.xlu1 %v9920_v12 }
  0xc6   :  { %619 = vperm.xlu1 %9148, %v10107_v14   ;;  %391 = vperm.xlu0 %9166, %v10127_v31  }
  0xca   :  { %9149 = vset.pattern.permute.xlu1 %v9918_v10  ;;  %399 = vperm.xlu0 %9166, %v10139_v39  }
  0xcb   :  { %503 = vperm.xlu1 %9149, %v10115_v21  }
  0xce   :  { %407 = vperm.xlu0 %9166, %v10151_v47  }
  0xcf   :  { %9150 = vset.pattern.permute.xlu1 %v9919_v11 }
  0xd0   :  { %387 = vperm.xlu1 %9150, %v10121_v27  }
  0xd2   :  { %415 = vperm.xlu0 %9166, %v10163_v55  }
  0xd4   :  { %9151 = vset.pattern.permute.xlu1 %v9918_v10 }
  0xd5   :  { %v761_v16 = vpop.permute.xlu1 %760  ;;  %v758_v17 = vpop.permute.xlu0 %757  ;;  %507 = vperm.xlu1 %9151, %v10121_v27  }
  0xd6   :  { %423 = vperm.xlu0 %9166, %v10175_v63   ;;  %vm805_vm1 = vcmp.eq.s32.totalorder %v10224_v18, %v761_v16  ;;  %vm804_vm4 = vcmp.eq.s32.totalorder %v10224_v18, %v758_v17 }
  0xd9   :  { %9152 = vset.pattern.permute.xlu1 %v9920_v12 }
  0xda   :  { %v825_v19 = vpop.permute.xlu1 %824  ;;  %v822_v20 = vpop.permute.xlu0 %821  ;;  %627 = vperm.xlu1 %9152, %v10121_v27   ;;  %9174 = vset.pattern.permute.xlu0 %v14521_v22 }
  0xdb   :  { %vm869_vm2 = vcmp.eq.s32.totalorder %v10224_v18, %v825_v19  ;;  %vm868_vm3 = vcmp.eq.s32.totalorder %v10224_v18, %v822_v20  ;;  %231 = vperm.xlu0 %9174, %v10083_v1  }
  0xdc   :  { %vm885_vm5 = vmor %vm805_vm1, %vm869_vm2 }
  0xdd   :  { %vm884_vm7 = vmor %vm804_vm4, %vm868_vm3  ;;  %v7108_v24 = vsel %vm885_vm5, 1.0, %v14515_v23 }
  0xde   :  { %v7107_v25 = vsel %vm884_vm7, 1.0, %v14515_v23  ;;  %v828_v26 = vpop.permute.xlu0 %827  ;;  %9153 = vset.pattern.permute.xlu1 %v9918_v10 }
  0xdf   :  { %7847 = vmatprep.mubr.msk.f32.mxu0 %vm935_vm6, %v7107_v25  ;;  %vm870_vm8 = vcmp.eq.s32.totalorder %v10224_v18, %v828_v26  ;;  %v764_v28 = vpop.permute.xlu1 %763  ;;  %511 = vperm.xlu1 %9153, %v10127_v31  }
  0xe0   :  { %vm806_vm9 = vcmp.eq.s32.totalorder %v10224_v18, %v764_v28  ;;  %7848 = vmatmul.mubr.msk.f32.vlgmr.msra.gmra.mrb[0].mxu0 %vm935_vm6, %v7108_v24  ;;  %235 = vperm.xlu0 %9174, %v10093_v3  }
  0xe1   :  { %vm886_vm10 = vmor %vm806_vm9, %vm870_vm8 }
  0xe2   :  { %v831_v29 = vpop.permute.xlu0 %830  ;;  %v7109_v30 = vsel %vm886_vm10, 1.0, %v14515_v23 }
  0xe3   :  { %vm871_vm11 = vcmp.eq.s32.totalorder %v10224_v18, %v831_v29  ;;  %v767_v32 = vpop.permute.xlu1 %766  ;;  %7850 = vmatprep.mubr.msk.f32.mxu0 %vm935_vm6, %v7109_v30  ;;  %9154 = vset.pattern.permute.xlu1 %v9919_v11 }
  0xe4   :  { %vm807_vm12 = vcmp.eq.s32.totalorder %v10224_v18, %v767_v32  ;;  %395 = vperm.xlu1 %9154, %v10133_v35  }
  0xe5   :  { %vm887_vm13 = vmor %vm807_vm12, %vm871_vm11 }
  0xe6   :  { %v834_v33 = vpop.permute.xlu0 %833  ;;  %v7110_v34 = vsel %vm887_vm13, 1.0, %v14515_v23 }
  0xe7   :  { %vm872_vm14 = vcmp.eq.s32.totalorder %v10224_v18, %v834_v33  ;;  %v770_v36 = vpop.permute.xlu1 %769  ;;  %7851 = vmatmul.mubr.msk.f32.gmra.mrb[2].mxu0 %vm935_vm6, %v7110_v34 }
  0xe8   :  { %vm808_vm15 = vcmp.eq.s32.totalorder %v10224_v18, %v770_v36  ;;  %9155 = vset.pattern.permute.xlu1 %v9918_v10 }
  0xe9   :  { %vm888_vm0 = vmor %vm808_vm15, %vm872_vm14  ;;  %515 = vperm.xlu1 %9155, %v10133_v35  }
  0xea   :  { %v837_v37 = vpop.permute.xlu0 %836  ;;  %v7111_v38 = vsel %vm888_vm0, 1.0, %v14515_v23 }
  0xeb   :  { %vm873_vm1 = vcmp.eq.s32.totalorder %v10224_v18, %v837_v37  ;;  %v773_v40 = vpop.permute.xlu1 %772  ;;  %7853 = vmatprep.mubr.msk.f32.mxu0 %vm935_vm6, %v7111_v38 }
  0xec   :  { %vm809_vm2 = vcmp.eq.s32.totalorder %v10224_v18, %v773_v40 }
  0xed   :  { %vm889_vm3 = vmor %vm809_vm2, %vm873_vm1  ;;  %9156 = vset.pattern.permute.xlu1 %v9920_v12 }
  0xee   :  { %v840_v41 = vpop.permute.xlu0 %839  ;;  %v7112_v42 = vsel %vm889_vm3, 1.0, %v14515_v23  ;;  %635 = vperm.xlu1 %9156, %v10133_v35  }
  0xef   :  { %vm874_vm4 = vcmp.eq.s32.totalorder %v10224_v18, %v840_v41  ;;  %v776_v44 = vpop.permute.xlu1 %775  ;;  %7854 = vmatmul.mubr.msk.f32.gmra.mrb[4].mxu0 %vm935_vm6, %v7112_v42 }
  0xf0   :  { %vm810_vm5 = vcmp.eq.s32.totalorder %v10224_v18, %v776_v44 }
  0xf1   :  { %vm890_vm7 = vmor %vm810_vm5, %vm874_vm4 }
  0xf2   :  { %v843_v45 = vpop.permute.xlu0 %842  ;;  %v7113_v46 = vsel %vm890_vm7, 1.0, %v14515_v23  ;;  %9157 = vset.pattern.permute.xlu1 %v9918_v10 }
  0xf3   :  { %vm875_vm8 = vcmp.eq.s32.totalorder %v10224_v18, %v843_v45  ;;  %v779_v48 = vpop.permute.xlu1 %778  ;;  %7856 = vmatprep.mubr.msk.f32.mxu0 %vm935_vm6, %v7113_v46  ;;  %519 = vperm.xlu1 %9157, %v10139_v39  }
  0xf4   :  { %vm811_vm9 = vcmp.eq.s32.totalorder %v10224_v18, %v779_v48 }
  0xf5   :  { %vm891_vm10 = vmor %vm811_vm9, %vm875_vm8 }
  0xf6   :  { %v846_v49 = vpop.permute.xlu0 %845  ;;  %v7114_v50 = vsel %vm891_vm10, 1.0, %v14515_v23 }
  0xf7   :  { %vm876_vm11 = vcmp.eq.s32.totalorder %v10224_v18, %v846_v49  ;;  %v782_v52 = vpop.permute.xlu1 %781  ;;  %7857 = vmatmul.mubr.msk.f32.gmra.mrb[6].mxu0 %vm935_vm6, %v7114_v50  ;;  %9158 = vset.pattern.permute.xlu1 %v9919_v11 }
  0xf8   :  { %vm812_vm12 = vcmp.eq.s32.totalorder %v10224_v18, %v782_v52  ;;  %403 = vperm.xlu1 %9158, %v10145_v43  }
  0xf9   :  { %vm892_vm13 = vmor %vm812_vm12, %vm876_vm11 }
  0xfa   :  { %v849_v53 = vpop.permute.xlu0 %848  ;;  %v7115_v54 = vsel %vm892_vm13, 1.0, %v14515_v23 }
  0xfb   :  { %vm877_vm14 = vcmp.eq.s32.totalorder %v10224_v18, %v849_v53  ;;  %v785_v56 = vpop.permute.xlu1 %784  ;;  %7859 = vmatprep.mubr.msk.f32.mxu0 %vm935_vm6, %v7115_v54 }
  0xfc   :  { %vm813_vm15 = vcmp.eq.s32.totalorder %v10224_v18, %v785_v56  ;;  %9159 = vset.pattern.permute.xlu1 %v9918_v10 }
  0xfd   :  { %vm893_vm0 = vmor %vm813_vm15, %vm877_vm14  ;;  %523 = vperm.xlu1 %9159, %v10145_v43  }
  0xfe   :  { %v852_v57 = vpop.permute.xlu0 %851  ;;  %v7116_v58 = vsel %vm893_vm0, 1.0, %v14515_v23 }
  0xff   :  { %vm878_vm1 = vcmp.eq.s32.totalorder %v10224_v18, %v852_v57  ;;  %v788_v60 = vpop.permute.xlu1 %787  ;;  %7860 = vmatmul.mubr.msk.f32.gmra.mrb[8].mxu0 %vm935_vm6, %v7116_v58 }
 0x100   :  { %vm814_vm2 = vcmp.eq.s32.totalorder %v10224_v18, %v788_v60 }
 0x101   :  { %vm894_vm3 = vmor %vm814_vm2, %vm878_vm1  ;;  %9160 = vset.pattern.permute.xlu1 %v9920_v12 }
 0x102   :  { %v855_v61 = vpop.permute.xlu0 %854  ;;  %v7117_v62 = vsel %vm894_vm3, 1.0, %v14515_v23  ;;  %643 = vperm.xlu1 %9160, %v10145_v43  }
 0x103   :  { %vm879_vm4 = vcmp.eq.s32.totalorder %v10224_v18, %v855_v61  ;;  %v791_v0 = vpop.permute.xlu1 %790  ;;  %7862 = vmatprep.mubr.msk.f32.mxu0 %vm935_vm6, %v7117_v62 }
 0x104   :  { %vm815_vm5 = vcmp.eq.s32.totalorder %v10224_v18, %v791_v0 }
 0x105   :  { %vm895_vm7 = vmor %vm815_vm5, %vm879_vm4  ;;  %vm1621_vm4 = vcmask 523264  }
 0x106   :  { %v858_v4 = vpop.permute.xlu0 %857  ;;  %v7118_v5 = vsel %vm895_vm7, 1.0, %v14515_v23  ;;  %9161 = vset.pattern.permute.xlu1 %v9918_v10 }
 0x107   :  { %vm880_vm8 = vcmp.eq.s32.totalorder %v10224_v18, %v858_v4  ;;  %v794_v6 = vpop.permute.xlu1 %793  ;;  %7863 = vmatmul.mubr.msk.f32.gmra.mrb[10].mxu0 %vm935_vm6, %v7118_v5  ;;  %527 = vperm.xlu1 %9161, %v10151_v47  }
 0x108   :  { %vm816_vm9 = vcmp.eq.s32.totalorder %v10224_v18, %v794_v6 }
 0x109   :  { %vm896_vm10 = vmor %vm816_vm9, %vm880_vm8 }
 0x10a   :  { %v861_v7 = vpop.permute.xlu0 %860  ;;  %v7119_v8 = vsel %vm896_vm10, 1.0, %v14515_v23 }
 0x10b   :  { %vm881_vm11 = vcmp.eq.s32.totalorder %v10224_v18, %v861_v7  ;;  %v797_v16 = vpop.permute.xlu1 %796  ;;  %7865 = vmatprep.mubr.msk.f32.mxu0 %vm935_vm6, %v7119_v8  ;;  %9162 = vset.pattern.permute.xlu1 %v9919_v11 }
 0x10c   :  { %vm817_vm12 = vcmp.eq.s32.totalorder %v10224_v18, %v797_v16  ;;  %411 = vperm.xlu1 %9162, %v10157_v51  }
 0x10d   :  { %vm897_vm13 = vmor %vm817_vm12, %vm881_vm11 }
 0x10e   :  { %v864_v17 = vpop.permute.xlu0 %863  ;;  %v7120_v19 = vsel %vm897_vm13, 1.0, %v14515_v23 }
 0x10f   :  { %vm882_vm14 = vcmp.eq.s32.totalorder %v10224_v18, %v864_v17  ;;  %v800_v20 = vpop.permute.xlu1 %799  ;;  %7866 = vmatmul.mubr.msk.f32.gmra.mrb[12].mxu0 %vm935_vm6, %v7120_v19 }
 0x110   :  { %vm818_vm15 = vcmp.eq.s32.totalorder %v10224_v18, %v800_v20  ;;  %9163 = vset.pattern.permute.xlu1 %v9918_v10 }
 0x111   :  { %vm898_vm0 = vmor %vm818_vm15, %vm882_vm14  ;;  %531 = vperm.xlu1 %9163, %v10157_v51  }
 0x112   :  { %v867_v24 = vpop.permute.xlu0 %866  ;;  %v7121_v25 = vsel %vm898_vm0, 1.0, %v14515_v23 }
 0x113   :  { %vm883_vm1 = vcmp.eq.s32.totalorder %v10224_v18, %v867_v24  ;;  %v803_v26 = vpop.permute.xlu1 %802  ;;  %7868 = vmatprep.mubr.msk.f32.mxu0 %vm935_vm6, %v7121_v25 }
 0x114   :  { %vm819_vm2 = vcmp.eq.s32.totalorder %v10224_v18, %v803_v26 }
 0x115   :  { %vm899_vm3 = vmor %vm819_vm2, %vm883_vm1  ;;  %9164 = vset.pattern.permute.xlu1 %v9920_v12 }
 0x116   :  { %v7122_v28 = vsel %vm899_vm3, 1.0, %v14515_v23  ;;  %651 = vperm.xlu1 %9164, %v10157_v51  }
 0x117   :  { %7869 = vmatmul.mubr.msk.f32.gmra.mrb[14].mxu0 %vm935_vm6, %v7122_v28  ;;  %v10424_v58 = vpop.permute.xlu0 %483  ;;  %vm1341_vm6 = vcmask 261120  }
 0x118   :  { %1734 = vmatprep.mubr.f32.mxu0 %v14515_v23  ;;  %vm11351_vm5 = vmpackc.low %vm1341_vm6, %vm1341_vm6 }
 0x11a   :  { %9165 = vset.pattern.permute.xlu1 %v9918_v10 }
 0x11b   :  { %535 = vperm.xlu1 %9165, %v10163_v55   ;;  %v14518_v55 = vmov 0   ;;  %v10432_v61 = vpop.permute.xlu0 %487 }
 0x11f   :  { %9167 = vset.pattern.permute.xlu1 %v9919_v11 }
 0x120   :  { %419 = vperm.xlu1 %9167, %v10169_v59   ;;  %v10443_v4 = vpop.permute.xlu0 %615 }
 0x124   :  { %9168 = vset.pattern.permute.xlu1 %v9918_v10  ;;  %v10455_v7 = vpop.permute.xlu0 %623 }
 0x125   :  { %539 = vperm.xlu1 %9168, %v10169_v59  }
 0x128   :  { %v10470_v19 = vpop.permute.xlu0 %631 }
 0x129   :  { %9169 = vset.pattern.permute.xlu1 %v9920_v12 }
 0x12a   :  { %659 = vperm.xlu1 %9169, %v10169_v59   ;;  %v10341_v59 = vpop.permute.xlu1 %363 }
 0x12c   :  { %v10478_v24 = vpop.permute.xlu0 %639 }
 0x12e   :  { %9170 = vset.pattern.permute.xlu1 %v9918_v10 }
 0x12f   :  { %543 = vperm.xlu1 %9170, %v10175_v63  }
 0x133   :  { %9171 = vset.pattern.permute.xlu1 %v14521_v22 }
 0x134   :  { %227 = vperm.xlu1 %9171, %v10088_v2  }
 0x138   :  { %9172 = vset.pattern.permute.xlu1 %v9920_v12 }
 0x139   :  { %663 = vperm.xlu1 %9172, %v10175_v63   ;;  %v10344_v63 = vpop.permute.xlu1 %603 }
 0x13d   :  { %9173 = vset.pattern.permute.xlu1 %v14518_v55  ;;  %v10346_v10 = vpop.permute.xlu1 %367 }
 0x13e   :  { %133 = vperm.xlu1 %9173, %v10083_v1  }
 0x141   :  { %v10348_v11 = vpop.permute.xlu1 %607 }
 0x142   :  { %138 = vperm.xlu1 %9173, %v10093_v3  }
 0x145   :  { %v10350_v1 = vpop.permute.xlu1 %491 }
 0x146   :  { %9175 = vset.pattern.permute.xlu1 %v14521_v22 }
 0x147   :  { %239 = vperm.xlu1 %9175, %v10101_v9  }
 0x149   :  { %v10352_v3 = vpop.permute.xlu1 %611 }
 0x14b   :  { %243 = vperm.xlu1 %9175, %v10107_v14  }
 0x14d   :  { %v10354_v12 = vpop.permute.xlu1 %495 }
 0x14f   :  { %9176 = vset.pattern.permute.xlu1 %v14518_v55 }
 0x150   :  { %153 = vperm.xlu1 %9176, %v10115_v21  }
 0x151   :  { %v10356_v18 = vpop.permute.xlu1 %379 }
 0x155   :  { %v10358_v29 = vpop.permute.xlu1 %499 }
 0x159   :  { %v10360_v30 = vpop.permute.xlu1 %619 }
 0x15d   :  { %v10362_v32 = vpop.permute.xlu1 %503 }
 0x161   :  { %v10364_v33 = vpop.permute.xlu1 %387 }
 0x165   :  { %v10366_v34 = vpop.permute.xlu1 %507 }
 0x169   :  { %v10368_v36 = vpop.permute.xlu1 %627 }
 0x16d   :  { %v10370_v37 = vpop.permute.xlu1 %511 }
 0x171   :  { %v10372_v38 = vpop.permute.xlu1 %395 }
 0x175   :  { %v10374_v40 = vpop.permute.xlu1 %515 }
 0x179   :  { %v10376_v41 = vpop.permute.xlu1 %635 }
 0x17d   :  { %v10384_v45 = vpop.permute.xlu1 %519 }
 0x181   :  { %v10392_v48 = vpop.permute.xlu1 %403 }
 0x185   :  { %v10401_v50 = vpop.permute.xlu1 %523 }
 0x189   :  { %v10411_v53 = vpop.permute.xlu1 %643 }
 0x18a   :  { %14609 = vst [vmem:[#allocation12_spill] sm:$0xff] %v10411_v53 }
 0x18d   :  { %v10416_v56 = vpop.permute.xlu1 %527 }
 0x18e   :  { %14611 = vst [vmem:[#allocation14_spill] sm:$0xff] %v10416_v56 }
 0x191   :  { %v10428_v60 = vpop.permute.xlu1 %411 }
 0x192   :  { %14613 = vst [vmem:[#allocation16_spill] sm:$0xff] %v10428_v60 }
 0x195   :  { %v10440_v0 = vpop.permute.xlu1 %531 }
 0x196   :  { %14616 = vst [vmem:[#allocation19_spill] sm:$0xff] %v10440_v0 }
 0x199   :  { %v10453_v6 = vpop.permute.xlu1 %651 }
 0x19a   :  { %14619 = vst [vmem:[#allocation22_spill] sm:$0xff] %v10453_v6 }
 0x19d   :  { %v10458_v8 = vpop.permute.xlu1 %535 }
 0x19e   :  { %14620 = vst [vmem:[#allocation23_spill] sm:$0xff] %v10458_v8 }
 0x1a1   :  { %v10468_v17 = vpop.permute.xlu1 %419 }
 0x1a2   :  { %14623 = vst [vmem:[#allocation26_spill] sm:$0xff] %v10468_v17  ;;  %v1587_v17 = vld [vmem:[%s14495_s9 + $0x20] sm:$0xff] }
 0x1a5   :  { %v10476_v20 = vpop.permute.xlu1 %539 }
 0x1a6   :  { %14625 = vst [vmem:[#allocation28_spill] sm:$0xff] %v10476_v20 }
 0x1a9   :  { %v10487_v26 = vpop.permute.xlu1 %659 }
 0x1aa   :  { %14627 = vst [vmem:[#allocation30_spill] sm:$0xff] %v10487_v26  ;;  %v1588_v26 = vld [vmem:[%s14495_s9 + $0x28] sm:$0xff] }
 0x1ae   :  { %v10492_v28 = vpop.permute.xlu1 %543 }
 0x1af   :  { %14629 = vst [vmem:[#allocation32_spill] sm:$0xff] %v10492_v28 }
 0x1b3   :  { %v10378_v42 = vpop.f32.mrb[0].mxu0 }
 0x1b4   :  { %1183 = vrot.lane.b32.xlu1 %v10378_v42, %s9924_s30  ;;  %v10382_v44 = vpop.f32.mrb[1].mxu0 }
 0x1b5   :  { %1181 = vrot.lane.b32.xlu0 %v10382_v44, %s9924_s30 }
 0x1b8   :  { %158 = vperm.xlu1 %9176, %v10121_v27  }
 0x1b9   :  { %247 = vperm.xlu0 %9174, %v10115_v21  }
 0x1ba   :  { %v10390_v46 = vpop.f32.mrb[2].mxu0 }
 0x1bb   :  { %v10394_v49 = vpop.f32.mrb[3].mxu0 }
 0x1bc   :  { %1187 = vrot.lane.b32.xlu1 %v10390_v46, %s9924_s30 }
 0x1bd   :  { %1185 = vrot.lane.b32.xlu0 %v10394_v49, %s9924_s30  ;;  %9178 = vset.pattern.permute.xlu1 %v14521_v22 }
 0x1c2   :  { %v10403_v52 = vpop.f32.mrb[4].mxu0 }
 0x1c3   :  { %1191 = vrot.lane.b32.xlu1 %v10403_v52, %s9924_s30  ;;  %v10407_v21 = vpop.f32.mrb[5].mxu0 }
 0x1c4   :  { %1189 = vrot.lane.b32.xlu0 %v10407_v21, %s9924_s30 }
 0x1c8   :  { %251 = vperm.xlu0 %9174, %v10121_v27  }
 0x1ca   :  { %v10414_v54 = vpop.f32.mrb[6].mxu0 }
 0x1cb   :  { %14610 = vst [vmem:[#allocation13_spill] sm:$0xff] %v10414_v54  ;;  %1195 = vrot.lane.b32.xlu1 %v10414_v54, %s9924_s30  ;;  %v10420_v57 = vpop.f32.mrb[7].mxu0 }
 0x1cc   :  { %14612 = vst [vmem:[#allocation15_spill] sm:$0xff] %v10420_v57  ;;  %1193 = vrot.lane.b32.xlu0 %v10420_v57, %s9924_s30 }
 0x1cd   :  { %9177 = vset.pattern.permute.xlu0 %v14518_v55 }
 0x1d0   :  { %128 = vperm.xlu0 %9177, %v10088_v2  }
 0x1d2   :  { %v10430_v27 = vpop.f32.mrb[8].mxu0 }
 0x1d3   :  { %14614 = vst [vmem:[#allocation17_spill] sm:$0xff] %v10430_v27  ;;  %1199 = vrot.lane.b32.xlu1 %v10430_v27, %s9924_s30  ;;  %v10436_v62 = vpop.f32.mrb[9].mxu0 }
 0x1d4   :  { %14615 = vst [vmem:[#allocation18_spill] sm:$0xff] %v10436_v62  ;;  %1197 = vrot.lane.b32.xlu0 %v10436_v62, %s9924_s30 }
 0x1d8   :  { %143 = vperm.xlu0 %9177, %v10101_v9  }
 0x1da   :  { %v10445_v2 = vpop.f32.mrb[10].mxu0 }
 0x1db   :  { %14617 = vst [vmem:[#allocation20_spill] sm:$0xff] %v10445_v2  ;;  %1203 = vrot.lane.b32.xlu1 %v10445_v2, %s9924_s30  ;;  %v10449_v5 = vpop.f32.mrb[11].mxu0 }
 0x1dc   :  { %14618 = vst [vmem:[#allocation21_spill] sm:$0xff] %v10449_v5  ;;  %1201 = vrot.lane.b32.xlu0 %v10449_v5, %s9924_s30 }
 0x1e0   :  { %148 = vperm.xlu0 %9177, %v10107_v14  }
 0x1e2   :  { %v10460_v9 = vpop.f32.mrb[12].mxu0 }
 0x1e3   :  { %14621 = vst [vmem:[#allocation24_spill] sm:$0xff] %v10460_v9  ;;  %1207 = vrot.lane.b32.xlu1 %v10460_v9, %s9924_s30  ;;  %v10464_v16 = vpop.f32.mrb[13].mxu0  ;;  %v1590_v9 = vld [vmem:[%s14495_s9 + $0x38] sm:$0xff] }
 0x1e4   :  { %14622 = vst [vmem:[#allocation25_spill] sm:$0xff] %v10464_v16  ;;  %1205 = vrot.lane.b32.xlu0 %v10464_v16, %s9924_s30  ;;  %v8639_v20 = vpack.c.bf16 %v1590_v9, %v1588_v26  ;;  %v1591_v16 = vld [vmem:[%s14495_s9 + $0x40] sm:$0xff] }
 0x1e7   :  { %255 = vperm.xlu1 %9178, %v10127_v31  }
 0x1e8   :  { %163 = vperm.xlu0 %9177, %v10127_v31   ;;  %v10489_v31 = vpop.permute.xlu0 %647 }
 0x1e9   :  { %14628 = vst [vmem:[#allocation31_spill] sm:$0xff] %v10489_v31 }
 0x1ea   :  { %v10474_v14 = vpop.f32.mrb[14].mxu0 }
 0x1eb   :  { %14624 = vst [vmem:[#allocation27_spill] sm:$0xff] %v10474_v14  ;;  %259 = vperm.xlu1 %9178, %v10133_v35   ;;  %v10481_v25 = vpop.f32.mrb[15].mxu0 }
 0x1ec   :  { %14626 = vst [vmem:[#allocation29_spill] sm:$0xff] %v10481_v25  ;;  %168 = vperm.xlu0 %9177, %v10133_v35   ;;  %v10494_v23 = vpop.permute.xlu0 %655  ;;  %v10498_v35 = vpop.permute.xlu1 %227 }
 0x1ed   :  { %14630 = vst [vmem:[#allocation33_spill] sm:$0xff] %v10494_v23  ;;  %14631 = vst [vmem:[#allocation34_spill] sm:$0xff] %v10498_v35  ;;  %v1583_v35 = vld [vmem:[%s14495_s9] sm:$0xff] }
 0x1ef   :  { %9179 = vset.pattern.permute.xlu1 %v14518_v55 }
 0x1f0   :  { %173 = vperm.xlu1 %9179, %v10139_v39   ;;  %183 = vperm.xlu0 %9177, %v10151_v47   ;;  %v10500_v15 = vpop.permute.xlu0 %371 }
 0x1f4   :  { %178 = vperm.xlu1 %9179, %v10145_v43   ;;  %v10504_v55 = vpop.permute.xlu0 %375  ;;  %v10508_v43 = vpop.permute.xlu1 %663 }
 0x1f5   :  { %14632 = vst [vmem:[#allocation35_spill] sm:$0xff] %v10508_v43 }
 0x1f8   :  { %9180 = vset.pattern.permute.xlu1 %v14521_v22  ;;  %v10510_v13 = vpop.permute.xlu0 %383  ;;  %v1586_v22 = vld [vmem:[%s14495_s9 + $0x18] sm:$0xff]  ;;  %v10539_v2 = vpop.permute.xlu1 %133 }
 0x1f9   :  { %271 = vperm.xlu1 %9180, %v10151_v47   ;;  %v1584_v47 = vld [vmem:[%s14495_s9 + $0x8] sm:$0xff]  ;;  %14633 = vst [vmem:[#allocation36_spill] sm:$0xff] %v10539_v2 }
 0x1fc   :  { %v10544_v9 = vpop.permute.xlu0 %391 }
 0x1fd   :  { %1211 = vrot.lane.b32.xlu1 %v10474_v14, %s9924_s30  ;;  %v8635_v14 = vpack.c.bf16 %v1586_v22, %v1584_v47  ;;  %v1589_v22 = vld [vmem:[%s14495_s9 + $0x30] sm:$0xff]  ;;  %v1592_v47 = vld [vmem:[%s14495_s9 + $0x48] sm:$0xff] }
 0x1fe   :  { %v8641_v26 = vpack.c.bf16 %v1589_v22, %v1587_v17  ;;  %v10568_v22 = vld [vmem:[%s14639_s29] sm:$0x1f] }
 0x1ff   :  { %8636 = vmatprep.subr.bf16.mxu0 %v8635_v14  ;;  %v1593_v14 = vld [vmem:[%s14495_s9 + $0x50] sm:$0xff]  ;;  %14640 = vst [vmem:[#allocation41_spill] sm:$0xff] %v10568_v22 }
 0x200   :  { %v10555_v2 = vpop.permute.xlu0 %399  ;;  %v8645_v27 = vpack.c.bf16 %v1593_v14, %v1591_v16 }
 0x201   :  { %1209 = vrot.lane.b32.xlu1 %v10481_v25, %s9924_s30  ;;  %v1585_v25 = vld [vmem:[%s14495_s9 + $0x10] sm:$0xff] }
 0x202   :  { %v8637_v43 = vpack.c.bf16 %v1585_v25, %v1583_v35  ;;  %v1594_v25 = vld [vmem:[%s14495_s9 + $0x58] sm:$0xff]  ;;  %v14634_v35 = vlaneseq }
 0x203   :  { %v8643_v5 = vpack.c.bf16 %v1594_v25, %v1592_v47  ;;  %v10572_v25 = vld [vmem:[#allocation2] sm:$0xf] }
 0x204   :  { %8638 = vmatpush1.bf16.msra.mxu0 %v8637_v43  ;;  %v10547_v28 = vshrl.u32 %v14634_v35, 7  ;;  %v10570_v47 = vpop.permute.xlu0 %407  ;;  %14642 = vst [vmem:[#allocation43_spill] sm:$0xff] %v10572_v25 }
 0x205   :  { %8640 = vmatprep.subr.bf16.mxu0 %v8639_v20  ;;  %v10563_v20 = vpop.permute.xlu1 %138  ;;  %14641 = vst [vmem:[#allocation42_spill] sm:$0xff] %v10570_v47 }
 0x206   :  { %14635 = vst [vmem:[#allocation37_spill] sm:$0xff] %v10547_v28  ;;  %v10558_v43 = vsub.s32 2, %v10547_v28  ;;  %v10561_v17 = vsub.s32 3, %v10547_v28  ;;  %14638 = vst [vmem:[#allocation40_spill] sm:$0xff] %v10563_v20  ;;  %v10582_v35 = vsub.s32 1, %v10547_v28 }
 0x208   :  { %8642 = vmatpush1.bf16.msra.mxu0 %v8641_v26  ;;  %14636 = vst [vmem:[#allocation38_spill] sm:$0xff] %v10558_v43  ;;  %14637 = vst [vmem:[#allocation39_spill] sm:$0xff] %v10561_v17  ;;  %v10576_v16 = vrot.slane %v10568_v22, %v10561_v17  ;;  %v10579_v26 = vsub.s32 4, %v10547_v28  ;;  %v10598_v8 = vpop.permute.xlu0 %415 }
 0x209   :  { %8644 = vmatprep.subr.bf16.mxu0 %v8643_v5  ;;  %14644 = vst [vmem:[#allocation45_spill] sm:$0xff] %v10582_v35  ;;  %v10586_v5 = vrot.slane %v10568_v22, %v10558_v43  ;;  %v10588_v14 = vpop.permute.xlu1 %239  ;;  %14646 = vst [vmem:[#allocation47_spill] sm:$0xff] %v10598_v8 }
 0x20a   :  { %14643 = vst [vmem:[#allocation44_spill] sm:$0xff] %v10579_v26  ;;  %14645 = vst [vmem:[#allocation46_spill] sm:$0xff] %v10588_v14  ;;  %v551_v20 = vmul.f32 %v10576_v16, %v10432_v61  ;;  %v550_v28 = vmul.f32 %v10576_v16, %v10424_v58  ;;  %v10604_v57 = vrot.slane %v10568_v22, %v10579_v26 }
 0x20b   :  { %v431_v23 = vmul.f32 %v10586_v5, %v10346_v10  ;;  %v10608_v14 = vrot.slane %v10572_v25, %v10582_v35  ;;  %v10621_v26 = vrot.slane %v10572_v25, %v10561_v17 }
 0x20c   :  { %8646 = vmatpush1.bf16.msra.mxu0 %v8645_v27  ;;  %v10592_v27 = vrot.slane %v10572_v25, %v10558_v43  ;;  %v430_v43 = vmul.f32 %v10586_v5, %v10341_v59  ;;  %v671_v8 = vmul.f32 %v10604_v57, %v10348_v11  ;;  %v10616_v31 = vpop.permute.xlu0 %423  ;;  %v670_v59 = vmul.f32 %v10604_v57, %v10344_v63  ;;  %v1598_v11 = vld [vmem:[%s14495_s9 + $0x78] sm:$0xff] }
 0x20d   :  { %v451_v10 = vadd.f32 %v10608_v14, %v431_v23  ;;  %14647 = vst [vmem:[#allocation48_spill] sm:$0xff] %v10616_v31  ;;  %v10626_v22 = vpop.permute.xlu1 %243  ;;  %v1596_v23 = vld [vmem:[%s14495_s9 + $0x68] sm:$0xff] }
 0x20e   :  { %v571_v61 = vadd.f32 %v10592_v27, %v551_v20  ;;  %v570_v58 = vadd.f32 %v10592_v27, %v550_v28  ;;  %v450_v35 = vadd.f32 %v10608_v14, %v430_v43  ;;  %14648 = vst [vmem:[#allocation49_spill] sm:$0xff] %v10626_v22  ;;  %v8647_v28 = vpack.c.bf16 %v1598_v11, %v1596_v23  ;;  %v1595_v20 = vld [vmem:[%s14495_s9 + $0x60] sm:$0xff]  ;;  %v1597_v43 = vld [vmem:[%s14495_s9 + $0x70] sm:$0xff]  ;;  %s9925_s9 = smov 32  }
 0x20f   :  { %v467_v17 = vmax.f32 %v451_v10, 0.0  ;;  %v691_v22 = vadd.f32 %v10621_v26, %v671_v8  ;;  %v8649_v31 = vpack.c.bf16 %v1597_v43, %v1595_v20  ;;  %v690_v56 = vadd.f32 %v10621_v26, %v670_v59 }
 0x210   :  { %v587_v63 = vmax.f32 %v571_v61, 0.0  ;;  %v10641_v25 = vpop.permute.xlu0 %231  ;;  %v586_v62 = vmax.f32 %v570_v58, 0.0  ;;  %v466_v6 = vmax.f32 %v450_v35, 0.0  ;;  %8648 = vmatprep.subr.bf16.mxu0 %v8647_v28 }
 0x211   :  { %8650 = vmatpush1.bf16.msra.mxu0 %v8649_v31  ;;  %v10644_v23 = vpop.permute.xlu1 %153  ;;  %v707_v11 = vmax.f32 %v691_v22, 0.0  ;;  %v706_v47 = vmax.f32 %v690_v56, 0.0  ;;  %v553_v31 = vmul.f32 %v10576_v16, %v10354_v12  ;;  %v433_v56 = vmul.f32 %v10586_v5, %v10504_v55 }
 0x212   :  { %v1134_v53 = vadd.f32 %v587_v63, %v467_v17  ;;  %v1133_v54 = vadd.f32 %v586_v62, %v466_v6  ;;  %v673_v12 = vmul.f32 %v10604_v57, %v10443_v4  ;;  %v554_v6 = vmul.f32 %v10576_v16, %v10358_v29 }
 0x213   :  { %v453_v55 = vadd.f32 %v10608_v14, %v433_v56  ;;  %v555_v4 = vmul.f32 %v10576_v16, %v10362_v32  ;;  %v435_v22 = vmul.f32 %v10586_v5, %v10510_v13  ;;  %v674_v32 = vmul.f32 %v10604_v57, %v10360_v30 }
 0x214   :  { %v10646_v0 = vpop.permute.xlu0 %235  ;;  %v1150_v61 = vadd.f32 %v1134_v53, %v707_v11  ;;  %v1149_v8 = vadd.f32 %v1133_v54, %v706_v47  ;;  %v552_v53 = vmul.f32 %v10576_v16, %v10350_v1  ;;  %v432_v54 = vmul.f32 %v10586_v5, %v10500_v15 }
 0x215   :  { %v434_v1 = vmul.f32 %v10586_v5, %v10356_v18  ;;  %v672_v15 = vmul.f32 %v10604_v57, %v10352_v3  ;;  %v693_v47 = vadd.f32 %v10621_v26, %v673_v12  ;;  %v675_v18 = vmul.f32 %v10604_v57, %v10455_v7 }
 0x216   :  { %v452_v17 = vadd.f32 %v10608_v14, %v432_v54  ;;  %v469_v29 = vmax.f32 %v453_v55, 0.0  ;;  %v574_v3 = vadd.f32 %v10592_v27, %v554_v6  ;;  %v455_v11 = vadd.f32 %v10608_v14, %v435_v22 }
 0x217   :  { %v454_v43 = vadd.f32 %v10608_v14, %v434_v1  ;;  %v692_v13 = vadd.f32 %v10621_v26, %v672_v15  ;;  %v709_v7 = vmax.f32 %v693_v47, 0.0  ;;  %v437_v6 = vmul.f32 %v10586_v5, %v10544_v9 }
 0x218   :  { %v468_v63 = vmax.f32 %v452_v17, 0.0  ;;  %v557_v47 = vmul.f32 %v10576_v16, %v10370_v37  ;;  %v556_v37 = vmul.f32 %v10576_v16, %v10366_v34 }
 0x219   :  { %v708_v56 = vmax.f32 %v692_v13, 0.0  ;;  %v457_v9 = vadd.f32 %v10608_v14, %v437_v6 }
 0x226   :  { %v1184_v10 = vpop.permute.xlu1 %1183 }
 0x227   :  { %v10648_v60 = vadd.f32 %v1184_v10, %v1150_v61  ;;  %v1182_v20 = vpop.permute.xlu0 %1181  ;;  %v14649_v61 = vmov 1  }
 0x228   :  { %v10650_v58 = vadd.f32 %v1182_v20, %v1149_v8  ;;  %v695_v8 = vadd.f32 %v10621_v26, %v675_v18  ;;  %v470_v20 = vmax.f32 %v454_v43, 0.0  ;;  %v677_v43 = vmul.f32 %v10604_v57, %v10470_v19 }
 0x229   :  { %v1262_v35 = vadd.f32 %v10378_v42, %v10648_v60  ;;  %v573_v42 = vadd.f32 %v10592_v27, %v553_v31  ;;  %v694_v31 = vadd.f32 %v10621_v26, %v674_v32  ;;  %v558_v19 = vmul.f32 %v10576_v16, %v10374_v40 }
 0x22a   :  { %v1261_v62 = vadd.f32 %v10650_v58, %v10382_v44  ;;  %v572_v44 = vadd.f32 %v10592_v27, %v552_v53  ;;  %v471_v53 = vmax.f32 %v455_v11, 0.0  ;;  %v711_v55 = vmax.f32 %v695_v8, 0.0 }
 0x22b   :  { %1295 = vrot.lane.b32.xlu1 %v1262_v35, %s9925_s9  ;;  %v589_v59 = vmax.f32 %v573_v42, 0.0  ;;  %v590_v35 = vmax.f32 %v574_v3, 0.0  ;;  %v697_v34 = vadd.f32 %v10621_v26, %v677_v43  ;;  %v676_v40 = vmul.f32 %v10604_v57, %v10368_v36 }
 0x22c   :  { %1293 = vrot.lane.b32.xlu0 %v1261_v62, %s9925_s9  ;;  %v588_v28 = vmax.f32 %v572_v44, 0.0  ;;  %v710_v44 = vmax.f32 %v694_v31, 0.0  ;;  %v439_v36 = vmul.f32 %v10586_v5, %v10555_v2 }
 0x22d   :  { %v1136_v10 = vadd.f32 %v589_v59, %v469_v29  ;;  %v1137_v1 = vadd.f32 %v590_v35, %v470_v20  ;;  %v578_v35 = vadd.f32 %v10592_v27, %v558_v19  ;;  %v560_v19 = vmul.f32 %v10576_v16, %v10401_v50 }
 0x22e   :  { %v1135_v12 = vadd.f32 %v588_v28, %v468_v63  ;;  %v436_v63 = vmul.f32 %v10586_v5, %v10364_v33 }
 0x22f   :  { %v1152_v42 = vadd.f32 %v1136_v10, %v709_v7  ;;  %v1153_v28 = vadd.f32 %v1137_v1, %v710_v44  ;;  %v473_v10 = vmax.f32 %v457_v9, 0.0 }
 0x230   :  { %188 = vperm.xlu0 %9177, %v10157_v51   ;;  %v575_v51 = vadd.f32 %v10592_v27, %v555_v4  ;;  %v1151_v15 = vadd.f32 %v1135_v12, %v708_v56  ;;  %v456_v8 = vadd.f32 %v10608_v14, %v436_v63 }
 0x232   :  { %v591_v62 = vmax.f32 %v575_v51, 0.0  ;;  %v438_v51 = vmul.f32 %v10586_v5, %v10372_v38  ;;  %v576_v38 = vadd.f32 %v10592_v27, %v556_v37  ;;  %v472_v12 = vmax.f32 %v456_v8, 0.0 }
 0x233   :  { %v440_v37 = vmul.f32 %v10586_v5, %v10392_v48 }
 0x234   :  { %9181 = vset.pattern.permute.xlu0 %v14649_v61  ;;  %v1138_v22 = vadd.f32 %v591_v62, %v471_v53  ;;  %v713_v62 = vmax.f32 %v697_v34, 0.0  ;;  %v559_v53 = vmul.f32 %v10576_v16, %v10384_v45  ;;  %v679_v45 = vmul.f32 %v10604_v57, %v10478_v24 }
 0x235   :  { %263 = vperm.xlu0 %9181, %v10139_v39  }
 0x236   :  { %v1154_v3 = vadd.f32 %v1138_v22, %v711_v55  ;;  %v696_v55 = vadd.f32 %v10621_v26, %v676_v40  ;;  %v579_v6 = vadd.f32 %v10592_v27, %v559_v53  ;;  %v9811_v22 = vld [vmem:[%s14608_s25 + $0x60] sm:$0xff]  ;;  %v699_v9 = vadd.f32 %v10621_v26, %v679_v45  ;;  %v14658_v45 = vld [vmem:[#allocation18_spill] sm:$0xff] }
 0x237   :  { %v10697_v30 = vpop.permute.xlu1 %158 }
 0x238   :  { %v10699_v54 = vpop.permute.xlu0 %247  ;;  %v595_v63 = vmax.f32 %v579_v6, 0.0  ;;  %v715_v40 = vmax.f32 %v699_v9, 0.0  ;;  %v14659_v6 = vld [vmem:[#allocation31_spill] sm:$0xff] }
 0x23b   :  { %v1188_v39 = vpop.permute.xlu1 %1187 }
 0x23c   :  { %v10703_v17 = vadd.f32 %v1188_v39, %v1152_v42  ;;  %v1186_v4 = vpop.permute.xlu0 %1185  ;;  %v592_v42 = vmax.f32 %v576_v38, 0.0  ;;  %v594_v39 = vmax.f32 %v578_v35, 0.0 }
 0x23d   :  { %v10709_v59 = vadd.f32 %v1186_v4, %v1151_v15  ;;  %v459_v15 = vadd.f32 %v10608_v14, %v439_v36  ;;  %v580_v36 = vadd.f32 %v10592_v27, %v560_v19  ;;  %v14662_v19 = vld [vmem:[#allocation23_spill] sm:$0xff] }
 0x23e   :  { %v1264_v18 = vadd.f32 %v10390_v46, %v10703_v17  ;;  %v577_v46 = vadd.f32 %v10592_v27, %v557_v47  ;;  %v712_v47 = vmax.f32 %v696_v55, 0.0  ;;  %v14656_v55 = vld [vmem:[#allocation14_spill] sm:$0xff] }
 0x23f   :  { %v1192_v29 = vpop.permute.xlu1 %1191  ;;  %v1263_v11 = vadd.f32 %v10709_v59, %v10394_v49  ;;  %v458_v49 = vadd.f32 %v10608_v14, %v438_v51  ;;  %v14650_v51 = vmov 0  }
 0x240   :  { %1299 = vrot.lane.b32.xlu1 %v1264_v18, %s9925_s9  ;;  %v1190_v32 = vpop.permute.xlu0 %1189  ;;  %v10728_v7 = vadd.f32 %v1192_v29, %v1154_v3  ;;  %v593_v20 = vmax.f32 %v577_v46, 0.0  ;;  %v1139_v29 = vadd.f32 %v592_v42, %v472_v12  ;;  %v475_v46 = vmax.f32 %v459_v15, 0.0  ;;  %v14655_v12 = vld [vmem:[#allocation12_spill] sm:$0xff] }
 0x241   :  { %v10720_v13 = vadd.f32 %v1190_v32, %v1153_v28  ;;  %v9812_v28 = vld [vmem:[%s14608_s25 + $0x68] sm:$0xff]  ;;  %v680_v42 = vmul.f32 %v10604_v57, %v14655_v12  ;;  %v681_v15 = vmul.f32 %v10604_v57, %v14659_v6 }
 0x242   :  { %v1266_v31 = vadd.f32 %v10403_v52, %v10728_v7  ;;  %v1140_v44 = vadd.f32 %v593_v20, %v473_v10  ;;  %v474_v52 = vmax.f32 %v458_v49, 0.0  ;;  %v14652_v10 = vld [vmem:[#allocation19_spill] sm:$0xff]  ;;  %v14653_v20 = vld [vmem:[#allocation13_spill] sm:$0xff] }
 0x243   :  { %v1265_v33 = vadd.f32 %v10720_v13, %v10407_v21  ;;  %v678_v21 = vmul.f32 %v10604_v57, %v10376_v41  ;;  %v9810_v41 = vld [vmem:[%s14608_s25 + $0x50] sm:$0xff]  ;;  %v1196_v4 = vpop.permute.xlu1 %1195  ;;  %v562_v8 = vmul.f32 %v10576_v16, %v14652_v10 }
 0x244   :  { %1297 = vrot.lane.b32.xlu1 %v1263_v11, %s9925_s9  ;;  %v1156_v18 = vadd.f32 %v1140_v44, %v713_v62  ;;  %v1141_v43 = vadd.f32 %v594_v39, %v474_v52  ;;  %v1155_v11 = vadd.f32 %v1139_v29, %v712_v47  ;;  %v1142_v62 = vadd.f32 %v595_v63, %v475_v46  ;;  %v14657_v39 = vld [vmem:[#allocation22_spill] sm:$0xff] }
 0x245   :  { %1301 = vrot.lane.b32.xlu0 %v1265_v33, %s9925_s9  ;;  %v698_v1 = vadd.f32 %v10621_v26, %v678_v21  ;;  %v14651_v33 = vld [vmem:[#allocation16_spill] sm:$0xff]  ;;  %v460_v21 = vadd.f32 %v10608_v14, %v440_v37  ;;  %v561_v44 = vmul.f32 %v10576_v16, %v14656_v55  ;;  %v582_v52 = vadd.f32 %v10592_v27, %v562_v8 }
 0x246   :  { %v10768_v3 = vadd.f32 %v1196_v4, %v1156_v18  ;;  %v442_v34 = vmul.f32 %v10586_v5, %v14651_v33  ;;  %v14660_v4 = vld [vmem:[#allocation15_spill] sm:$0xff]  ;;  %v1158_v9 = vadd.f32 %v1142_v62, %v715_v40  ;;  %v596_v63 = vmax.f32 %v580_v36, 0.0 }
 0x247   :  { %v10745_v56 = vpop.permute.xlu0 %251  ;;  %v714_v24 = vmax.f32 %v698_v1, 0.0  ;;  %v682_v1 = vmul.f32 %v10604_v57, %v14657_v39  ;;  %v476_v18 = vmax.f32 %v460_v21, 0.0  ;;  %v700_v37 = vadd.f32 %v10621_v26, %v680_v42 }
 0x248   :  { %1303 = vrot.lane.b32.xlu1 %v1266_v31, %s9925_s9  ;;  %v1268_v49 = vadd.f32 %v14653_v20, %v10768_v3  ;;  %v14654_v31 = vld [vmem:[#allocation42_spill] sm:$0xff]  ;;  %v581_v46 = vadd.f32 %v10592_v27, %v561_v44  ;;  %v701_v40 = vadd.f32 %v10621_v26, %v681_v15  ;;  %v14663_v20 = vld [vmem:[#allocation33_spill] sm:$0xff] }
 0x249   :  { %267 = vperm.xlu0 %9181, %v9810_v41   ;;  %v1157_v38 = vadd.f32 %v1141_v43, %v714_v24  ;;  %v441_v50 = vmul.f32 %v10586_v5, %v14654_v31  ;;  %v462_v41 = vadd.f32 %v10608_v14, %v442_v34  ;;  %v1200_v43 = vpop.permute.xlu1 %1199  ;;  %v598_v34 = vmax.f32 %v582_v52, 0.0  ;;  %v9813_v31 = vld [vmem:[%s14608_s25 + $0x70] sm:$0xff] }
 0x24a   :  { %v702_v10 = vadd.f32 %v10621_v26, %v682_v1  ;;  %v10818_v8 = vadd.f32 %v1200_v43, %v1158_v9  ;;  %v597_v62 = vmax.f32 %v581_v46, 0.0  ;;  %v1143_v12 = vadd.f32 %v596_v63, %v476_v18  ;;  %v14666_v46 = vld [vmem:[#allocation25_spill] sm:$0xff] }
 0x24b   :  { %v1194_v2 = vpop.permute.xlu0 %1193  ;;  %v461_v29 = vadd.f32 %v10608_v14, %v441_v50  ;;  %v478_v33 = vmax.f32 %v462_v41, 0.0  ;;  %v716_v50 = vmax.f32 %v700_v37, 0.0  ;;  %v14664_v41 = vld [vmem:[#allocation17_spill] sm:$0xff]  ;;  %v717_v1 = vmax.f32 %v701_v40, 0.0 }
 0x24c   :  { %275 = vperm.xlu1 %9180, %v9811_v22   ;;  %v10783_v48 = vadd.f32 %v1194_v2, %v1155_v11  ;;  %v563_v11 = vmul.f32 %v10576_v16, %v14662_v19  ;;  %v718_v42 = vmax.f32 %v702_v10, 0.0  ;;  %v1270_v52 = vadd.f32 %v14664_v41, %v10818_v8  ;;  %v14673_v41 = vld [vmem:[#allocation35_spill] sm:$0xff] }
 0x24d   :  { %279 = vperm.xlu0 %9181, %v9812_v28   ;;  %v1204_v55 = vpop.permute.xlu1 %1203  ;;  %v1145_v44 = vadd.f32 %v598_v34, %v478_v33  ;;  %v14665_v37 = vmov 6  }
 0x24e   :  { %v1267_v22 = vadd.f32 %v10783_v48, %v14660_v4  ;;  %v583_v36 = vadd.f32 %v10592_v27, %v563_v11  ;;  %v1159_v4 = vadd.f32 %v1143_v12, %v716_v50 }
 0x24f   :  { %v10770_v32 = vpop.permute.xlu0 %128 }
 0x250   :  { %9182 = vset.pattern.permute.xlu1 %v14650_v51 }
 0x251   :  { %193 = vperm.xlu1 %9182, %v9812_v28   ;;  %v14661_v28 = vld [vmem:[#allocation47_spill] sm:$0xff] }
 0x252   :  { %v443_v24 = vmul.f32 %v10586_v5, %v14661_v28 }
 0x253   :  { %v1198_v35 = vpop.permute.xlu0 %1197 }
 0x254   :  { %v10788_v53 = vadd.f32 %v1198_v35, %v1157_v38  ;;  %v477_v35 = vmax.f32 %v461_v29, 0.0  ;;  %v463_v21 = vadd.f32 %v10608_v14, %v443_v24  ;;  %v1161_v29 = vadd.f32 %v1145_v44, %v718_v42  ;;  %v14672_v42 = vld [vmem:[#allocation28_spill] sm:$0xff] }
 0x255   :  { %1307 = vrot.lane.b32.xlu1 %v1268_v49, %s9925_s9  ;;  %v683_v49 = vmul.f32 %v10604_v57, %v14663_v20  ;;  %v1208_v18 = vpop.permute.xlu1 %1207 }
 0x256   :  { %v1269_v2 = vadd.f32 %v10788_v53, %v14658_v45  ;;  %v479_v6 = vmax.f32 %v463_v21, 0.0  ;;  %v1144_v15 = vadd.f32 %v597_v62, %v477_v35  ;;  %v14670_v21 = vld [vmem:[#allocation20_spill] sm:$0xff]  ;;  %v14671_v62 = vld [vmem:[#allocation26_spill] sm:$0xff] }
 0x257   :  { %v10806_v47 = vpop.permute.xlu0 %143  ;;  %v703_v45 = vadd.f32 %v10621_v26, %v683_v49  ;;  %v14669_v49 = vld [vmem:[#allocation32_spill] sm:$0xff] }
 0x258   :  { %1309 = vrot.lane.b32.xlu0 %v1269_v2, %s9925_s9  ;;  %v599_v2 = vmax.f32 %v583_v36, 0.0  ;;  %v1160_v9 = vadd.f32 %v1144_v15, %v717_v1  ;;  %v565_v35 = vmul.f32 %v10576_v16, %v14669_v49  ;;  %v444_v36 = vmul.f32 %v10586_v5, %v14671_v62  ;;  %v14674_v1 = vld [vmem:[#allocation24_spill] sm:$0xff] }
 0x259   :  { %1305 = vrot.lane.b32.xlu1 %v1267_v22, %s9925_s9  ;;  %v9814_v22 = vld [vmem:[%s14608_s25 + $0x78] sm:$0xff]  ;;  %v1390_v49 = vld [vmem:[%s14492_s6] sm:$0xff] }
 0x25a   :  { %v1146_v63 = vadd.f32 %v599_v2, %v479_v6  ;;  %v10848_v33 = vadd.f32 %v1204_v55, %v1160_v9  ;;  %v564_v55 = vmul.f32 %v10576_v16, %v14672_v42  ;;  %v585_v44 = vadd.f32 %v10592_v27, %v565_v35  ;;  %7903 = vmatprep.mubr.f32.mxu1 %v1390_v49  ;;  %v14677_v35 = vld [vmem:[#allocation29_spill] sm:$0xff] }
 0x25b   :  { %v1202_v38 = vpop.permute.xlu0 %1201  ;;  %v464_v6 = vadd.f32 %v10608_v14, %v444_v36  ;;  %v14680_v36 = vld [vmem:[#allocation41_spill] sm:$0xff] }
 0x25c   :  { %283 = vperm.xlu0 %9181, %v9813_v31   ;;  %v10839_v28 = vadd.f32 %v1202_v38, %v1159_v4  ;;  %v14668_v38 = vld [vmem:[#allocation48_spill] sm:$0xff]  ;;  %v584_v15 = vadd.f32 %v10592_v27, %v564_v55  ;;  %v14675_v4 = vld [vmem:[#allocation30_spill] sm:$0xff]  ;;  %v14681_v42 = vld [vmem:[#allocation45_spill] sm:$0xff] }
 0x25d   :  { %198 = vperm.xlu1 %9182, %v9813_v31   ;;  %v445_v40 = vmul.f32 %v10586_v5, %v14668_v38  ;;  %v1272_v31 = vadd.f32 %v14670_v21, %v10848_v33  ;;  %v684_v16 = vmul.f32 %v10604_v57, %v14675_v4  ;;  %v10910_v55 = vrot.slane %v14680_v36, %v14681_v42  ;;  %v14684_v4 = vld [vmem:[#allocation43_spill] sm:$0xff] }
 0x25f   :  { %v10830_v39 = vpop.permute.xlu0 %148  ;;  %v465_v12 = vadd.f32 %v10608_v14, %v445_v40  ;;  %v704_v9 = vadd.f32 %v10621_v26, %v684_v16 }
 0x260   :  { %9183 = vset.pattern.permute.xlu0 %v14650_v51  ;;  %v719_v51 = vmax.f32 %v703_v45, 0.0 }
 0x261   :  { %1311 = vrot.lane.b32.xlu1 %v1270_v52, %s9925_s9  ;;  %203 = vperm.xlu0 %9183, %v9814_v22   ;;  %v685_v52 = vmul.f32 %v10604_v57, %v14673_v41  ;;  %v481_v5 = vmax.f32 %v465_v12, 0.0  ;;  %v720_v14 = vmax.f32 %v704_v9, 0.0  ;;  %v14676_v57 = vld [vmem:[#allocation27_spill] sm:$0xff]  ;;  %v14682_v41 = vld [vmem:[#allocation36_spill] sm:$0xff] }
 0x262   :  { %9184 = vset.pattern.permute.xlu1 %v14649_v61  ;;  %v14667_v61 = vld [vmem:[#allocation21_spill] sm:$0xff]  ;;  %v1162_v10 = vadd.f32 %v1146_v63, %v719_v51  ;;  %v600_v51 = vmax.f32 %v584_v15, 0.0 }
 0x263   :  { %v1206_v24 = vpop.permute.xlu0 %1205  ;;  %v1271_v34 = vadd.f32 %v10839_v28, %v14667_v61 }
 0x264   :  { %v10841_v43 = vadd.f32 %v1206_v24, %v1161_v29  ;;  %v10862_v50 = vadd.f32 %v1208_v18, %v1162_v10  ;;  %v705_v18 = vadd.f32 %v10621_v26, %v685_v52  ;;  %v480_v24 = vmax.f32 %v464_v6, 0.0  ;;  %v14683_v6 = vld [vmem:[#allocation34_spill] sm:$0xff] }
 0x265   :  { %287 = vperm.xlu1 %9184, %v9814_v22   ;;  %9425 = vset.pattern.permute.xlu0 %v14665_v37  ;;  %v601_v22 = vmax.f32 %v585_v44, 0.0 }
 0x266   :  { %v1273_v19 = vadd.f32 %v10841_v43, %v14666_v46  ;;  %v10846_v11 = vpop.permute.xlu1 %255  ;;  %v1274_v45 = vadd.f32 %v14674_v1, %v10862_v50  ;;  %v721_v63 = vmax.f32 %v705_v18, 0.0  ;;  %v1147_v61 = vadd.f32 %v600_v51, %v480_v24 }
 0x267   :  { %v1148_v37 = vadd.f32 %v601_v22, %v481_v5  ;;  %v295_v1 = vmul.f32 %v10910_v55, %v10641_v25  ;;  %v294_v5 = vmul.f32 %v10910_v55, %v14683_v6  ;;  %v14689_v6 = vld [vmem:[#allocation49_spill] sm:$0xff] }
 0x268   :  { %1317 = vrot.lane.b32.xlu0 %v1273_v19, %s9925_s9  ;;  %v1163_v38 = vadd.f32 %v1147_v61, %v720_v14 }
 0x269   :  { %1313 = vrot.lane.b32.xlu1 %v1271_v34, %s9925_s9  ;;  %v1164_v19 = vadd.f32 %v1148_v37, %v721_v63 }
 0x26a   :  { %v10856_v20 = vpop.permute.xlu1 %259 }
 0x26d   :  { %1315 = vrot.lane.b32.xlu1 %v1272_v31, %s9925_s9  ;;  %v14678_v31 = vld [vmem:[#allocation37_spill] sm:$0xff] }
 0x26e   :  { %v10902_v62 = vsub.s32 0, %v14678_v31  ;;  %v14688_v31 = vld [vmem:[#allocation46_spill] sm:$0xff] }
 0x26f   :  { %v10875_v2 = vpop.permute.xlu1 %173 }
 0x270   :  { %14679 = vst [vmem:[#allocation16_spill] sm:$0xff] %v10902_v62  ;;  %v10906_v12 = vrot.slane %v14680_v36, %v10902_v62  ;;  %v10924_v16 = vrot.slane %v14684_v4, %v10902_v62  ;;  %v297_v36 = vmul.f32 %v10910_v55, %v14688_v31 }
 0x271   :  { %1319 = vrot.lane.b32.xlu1 %v1274_v45, %s9925_s9  ;;  %v10918_v45 = vpop.permute.xlu0 %163 }
 0x272   :  { %v210_v44 = vmul.f32 %v10906_v12, %v10770_v32  ;;  %v211_v52 = vmul.f32 %v10906_v12, %v14682_v41  ;;  %v213_v49 = vmul.f32 %v10906_v12, %v10806_v47  ;;  %v299_v41 = vmul.f32 %v10910_v55, %v10699_v54 }
 0x273   :  { %v10883_v29 = vpop.permute.xlu1 %178  ;;  %v214_v47 = vmul.f32 %v10906_v12, %v10830_v39 }
 0x274   :  { %v310_v15 = vadd.f32 %v294_v5, %v210_v44  ;;  %v311_v22 = vadd.f32 %v295_v1, %v211_v52  ;;  %v296_v44 = vmul.f32 %v10910_v55, %v10646_v0  ;;  %v313_v52 = vadd.f32 %v297_v36, %v213_v49 }
 0x275   :  { %v10926_v18 = vpop.permute.xlu0 %168  ;;  %v298_v5 = vmul.f32 %v10910_v55, %v14689_v6 }
 0x276   :  { %v330_v32 = vadd.f32 %v10924_v16, %v310_v15  ;;  %v331_v24 = vadd.f32 %v10924_v16, %v311_v22  ;;  %v215_v15 = vmul.f32 %v10906_v12, %v10644_v23  ;;  %v333_v22 = vadd.f32 %v10924_v16, %v313_v52 }
 0x277   :  { %v314_v0 = vadd.f32 %v298_v5, %v214_v47  ;;  %v1362_v47 = vld [vmem:[%s14685_s21 + $0x20] sm:$0xff]  ;;  %v300_v5 = vmul.f32 %v10910_v55, %v10745_v56  ;;  %v218_v56 = vmul.f32 %v10906_v12, %v10926_v18 }
 0x278   :  { %v10886_v46 = vpop.permute.xlu1 %271  ;;  %v346_v51 = vmax.f32 %v330_v32, 0.0  ;;  %v347_v9 = vmax.f32 %v331_v24, 0.0  ;;  %v315_v4 = vadd.f32 %v299_v41, %v215_v15  ;;  %v301_v15 = vmul.f32 %v10910_v55, %v10846_v11 }
 0x279   :  { %v10930_v25 = vpop.permute.xlu0 %183  ;;  %v334_v39 = vadd.f32 %v10924_v16, %v314_v0 }
 0x27a   :  { %v1246_v63 = vadd.f32 %v10648_v60, %v347_v9  ;;  %v1245_v14 = vadd.f32 %v10650_v58, %v346_v51  ;;  %v1359_v60 = vld [vmem:[%s14685_s21 + $0x8] sm:$0xff]  ;;  %v14686_v58 = vmov 0.0   ;;  %v335_v54 = vadd.f32 %v10924_v16, %v315_v4 }
 0x27b   :  { %v349_v51 = vmax.f32 %v333_v22, 0.0  ;;  %v350_v23 = vmax.f32 %v334_v39, 0.0  ;;  %v217_v4 = vmul.f32 %v10906_v12, %v10918_v45  ;;  %v216_v22 = vmul.f32 %v10906_v12, %v10697_v30 }
 0x27c   :  { %v1212_v27 = vpop.permute.xlu1 %1211  ;;  %v219_v30 = vmul.f32 %v10906_v12, %v10875_v2 }
 0x27d   :  { %v10888_v34 = vadd.f32 %v1212_v27, %v1164_v19  ;;  %v1358_v19 = vld [vmem:[%s14685_s21] sm:$0xff]  ;;  %v316_v0 = vadd.f32 %v300_v5, %v216_v22 }
 0x27f   :  { %v1276_v10 = vadd.f32 %v14676_v57, %v10888_v34  ;;  %v336_v39 = vadd.f32 %v10924_v16, %v316_v0 }
 0x280   :  { %v1210_v40 = vpop.permute.xlu1 %1209 }
 0x281   :  { %v10895_v26 = vadd.f32 %v1210_v40, %v1163_v38  ;;  %1323 = vrot.lane.b32.xlu1 %v1276_v10, %s9925_s9 }
 0x283   :  { %v1275_v21 = vadd.f32 %v10895_v26, %v14677_v35  ;;  %v14687_v35 = vld [vmem:[#allocation40_spill] sm:$0xff] }
 0x285   :  { %1321 = vrot.lane.b32.xlu0 %v1275_v21, %s9925_s9  ;;  %v212_v21 = vmul.f32 %v10906_v12, %v14687_v35 }
 0x287   :  { %v312_v1 = vadd.f32 %v296_v44, %v212_v21 }
 0x289   :  { %v332_v32 = vadd.f32 %v10924_v16, %v312_v1  ;;  %v1363_v1 = vld [vmem:[%s14685_s21 + $0x28] sm:$0xff] }
 0x29d   :  { %v1296_v37 = vpop.permute.xlu1 %1295 }
 0x29e   :  { %v1343_v61 = vsel %vm1341_vm6, %v1246_v63, %v1296_v37  ;;  %v1294_v27 = vpop.permute.xlu0 %1293  ;;  %v348_v63 = vmax.f32 %v332_v32, 0.0  ;;  %v317_v32 = vadd.f32 %v301_v15, %v217_v4 }
 0x29f   :  { %v1342_v57 = vsel %vm1341_vm6, %v1245_v14, %v1294_v27  ;;  %v10947_v40 = vadd.f32 %v1359_v60, %v1343_v61  ;;  %v1360_v27 = vld [vmem:[%s14685_s21 + $0x10] sm:$0xff] }
 0x2a0   :  { %v10939_v10 = vadd.f32 %v1358_v19, %v1342_v57  ;;  %v8603_v38 = vpack.c.bf16 %v1343_v61, %v1342_v57  ;;  %v1247_v14 = vadd.f32 %v10709_v59, %v348_v63  ;;  %v351_v19 = vmax.f32 %v335_v54, 0.0  ;;  %v1361_v59 = vld [vmem:[%s14685_s21 + $0x18] sm:$0xff] }
 0x2a1   :  { %v1248_v61 = vadd.f32 %v10703_v17, %v349_v51  ;;  %v1249_v17 = vadd.f32 %v10720_v13, %v350_v23  ;;  %v302_v51 = vmul.f32 %v10910_v55, %v10856_v20  ;;  %v337_v11 = vadd.f32 %v10924_v16, %v317_v32  ;;  %v1366_v32 = vld [vmem:[%s14685_s21 + $0x40] sm:$0xff] }
 0x2a2   :  { %8604 = vmatprep.subr.bf16.mxu1 %v8603_v38  ;;  %7140 = vmatmul.mubr.msk.f32.vlgmr.msra.gmra.mrb[16].mxu0 %vm1621_vm4, %v10939_v10  ;;  %v1250_v31 = vadd.f32 %v10728_v7, %v351_v19  ;;  %v352_v19 = vmax.f32 %v336_v39, 0.0 }
 0x2a3   :  { %8606 = vmatpush3.bf16.msra.mxu1 %v8603_v38  ;;  %1740 = vmatprep.mubr.f32.mxu0 %v14686_v58  ;;  %v353_v23 = vmax.f32 %v337_v11, 0.0 }
 0x2a4   :  { %v1251_v18 = vadd.f32 %v10783_v48, %v352_v19  ;;  %v305_v48 = vmul.f32 %v10910_v55, %v10886_v46 }
 0x2a6   :  { %7141 = vmatmul.mubr.msk.f32.gmra.mrb[18].mxu0 %vm1621_vm4, %v10947_v40 }
 0x2a7   :  { %1746 = vmatprep.mubr.f32.mxu0 %v14686_v58 }
 0x2af   :  { %v10970_v24 = vpop.permute.xlu0 %188 }
 0x2b0   :  { %v222_v4 = vmul.f32 %v10906_v12, %v10970_v24 }
 0x2b2   :  { %v1300_v9 = vpop.permute.xlu1 %1299 }
 0x2b3   :  { %v1345_v38 = vsel %vm1341_vm6, %v1248_v61, %v1300_v9 }
 0x2b4   :  { %v264_v37 = vpop.permute.xlu0 %263  ;;  %v10993_v52 = vadd.f32 %v1361_v59, %v1345_v38 }
 0x2b5   :  { %v303_v45 = vmul.f32 %v10910_v55, %v264_v37  ;;  %v1252_v37 = vadd.f32 %v10768_v3, %v353_v23 }
 0x2b6   :  { %v1298_v57 = vpop.permute.xlu1 %1297 }
 0x2b7   :  { %v1344_v60 = vsel %vm1341_vm6, %v1247_v14, %v1298_v57  ;;  %v318_v14 = vadd.f32 %v302_v51, %v218_v56  ;;  %v319_v61 = vadd.f32 %v303_v45, %v219_v30 }
 0x2b8   :  { %v10981_v49 = vadd.f32 %v1360_v27, %v1344_v60  ;;  %v8607_v35 = vpack.c.bf16 %v1345_v38, %v1344_v60  ;;  %v1302_v21 = vpop.permute.xlu0 %1301 }
 0x2b9   :  { %v1346_v44 = vsel %vm1341_vm6, %v1249_v17, %v1302_v21  ;;  %v338_v20 = vadd.f32 %v10924_v16, %v318_v14  ;;  %v339_v38 = vadd.f32 %v10924_v16, %v319_v61 }
 0x2ba   :  { %v1304_v36 = vpop.permute.xlu1 %1303  ;;  %8608 = vmatprep.subr.bf16.mxu1 %v8607_v35  ;;  %7142 = vmatmul.mubr.msk.f32.gmra.mrb[20].mxu0 %vm1621_vm4, %v10981_v49  ;;  %v11001_v13 = vadd.f32 %v1362_v47, %v1346_v44  ;;  %v1365_v47 = vld [vmem:[%s14685_s21 + $0x38] sm:$0xff] }
 0x2bb   :  { %v1347_v41 = vsel %vm1341_vm6, %v1250_v31, %v1304_v36  ;;  %8610 = vmatpush3.bf16.msra.mxu1 %v8607_v35  ;;  %1752 = vmatprep.mubr.f32.mxu0 %v14686_v58  ;;  %v1364_v35 = vld [vmem:[%s14685_s21 + $0x30] sm:$0xff]  ;;  %v354_v21 = vmax.f32 %v338_v20, 0.0  ;;  %v220_v31 = vmul.f32 %v10906_v12, %v10883_v29  ;;  %v355_v3 = vmax.f32 %v339_v38, 0.0 }
 0x2bc   :  { %v8611_v7 = vpack.c.bf16 %v1347_v41, %v1346_v44  ;;  %v11009_v6 = vadd.f32 %v1363_v1, %v1347_v41  ;;  %v221_v29 = vmul.f32 %v10906_v12, %v10930_v25 }
 0x2bd   :  { %v1253_v5 = vadd.f32 %v10788_v53, %v354_v21  ;;  %v1254_v51 = vadd.f32 %v10818_v8, %v355_v3  ;;  %v1367_v8 = vld [vmem:[%s14685_s21 + $0x48] sm:$0xff] }
 0x2be   :  { %8612 = vmatprep.subr.bf16.mxu1 %v8611_v7  ;;  %7143 = vmatmul.mubr.msk.f32.gmra.mrb[22].mxu0 %vm1621_vm4, %v10993_v52  ;;  %v321_v15 = vadd.f32 %v305_v48, %v221_v29 }
 0x2bf   :  { %8614 = vmatpush3.bf16.msra.mxu1 %v8611_v7  ;;  %1758 = vmatprep.mubr.f32.mxu0 %v14686_v58 }
 0x2c2   :  { %7144 = vmatmul.mubr.msk.f32.gmra.mrb[24].mxu0 %vm1621_vm4, %v11001_v13 }
 0x2c3   :  { %1764 = vmatprep.mubr.f32.mxu0 %v14686_v58 }
 0x2c6   :  { %7145 = vmatmul.mubr.msk.f32.gmra.mrb[26].mxu0 %vm1621_vm4, %v11009_v6 }
 0x2c7   :  { %1770 = vmatprep.mubr.f32.mxu0 %v14686_v58 }
 0x2c8   :  { %v268_v9 = vpop.permute.xlu0 %267 }
 0x2c9   :  { %v304_v60 = vmul.f32 %v10910_v55, %v268_v9 }
 0x2cb   :  { %v276_v54 = vpop.permute.xlu1 %275  ;;  %v320_v41 = vadd.f32 %v304_v60, %v220_v31 }
 0x2cc   :  { %v280_v57 = vpop.permute.xlu0 %279  ;;  %v306_v46 = vmul.f32 %v10910_v55, %v276_v54 }
 0x2cd   :  { %v340_v25 = vadd.f32 %v10924_v16, %v320_v41  ;;  %v307_v39 = vmul.f32 %v10910_v55, %v280_v57 }
 0x2ce   :  { %v322_v24 = vadd.f32 %v306_v46, %v222_v4 }
 0x2cf   :  { %v356_v14 = vmax.f32 %v340_v25, 0.0 }
 0x2d0   :  { %v194_v63 = vpop.permute.xlu1 %193  ;;  %v1310_v7 = vpop.permute.xlu0 %1309  ;;  %v342_v23 = vadd.f32 %v10924_v16, %v322_v24 }
 0x2d1   :  { %v223_v0 = vmul.f32 %v10906_v12, %v194_v63  ;;  %v1350_v54 = vsel %vm1341_vm6, %v1253_v5, %v1310_v7  ;;  %v341_v63 = vadd.f32 %v10924_v16, %v321_v15 }
 0x2d2   :  { %v11073_v45 = vadd.f32 %v1366_v32, %v1350_v54  ;;  %v358_v31 = vmax.f32 %v342_v23, 0.0  ;;  %v1393_v23 = vld [vmem:[%s14492_s6 + $0x18] sm:$0xff] }
 0x2d3   :  { %v323_v30 = vadd.f32 %v307_v39, %v223_v0  ;;  %v357_v60 = vmax.f32 %v341_v63, 0.0  ;;  %v1372_v39 = vld [vmem:[%s14685_s21 + $0x70] sm:$0xff] }
 0x2d4   :  { %v1308_v27 = vpop.permute.xlu1 %1307  ;;  %v1257_v7 = vadd.f32 %v10841_v43, %v358_v31  ;;  %v1404_v31 = vld [vmem:[%s14492_s6 + $0x70] sm:$0xff] }
 0x2d5   :  { %v1349_v59 = vsel %vm1341_vm6, %v1252_v37, %v1308_v27  ;;  %v343_v37 = vadd.f32 %v10924_v16, %v323_v30 }
 0x2d6   :  { %v11059_v22 = vadd.f32 %v1365_v47, %v1349_v59 }
 0x2d7   :  { %v359_v48 = vmax.f32 %v343_v37, 0.0  ;;  %v1400_v37 = vld [vmem:[%s14492_s6 + $0x50] sm:$0xff] }
 0x2d8   :  { %v1306_v2 = vpop.permute.xlu1 %1305 }
 0x2d9   :  { %v1348_v17 = vsel %vm1341_vm6, %v1251_v18, %v1306_v2  ;;  %v1255_v2 = vadd.f32 %v10839_v28, %v356_v14  ;;  %v1256_v28 = vadd.f32 %v10848_v33, %v357_v60  ;;  %v1370_v33 = vld [vmem:[%s14685_s21 + $0x60] sm:$0xff]  ;;  %v1258_v4 = vadd.f32 %v10862_v50, %v359_v48  ;;  %v1399_v60 = vld [vmem:[%s14492_s6 + $0x48] sm:$0xff] }
 0x2da   :  { %v11045_v36 = vadd.f32 %v1364_v35, %v1348_v17  ;;  %v8615_v44 = vpack.c.bf16 %v1349_v59, %v1348_v17  ;;  %v1368_v35 = vld [vmem:[%s14685_s21 + $0x50] sm:$0xff] }
 0x2db   :  { %v284_v53 = vpop.permute.xlu0 %283 }
 0x2dc   :  { %v199_v1 = vpop.permute.xlu1 %198  ;;  %8616 = vmatprep.subr.bf16.mxu1 %v8615_v44  ;;  %7146 = vmatmul.mubr.msk.f32.gmra.mrb[28].mxu0 %vm1621_vm4, %v11045_v36  ;;  %v308_v61 = vmul.f32 %v10910_v55, %v284_v53  ;;  %v1371_v53 = vld [vmem:[%s14685_s21 + $0x68] sm:$0xff] }
 0x2dd   :  { %8618 = vmatpush3.bf16.msra.mxu1 %v8615_v44  ;;  %1776 = vmatprep.mubr.f32.mxu0 %v14686_v58  ;;  %v224_v20 = vmul.f32 %v10906_v12, %v199_v1  ;;  %v1369_v44 = vld [vmem:[%s14685_s21 + $0x58] sm:$0xff] }
 0x2e0   :  { %v1312_v56 = vpop.permute.xlu1 %1311  ;;  %7147 = vmatmul.mubr.msk.f32.gmra.mrb[30].mxu0 %vm1621_vm4, %v11059_v22  ;;  %v204_v27 = vpop.permute.xlu0 %203 }
 0x2e1   :  { %v1351_v11 = vsel %vm1341_vm6, %v1254_v51, %v1312_v56  ;;  %1782 = vmatprep.mubr.f32.mxu0 %v14686_v58  ;;  %v225_v18 = vmul.f32 %v10906_v12, %v204_v27  ;;  %v324_v12 = vadd.f32 %v308_v61, %v224_v20  ;;  %v1394_v61 = vld [vmem:[%s14492_s6 + $0x20] sm:$0xff]  ;;  %v1395_v27 = vld [vmem:[%s14492_s6 + $0x28] sm:$0xff]  ;;  %v1396_v20 = vld [vmem:[%s14492_s6 + $0x30] sm:$0xff] }
 0x2e2   :  { %v8619_v9 = vpack.c.bf16 %v1351_v11, %v1350_v54  ;;  %v11085_v57 = vadd.f32 %v1367_v8, %v1351_v11  ;;  %v1392_v8 = vld [vmem:[%s14492_s6 + $0x10] sm:$0xff] }
 0x2e3   :  { %v344_v29 = vadd.f32 %v10924_v16, %v324_v12 }
 0x2e4   :  { %v288_v19 = vpop.permute.xlu1 %287  ;;  %8620 = vmatprep.subr.bf16.mxu1 %v8619_v9  ;;  %7148 = vmatmul.mubr.msk.f32.gmra.mrb[32].mxu0 %vm1621_vm4, %v11073_v45  ;;  %14690 = vst [vmem:[#allocation19_spill] sm:$0xff] %v11085_v57  ;;  %v1318_v3 = vpop.permute.xlu0 %1317 }
 0x2e5   :  { %8622 = vmatpush3.bf16.msra.mxu1 %v8619_v9  ;;  %1788 = vmatprep.mubr.f32.mxu0 %v14686_v58  ;;  %v309_v38 = vmul.f32 %v10910_v55, %v288_v19  ;;  %v1354_v15 = vsel %vm1341_vm6, %v1257_v7, %v1318_v3 }
 0x2e6   :  { %v11122_v32 = vadd.f32 %v1370_v33, %v1354_v15 }
 0x2e7   :  { %v325_v55 = vadd.f32 %v309_v38, %v225_v18  ;;  %v1397_v18 = vld [vmem:[%s14492_s6 + $0x38] sm:$0xff]  ;;  %v1398_v38 = vld [vmem:[%s14492_s6 + $0x40] sm:$0xff] }
 0x2e8   :  { %v1314_v21 = vpop.permute.xlu1 %1313  ;;  %7149 = vmatmul.mubr.msk.f32.gmra.mrb[34].mxu0 %vm1621_vm4, %v11085_v57  ;;  %14693 = vst [vmem:[#allocation12_spill] sm:$0xff] %v11122_v32 }
 0x2e9   :  { %v1352_v59 = vsel %vm1341_vm6, %v1255_v2, %v1314_v21  ;;  %1794 = vmatprep.mubr.f32.mxu0 %v14686_v58  ;;  %v345_v1 = vadd.f32 %v10924_v16, %v325_v55  ;;  %v360_v16 = vmax.f32 %v344_v29, 0.0  ;;  %v1402_v2 = vld [vmem:[%s14492_s6 + $0x60] sm:$0xff]  ;;  %v1403_v21 = vld [vmem:[%s14492_s6 + $0x68] sm:$0xff] }
 0x2ea   :  { %v11098_v17 = vadd.f32 %v1368_v35, %v1352_v59  ;;  %v1401_v35 = vld [vmem:[%s14492_s6 + $0x58] sm:$0xff] }
 0x2eb   :  { %v361_v0 = vmax.f32 %v345_v1, 0.0  ;;  %v1259_v24 = vadd.f32 %v10895_v26, %v360_v16  ;;  %v1391_v26 = vld [vmem:[%s14492_s6 + $0x8] sm:$0xff] }
 0x2ec   :  { %14691 = vst [vmem:[#allocation13_spill] sm:$0xff] %v11098_v17  ;;  %v1316_v41 = vpop.permute.xlu1 %1315  ;;  %7150 = vmatmul.mubr.msk.f32.gmra.mrb[36].mxu0 %vm1621_vm4, %v11098_v17 }
 0x2ed   :  { %v1353_v47 = vsel %vm1341_vm6, %v1256_v28, %v1316_v41  ;;  %1800 = vmatprep.mubr.f32.mxu0 %v14686_v58  ;;  %v1260_v56 = vadd.f32 %v10888_v34, %v361_v0  ;;  %v1373_v34 = vld [vmem:[%s14685_s21 + $0x78] sm:$0xff] }
 0x2ee   :  { %v11111_v46 = vadd.f32 %v1369_v44, %v1353_v47  ;;  %v8623_v5 = vpack.c.bf16 %v1353_v47, %v1352_v59  ;;  %v1405_v59 = vld [vmem:[%s14492_s6 + $0x78] sm:$0xff]  ;;  %s9926_s6 = smov 64  }
 0x2f0   :  { %14692 = vst [vmem:[#allocation42_spill] sm:$0xff] %v11111_v46  ;;  %v1320_v43 = vpop.permute.xlu1 %1319  ;;  %8624 = vmatprep.subr.bf16.mxu1 %v8623_v5  ;;  %7151 = vmatmul.mubr.msk.f32.gmra.mrb[38].mxu0 %vm1621_vm4, %v11111_v46 }
 0x2f1   :  { %v1355_v25 = vsel %vm1341_vm6, %v1258_v4, %v1320_v43  ;;  %8626 = vmatpush3.bf16.msra.mxu1 %v8623_v5  ;;  %1806 = vmatprep.mubr.f32.mxu0 %v14686_v58 }
 0x2f2   :  { %v8627_v54 = vpack.c.bf16 %v1355_v25, %v1354_v15  ;;  %v11130_v51 = vadd.f32 %v1371_v53, %v1355_v25 }
 0x2f4   :  { %8628 = vmatprep.subr.bf16.mxu1 %v8627_v54  ;;  %7152 = vmatmul.mubr.msk.f32.gmra.mrb[40].mxu0 %vm1621_vm4, %v11122_v32  ;;  %v1324_v50 = vpop.permute.xlu1 %1323  ;;  %14694 = vst [vmem:[#allocation14_spill] sm:$0xff] %v11130_v51 }
 0x2f5   :  { %8630 = vmatpush3.bf16.msra.mxu1 %v8627_v54  ;;  %1812 = vmatprep.mubr.f32.mxu0 %v14686_v58  ;;  %v1357_v9 = vsel %vm1341_vm6, %v1260_v56, %v1324_v50 }
 0x2f6   :  { %v11156_v19 = vadd.f32 %v1373_v34, %v1357_v9 }
 0x2f7   :  { %v1322_v11 = vpop.permute.xlu0 %1321 }
 0x2f8   :  { %7153 = vmatmul.mubr.msk.f32.gmra.mrb[42].mxu0 %vm1621_vm4, %v11130_v51  ;;  %v1356_v63 = vsel %vm1341_vm6, %v1259_v24, %v1322_v11  ;;  %14696 = vst [vmem:[#allocation18_spill] sm:$0xff] %v11156_v19 }
 0x2f9   :  { %v11141_v14 = vadd.f32 %v1372_v39, %v1356_v63  ;;  %v8631_v30 = vpack.c.bf16 %v1357_v9, %v1356_v63  ;;  %1818 = vmatprep.mubr.f32.mxu0 %v14686_v58 }
 0x2fb   :  { %14695 = vst [vmem:[#allocation22_spill] sm:$0xff] %v11141_v14  ;;  %8632 = vmatprep.subr.bf16.mxu1 %v8631_v30 }
 0x2fc   :  { %7154 = vmatmul.mubr.msk.f32.gmra.mrb[44].mxu0 %vm1621_vm4, %v11141_v14  ;;  %8634 = vmatpush3.bf16.msra.mxu1 %v8631_v30 }
 0x2fd   :  { %1824 = vmatprep.mubr.f32.mxu0 %v14686_v58 }
 0x2ff   :  { %7904 = vmatmul.mubr.f32.vlgmr.msra.gmra.mrb[0].mxu1 %v1391_v26 }
 0x300   :  { %7155 = vmatmul.mubr.msk.f32.gmra.mrb[46].mxu0 %vm1621_vm4, %v11156_v19  ;;  %7906 = vmatprep.mubr.f32.mxu1 %v1392_v8 }
 0x303   :  { %7907 = vmatmul.mubr.f32.gmra.mrb[2].mxu1 %v1393_v23 }
 0x304   :  { %7909 = vmatprep.mubr.f32.mxu1 %v1394_v61 }
 0x307   :  { %7910 = vmatmul.mubr.f32.gmra.mrb[4].mxu1 %v1395_v27 }
 0x308   :  { %7912 = vmatprep.mubr.f32.mxu1 %v1396_v20 }
 0x30b   :  { %7913 = vmatmul.mubr.f32.gmra.mrb[6].mxu1 %v1397_v18 }
 0x30c   :  { %7915 = vmatprep.mubr.f32.mxu1 %v1398_v38 }
 0x30f   :  { %7916 = vmatmul.mubr.f32.gmra.mrb[8].mxu1 %v1399_v60 }
 0x310   :  { %7918 = vmatprep.mubr.f32.mxu1 %v1400_v37 }
 0x313   :  { %7919 = vmatmul.mubr.f32.gmra.mrb[10].mxu1 %v1401_v35 }
 0x314   :  { %7921 = vmatprep.mubr.f32.mxu1 %v1402_v2 }
 0x317   :  { %7922 = vmatmul.mubr.f32.gmra.mrb[12].mxu1 %v1403_v21 }
 0x318   :  { %7924 = vmatprep.mubr.f32.mxu1 %v1404_v31 }
 0x31b   :  { %7925 = vmatmul.mubr.f32.gmra.mrb[14].mxu1 %v1405_v59 }
 0x375   :  { %v11199_v12 = vpop.f32.mrb[16].mxu0 }
 0x376   :  { %v11201_v55 = vpop.f32.mrb[17].mxu0  ;;  %7959 = vmatprep.mubr.msk.f32.mxu1 %vm1341_vm6, %v11199_v12 }
 0x379   :  { %v11205_v48 = vpop.f32.mrb[18].mxu0 }
 0x37a   :  { %v11209_v44 = vpack.i.bf16 %v11205_v48, %v11199_v12  ;;  %v11211_v28 = vpop.f32.mrb[19].mxu0 }
 0x37b   :  { %v8699_v41 = vpack.c.bf16 %v11211_v28, %v11201_v55 }
 0x37c   :  { %9186 = vrot.lane.b32.xlu0 %v11209_v44, %s9926_s6 }
 0x37d   :  { %8700 = vmatprep.subr.bf16.mxu0 %v8699_v41 }
 0x37e   :  { %8702 = vmatpush3.bf16.msra.mxu0 %v8699_v41 }
 0x38d   :  { %v11219_v7 = vpop.f32.mrb[20].mxu0 }
 0x38e   :  { %v11221_v47 = vpop.f32.mrb[21].mxu0 }
 0x391   :  { %v11223_v29 = vpop.f32.mrb[22].mxu0 }
 0x392   :  { %v11227_v1 = vpack.i.bf16 %v11223_v29, %v11219_v7  ;;  %v11229_v5 = vpop.f32.mrb[23].mxu0 }
 0x393   :  { %v9270_v33 = vpack.i.bf16 %v11229_v5, %v11221_v47  ;;  %v8703_v15 = vpack.c.bf16 %v11229_v5, %v11221_v47  ;;  %v14700_v47 = vpack.i.bf16 %v11211_v28, %v11201_v55 }
 0x394   :  { %9191 = vrot.lane.b32.xlu1 %v11227_v1, %s9926_s6 }
 0x395   :  { %v11237_v4 = vpop.f32.mrb[24].mxu0  ;;  %8704 = vmatprep.subr.bf16.mxu0 %v8703_v15 }
 0x396   :  { %v11239_v43 = vpop.f32.mrb[25].mxu0  ;;  %8706 = vmatpush3.bf16.msra.mxu0 %v8703_v15 }
 0x399   :  { %v11241_v25 = vpop.f32.mrb[26].mxu0 }
 0x39a   :  { %v9235_v16 = vpack.i.bf16 %v11241_v25, %v11237_v4  ;;  %v11245_v0 = vpop.f32.mrb[27].mxu0 }
 0x39b   :  { %v8707_v53 = vpack.c.bf16 %v11245_v0, %v11239_v43  ;;  %v14701_v5 = vpack.i.bf16 %v11245_v0, %v11239_v43 }
 0x39c   :  { %9196 = vrot.lane.b32.xlu0 %v9235_v16, %s9926_s6 }
 0x39d   :  { %8708 = vmatprep.subr.bf16.mxu0 %v8707_v53 }
 0x39e   :  { %8710 = vmatpush3.bf16.msra.mxu0 %v8707_v53 }
 0x3af   :  { %v11252_v50 = vpop.f32.mrb[28].mxu0 }
 0x3b0   :  { %v11254_v56 = vpop.f32.mrb[29].mxu0 }
 0x3b3   :  { %v11256_v24 = vpop.f32.mrb[30].mxu0 }
 0x3b4   :  { %v9240_v39 = vpack.i.bf16 %v11256_v24, %v11252_v50  ;;  %v11260_v11 = vpop.f32.mrb[31].mxu0 }
 0x3b5   :  { %v8711_v63 = vpack.c.bf16 %v11260_v11, %v11254_v56  ;;  %v14702_v55 = vpack.i.bf16 %v11260_v11, %v11254_v56 }
 0x3b6   :  { %9201 = vrot.lane.b32.xlu1 %v9240_v39, %s9926_s6 }
 0x3b7   :  { %v11267_v30 = vpop.f32.mrb[32].mxu0  ;;  %8712 = vmatprep.subr.bf16.mxu0 %v8711_v63 }
 0x3b8   :  { %v11269_v34 = vpop.f32.mrb[33].mxu0  ;;  %8714 = vmatpush3.bf16.msra.mxu0 %v8711_v63 }
 0x3bb   :  { %v11271_v26 = vpop.f32.mrb[34].mxu0 }
 0x3bc   :  { %v9245_v8 = vpack.i.bf16 %v11271_v26, %v11267_v30  ;;  %v11275_v23 = vpop.f32.mrb[35].mxu0 }
 0x3bd   :  { %v9285_v61 = vpack.i.bf16 %v11275_v23, %v11269_v34  ;;  %v8715_v27 = vpack.c.bf16 %v11275_v23, %v11269_v34 }
 0x3be   :  { %9206 = vrot.lane.b32.xlu0 %v9245_v8, %s9926_s6 }
 0x3bf   :  { %v11282_v20 = vpop.f32.mrb[36].mxu0  ;;  %8716 = vmatprep.subr.bf16.mxu0 %v8715_v27 }
 0x3c0   :  { %v11284_v18 = vpop.f32.mrb[37].mxu0  ;;  %8718 = vmatpush3.bf16.msra.mxu0 %v8715_v27 }
 0x3c3   :  { %v11286_v38 = vpop.f32.mrb[38].mxu0 }
 0x3c4   :  { %v9250_v60 = vpack.i.bf16 %v11286_v38, %v11282_v20  ;;  %v11290_v37 = vpop.f32.mrb[39].mxu0 }
 0x3c5   :  { %v8719_v2 = vpack.c.bf16 %v11290_v37, %v11284_v18  ;;  %v14703_v28 = vpack.i.bf16 %v11290_v37, %v11284_v18 }
 0x3c6   :  { %9211 = vrot.lane.b32.xlu1 %v9250_v60, %s9926_s6 }
 0x3c7   :  { %v11297_v21 = vpop.f32.mrb[40].mxu0  ;;  %8720 = vmatprep.subr.bf16.mxu0 %v8719_v2 }
 0x3c8   :  { %v11299_v31 = vpop.f32.mrb[41].mxu0  ;;  %8722 = vmatpush3.bf16.msra.mxu0 %v8719_v2 }
 0x3cb   :  { %v11301_v59 = vpop.f32.mrb[42].mxu0 }
 0x3cc   :  { %v9255_v41 = vpack.i.bf16 %v11301_v59, %v11297_v21  ;;  %v11305_v15 = vpop.f32.mrb[43].mxu0 }
 0x3cd   :  { %v8723_v63 = vpack.c.bf16 %v11305_v15, %v11299_v31 }
 0x3ce   :  { %9216 = vrot.lane.b32.xlu0 %v9255_v41, %s9926_s6 }
 0x3cf   :  { %v11312_v27 = vpop.f32.mrb[44].mxu0  ;;  %8724 = vmatprep.subr.bf16.mxu0 %v8723_v63 }
 0x3d0   :  { %v11314_v35 = vpop.f32.mrb[45].mxu0  ;;  %8726 = vmatpush3.bf16.msra.mxu0 %v8723_v63 }
 0x3d2   :  { %9226 = vrot.lane.b32.xlu0 %v11209_v44, %s9925_s9 }
 0x3d3   :  { %v11318_v2 = vpop.f32.mrb[46].mxu0 }
 0x3d4   :  { %v9260_v9 = vpack.i.bf16 %v11318_v2, %v11312_v27  ;;  %v11322_v53 = vpop.f32.mrb[47].mxu0 }
 0x3d5   :  { %v8727_v3 = vpack.c.bf16 %v11322_v53, %v11314_v35 }
 0x3d6   :  { %9236 = vrot.lane.b32.xlu0 %v9235_v16, %s9925_s9  ;;  %9221 = vrot.lane.b32.xlu1 %v9260_v9, %s9926_s6 }
 0x3d7   :  { %8728 = vmatprep.subr.bf16.mxu0 %v8727_v3 }
 0x3d8   :  { %8730 = vmatpush3.bf16.msra.mxu0 %v8727_v3 }
 0x3da   :  { %9246 = vrot.lane.b32.xlu0 %v9245_v8, %s9925_s9  ;;  %9231 = vrot.lane.b32.xlu1 %v11227_v1, %s9925_s9  ;;  %v14697_v1 = vmov 0 }
 0x3db   :  { %v14698_v1 = vsel %vm11351_vm5, 4294967295, %v14697_v1 }
 0x3dc   :  { %14699 = vst [vmem:[#allocation31_spill] sm:$0xff] %v14698_v1 }
 0x3de   :  { %9256 = vrot.lane.b32.xlu0 %v9255_v41, %s9925_s9  ;;  %9241 = vrot.lane.b32.xlu1 %v9240_v39, %s9925_s9 }
 0x3e2   :  { %2377 = vrot.lane.b32.xlu0 %v11199_v12, %s9924_s30  ;;  %9251 = vrot.lane.b32.xlu1 %v9250_v60, %s9925_s9 }
 0x3e6   :  { %2381 = vrot.lane.b32.xlu0 %v11219_v7, %s9924_s30  ;;  %9261 = vrot.lane.b32.xlu1 %v9260_v9, %s9925_s9 }
 0x3ea   :  { %2385 = vrot.lane.b32.xlu0 %v11237_v4, %s9924_s30  ;;  %2379 = vrot.lane.b32.xlu1 %v11205_v48, %s9924_s30 }
 0x3ee   :  { %2389 = vrot.lane.b32.xlu0 %v11252_v50, %s9924_s30  ;;  %2383 = vrot.lane.b32.xlu1 %v11223_v29, %s9924_s30  ;;  %v9187_v12 = vpop.permute.xlu0 %9186 }
 0x3ef   :  { %v9189_v44 = vunpack.i.h.bf16 %v9187_v12  ;;  %v9188_v3 = vunpack.i.l.bf16 %v9187_v12 }
 0x3f1   :  { %v8651_v16 = vpack.c.bf16 %v9189_v44, %v9188_v3  ;;  %v11415_v44 = vpop.f32.mrb[0].mxu1 }
 0x3f2   :  { %2393 = vrot.lane.b32.xlu0 %v11267_v30, %s9924_s30  ;;  %2387 = vrot.lane.b32.xlu1 %v11241_v25, %s9924_s30  ;;  %14704 = vst [vmem:[#allocation15_spill] sm:$0xff] %v11415_v44  ;;  %v11417_v3 = vpop.f32.mrb[1].mxu1 }
 0x3f3   :  { %8653 = vmatprep.subr.msk.bf16.mxu1 %vm11351_vm5, %v8651_v16  ;;  %14705 = vst [vmem:[#allocation47_spill] sm:$0xff] %v11417_v3  ;;  %v11419_v18 = vpop.f32.mrb[2].mxu1 }
 0x3f4   :  { %8656 = vmatpush3.bf16.xpose.msk.msra.mxu1 %vm11351_vm5, %v8651_v16  ;;  %14706 = vst [vmem:[#allocation23_spill] sm:$0xff] %v11419_v18  ;;  %v11421_v37 = vpop.f32.mrb[3].mxu1 }
 0x3f5   :  { %14707 = vst [vmem:[#allocation33_spill] sm:$0xff] %v11421_v37 }
 0x3f6   :  { %2397 = vrot.lane.b32.xlu0 %v11282_v20, %s9924_s30  ;;  %2391 = vrot.lane.b32.xlu1 %v11256_v24, %s9924_s30 }
 0x3fa   :  { %2401 = vrot.lane.b32.xlu0 %v11297_v21, %s9924_s30  ;;  %2395 = vrot.lane.b32.xlu1 %v11271_v26, %s9924_s30 }
 0x3fe   :  { %2405 = vrot.lane.b32.xlu0 %v11312_v27, %s9924_s30  ;;  %2399 = vrot.lane.b32.xlu1 %v11286_v38, %s9924_s30 }
 0x402   :  { %9271 = vrot.lane.b32.xlu0 %v9270_v33, %s9924_s30  ;;  %2403 = vrot.lane.b32.xlu1 %v11301_v59, %s9924_s30 }
 0x406   :  { %v9192_v39 = vpop.permute.xlu1 %9191  ;;  %9286 = vrot.lane.b32.xlu0 %v9285_v61, %s9924_s30  ;;  %2407 = vrot.lane.b32.xlu1 %v11318_v2, %s9924_s30 }
 0x407   :  { %v9194_v9 = vunpack.i.h.bf16 %v9192_v39  ;;  %v9193_v8 = vunpack.i.l.bf16 %v9192_v39  ;;  %v11425_v39 = vpop.f32.mrb[4].mxu1 }
 0x408   :  { %14708 = vst [vmem:[#allocation17_spill] sm:$0xff] %v11425_v39 }
 0x409   :  { %v8657_v60 = vpack.c.bf16 %v9194_v9, %v9193_v8  ;;  %v11429_v9 = vpop.f32.mrb[5].mxu1 }
 0x40a   :  { %9266 = vrot.lane.b32.xlu1 %v14700_v47, %s9924_s30  ;;  %14709 = vst [vmem:[#allocation25_spill] sm:$0xff] %v11429_v9  ;;  %v11431_v8 = vpop.f32.mrb[6].mxu1 }
 0x40b   :  { %8659 = vmatprep.subr.msk.bf16.mxu1 %vm11351_vm5, %v8657_v60  ;;  %14710 = vst [vmem:[#allocation21_spill] sm:$0xff] %v11431_v8  ;;  %v11433_v47 = vpop.f32.mrb[7].mxu1 }
 0x40c   :  { %8662 = vmatpush3.bf16.xpose.msk.msra.mxu1 %vm11351_vm5, %v8657_v60  ;;  %14711 = vst [vmem:[#allocation48_spill] sm:$0xff] %v11433_v47 }
 0x40e   :  { %9276 = vrot.lane.b32.xlu1 %v14701_v5, %s9924_s30  ;;  %v9197_v33 = vpop.permute.xlu0 %9196 }
 0x40f   :  { %v9199_v34 = vunpack.i.h.bf16 %v9197_v33  ;;  %v9198_v23 = vunpack.i.l.bf16 %v9197_v33 }
 0x411   :  { %v8663_v61 = vpack.c.bf16 %v9199_v34, %v9198_v23  ;;  %v11435_v34 = vpop.f32.mrb[8].mxu1 }
 0x412   :  { %9281 = vrot.lane.b32.xlu1 %v14702_v55, %s9924_s30  ;;  %14712 = vst [vmem:[#allocation32_spill] sm:$0xff] %v11435_v34  ;;  %v11437_v23 = vpop.f32.mrb[9].mxu1  ;;  %v1581_v34 = vld [vmem:[%s14493_s7 + $0x70] sm:$0xff] }
 0x413   :  { %8665 = vmatprep.subr.msk.bf16.mxu1 %vm11351_vm5, %v8663_v61  ;;  %14713 = vst [vmem:[#allocation20_spill] sm:$0xff] %v11437_v23  ;;  %v11439_v55 = vpop.f32.mrb[10].mxu1 }
 0x414   :  { %8668 = vmatpush3.bf16.xpose.msk.msra.mxu1 %vm11351_vm5, %v8663_v61  ;;  %14714 = vst [vmem:[#allocation26_spill] sm:$0xff] %v11439_v55 }
 0x416   :  { %9291 = vrot.lane.b32.xlu1 %v14703_v28, %s9924_s30  ;;  %v11441_v28 = vpop.f32.mrb[11].mxu1 }
 0x417   :  { %14715 = vst [vmem:[#allocation28_spill] sm:$0xff] %v11441_v28 }
 0x428   :  { %v9202_v43 = vpop.permute.xlu1 %9201 }
 0x429   :  { %v9204_v0 = vunpack.i.h.bf16 %v9202_v43  ;;  %v9203_v41 = vunpack.i.l.bf16 %v9202_v43  ;;  %v11445_v43 = vpop.f32.mrb[12].mxu1 }
 0x42a   :  { %14716 = vst [vmem:[#allocation35_spill] sm:$0xff] %v11445_v43 }
 0x42b   :  { %v8669_v63 = vpack.c.bf16 %v9204_v0, %v9203_v41  ;;  %v11449_v0 = vpop.f32.mrb[13].mxu1 }
 0x42c   :  { %14717 = vst [vmem:[#allocation24_spill] sm:$0xff] %v11449_v0  ;;  %v11451_v41 = vpop.f32.mrb[14].mxu1 }
 0x42d   :  { %8671 = vmatprep.subr.msk.bf16.mxu1 %vm11351_vm5, %v8669_v63  ;;  %14718 = vst [vmem:[#allocation30_spill] sm:$0xff] %v11451_v41 }
 0x42e   :  { %8674 = vmatpush3.bf16.xpose.msk.msra.mxu1 %vm11351_vm5, %v8669_v63 }
 0x430   :  { %v9207_v56 = vpop.permute.xlu0 %9206 }
 0x431   :  { %v9209_v11 = vunpack.i.h.bf16 %v9207_v56  ;;  %v9208_v12 = vunpack.i.l.bf16 %v9207_v56  ;;  %v11453_v56 = vpop.f32.mrb[15].mxu1 }
 0x432   :  { %14719 = vst [vmem:[#allocation27_spill] sm:$0xff] %v11453_v56 }
 0x433   :  { %v8675_v16 = vpack.c.bf16 %v9209_v11, %v9208_v12 }
 0x435   :  { %8677 = vmatprep.subr.msk.bf16.mxu1 %vm11351_vm5, %v8675_v16 }
 0x436   :  { %8680 = vmatpush3.bf16.xpose.msk.msra.mxu1 %vm11351_vm5, %v8675_v16 }
 0x438   :  { %v9212_v60 = vpop.permute.xlu1 %9211 }
 0x439   :  { %v9214_v5 = vunpack.i.h.bf16 %v9212_v60  ;;  %v9213_v33 = vunpack.i.l.bf16 %v9212_v60 }
 0x43b   :  { %v8681_v61 = vpack.c.bf16 %v9214_v5, %v9213_v33 }
 0x43d   :  { %8683 = vmatprep.subr.msk.bf16.mxu1 %vm11351_vm5, %v8681_v61 }
 0x43e   :  { %8686 = vmatpush3.bf16.xpose.msk.msra.mxu1 %vm11351_vm5, %v8681_v61 }
 0x440   :  { %v9217_v63 = vpop.permute.xlu0 %9216 }
 0x441   :  { %v9219_v11 = vunpack.i.h.bf16 %v9217_v63  ;;  %v9218_v12 = vunpack.i.l.bf16 %v9217_v63 }
 0x443   :  { %v8687_v16 = vpack.c.bf16 %v9219_v11, %v9218_v12 }
 0x444   :  { %v9227_v60 = vpop.permute.xlu0 %9226 }
 0x445   :  { %8689 = vmatprep.subr.msk.bf16.mxu1 %vm11351_vm5, %v8687_v16  ;;  %v9229_v33 = vunpack.i.h.bf16 %v9227_v60  ;;  %v9228_v61 = vunpack.i.l.bf16 %v9227_v60 }
 0x446   :  { %8692 = vmatpush3.bf16.xpose.msk.msra.mxu1 %vm11351_vm5, %v8687_v16 }
 0x447   :  { %v8731_v55 = vpack.c.bf16 %v9229_v33, %v9228_v61 }
 0x448   :  { %v9222_v5 = vpop.permute.xlu1 %9221 }
 0x449   :  { %v9224_v54 = vunpack.i.h.bf16 %v9222_v5  ;;  %v9223_v43 = vunpack.i.l.bf16 %v9222_v5 }
 0x44b   :  { %v8693_v0 = vpack.c.bf16 %v9224_v54, %v9223_v43  ;;  %v9237_v54 = vpop.permute.xlu0 %9236 }
 0x44c   :  { %v9232_v41 = vpop.permute.xlu1 %9231  ;;  %v9238_v60 = vunpack.i.l.bf16 %v9237_v54 }
 0x44d   :  { %8695 = vmatprep.subr.msk.bf16.mxu1 %vm11351_vm5, %v8693_v0  ;;  %v9234_v11 = vunpack.i.h.bf16 %v9232_v41  ;;  %v9233_v12 = vunpack.i.l.bf16 %v9232_v41 }
 0x44e   :  { %8698 = vmatpush3.bf16.xpose.msk.msra.mxu1 %vm11351_vm5, %v8693_v0  ;;  %v9239_v0 = vunpack.i.h.bf16 %v9237_v54 }
 0x44f   :  { %8733 = vmatprep.subr.msk.bf16.mxu1 %vm11351_vm5, %v8731_v55  ;;  %v8737_v56 = vpack.c.bf16 %v9234_v11, %v9233_v12 }
 0x450   :  { %v9242_v63 = vpop.permute.xlu1 %9241  ;;  %v8743_v41 = vpack.c.bf16 %v9239_v0, %v9238_v60 }
 0x454   :  { %v9252_v16 = vpop.permute.xlu1 %9251 }
 0x455   :  { %7960 = vmatmul.mubr.msk.f32.vlgmr.msra.gmra.mrb[16].mxu1 %vm1341_vm6, %v11205_v48  ;;  %v9253_v61 = vunpack.i.l.bf16 %v9252_v16 }
 0x456   :  { %7962 = vmatprep.mubr.msk.f32.mxu1 %vm1341_vm6, %v11219_v7  ;;  %8736 = vmatpush3.bf16.xpose.msk.msra.mxu1 %vm11351_vm5, %v8731_v55  ;;  %v9244_v55 = vunpack.i.h.bf16 %v9242_v63 }
 0x457   :  { %8739 = vmatprep.subr.msk.bf16.mxu1 %vm11351_vm5, %v8737_v56 }
 0x458   :  { %v9262_v43 = vpop.permute.xlu1 %9261 }
 0x459   :  { %7963 = vmatmul.mubr.msk.f32.gmra.mrb[18].mxu1 %vm1341_vm6, %v11223_v29  ;;  %v9243_v29 = vunpack.i.l.bf16 %v9242_v63 }
 0x45a   :  { %7965 = vmatprep.mubr.msk.f32.mxu1 %vm1341_vm6, %v11237_v4 }
 0x45b   :  { %v8749_v5 = vpack.c.bf16 %v9244_v55, %v9243_v29  ;;  %v9263_v55 = vunpack.i.l.bf16 %v9262_v43 }
 0x45c   :  { %v2380_v48 = vpop.permute.xlu1 %2379 }
 0x45d   :  { %7966 = vmatmul.mubr.msk.f32.gmra.mrb[20].mxu1 %vm1341_vm6, %v11241_v25  ;;  %v9247_v25 = vpop.permute.xlu0 %9246 }
 0x45e   :  { %7968 = vmatprep.mubr.msk.f32.mxu1 %vm1341_vm6, %v11252_v50  ;;  %8742 = vmatpush3.bf16.xpose.msk.msra.mxu1 %vm11351_vm5, %v8737_v56  ;;  %v9248_v56 = vunpack.i.l.bf16 %v9247_v25 }
 0x45f   :  { %8745 = vmatprep.subr.msk.bf16.mxu1 %vm11351_vm5, %v8743_v41 }
 0x460   :  { %v2384_v7 = vpop.permute.xlu1 %2383 }
 0x461   :  { %7969 = vmatmul.mubr.msk.f32.gmra.mrb[22].mxu1 %vm1341_vm6, %v11256_v24  ;;  %v9249_v24 = vunpack.i.h.bf16 %v9247_v25 }
 0x462   :  { %7971 = vmatprep.mubr.msk.f32.mxu1 %vm1341_vm6, %v11267_v30  ;;  %v9257_v30 = vpop.permute.xlu0 %9256 }
 0x463   :  { %v8755_v33 = vpack.c.bf16 %v9249_v24, %v9248_v56  ;;  %v9259_v11 = vunpack.i.h.bf16 %v9257_v30  ;;  %v9258_v12 = vunpack.i.l.bf16 %v9257_v30 }
 0x464   :  { %v2388_v4 = vpop.permute.xlu1 %2387 }
 0x465   :  { %7972 = vmatmul.mubr.msk.f32.gmra.mrb[24].mxu1 %vm1341_vm6, %v11271_v26  ;;  %v8767_v0 = vpack.c.bf16 %v9259_v11, %v9258_v12 }
 0x466   :  { %7974 = vmatprep.mubr.msk.f32.mxu1 %vm1341_vm6, %v11282_v20  ;;  %8748 = vmatpush3.bf16.xpose.msk.msra.mxu1 %vm11351_vm5, %v8743_v41  ;;  %v2378_v63 = vpop.permute.xlu0 %2377  ;;  %v9264_v41 = vunpack.i.h.bf16 %v9262_v43 }
 0x467   :  { %8751 = vmatprep.subr.msk.bf16.mxu1 %vm11351_vm5, %v8749_v5 }
 0x468   :  { %v2392_v50 = vpop.permute.xlu1 %2391  ;;  %v8773_v29 = vpack.c.bf16 %v9264_v41, %v9263_v55 }
 0x469   :  { %7975 = vmatmul.mubr.msk.f32.gmra.mrb[26].mxu1 %vm1341_vm6, %v11286_v38  ;;  %v9254_v38 = vunpack.i.h.bf16 %v9252_v16 }
 0x46a   :  { %7977 = vmatprep.mubr.msk.f32.mxu1 %vm1341_vm6, %v11297_v21  ;;  %v2382_v25 = vpop.permute.xlu0 %2381 }
 0x46c   :  { %v2396_v26 = vpop.permute.xlu1 %2395 }
 0x46d   :  { %7978 = vmatmul.mubr.msk.f32.gmra.mrb[28].mxu1 %vm1341_vm6, %v11301_v59  ;;  %v8761_v59 = vpack.c.bf16 %v9254_v38, %v9253_v61  ;;  %v11563_v38 = vld [vmem:[%s14493_s7 + $0x18] sm:$0xff] }
 0x46e   :  { %7980 = vmatprep.mubr.msk.f32.mxu1 %vm1341_vm6, %v11312_v27  ;;  %8754 = vmatpush3.bf16.xpose.msk.msra.mxu1 %vm11351_vm5, %v8749_v5  ;;  %v2386_v5 = vpop.permute.xlu0 %2385 }
 0x46f   :  { %8757 = vmatprep.subr.msk.bf16.mxu1 %vm11351_vm5, %v8755_v33 }
 0x470   :  { %v2400_v20 = vpop.permute.xlu1 %2399 }
 0x471   :  { %7981 = vmatmul.mubr.msk.f32.gmra.mrb[30].mxu1 %vm1341_vm6, %v11318_v2 }
 0x472   :  { %8071 = vmatprep.mubr.msk.f32.mxu1 %vm1341_vm6, %v2378_v63  ;;  %v2390_v24 = vpop.permute.xlu0 %2389 }
 0x474   :  { %v2404_v21 = vpop.permute.xlu1 %2403 }
 0x476   :  { %8760 = vmatpush3.bf16.xpose.msk.msra.mxu1 %vm11351_vm5, %v8755_v33  ;;  %v2394_v43 = vpop.permute.xlu0 %2393 }
 0x477   :  { %8763 = vmatprep.subr.msk.bf16.mxu1 %vm11351_vm5, %v8761_v59 }
 0x478   :  { %v2408_v27 = vpop.permute.xlu1 %2407 }
 0x47a   :  { %v2398_v56 = vpop.permute.xlu0 %2397 }
 0x47c   :  { %v9267_v54 = vpop.permute.xlu1 %9266 }
 0x47d   :  { %v9269_v16 = vunpack.i.h.bf16 %v9267_v54  ;;  %v9268_v60 = vunpack.i.l.bf16 %v9267_v54 }
 0x47e   :  { %8766 = vmatpush3.bf16.xpose.msk.msra.mxu1 %vm11351_vm5, %v8761_v59  ;;  %v1569_v59 = vld [vmem:[%s14493_s7 + $0x10] sm:$0xff] }
 0x47f   :  { %8769 = vmatprep.subr.msk.bf16.mxu1 %vm11351_vm5, %v8767_v0  ;;  %v11520_v2 = vpack.c.bf16 %v9269_v16, %v9268_v60  ;;  %v1572_v16 = vld [vmem:[%s14493_s7 + $0x28] sm:$0xff]  ;;  %v11590_v60 = vld [vmem:[%s14493_s7 + $0x30] sm:$0xff] }
 0x481   :  { %8780 = vmatprep.subr.bf16.mxu0 %v11520_v2 }
 0x486   :  { %8772 = vmatpush3.bf16.xpose.msk.msra.mxu1 %vm11351_vm5, %v8767_v0 }
 0x487   :  { %8775 = vmatprep.subr.msk.bf16.mxu1 %vm11351_vm5, %v8773_v29 }
 0x48e   :  { %8778 = vmatpush3.bf16.xpose.msk.msra.mxu1 %vm11351_vm5, %v8773_v29 }
 0x495   :  { %8072 = vmatmul.mubr.msk.f32.vlgmr.msra.gmra.mrb[32].mxu1 %vm1341_vm6, %v2380_v48  ;;  %v2402_v48 = vpop.permute.xlu0 %2401 }
 0x496   :  { %8074 = vmatprep.mubr.msk.f32.mxu1 %vm1341_vm6, %v2382_v25 }
 0x499   :  { %8075 = vmatmul.mubr.msk.f32.gmra.mrb[34].mxu1 %vm1341_vm6, %v2384_v7  ;;  %v2406_v7 = vpop.permute.xlu0 %2405 }
 0x49a   :  { %8077 = vmatprep.mubr.msk.f32.mxu1 %vm1341_vm6, %v2386_v5  ;;  %v1574_v5 = vld [vmem:[%s14493_s7 + $0x38] sm:$0xff] }
 0x49d   :  { %8078 = vmatmul.mubr.msk.f32.gmra.mrb[36].mxu1 %vm1341_vm6, %v2388_v4  ;;  %v11547_v4 = vld [vmem:[%s14493_s7 + $0x8] sm:$0xff] }
 0x49e   :  { %8080 = vmatprep.mubr.msk.f32.mxu1 %vm1341_vm6, %v2390_v24  ;;  %v11605_v24 = vld [vmem:[%s14493_s7 + $0x40] sm:$0xff] }
 0x4a1   :  { %8081 = vmatmul.mubr.msk.f32.gmra.mrb[38].mxu1 %vm1341_vm6, %v2392_v50  ;;  %v11552_v50 = vld [vmem:[%s14493_s7] sm:$0xff] }
 0x4a2   :  { %8083 = vmatprep.mubr.msk.f32.mxu1 %vm1341_vm6, %v2394_v43 }
 0x4a5   :  { %8084 = vmatmul.mubr.msk.f32.gmra.mrb[40].mxu1 %vm1341_vm6, %v2396_v26 }
 0x4a6   :  { %8086 = vmatprep.mubr.msk.f32.mxu1 %vm1341_vm6, %v2398_v56 }
 0x4a9   :  { %8087 = vmatmul.mubr.msk.f32.gmra.mrb[42].mxu1 %vm1341_vm6, %v2400_v20 }
 0x4aa   :  { %8089 = vmatprep.mubr.msk.f32.mxu1 %vm1341_vm6, %v2402_v48 }
 0x4ad   :  { %8090 = vmatmul.mubr.msk.f32.gmra.mrb[44].mxu1 %vm1341_vm6, %v2404_v21 }
 0x4ae   :  { %8092 = vmatprep.mubr.msk.f32.mxu1 %vm1341_vm6, %v2406_v7 }
 0x4b1   :  { %8093 = vmatmul.mubr.msk.f32.gmra.mrb[46].mxu1 %vm1341_vm6, %v2408_v27  ;;  %v11576_v27 = vld [vmem:[%s14493_s7 + $0x20] sm:$0xff] }
 0x528   :  { %v7961_v30 = vpop.f32.mrb[16].mxu1 }
 0x529   :  { %v11555_v26 = vadd.f32 %v7961_v30, %v11547_v4  ;;  %v2009_v33 = vpop.f32.mrb[17].mxu1  ;;  %v1576_v30 = vld [vmem:[%s14493_s7 + $0x48] sm:$0xff] }
 0x52a   :  { %v11558_v20 = vadd.f32 %v2009_v33, %v11552_v50  ;;  %v1577_v33 = vld [vmem:[%s14493_s7 + $0x50] sm:$0xff] }
 0x52b   :  { %2090 = vmax.xlane.f32.xlu1 %v11555_v26 }
 0x52c   :  { %v7964_v61 = vpop.f32.mrb[18].mxu1  ;;  %2088 = vmax.xlane.f32.xlu0 %v11558_v20 }
 0x52d   :  { %v11568_v63 = vadd.f32 %v7964_v61, %v11563_v38  ;;  %v2019_v21 = vpop.f32.mrb[19].mxu1 }
 0x52e   :  { %v11579_v54 = vadd.f32 %v2019_v21, %v1569_v59 }
 0x530   :  { %v7967_v11 = vpop.f32.mrb[20].mxu1  ;;  %2094 = vmax.xlane.f32.xlu0 %v11568_v63 }
 0x531   :  { %v2029_v12 = vpop.f32.mrb[21].mxu1  ;;  %v11594_v29 = vadd.f32 %v7967_v11, %v1572_v16 }
 0x532   :  { %v11582_v0 = vadd.f32 %v2029_v12, %v11576_v27 }
 0x534   :  { %v7970_v41 = vpop.f32.mrb[22].mxu1  ;;  %2096 = vmax.xlane.f32.xlu1 %v11582_v0  ;;  %2092 = vmax.xlane.f32.xlu0 %v11579_v54 }
 0x535   :  { %v2039_v55 = vpop.f32.mrb[23].mxu1  ;;  %v11609_v48 = vadd.f32 %v7970_v41, %v1574_v5  ;;  %v1578_v41 = vld [vmem:[%s14493_s7 + $0x58] sm:$0xff] }
 0x536   :  { %v11597_v25 = vadd.f32 %v2039_v55, %v11590_v60  ;;  %v1579_v55 = vld [vmem:[%s14493_s7 + $0x60] sm:$0xff] }
 0x538   :  { %v7973_v43 = vpop.f32.mrb[24].mxu1  ;;  %2100 = vmax.xlane.f32.xlu1 %v11597_v25  ;;  %2098 = vmax.xlane.f32.xlu0 %v11594_v29 }
 0x539   :  { %v2049_v56 = vpop.f32.mrb[25].mxu1  ;;  %v11622_v11 = vadd.f32 %v7973_v43, %v1576_v30 }
 0x53a   :  { %v11612_v7 = vadd.f32 %v2049_v56, %v11605_v24 }
 0x53c   :  { %v7976_v61 = vpop.f32.mrb[26].mxu1  ;;  %2104 = vmax.xlane.f32.xlu1 %v11612_v7  ;;  %2102 = vmax.xlane.f32.xlu0 %v11609_v48 }
 0x53d   :  { %v2059_v21 = vpop.f32.mrb[27].mxu1  ;;  %v11634_v28 = vadd.f32 %v7976_v61, %v1578_v41 }
 0x53e   :  { %v11624_v12 = vadd.f32 %v2059_v21, %v1577_v33  ;;  %v1580_v21 = vld [vmem:[%s14493_s7 + $0x68] sm:$0xff] }
 0x540   :  { %v7979_v56 = vpop.f32.mrb[28].mxu1  ;;  %2108 = vmax.xlane.f32.xlu1 %v11624_v12  ;;  %2106 = vmax.xlane.f32.xlu0 %v11622_v11 }
 0x541   :  { %v2069_v1 = vpop.f32.mrb[29].mxu1  ;;  %v11646_v47 = vadd.f32 %v7979_v56, %v1580_v21 }
 0x542   :  { %v11636_v43 = vadd.f32 %v2069_v1, %v1579_v55  ;;  %v1582_v1 = vld [vmem:[%s14493_s7 + $0x78] sm:$0xff] }
 0x544   :  { %v7982_v23 = vpop.f32.mrb[30].mxu1  ;;  %2112 = vmax.xlane.f32.xlu1 %v11636_v43  ;;  %2110 = vmax.xlane.f32.xlu0 %v11634_v28 }
 0x545   :  { %v2079_v8 = vpop.f32.mrb[31].mxu1  ;;  %v11655_v39 = vadd.f32 %v7982_v23, %v1582_v1 }
 0x546   :  { %v11648_v61 = vadd.f32 %v2079_v8, %v1581_v34 }
 0x548   :  { %2116 = vmax.xlane.f32.xlu1 %v11648_v61  ;;  %2114 = vmax.xlane.f32.xlu0 %v11646_v47 }
 0x54c   :  { %2118 = vmax.xlane.f32.xlu0 %v11655_v39 }
 0x568   :  { %v8073_v9 = vpop.f32.mrb[32].mxu1 }
 0x569   :  { %v11659_v18 = vadd.f32 %v8073_v9, %v11547_v4  ;;  %v2571_v56 = vpop.f32.mrb[33].mxu1 }
 0x56a   :  { %v11662_v8 = vadd.f32 %v2571_v56, %v11552_v50 }
 0x56b   :  { %2652 = vmax.xlane.f32.xlu0 %v11659_v18 }
 0x56c   :  { %v8076_v37 = vpop.f32.mrb[34].mxu1  ;;  %2650 = vmax.xlane.f32.xlu1 %v11662_v8 }
 0x56d   :  { %v11667_v44 = vadd.f32 %v8076_v37, %v11563_v38  ;;  %v2581_v23 = vpop.f32.mrb[35].mxu1 }
 0x56e   :  { %v11669_v3 = vadd.f32 %v2581_v23, %v1569_v59 }
 0x56f   :  { %2656 = vmax.xlane.f32.xlu0 %v11667_v44 }
 0x570   :  { %v8079_v58 = vpop.f32.mrb[36].mxu1  ;;  %2654 = vmax.xlane.f32.xlu1 %v11669_v3 }
 0x571   :  { %v11673_v9 = vadd.f32 %v8079_v58, %v1572_v16  ;;  %v2591_v4 = vpop.f32.mrb[37].mxu1 }
 0x572   :  { %v11676_v50 = vadd.f32 %v2591_v4, %v11576_v27 }
 0x573   :  { %2660 = vmax.xlane.f32.xlu0 %v11673_v9 }
 0x574   :  { %v8082_v56 = vpop.f32.mrb[38].mxu1  ;;  %2658 = vmax.xlane.f32.xlu1 %v11676_v50 }
 0x575   :  { %v11680_v37 = vadd.f32 %v8082_v56, %v1574_v5  ;;  %v2601_v38 = vpop.f32.mrb[39].mxu1 }
 0x576   :  { %v11683_v59 = vadd.f32 %v2601_v38, %v11590_v60 }
 0x577   :  { %2664 = vmax.xlane.f32.xlu0 %v11680_v37 }
 0x578   :  { %v8085_v23 = vpop.f32.mrb[40].mxu1  ;;  %2662 = vmax.xlane.f32.xlu1 %v11683_v59 }
 0x579   :  { %v11687_v58 = vadd.f32 %v8085_v23, %v1576_v30  ;;  %v2611_v27 = vpop.f32.mrb[41].mxu1 }
 0x57a   :  { %v11690_v16 = vadd.f32 %v2611_v27, %v11605_v24 }
 0x57b   :  { %2668 = vmax.xlane.f32.xlu0 %v11687_v58 }
 0x57c   :  { %v8088_v4 = vpop.f32.mrb[42].mxu1  ;;  %2666 = vmax.xlane.f32.xlu1 %v11690_v16 }
 0x57d   :  { %v11694_v5 = vadd.f32 %v8088_v4, %v1578_v41  ;;  %v2621_v60 = vpop.f32.mrb[43].mxu1 }
 0x57e   :  { %v11696_v56 = vadd.f32 %v2621_v60, %v1577_v33 }
 0x57f   :  { %2672 = vmax.xlane.f32.xlu0 %v11694_v5 }
 0x580   :  { %v8091_v38 = vpop.f32.mrb[44].mxu1  ;;  %2670 = vmax.xlane.f32.xlu1 %v11696_v56 }
 0x581   :  { %v11700_v30 = vadd.f32 %v8091_v38, %v1580_v21  ;;  %v2631_v23 = vpop.f32.mrb[45].mxu1  ;;  %v14720_v21 = vpack.i.bf16 %v11305_v15, %v11299_v31  ;;  %v11720_v38 = vpop.permute.xlu0 %9271 }
 0x582   :  { %v11702_v24 = vadd.f32 %v2631_v23, %v1579_v55  ;;  %v11716_v55 = vpop.permute.xlu1 %9276 }
 0x583   :  { %2676 = vmax.xlane.f32.xlu0 %v11700_v30 }
 0x584   :  { %v8094_v27 = vpop.f32.mrb[46].mxu1  ;;  %2674 = vmax.xlane.f32.xlu1 %v11702_v24 }
 0x585   :  { %v11706_v41 = vadd.f32 %v8094_v27, %v1582_v1  ;;  %v2641_v4 = vpop.f32.mrb[47].mxu1  ;;  %v11724_v23 = vpop.permute.xlu0 %9286 }
 0x586   :  { %v11708_v33 = vadd.f32 %v2641_v4, %v1581_v34  ;;  %v11718_v60 = vpop.permute.xlu1 %9281 }
 0x587   :  { %2680 = vmax.xlane.f32.xlu0 %v11706_v41 }
 0x588   :  { %2678 = vmax.xlane.f32.xlu1 %v11708_v33 }
 0x58a   :  { %v11722_v1 = vpop.permute.xlu1 %9291 }
 0x59d   :  { %9296 = vrot.lane.b32.xlu0 %v14720_v21, %s9924_s30 }
 0x5b8   :  { %v2091_v34 = vpop.xlane.xlu1 %2090 }
 0x5b9   :  { %v2121_v27 = vsub.f32 %v11555_v26, %v2091_v34  ;;  %v2089_v4 = vpop.xlane.xlu0 %2088 }
 0x5ba   :  { %v2120_v42 = vsub.f32 %v11558_v20, %v2089_v4 }
 0x5bb   :  { %v2138_v62 = vmul.f32 1.442695, %v2121_v27 }
 0x5bc   :  { %v2136_v19 = vmul.f32 1.442695, %v2120_v42 }
 0x5bd   :  { %9426 = vpow2.f32 %v2138_v62  ;;  %v2095_v31 = vpop.xlane.xlu0 %2094 }
 0x5be   :  { %9428 = vpow2.f32 %v2136_v19  ;;  %v2123_v15 = vsub.f32 %v11568_v63, %v2095_v31 }
 0x5c0   :  { %v2142_v21 = vmul.f32 1.442695, %v2123_v15 }
 0x5c1   :  { %v2097_v51 = vpop.xlane.xlu1 %2096  ;;  %v2093_v14 = vpop.xlane.xlu0 %2092 }
 0x5c2   :  { %9430 = vpow2.f32 %v2142_v21  ;;  %v2124_v46 = vsub.f32 %v11582_v0, %v2097_v51  ;;  %v2122_v32 = vsub.f32 %v11579_v54, %v2093_v14 }
 0x5c4   :  { %v2140_v57 = vmul.f32 1.442695, %v2122_v32  ;;  %v2144_v17 = vmul.f32 1.442695, %v2124_v46 }
 0x5c5   :  { %v2101_v26 = vpop.xlane.xlu1 %2100  ;;  %v2099_v34 = vpop.xlane.xlu0 %2098 }
 0x5c6   :  { %v2126_v20 = vsub.f32 %v11597_v25, %v2101_v26  ;;  %v2125_v62 = vsub.f32 %v11594_v29, %v2099_v34  ;;  %9432 = vpow2.f32 %v2140_v57 }
 0x5c7   :  { %v11733_v42 = vpop.eup %9426  ;;  %9434 = vpow2.f32 %v2144_v17 }
 0x5c8   :  { %v11735_v19 = vpop.eup %9428  ;;  %v2146_v63 = vmul.f32 1.442695, %v2125_v62  ;;  %2170 = vadd.xlane.f32.xlu0 %v11733_v42  ;;  %v2148_v32 = vmul.f32 1.442695, %v2126_v20 }
 0x5c9   :  { %v2105_v27 = vpop.xlane.xlu1 %2104  ;;  %2168 = vadd.xlane.f32.xlu1 %v11735_v19  ;;  %v2103_v51 = vpop.xlane.xlu0 %2102 }
 0x5ca   :  { %v2128_v46 = vsub.f32 %v11612_v7, %v2105_v27  ;;  %v2127_v14 = vsub.f32 %v11609_v48, %v2103_v51  ;;  %9436 = vpow2.f32 %v2146_v63 }
 0x5cb   :  { %9438 = vpow2.f32 %v2148_v32 }
 0x5cc   :  { %v11741_v54 = vpop.eup %9430  ;;  %v2150_v0 = vmul.f32 1.442695, %v2127_v14  ;;  %v2152_v25 = vmul.f32 1.442695, %v2128_v46 }
 0x5cd   :  { %v2109_v57 = vpop.xlane.xlu1 %2108  ;;  %2174 = vadd.xlane.f32.xlu0 %v11741_v54  ;;  %v2107_v29 = vpop.xlane.xlu0 %2106 }
 0x5ce   :  { %v2130_v4 = vsub.f32 %v11624_v12, %v2109_v57  ;;  %v2129_v31 = vsub.f32 %v11622_v11, %v2107_v29  ;;  %9440 = vpow2.f32 %v2150_v0 }
 0x5cf   :  { %9442 = vpow2.f32 %v2152_v25 }
 0x5d0   :  { %v2154_v17 = vmul.f32 1.442695, %v2129_v31  ;;  %v11746_v15 = vpop.eup %9432  ;;  %v2156_v21 = vmul.f32 1.442695, %v2130_v4 }
 0x5d1   :  { %v2113_v7 = vpop.xlane.xlu1 %2112  ;;  %v2111_v48 = vpop.xlane.xlu0 %2110  ;;  %2172 = vadd.xlane.f32.xlu1 %v11746_v15 }
 0x5d2   :  { %v2132_v26 = vsub.f32 %v11636_v43, %v2113_v7  ;;  %v2131_v34 = vsub.f32 %v11634_v28, %v2111_v48  ;;  %9444 = vpow2.f32 %v2154_v17  ;;  %v11751_v20 = vpop.eup %9434 }
 0x5d3   :  { %9446 = vpow2.f32 %v2156_v21 }
 0x5d4   :  { %v2158_v12 = vmul.f32 1.442695, %v2131_v34  ;;  %v11753_v62 = vpop.eup %9436  ;;  %v2160_v63 = vmul.f32 1.442695, %v2132_v26 }
 0x5d5   :  { %v2115_v11 = vpop.xlane.xlu0 %2114  ;;  %2176 = vadd.xlane.f32.xlu1 %v11751_v20  ;;  %2178 = vadd.xlane.f32.xlu0 %v11753_v62  ;;  %v11758_v43 = vpop.eup %9438 }
 0x5d6   :  { %v2133_v27 = vsub.f32 %v11646_v47, %v2115_v11  ;;  %9448 = vpow2.f32 %v2158_v12  ;;  %v2117_v51 = vpop.xlane.xlu1 %2116 }
 0x5d7   :  { %9450 = vpow2.f32 %v2160_v63  ;;  %v2134_v0 = vsub.f32 %v11648_v61, %v2117_v51 }
 0x5d8   :  { %v2162_v28 = vmul.f32 1.442695, %v2133_v27  ;;  %v11760_v32 = vpop.eup %9440 }
 0x5d9   :  { %v2119_v46 = vpop.xlane.xlu0 %2118  ;;  %2180 = vadd.xlane.f32.xlu1 %v11758_v43  ;;  %2182 = vadd.xlane.f32.xlu0 %v11760_v32  ;;  %v11766_v57 = vpop.eup %9442  ;;  %v2164_v25 = vmul.f32 1.442695, %v2134_v0 }
 0x5da   :  { %v2135_v14 = vsub.f32 %v11655_v39, %v2119_v46  ;;  %9452 = vpow2.f32 %v2162_v28 }
 0x5dc   :  { %v2166_v47 = vmul.f32 1.442695, %v2135_v14  ;;  %v11768_v29 = vpop.eup %9444 }
 0x5dd   :  { %2184 = vadd.xlane.f32.xlu1 %v11766_v57  ;;  %2186 = vadd.xlane.f32.xlu0 %v11768_v29  ;;  %v11772_v4 = vpop.eup %9446 }
 0x5de   :  { %9454 = vpow2.f32 %v2166_v47 }
 0x5df   :  { %9456 = vpow2.f32 %v2164_v25 }
 0x5e0   :  { %v11774_v31 = vpop.eup %9448 }
 0x5e1   :  { %2188 = vadd.xlane.f32.xlu1 %v11772_v4  ;;  %2190 = vadd.xlane.f32.xlu0 %v11774_v31  ;;  %v11778_v39 = vpop.eup %9450 }
 0x5e4   :  { %v11780_v61 = vpop.eup %9452 }
 0x5e5   :  { %2192 = vadd.xlane.f32.xlu1 %v11778_v39  ;;  %2194 = vadd.xlane.f32.xlu0 %v11780_v61 }
 0x5e8   :  { %v11784_v17 = vpop.eup %9454 }
 0x5e9   :  { %2198 = vadd.xlane.f32.xlu0 %v11784_v17  ;;  %v11787_v7 = vpop.eup %9456 }
 0x5ed   :  { %2196 = vadd.xlane.f32.xlu0 %v11787_v7 }
 0x5f8   :  { %v2653_v48 = vpop.xlane.xlu0 %2652 }
 0x5f9   :  { %v2683_v21 = vsub.f32 %v11659_v18, %v2653_v48  ;;  %v2651_v26 = vpop.xlane.xlu1 %2650 }
 0x5fa   :  { %v2682_v34 = vsub.f32 %v11662_v8, %v2651_v26 }
 0x5fb   :  { %v2700_v12 = vmul.f32 1.442695, %v2683_v21 }
 0x5fc   :  { %v2698_v11 = vmul.f32 1.442695, %v2682_v34  ;;  %v2657_v63 = vpop.xlane.xlu0 %2656 }
 0x5fd   :  { %9458 = vpow2.f32 %v2700_v12  ;;  %v2685_v27 = vsub.f32 %v11667_v44, %v2657_v63  ;;  %v2655_v51 = vpop.xlane.xlu1 %2654 }
 0x5fe   :  { %9460 = vpow2.f32 %v2698_v11  ;;  %v2684_v28 = vsub.f32 %v11669_v3, %v2655_v51 }
 0x5ff   :  { %v2704_v46 = vmul.f32 1.442695, %v2685_v27 }
 0x600   :  { %v2661_v14 = vpop.xlane.xlu0 %2660  ;;  %v2702_v0 = vmul.f32 1.442695, %v2684_v28 }
 0x601   :  { %9462 = vpow2.f32 %v2704_v46  ;;  %v2659_v47 = vpop.xlane.xlu1 %2658 }
 0x602   :  { %v2686_v18 = vsub.f32 %v11676_v50, %v2659_v47  ;;  %9464 = vpow2.f32 %v2702_v0 }
 0x604   :  { %v2665_v25 = vpop.xlane.xlu0 %2664  ;;  %v2706_v8 = vmul.f32 1.442695, %v2686_v18 }
 0x605   :  { %v2663_v48 = vpop.xlane.xlu1 %2662 }
 0x606   :  { %v2688_v21 = vsub.f32 %v11683_v59, %v2663_v48  ;;  %9466 = vpow2.f32 %v2706_v8 }
 0x607   :  { %v11796_v26 = vpop.eup %9458 }
 0x608   :  { %v11798_v44 = vpop.eup %9460  ;;  %2732 = vadd.xlane.f32.xlu0 %v11796_v26  ;;  %v2669_v3 = vpop.xlane.xlu0 %2668  ;;  %v2710_v34 = vmul.f32 1.442695, %v2688_v21 }
 0x609   :  { %v2667_v12 = vpop.xlane.xlu1 %2666  ;;  %2730 = vadd.xlane.f32.xlu1 %v11798_v44 }
 0x60a   :  { %v2690_v50 = vsub.f32 %v11690_v16, %v2667_v12  ;;  %9468 = vpow2.f32 %v2710_v34 }
 0x60b   :  { %v11803_v11 = vpop.eup %9462 }
 0x60c   :  { %2736 = vadd.xlane.f32.xlu0 %v11803_v11  ;;  %v2673_v63 = vpop.xlane.xlu0 %2672  ;;  %v2714_v59 = vmul.f32 1.442695, %v2690_v50  ;;  %v11807_v28 = vpop.eup %9464 }
 0x60d   :  { %v2671_v27 = vpop.xlane.xlu1 %2670 }
 0x60e   :  { %v2692_v51 = vsub.f32 %v11696_v56, %v2671_v27  ;;  %9470 = vpow2.f32 %v2714_v59 }
 0x610   :  { %2734 = vadd.xlane.f32.xlu0 %v11807_v28  ;;  %v2677_v46 = vpop.xlane.xlu0 %2676  ;;  %v2718_v0 = vmul.f32 1.442695, %v2692_v51  ;;  %v11811_v18 = vpop.eup %9466 }
 0x611   :  { %v2675_v47 = vpop.xlane.xlu1 %2674 }
 0x612   :  { %v2694_v16 = vsub.f32 %v11702_v24, %v2675_v47  ;;  %9472 = vpow2.f32 %v2718_v0  ;;  %v14721_v24 = vpack.i.bf16 %v11322_v53, %v11314_v35  ;;  %v2687_v53 = vsub.f32 %v11673_v9, %v2661_v14 }
 0x613   :  { %v2689_v47 = vsub.f32 %v11680_v37, %v2665_v25 }
 0x614   :  { %2738 = vadd.xlane.f32.xlu0 %v11811_v18  ;;  %v2722_v8 = vmul.f32 1.442695, %v2694_v16  ;;  %v2681_v21 = vpop.xlane.xlu0 %2680  ;;  %v11815_v34 = vpop.eup %9468  ;;  %v2708_v0 = vmul.f32 1.442695, %v2687_v53  ;;  %v9274_v53 = vunpack.i.h.bf16 %v11720_v38 }
 0x615   :  { %v2679_v48 = vpop.xlane.xlu1 %2678  ;;  %v2697_v12 = vsub.f32 %v11706_v41, %v2681_v21  ;;  %v2712_v16 = vmul.f32 1.442695, %v2689_v47  ;;  %v2693_v21 = vsub.f32 %v11694_v5, %v2673_v63 }
 0x616   :  { %v2696_v56 = vsub.f32 %v11708_v33, %v2679_v48  ;;  %9474 = vpow2.f32 %v2722_v8  ;;  %v2691_v8 = vsub.f32 %v11687_v58, %v2669_v3 }
 0x617   :  { %v2728_v27 = vmul.f32 1.442695, %v2697_v12  ;;  %v2695_v12 = vsub.f32 %v11700_v30, %v2677_v46 }
 0x618   :  { %2742 = vadd.xlane.f32.xlu0 %v11815_v34  ;;  %v2726_v50 = vmul.f32 1.442695, %v2696_v56  ;;  %v11823_v59 = vpop.eup %9470  ;;  %v2716_v48 = vmul.f32 1.442695, %v2691_v8  ;;  %v2720_v56 = vmul.f32 1.442695, %v2693_v21  ;;  %v11858_v30 = vpop.permute.xlu0 %9296  ;;  %v9279_v21 = vunpack.i.h.bf16 %v11716_v55 }
 0x619   :  { %v2724_v9 = vmul.f32 1.442695, %v2695_v12 }
 0x61a   :  { %9301 = vrot.lane.b32.xlu1 %v14721_v24, %s9924_s30  ;;  %9476 = vpow2.f32 %v2726_v50 }
 0x61b   :  { %9478 = vpow2.f32 %v2728_v27 }
 0x61c   :  { %2746 = vadd.xlane.f32.xlu0 %v11823_v59  ;;  %v11826_v33 = vpop.eup %9472  ;;  %9480 = vpow2.f32 %v2708_v0  ;;  %v9273_v0 = vunpack.i.l.bf16 %v11720_v38 }
 0x61d   :  { %9482 = vpow2.f32 %v2712_v16 }
 0x61e   :  { %9484 = vpow2.f32 %v2716_v48  ;;  %v8783_v12 = vpack.c.bf16 %v9274_v53, %v9273_v0  ;;  %v9289_v53 = vunpack.i.h.bf16 %v11724_v23  ;;  %v9288_v0 = vunpack.i.l.bf16 %v11724_v23 }
 0x61f   :  { %9486 = vpow2.f32 %v2720_v56  ;;  %v9278_v56 = vunpack.i.l.bf16 %v11716_v55 }
 0x620   :  { %2750 = vadd.xlane.f32.xlu0 %v11826_v33  ;;  %v11829_v51 = vpop.eup %9474  ;;  %9488 = vpow2.f32 %v2724_v9  ;;  %v8795_v23 = vpack.c.bf16 %v9289_v53, %v9288_v0 }
 0x624   :  { %2754 = vadd.xlane.f32.xlu0 %v11829_v51  ;;  %v11832_v41 = vpop.eup %9476 }
 0x625   :  { %v11835_v35 = vpop.eup %9478 }
 0x626   :  { %v11843_v50 = vpop.eup %9480 }
 0x627   :  { %v11846_v14 = vpop.eup %9482 }
 0x628   :  { %2758 = vadd.xlane.f32.xlu0 %v11832_v41  ;;  %v11849_v37 = vpop.eup %9484 }
 0x629   :  { %v11852_v58 = vpop.eup %9486 }
 0x62a   :  { %v11855_v5 = vpop.eup %9488 }
 0x62c   :  { %2760 = vadd.xlane.f32.xlu0 %v11835_v35 }
 0x63e   :  { %2740 = vadd.xlane.f32.xlu1 %v11843_v50 }
 0x642   :  { %2744 = vadd.xlane.f32.xlu1 %v11846_v14 }
 0x646   :  { %2748 = vadd.xlane.f32.xlu1 %v11849_v37 }
 0x64a   :  { %2752 = vadd.xlane.f32.xlu1 %v11852_v58 }
 0x64e   :  { %2756 = vadd.xlane.f32.xlu1 %v11855_v5 }
 0x655   :  { %v2171_v25 = vpop.xlane.xlu0 %2170 }
 0x656   :  { %9490 = vrcp.f32 %v2171_v25  ;;  %v2169_v3 = vpop.xlane.xlu1 %2168  ;;  %v8787_v25 = vpack.c.bf16 %v9279_v21, %v9278_v56  ;;  %v9294_v21 = vunpack.i.h.bf16 %v11722_v1  ;;  %v9293_v56 = vunpack.i.l.bf16 %v11722_v1 }
 0x657   :  { %9492 = vrcp.f32 %v2169_v3 }
 0x658   :  { %v8799_v1 = vpack.c.bf16 %v9294_v21, %v9293_v56 }
 0x65a   :  { %v2175_v63 = vpop.xlane.xlu0 %2174 }
 0x65b   :  { %9494 = vrcp.f32 %v2175_v63  ;;  %v9283_v63 = vunpack.i.l.bf16 %v11718_v60 }
 0x65e   :  { %v2173_v46 = vpop.xlane.xlu1 %2172 }
 0x65f   :  { %9496 = vrcp.f32 %v2173_v46 }
 0x660   :  { %v9491_v24 = vpop.eup %9490 }
 0x661   :  { %v9493_v27 = vpop.eup %9492  ;;  %v2217_v48 = vmul.f32 %v9491_v24, %v11733_v42  ;;  %v9284_v42 = vunpack.i.h.bf16 %v11718_v60 }
 0x662   :  { %v2216_v47 = vmul.f32 %v9493_v27, %v11735_v19  ;;  %v2177_v16 = vpop.xlane.xlu1 %2176  ;;  %v2179_v8 = vpop.xlane.xlu0 %2178 }
 0x663   :  { %9498 = vrcp.f32 %v2177_v16 }
 0x664   :  { %8015 = vmatprep.mubr.f32.mxu0 %v2216_v47  ;;  %9500 = vrcp.f32 %v2179_v8  ;;  %v8791_v47 = vpack.c.bf16 %v9284_v42, %v9283_v63 }
 0x665   :  { %8016 = vmatmul.mubr.f32.vlgmr.msra.gmra.mrb[48].mxu0 %v2217_v48  ;;  %v9495_v19 = vpop.eup %9494 }
 0x666   :  { %8782 = vmatpush3.bf16.msra.mxu0 %v11520_v2  ;;  %v2181_v9 = vpop.xlane.xlu1 %2180  ;;  %v2183_v38 = vpop.xlane.xlu0 %2182  ;;  %v2219_v2 = vmul.f32 %v9495_v19, %v11741_v54 }
 0x667   :  { %8784 = vmatprep.subr.bf16.mxu0 %v8783_v12  ;;  %9502 = vrcp.f32 %v2181_v9 }
 0x668   :  { %9504 = vrcp.f32 %v2183_v38 }
 0x669   :  { %v9497_v3 = vpop.eup %9496 }
 0x66a   :  { %8786 = vmatpush3.bf16.msra.mxu0 %v8783_v12  ;;  %v2185_v46 = vpop.xlane.xlu1 %2184  ;;  %v2187_v55 = vpop.xlane.xlu0 %2186  ;;  %v2218_v24 = vmul.f32 %v9497_v3, %v11746_v15  ;;  %v9298_v3 = vunpack.i.l.bf16 %v11858_v30 }
 0x66b   :  { %8788 = vmatprep.subr.bf16.mxu0 %v8787_v25  ;;  %9506 = vrcp.f32 %v2185_v46 }
 0x66c   :  { %9508 = vrcp.f32 %v2187_v55  ;;  %8018 = vmatprep.mubr.f32.mxu0 %v2218_v24 }
 0x66d   :  { %v9499_v27 = vpop.eup %9498  ;;  %8019 = vmatmul.mubr.f32.gmra.mrb[50].mxu0 %v2219_v2 }
 0x66e   :  { %v9501_v16 = vpop.eup %9500  ;;  %8790 = vmatpush3.bf16.msra.mxu0 %v8787_v25  ;;  %v2189_v60 = vpop.xlane.xlu1 %2188  ;;  %v2220_v48 = vmul.f32 %v9499_v27, %v11751_v20  ;;  %v9299_v25 = vunpack.i.h.bf16 %v11858_v30 }
 0x66f   :  { %v2191_v8 = vpop.xlane.xlu0 %2190  ;;  %9510 = vrcp.f32 %v2189_v60  ;;  %8792 = vmatprep.subr.bf16.mxu0 %v8791_v47  ;;  %v2221_v15 = vmul.f32 %v9501_v16, %v11753_v62 }
 0x670   :  { %9512 = vrcp.f32 %v2191_v8  ;;  %8021 = vmatprep.mubr.f32.mxu0 %v2220_v48 }
 0x671   :  { %v9503_v54 = vpop.eup %9502  ;;  %8022 = vmatmul.mubr.f32.gmra.mrb[52].mxu0 %v2221_v15 }
 0x672   :  { %v9505_v12 = vpop.eup %9504  ;;  %8794 = vmatpush3.bf16.msra.mxu0 %v8791_v47  ;;  %v2193_v9 = vpop.xlane.xlu1 %2192  ;;  %v2222_v19 = vmul.f32 %v9503_v54, %v11758_v43 }
 0x673   :  { %v2195_v38 = vpop.xlane.xlu0 %2194  ;;  %9514 = vrcp.f32 %v2193_v9  ;;  %8796 = vmatprep.subr.bf16.mxu0 %v8795_v23  ;;  %v2223_v20 = vmul.f32 %v9505_v12, %v11760_v32  ;;  %v8803_v32 = vpack.c.bf16 %v9299_v25, %v9298_v3 }
 0x674   :  { %9516 = vrcp.f32 %v2195_v38  ;;  %8024 = vmatprep.mubr.f32.mxu0 %v2222_v19 }
 0x675   :  { %v9507_v62 = vpop.eup %9506  ;;  %8025 = vmatmul.mubr.f32.gmra.mrb[54].mxu0 %v2223_v20 }
 0x676   :  { %v9509_v42 = vpop.eup %9508  ;;  %8798 = vmatpush3.bf16.msra.mxu0 %v8795_v23  ;;  %v2224_v46 = vmul.f32 %v9507_v62, %v11766_v57 }
 0x677   :  { %v2199_v63 = vpop.xlane.xlu0 %2198  ;;  %8800 = vmatprep.subr.bf16.mxu0 %v8799_v1  ;;  %v2225_v43 = vmul.f32 %v9509_v42, %v11768_v29 }
 0x678   :  { %8027 = vmatprep.mubr.f32.mxu0 %v2224_v46  ;;  %9518 = vrcp.f32 %v2199_v63 }
 0x679   :  { %v9511_v55 = vpop.eup %9510  ;;  %8028 = vmatmul.mubr.f32.gmra.mrb[56].mxu0 %v2225_v43 }
 0x67a   :  { %v9513_v24 = vpop.eup %9512  ;;  %8802 = vmatpush3.bf16.msra.mxu0 %v8799_v1  ;;  %v2226_v30 = vmul.f32 %v9511_v55, %v11772_v4 }
 0x67b   :  { %v2197_v2 = vpop.xlane.xlu0 %2196  ;;  %8804 = vmatprep.subr.bf16.mxu0 %v8803_v32  ;;  %v2227_v27 = vmul.f32 %v9513_v24, %v11774_v31 }
 0x67c   :  { %9520 = vrcp.f32 %v2197_v2  ;;  %8030 = vmatprep.mubr.f32.mxu0 %v2226_v30 }
 0x67d   :  { %v9515_v53 = vpop.eup %9514  ;;  %8031 = vmatmul.mubr.f32.gmra.mrb[58].mxu0 %v2227_v27 }
 0x67e   :  { %v9517_v57 = vpop.eup %9516  ;;  %8806 = vmatpush3.bf16.msra.mxu0 %v8803_v32  ;;  %v2228_v29 = vmul.f32 %v9515_v53, %v11778_v39 }
 0x67f   :  { %v2229_v0 = vmul.f32 %v9517_v57, %v11780_v61 }
 0x680   :  { %8033 = vmatprep.mubr.f32.mxu0 %v2228_v29 }
 0x681   :  { %8034 = vmatmul.mubr.f32.gmra.mrb[60].mxu0 %v2229_v0 }
 0x682   :  { %v9519_v47 = vpop.eup %9518 }
 0x683   :  { %v2231_v4 = vmul.f32 %v9519_v47, %v11784_v17 }
 0x686   :  { %v9521_v16 = vpop.eup %9520 }
 0x687   :  { %v2230_v60 = vmul.f32 %v9521_v16, %v11787_v7 }
 0x689   :  { %8036 = vmatprep.mubr.f32.mxu0 %v2230_v60 }
 0x68a   :  { %8037 = vmatmul.mubr.f32.gmra.mrb[62].mxu0 %v2231_v4 }
 0x695   :  { %v2733_v31 = vpop.xlane.xlu0 %2732 }
 0x696   :  { %9522 = vrcp.f32 %v2733_v31  ;;  %v2731_v8 = vpop.xlane.xlu1 %2730 }
 0x697   :  { %9524 = vrcp.f32 %v2731_v8 }
 0x699   :  { %v2737_v48 = vpop.xlane.xlu0 %2736 }
 0x69a   :  { %v9302_v15 = vpop.permute.xlu1 %9301  ;;  %9526 = vrcp.f32 %v2737_v48 }
 0x69b   :  { %v9304_v54 = vunpack.i.h.bf16 %v9302_v15  ;;  %v9303_v39 = vunpack.i.l.bf16 %v9302_v15 }
 0x69d   :  { %v2735_v61 = vpop.xlane.xlu0 %2734  ;;  %v8807_v21 = vpack.c.bf16 %v9304_v54, %v9303_v39 }
 0x69e   :  { %9528 = vrcp.f32 %v2735_v61 }
 0x69f   :  { %8808 = vmatprep.subr.bf16.mxu0 %v8807_v21 }
 0x6a0   :  { %v9523_v56 = vpop.eup %9522  ;;  %8810 = vmatpush3.bf16.msra.mxu0 %v8807_v21 }
 0x6a1   :  { %v9525_v7 = vpop.eup %9524  ;;  %v2739_v23 = vpop.xlane.xlu0 %2738  ;;  %v2779_v12 = vmul.f32 %v9523_v56, %v11796_v26 }
 0x6a2   :  { %9530 = vrcp.f32 %v2739_v23  ;;  %v2778_v17 = vmul.f32 %v9525_v7, %v11798_v44 }
 0x6a4   :  { %8127 = vmatprep.mubr.f32.mxu0 %v2778_v17  ;;  %v9527_v9 = vpop.eup %9526 }
 0x6a5   :  { %8128 = vmatmul.mubr.f32.vlgmr.msra.gmra.mrb[64].mxu0 %v2779_v12  ;;  %v2781_v20 = vmul.f32 %v9527_v9, %v11803_v11  ;;  %v2743_v3 = vpop.xlane.xlu0 %2742  ;;  %v1599_v9 = vld [vmem:[%s14496_s10] sm:$0xff] }
 0x6a6   :  { %9532 = vrcp.f32 %v2743_v3  ;;  %v1603_v3 = vld [vmem:[%s14496_s10 + $0x20] sm:$0xff] }
 0x6a8   :  { %v9529_v38 = vpop.eup %9528 }
 0x6a9   :  { %v2780_v19 = vmul.f32 %v9529_v38, %v11807_v28  ;;  %v2747_v1 = vpop.xlane.xlu0 %2746  ;;  %v1600_v38 = vld [vmem:[%s14496_s10 + $0x8] sm:$0xff] }
 0x6ab   :  { %8130 = vmatprep.mubr.f32.mxu0 %v2780_v19  ;;  %v8811_v19 = vpack.c.bf16 %v1600_v38, %v1599_v9 }
 0x6ac   :  { %v9531_v62 = vpop.eup %9530  ;;  %8131 = vmatmul.mubr.f32.gmra.mrb[66].mxu0 %v2781_v20  ;;  %v1601_v20 = vld [vmem:[%s14496_s10 + $0x10] sm:$0xff] }
 0x6ad   :  { %v2782_v25 = vmul.f32 %v9531_v62, %v11811_v18  ;;  %v2751_v42 = vpop.xlane.xlu0 %2750  ;;  %8812 = vmatprep.subr.bf16.mxu0 %v8811_v19  ;;  %v1602_v62 = vld [vmem:[%s14496_s10 + $0x18] sm:$0xff] }
 0x6ae   :  { %8814 = vmatpush3.bf16.msra.mxu0 %v8811_v19 }
 0x6af   :  { %8133 = vmatprep.mubr.f32.mxu0 %v2782_v25  ;;  %v8815_v25 = vpack.c.bf16 %v1602_v62, %v1601_v20 }
 0x6b0   :  { %v9533_v11 = vpop.eup %9532 }
 0x6b1   :  { %v2755_v26 = vpop.xlane.xlu0 %2754  ;;  %v2784_v32 = vmul.f32 %v9533_v11, %v11815_v34  ;;  %8816 = vmatprep.subr.bf16.mxu0 %v8815_v25 }
 0x6b2   :  { %8818 = vmatpush3.bf16.msra.mxu0 %v8815_v25 }
 0x6b5   :  { %v2759_v46 = vpop.xlane.xlu0 %2758 }
 0x6b9   :  { %v2761_v30 = vpop.xlane.xlu0 %2760 }
 0x6cb   :  { %v2741_v44 = vpop.xlane.xlu1 %2740 }
 0x6cc   :  { %9534 = vrcp.f32 %v2741_v44  ;;  %v1605_v44 = vld [vmem:[%s14496_s10 + $0x30] sm:$0xff] }
 0x6cd   :  { %9536 = vrcp.f32 %v2747_v1  ;;  %v1604_v1 = vld [vmem:[%s14496_s10 + $0x28] sm:$0xff] }
 0x6cf   :  { %v2745_v63 = vpop.xlane.xlu1 %2744 }
 0x6d0   :  { %9538 = vrcp.f32 %v2745_v63 }
 0x6d1   :  { %9540 = vrcp.f32 %v2751_v42  ;;  %v8819_v42 = vpack.c.bf16 %v1604_v1, %v1603_v3 }
 0x6d3   :  { %v2749_v28 = vpop.xlane.xlu1 %2748  ;;  %8820 = vmatprep.subr.bf16.mxu0 %v8819_v42 }
 0x6d4   :  { %9542 = vrcp.f32 %v2749_v28  ;;  %8822 = vmatpush3.bf16.msra.mxu0 %v8819_v42 }
 0x6d5   :  { %9544 = vrcp.f32 %v2755_v26  ;;  %v1606_v26 = vld [vmem:[%s14496_s10 + $0x38] sm:$0xff] }
 0x6d6   :  { %v9535_v43 = vpop.eup %9534  ;;  %v8823_v63 = vpack.c.bf16 %v1606_v26, %v1605_v44 }
 0x6d7   :  { %v2753_v55 = vpop.xlane.xlu1 %2752  ;;  %v2783_v18 = vmul.f32 %v9535_v43, %v11843_v50  ;;  %v9537_v24 = vpop.eup %9536 }
 0x6d8   :  { %9546 = vrcp.f32 %v2753_v55  ;;  %v2786_v57 = vmul.f32 %v9537_v24, %v11823_v59  ;;  %8824 = vmatprep.subr.bf16.mxu0 %v8823_v63 }
 0x6d9   :  { %8134 = vmatmul.mubr.f32.gmra.mrb[68].mxu0 %v2783_v18  ;;  %9548 = vrcp.f32 %v2759_v46 }
 0x6da   :  { %v9539_v2 = vpop.eup %9538  ;;  %8136 = vmatprep.mubr.f32.mxu0 %v2784_v32  ;;  %8826 = vmatpush3.bf16.msra.mxu0 %v8823_v63 }
 0x6db   :  { %v2757_v27 = vpop.xlane.xlu1 %2756  ;;  %v2785_v53 = vmul.f32 %v9539_v2, %v11846_v14  ;;  %v9541_v29 = vpop.eup %9540 }
 0x6dc   :  { %9550 = vrcp.f32 %v2757_v27  ;;  %v2788_v34 = vmul.f32 %v9541_v29, %v11826_v33 }
 0x6dd   :  { %8137 = vmatmul.mubr.f32.gmra.mrb[70].mxu0 %v2785_v53  ;;  %9552 = vrcp.f32 %v2761_v30 }
 0x6de   :  { %v9543_v0 = vpop.eup %9542  ;;  %8139 = vmatprep.mubr.f32.mxu0 %v2786_v57 }
 0x6df   :  { %v2787_v50 = vmul.f32 %v9543_v0, %v11849_v37  ;;  %v9545_v47 = vpop.eup %9544 }
 0x6e0   :  { %v2790_v14 = vmul.f32 %v9545_v47, %v11829_v51  ;;  %v14723_v47 = vld [vmem:[#allocation19_spill] sm:$0xff] }
 0x6e1   :  { %8140 = vmatmul.mubr.f32.gmra.mrb[72].mxu0 %v2787_v50 }
 0x6e2   :  { %v9547_v16 = vpop.eup %9546  ;;  %8142 = vmatprep.mubr.f32.mxu0 %v2788_v34  ;;  %v14722_v34 = vld [vmem:[#allocation13_spill] sm:$0xff] }
 0x6e3   :  { %v2789_v60 = vmul.f32 %v9547_v16, %v11852_v58  ;;  %v9549_v4 = vpop.eup %9548  ;;  %v14724_v16 = vld [vmem:[#allocation12_spill] sm:$0xff] }
 0x6e4   :  { %v2792_v48 = vmul.f32 %v9549_v4, %v11832_v41  ;;  %v14727_v4 = vld [vmem:[#allocation14_spill] sm:$0xff] }
 0x6e5   :  { %8143 = vmatmul.mubr.f32.gmra.mrb[74].mxu0 %v2789_v60  ;;  %v14725_v60 = vld [vmem:[#allocation42_spill] sm:$0xff] }
 0x6e6   :  { %v9551_v59 = vpop.eup %9550  ;;  %8145 = vmatprep.mubr.f32.mxu0 %v2790_v14  ;;  %v14726_v14 = vld [vmem:[#allocation22_spill] sm:$0xff] }
 0x6e7   :  { %v2791_v31 = vmul.f32 %v9551_v59, %v11855_v5  ;;  %v9553_v8 = vpop.eup %9552  ;;  %v14728_v59 = vld [vmem:[#allocation18_spill] sm:$0xff] }
 0x6e8   :  { %v2793_v33 = vmul.f32 %v9553_v8, %v11835_v35 }
 0x6e9   :  { %8146 = vmatmul.mubr.f32.gmra.mrb[76].mxu0 %v2791_v31 }
 0x6ea   :  { %8148 = vmatprep.mubr.f32.mxu0 %v2792_v48 }
 0x6ed   :  { %8149 = vmatmul.mubr.f32.gmra.mrb[78].mxu0 %v2793_v33 }
 0x738   :  { %v11905_v37 = vpop.f32.mrb[48].mxu0 }
 0x739   :  { %v11907_v15 = vpop.f32.mrb[49].mxu0 }
 0x740   :  { %v11909_v58 = vpop.f32.mrb[50].mxu0 }
 0x741   :  { %v11911_v51 = vpop.f32.mrb[51].mxu0 }
 0x744   :  { %v11913_v54 = vpop.f32.mrb[52].mxu0 }
 0x745   :  { %v11915_v39 = vpop.f32.mrb[53].mxu0 }
 0x748   :  { %v11917_v5 = vpop.f32.mrb[54].mxu0 }
 0x749   :  { %v11919_v41 = vpop.f32.mrb[55].mxu0 }
 0x74c   :  { %v11921_v61 = vpop.f32.mrb[56].mxu0 }
 0x74d   :  { %v11923_v35 = vpop.f32.mrb[57].mxu0 }
 0x750   :  { %v11925_v21 = vpop.f32.mrb[58].mxu0 }
 0x751   :  { %v11927_v56 = vpop.f32.mrb[59].mxu0 }
 0x754   :  { %v11929_v7 = vpop.f32.mrb[60].mxu0 }
 0x755   :  { %v11931_v23 = vpop.f32.mrb[61].mxu0 }
 0x75d   :  { %v11933_v17 = vpop.f32.mrb[62].mxu0 }
 0x75e   :  { %v11935_v12 = vpop.f32.mrb[63].mxu0 }
 0x778   :  { %v8129_v28 = vpop.f32.mrb[64].mxu0 }
 0x779   :  { %3021 = vrot.lane.b32.xlu0 %v8129_v28, %s9925_s9  ;;  %v2924_v11 = vpop.f32.mrb[65].mxu0 }
 0x77d   :  { %3019 = vrot.lane.b32.xlu0 %v2924_v11, %s9925_s9 }
 0x77f   :  { %v8132_v46 = vpop.f32.mrb[66].mxu0 }
 0x780   :  { %3025 = vrot.lane.b32.xlu1 %v8132_v46, %s9925_s9  ;;  %v2934_v43 = vpop.f32.mrb[67].mxu0 }
 0x781   :  { %3023 = vrot.lane.b32.xlu0 %v2934_v43, %s9925_s9 }
 0x7ac   :  { %v8135_v55 = vpop.f32.mrb[68].mxu0 }
 0x7ad   :  { %3029 = vrot.lane.b32.xlu0 %v8135_v55, %s9925_s9  ;;  %v2944_v18 = vpop.f32.mrb[69].mxu0 }
 0x7b0   :  { %v8138_v32 = vpop.f32.mrb[70].mxu0 }
 0x7b1   :  { %3027 = vrot.lane.b32.xlu0 %v2944_v18, %s9925_s9  ;;  %v2954_v24 = vpop.f32.mrb[71].mxu0 }
 0x7b4   :  { %v8141_v2 = vpop.f32.mrb[72].mxu0 }
 0x7b5   :  { %3031 = vrot.lane.b32.xlu0 %v2954_v24, %s9925_s9  ;;  %v2964_v30 = vpop.f32.mrb[73].mxu0 }
 0x7b6   :  { %3035 = vrot.lane.b32.xlu1 %v2964_v30, %s9925_s9 }
 0x7b8   :  { %v8144_v27 = vpop.f32.mrb[74].mxu0 }
 0x7b9   :  { %3033 = vrot.lane.b32.xlu0 %v8138_v32, %s9925_s9  ;;  %v2974_v53 = vpop.f32.mrb[75].mxu0 }
 0x7ba   :  { %3039 = vrot.lane.b32.xlu1 %v2974_v53, %s9925_s9 }
 0x7bc   :  { %v8147_v57 = vpop.f32.mrb[76].mxu0 }
 0x7bd   :  { %3037 = vrot.lane.b32.xlu0 %v8141_v2, %s9925_s9  ;;  %v2984_v29 = vpop.f32.mrb[77].mxu0 }
 0x7be   :  { %3043 = vrot.lane.b32.xlu1 %v2984_v29, %s9925_s9 }
 0x7c0   :  { %v8150_v0 = vpop.f32.mrb[78].mxu0 }
 0x7c1   :  { %3041 = vrot.lane.b32.xlu0 %v8144_v27, %s9925_s9  ;;  %v2994_v50 = vpop.f32.mrb[79].mxu0 }
 0x7c2   :  { %3047 = vrot.lane.b32.xlu1 %v2994_v50, %s9925_s9 }
 0x7c5   :  { %3045 = vrot.lane.b32.xlu0 %v8147_v57, %s9925_s9 }
 0x7c6   :  { %3083 = vrot.lane.b32.xlu1 %v10939_v10, %s9924_s30 }
 0x7c9   :  { %3049 = vrot.lane.b32.xlu0 %v8150_v0, %s9925_s9 }
 0x7ca   :  { %3087 = vrot.lane.b32.xlu1 %v10981_v49, %s9924_s30 }
 0x7cd   :  { %3085 = vrot.lane.b32.xlu0 %v10947_v40, %s9924_s30 }
 0x7ce   :  { %3091 = vrot.lane.b32.xlu1 %v11001_v13, %s9924_s30 }
 0x7d1   :  { %3089 = vrot.lane.b32.xlu0 %v10993_v52, %s9924_s30 }
 0x7d2   :  { %3095 = vrot.lane.b32.xlu1 %v11045_v36, %s9924_s30 }
 0x7d5   :  { %3093 = vrot.lane.b32.xlu0 %v11009_v6, %s9924_s30 }
 0x7d6   :  { %3099 = vrot.lane.b32.xlu1 %v11073_v45, %s9924_s30 }
 0x7d9   :  { %3097 = vrot.lane.b32.xlu0 %v11059_v22, %s9924_s30 }
 0x7da   :  { %3103 = vrot.lane.b32.xlu1 %v14722_v34, %s9924_s30 }
 0x7dd   :  { %3101 = vrot.lane.b32.xlu0 %v14723_v47, %s9924_s30 }
 0x7de   :  { %3107 = vrot.lane.b32.xlu1 %v14724_v16, %s9924_s30 }
 0x7e1   :  { %3105 = vrot.lane.b32.xlu0 %v14725_v60, %s9924_s30 }
 0x7e2   :  { %3111 = vrot.lane.b32.xlu1 %v14726_v14, %s9924_s30 }
 0x7e5   :  { %3109 = vrot.lane.b32.xlu0 %v14727_v4, %s9924_s30 }
 0x7e9   :  { %3113 = vrot.lane.b32.xlu0 %v14728_v59, %s9924_s30 }
 0x7eb   :  { %v3022_v31 = vpop.permute.xlu0 %3021 }
 0x7ec   :  { %v3068_v33 = vsel %vm1341_vm6, %v11905_v37, %v3022_v31 }
 0x7ef   :  { %v3020_v8 = vpop.permute.xlu0 %3019 }
 0x7f0   :  { %v3067_v48 = vsel %vm1341_vm6, %v11907_v15, %v3020_v8 }
 0x7f1   :  { %8167 = vmatprep.mubr.msk.f32.mxu0 %vm1621_vm4, %v3067_v48 }
 0x7f2   :  { %8168 = vmatmul.mubr.msk.f32.vlgmr.msra.gmra.mrb[80].mxu0 %vm1621_vm4, %v3068_v33  ;;  %v3026_v9 = vpop.permute.xlu1 %3025 }
 0x7f3   :  { %v3024_v38 = vpop.permute.xlu0 %3023  ;;  %v3070_v20 = vsel %vm1341_vm6, %v11909_v58, %v3026_v9 }
 0x7f4   :  { %v3069_v19 = vsel %vm1341_vm6, %v11911_v51, %v3024_v38 }
 0x7f5   :  { %8170 = vmatprep.mubr.msk.f32.mxu0 %vm1621_vm4, %v3069_v19 }
 0x7f6   :  { %8171 = vmatmul.mubr.msk.f32.gmra.mrb[82].mxu0 %vm1621_vm4, %v3070_v20 }
 0x81f   :  { %v3030_v15 = vpop.permute.xlu0 %3029 }
 0x820   :  { %v3072_v25 = vsel %vm1341_vm6, %v11913_v54, %v3030_v15 }
 0x823   :  { %v3028_v62 = vpop.permute.xlu0 %3027 }
 0x824   :  { %v3071_v37 = vsel %vm1341_vm6, %v11915_v39, %v3028_v62 }
 0x825   :  { %8173 = vmatprep.mubr.msk.f32.mxu0 %vm1621_vm4, %v3071_v37 }
 0x826   :  { %8174 = vmatmul.mubr.msk.f32.gmra.mrb[84].mxu0 %vm1621_vm4, %v3072_v25 }
 0x827   :  { %v3032_v51 = vpop.permute.xlu0 %3031 }
 0x828   :  { %v3073_v58 = vsel %vm1341_vm6, %v11919_v41, %v3032_v51  ;;  %v3036_v3 = vpop.permute.xlu1 %3035 }
 0x829   :  { %8176 = vmatprep.mubr.msk.f32.mxu0 %vm1621_vm4, %v3073_v58  ;;  %v3075_v39 = vsel %vm1341_vm6, %v11923_v35, %v3036_v3 }
 0x82b   :  { %v3034_v1 = vpop.permute.xlu0 %3033 }
 0x82c   :  { %v3074_v42 = vsel %vm1341_vm6, %v11917_v5, %v3034_v1  ;;  %v3040_v44 = vpop.permute.xlu1 %3039 }
 0x82d   :  { %8177 = vmatmul.mubr.msk.f32.gmra.mrb[86].mxu0 %vm1621_vm4, %v3074_v42  ;;  %v3077_v63 = vsel %vm1341_vm6, %v11927_v56, %v3040_v44 }
 0x82e   :  { %8179 = vmatprep.mubr.msk.f32.mxu0 %vm1621_vm4, %v3075_v39 }
 0x82f   :  { %v3038_v54 = vpop.permute.xlu0 %3037 }
 0x830   :  { %v3076_v26 = vsel %vm1341_vm6, %v11921_v61, %v3038_v54  ;;  %v3044_v41 = vpop.permute.xlu1 %3043 }
 0x831   :  { %8180 = vmatmul.mubr.msk.f32.gmra.mrb[88].mxu0 %vm1621_vm4, %v3076_v26  ;;  %v3079_v28 = vsel %vm1341_vm6, %v11931_v23, %v3044_v41 }
 0x832   :  { %8182 = vmatprep.mubr.msk.f32.mxu0 %vm1621_vm4, %v3077_v63 }
 0x833   :  { %v3042_v5 = vpop.permute.xlu0 %3041 }
 0x834   :  { %v3078_v35 = vsel %vm1341_vm6, %v11925_v21, %v3042_v5  ;;  %v3048_v11 = vpop.permute.xlu1 %3047 }
 0x835   :  { %8183 = vmatmul.mubr.msk.f32.gmra.mrb[90].mxu0 %vm1621_vm4, %v3078_v35  ;;  %v3081_v46 = vsel %vm1341_vm6, %v11935_v12, %v3048_v11 }
 0x836   :  { %8185 = vmatprep.mubr.msk.f32.mxu0 %vm1621_vm4, %v3079_v28 }
 0x837   :  { %v3046_v61 = vpop.permute.xlu0 %3045 }
 0x838   :  { %v3080_v56 = vsel %vm1341_vm6, %v11929_v7, %v3046_v61  ;;  %v3084_v55 = vpop.permute.xlu1 %3083 }
 0x839   :  { %8186 = vmatmul.mubr.msk.f32.gmra.mrb[92].mxu0 %vm1621_vm4, %v3080_v56  ;;  %v3131_v32 = vadd.f32 %v3084_v55, %v10939_v10 }
 0x83a   :  { %8188 = vmatprep.mubr.msk.f32.mxu0 %vm1621_vm4, %v3081_v46 }
 0x83b   :  { %v3050_v21 = vpop.permute.xlu0 %3049 }
 0x83c   :  { %v3082_v23 = vsel %vm1341_vm6, %v11933_v17, %v3050_v21  ;;  %v3088_v2 = vpop.permute.xlu1 %3087 }
 0x83d   :  { %8189 = vmatmul.mubr.msk.f32.gmra.mrb[94].mxu0 %vm1621_vm4, %v3082_v23  ;;  %v3133_v57 = vadd.f32 %v3088_v2, %v10981_v49 }
 0x83f   :  { %v3086_v43 = vpop.permute.xlu0 %3085 }
 0x840   :  { %v3132_v18 = vadd.f32 %v3086_v43, %v10947_v40  ;;  %v3092_v8 = vpop.permute.xlu1 %3091 }
 0x841   :  { %v3135_v38 = vadd.f32 %v3092_v8, %v11001_v13 }
 0x843   :  { %v3090_v7 = vpop.permute.xlu0 %3089 }
 0x844   :  { %v3134_v53 = vadd.f32 %v3090_v7, %v10993_v52  ;;  %v3096_v33 = vpop.permute.xlu1 %3095 }
 0x845   :  { %v3137_v13 = vadd.f32 %v3096_v33, %v11045_v36 }
 0x847   :  { %v3094_v49 = vpop.permute.xlu0 %3093 }
 0x848   :  { %v3136_v9 = vadd.f32 %v3094_v49, %v11009_v6  ;;  %v3100_v37 = vpop.permute.xlu1 %3099 }
 0x849   :  { %v3139_v63 = vadd.f32 %v3100_v37, %v11073_v45 }
 0x84b   :  { %v3098_v48 = vpop.permute.xlu0 %3097 }
 0x84c   :  { %v3138_v6 = vadd.f32 %v3098_v48, %v11059_v22  ;;  %v3104_v42 = vpop.permute.xlu1 %3103 }
 0x84d   :  { %v3141_v45 = vadd.f32 %v3104_v42, %v14722_v34 }
 0x84f   :  { %v3102_v20 = vpop.permute.xlu0 %3101 }
 0x850   :  { %v3140_v26 = vadd.f32 %v3102_v20, %v14723_v47  ;;  %v3108_v61 = vpop.permute.xlu1 %3107 }
 0x853   :  { %v3106_v3 = vpop.permute.xlu0 %3105 }
 0x854   :  { %v3142_v47 = vadd.f32 %v3106_v3, %v14725_v60  ;;  %v3112_v2 = vpop.permute.xlu1 %3111 }
 0x857   :  { %v3110_v28 = vpop.permute.xlu0 %3109 }
 0x85b   :  { %v3114_v7 = vpop.permute.xlu0 %3113 }
 0x8c5   :  { %v8169_v24 = vpop.f32.mrb[80].mxu0 }
 0x8c6   :  { %v12059_v12 = vadd.f32 %v8169_v24, %v3132_v18  ;;  %v3261_v30 = vpop.f32.mrb[81].mxu0  ;;  %v3144_v18 = vadd.f32 %v3110_v28, %v14727_v4  ;;  %v3146_v4 = vadd.f32 %v3114_v7, %v14728_v59 }
 0x8c7   :  { %v12061_v27 = vadd.f32 %v3261_v30, %v3131_v32  ;;  %v3143_v32 = vadd.f32 %v3108_v61, %v14724_v16  ;;  %v3145_v16 = vadd.f32 %v3112_v2, %v14726_v14 }
 0x8c8   :  { %v3343_v17 = vsel %vm1341_vm6, %v12059_v12, 0.0 }
 0x8c9   :  { %3344 = vadd.xlane.f32.xlu0 %v3343_v17  ;;  %v8172_v29 = vpop.f32.mrb[82].mxu0  ;;  %v3340_v10 = vsel %vm1341_vm6, %v12061_v27, 0.0 }
 0x8ca   :  { %v12069_v40 = vadd.f32 %v8172_v29, %v3134_v53  ;;  %v3271_v0 = vpop.f32.mrb[83].mxu0  ;;  %3341 = vadd.xlane.f32.xlu1 %v3340_v10 }
 0x8cb   :  { %v12071_v50 = vadd.f32 %v3271_v0, %v3133_v57 }
 0x8cc   :  { %v3349_v31 = vsel %vm1341_vm6, %v12069_v40, 0.0 }
 0x8cd   :  { %v3346_v52 = vsel %vm1341_vm6, %v12071_v50, 0.0 }
 0x8ce   :  { %3347 = vadd.xlane.f32.xlu0 %v3346_v52  ;;  %3350 = vadd.xlane.f32.xlu1 %v3349_v31 }
 0x8f9   :  { %v8175_v19 = vpop.f32.mrb[84].mxu0 }
 0x8fa   :  { %v12079_v15 = vadd.f32 %v8175_v19, %v3136_v9  ;;  %v3281_v62 = vpop.f32.mrb[85].mxu0 }
 0x8fb   :  { %v12081_v25 = vadd.f32 %v3281_v62, %v3135_v38 }
 0x8fc   :  { %v3355_v51 = vsel %vm1341_vm6, %v12079_v15, 0.0 }
 0x8fd   :  { %3356 = vadd.xlane.f32.xlu1 %v3355_v51  ;;  %v3352_v58 = vsel %vm1341_vm6, %v12081_v25, 0.0 }
 0x8fe   :  { %3353 = vadd.xlane.f32.xlu0 %v3352_v58 }
 0x900   :  { %v8178_v1 = vpop.f32.mrb[86].mxu0 }
 0x901   :  { %v12089_v44 = vadd.f32 %v8178_v1, %v3138_v6  ;;  %v3291_v39 = vpop.f32.mrb[87].mxu0 }
 0x902   :  { %v12091_v54 = vadd.f32 %v3291_v39, %v3137_v13 }
 0x903   :  { %v3361_v41 = vsel %vm1341_vm6, %v12089_v44, 0.0 }
 0x904   :  { %v8181_v5 = vpop.f32.mrb[88].mxu0  ;;  %3362 = vadd.xlane.f32.xlu1 %v3361_v41  ;;  %v3358_v36 = vsel %vm1341_vm6, %v12091_v54, 0.0  ;;  %v1609_v41 = vld [vmem:[%s14497_s11 + $0x10] sm:$0xff] }
 0x905   :  { %v12099_v22 = vadd.f32 %v8181_v5, %v3140_v26  ;;  %v3301_v35 = vpop.f32.mrb[89].mxu0  ;;  %3359 = vadd.xlane.f32.xlu0 %v3358_v36 }
 0x906   :  { %v12101_v11 = vadd.f32 %v3301_v35, %v3139_v63  ;;  %v1610_v63 = vld [vmem:[%s14497_s11 + $0x18] sm:$0xff] }
 0x907   :  { %v3367_v56 = vsel %vm1341_vm6, %v12099_v22, 0.0  ;;  %v8831_v5 = vpack.c.bf16 %v1610_v63, %v1609_v41 }
 0x908   :  { %v8184_v46 = vpop.f32.mrb[90].mxu0  ;;  %3368 = vadd.xlane.f32.xlu1 %v3367_v56  ;;  %v3364_v21 = vsel %vm1341_vm6, %v12101_v11, 0.0 }
 0x909   :  { %v12109_v23 = vadd.f32 %v8184_v46, %v3142_v47  ;;  %v3311_v43 = vpop.f32.mrb[91].mxu0  ;;  %3365 = vadd.xlane.f32.xlu0 %v3364_v21 }
 0x90a   :  { %v12111_v55 = vadd.f32 %v3311_v43, %v3141_v45 }
 0x90b   :  { %v3373_v60 = vsel %vm1341_vm6, %v12109_v23, 0.0 }
 0x90c   :  { %v8187_v34 = vpop.f32.mrb[92].mxu0  ;;  %3374 = vadd.xlane.f32.xlu1 %v3373_v60  ;;  %v3370_v24 = vsel %vm1341_vm6, %v12111_v55, 0.0 }
 0x90d   :  { %v12119_v30 = vadd.f32 %v8187_v34, %v3144_v18  ;;  %v3321_v53 = vpop.f32.mrb[93].mxu0  ;;  %3371 = vadd.xlane.f32.xlu0 %v3370_v24 }
 0x90e   :  { %v12121_v17 = vadd.f32 %v3321_v53, %v3143_v32 }
 0x90f   :  { %v3379_v57 = vsel %vm1341_vm6, %v12119_v30, 0.0 }
 0x910   :  { %v8190_v29 = vpop.f32.mrb[94].mxu0  ;;  %3380 = vadd.xlane.f32.xlu1 %v3379_v57  ;;  %v3376_v10 = vsel %vm1341_vm6, %v12121_v17, 0.0 }
 0x911   :  { %v12129_v0 = vadd.f32 %v8190_v29, %v3146_v4  ;;  %v3331_v31 = vpop.f32.mrb[95].mxu0  ;;  %3377 = vadd.xlane.f32.xlu0 %v3376_v10 }
 0x912   :  { %v12131_v52 = vadd.f32 %v3331_v31, %v3145_v16 }
 0x913   :  { %v3385_v49 = vsel %vm1341_vm6, %v12129_v0, 0.0 }
 0x914   :  { %3386 = vadd.xlane.f32.xlu1 %v3385_v49  ;;  %v3382_v59 = vsel %vm1341_vm6, %v12131_v52, 0.0 }
 0x915   :  { %3383 = vadd.xlane.f32.xlu0 %v3382_v59 }
 0x956   :  { %v3345_v14 = vpop.xlane.xlu0 %3344 }
 0x957   :  { %v3390_v8 = vmul.f32 0.03125, %v3345_v14  ;;  %v3342_v48 = vpop.xlane.xlu1 %3341 }
 0x958   :  { %v3389_v33 = vmul.f32 0.03125, %v3342_v48 }
 0x959   :  { %v12138_v9 = vsub.f32 %v12059_v12, %v3390_v8 }
 0x95a   :  { %v12141_v38 = vsub.f32 %v12061_v27, %v3389_v33 }
 0x95b   :  { %v3348_v19 = vpop.xlane.xlu0 %3347  ;;  %v3351_v20 = vpop.xlane.xlu1 %3350  ;;  %v3422_v62 = vmul.f32 %v12138_v9, %v12138_v9 }
 0x95c   :  { %v3391_v37 = vmul.f32 0.03125, %v3348_v19  ;;  %v3392_v51 = vmul.f32 0.03125, %v3351_v20  ;;  %v3421_v58 = vmul.f32 %v12141_v38, %v12141_v38 }
 0x95d   :  { %v3440_v6 = vsel %vm1341_vm6, %v3422_v62, 0.0 }
 0x95e   :  { %v12149_v13 = vsub.f32 %v12071_v50, %v3391_v37  ;;  %v12152_v12 = vsub.f32 %v12069_v40, %v3392_v51  ;;  %3441 = vadd.xlane.f32.xlu1 %v3440_v6  ;;  %v3437_v27 = vsel %vm1341_vm6, %v3421_v58, 0.0  ;;  %v1607_v40 = vld [vmem:[%s14497_s11] sm:$0xff]  ;;  %v1608_v50 = vld [vmem:[%s14497_s11 + $0x8] sm:$0xff] }
 0x95f   :  { %3438 = vadd.xlane.f32.xlu0 %v3437_v27  ;;  %v8827_v26 = vpack.c.bf16 %v1608_v50, %v1607_v40 }
 0x960   :  { %v3423_v3 = vmul.f32 %v12149_v13, %v12149_v13  ;;  %v3424_v1 = vmul.f32 %v12152_v12, %v12152_v12 }
 0x961   :  { %8828 = vmatprep.subr.bf16.mxu1 %v8827_v26 }
 0x962   :  { %v3443_v42 = vsel %vm1341_vm6, %v3423_v3, 0.0  ;;  %v3446_v39 = vsel %vm1341_vm6, %v3424_v1, 0.0  ;;  %8830 = vmatpush3.bf16.msra.mxu1 %v8827_v26 }
 0x963   :  { %3444 = vadd.xlane.f32.xlu0 %v3443_v42  ;;  %3447 = vadd.xlane.f32.xlu1 %v3446_v39 }
 0x964   :  { %8832 = vmatprep.subr.bf16.mxu1 %v8831_v5 }
 0x966   :  { %8834 = vmatpush3.bf16.msra.mxu1 %v8831_v5 }
 0x98a   :  { %v3357_v36 = vpop.xlane.xlu1 %3356 }
 0x98b   :  { %v3394_v35 = vmul.f32 0.03125, %v3357_v36  ;;  %v3354_v28 = vpop.xlane.xlu0 %3353 }
 0x98c   :  { %v3393_v61 = vmul.f32 0.03125, %v3354_v28 }
 0x98d   :  { %v12174_v47 = vsub.f32 %v12079_v15, %v3394_v35  ;;  %v4284_v35 = vld [vmem:[%s14501_s15 + $0x18] sm:$0xff] }
 0x98e   :  { %v12177_v56 = vsub.f32 %v12081_v25, %v3393_v61 }
 0x98f   :  { %v3426_v45 = vmul.f32 %v12174_v47, %v12174_v47 }
 0x990   :  { %v3425_v46 = vmul.f32 %v12177_v56, %v12177_v56 }
 0x991   :  { %v3363_v21 = vpop.xlane.xlu1 %3362  ;;  %v3452_v43 = vsel %vm1341_vm6, %v3426_v45, 0.0 }
 0x992   :  { %v3396_v18 = vmul.f32 0.03125, %v3363_v21  ;;  %v3360_v60 = vpop.xlane.xlu0 %3359  ;;  %3453 = vadd.xlane.f32.xlu1 %v3452_v43  ;;  %v3449_v32 = vsel %vm1341_vm6, %v3425_v46, 0.0 }
 0x993   :  { %v3395_v7 = vmul.f32 0.03125, %v3360_v60  ;;  %3450 = vadd.xlane.f32.xlu0 %v3449_v32 }
 0x994   :  { %v12186_v15 = vsub.f32 %v12089_v44, %v3396_v18 }
 0x995   :  { %v12189_v25 = vsub.f32 %v12091_v54, %v3395_v7  ;;  %v3369_v34 = vpop.xlane.xlu1 %3368 }
 0x996   :  { %v3398_v24 = vmul.f32 0.03125, %v3369_v34  ;;  %v3366_v2 = vpop.xlane.xlu0 %3365  ;;  %v3428_v53 = vmul.f32 %v12186_v15, %v12186_v15 }
 0x997   :  { %v3397_v4 = vmul.f32 0.03125, %v3366_v2  ;;  %v3427_v57 = vmul.f32 %v12189_v25, %v12189_v25 }
 0x998   :  { %v12196_v16 = vsub.f32 %v12099_v22, %v3398_v24  ;;  %v3458_v29 = vsel %vm1341_vm6, %v3428_v53, 0.0  ;;  %v1620_v53 = vld [vmem:[%s14500_s14] sm:$0x1f] }
 0x999   :  { %v12200_v44 = vsub.f32 %v12101_v11, %v3397_v4  ;;  %3459 = vadd.xlane.f32.xlu1 %v3458_v29  ;;  %v3375_v54 = vpop.xlane.xlu1 %3374  ;;  %v3455_v10 = vsel %vm1341_vm6, %v3427_v57, 0.0  ;;  %v14729_v4 = vld [vmem:[#allocation16_spill] sm:$0xff] }
 0x99a   :  { %v3400_v31 = vmul.f32 0.03125, %v3375_v54  ;;  %v3372_v49 = vpop.xlane.xlu0 %3371  ;;  %3456 = vadd.xlane.f32.xlu0 %v3455_v10  ;;  %v3430_v59 = vmul.f32 %v12196_v16, %v12196_v16  ;;  %v12255_v57 = vrot.slane %v1620_v53, %v14729_v4 }
 0x99b   :  { %v3399_v14 = vmul.f32 0.03125, %v3372_v49  ;;  %v3429_v22 = vmul.f32 %v12200_v44, %v12200_v44  ;;  %v14730_v49 = vld [vmem:[#allocation45_spill] sm:$0xff] }
 0x99c   :  { %v12208_v8 = vsub.f32 %v12109_v23, %v3400_v31  ;;  %v3464_v11 = vsel %vm1341_vm6, %v3430_v59, 0.0  ;;  %v12260_v59 = vrot.slane %v1620_v53, %v14730_v49 }
 0x99d   :  { %v12212_v48 = vsub.f32 %v12111_v55, %v3399_v14  ;;  %3465 = vadd.xlane.f32.xlu1 %v3464_v11  ;;  %v3381_v33 = vpop.xlane.xlu1 %3380  ;;  %v3461_v19 = vsel %vm1341_vm6, %v3429_v22, 0.0  ;;  %v4281_v22 = vld [vmem:[%s14501_s15] sm:$0xff]  ;;  %v4283_v11 = vld [vmem:[%s14501_s15 + $0x10] sm:$0xff] }
 0x99e   :  { %v3402_v20 = vmul.f32 0.03125, %v3381_v33  ;;  %v3378_v62 = vpop.xlane.xlu0 %3377  ;;  %3462 = vadd.xlane.f32.xlu0 %v3461_v19  ;;  %v3432_v37 = vmul.f32 %v12208_v8, %v12208_v8 }
 0x99f   :  { %v3401_v51 = vmul.f32 0.03125, %v3378_v62  ;;  %v3431_v23 = vmul.f32 %v12212_v48, %v12212_v48 }
 0x9a0   :  { %v12220_v58 = vsub.f32 %v12119_v30, %v3402_v20  ;;  %v3470_v55 = vsel %vm1341_vm6, %v3432_v37, 0.0 }
 0x9a1   :  { %v12224_v6 = vsub.f32 %v12121_v17, %v3401_v51  ;;  %3471 = vadd.xlane.f32.xlu1 %v3470_v55  ;;  %v3387_v27 = vpop.xlane.xlu1 %3386  ;;  %v3467_v3 = vsel %vm1341_vm6, %v3431_v23, 0.0  ;;  %v8853_v51 = vpack.c.bf16 %v4283_v11, %v4281_v22 }
 0x9a2   :  { %v3404_v1 = vmul.f32 0.03125, %v3387_v27  ;;  %v3384_v42 = vpop.xlane.xlu0 %3383  ;;  %3468 = vadd.xlane.f32.xlu0 %v3467_v3  ;;  %v3434_v39 = vmul.f32 %v12220_v58, %v12220_v58  ;;  %v4285_v3 = vld [vmem:[%s14501_s15 + $0x20] sm:$0xff] }
 0x9a3   :  { %v3403_v40 = vmul.f32 0.03125, %v3384_v42  ;;  %v3433_v30 = vmul.f32 %v12224_v6, %v12224_v6  ;;  %v4290_v42 = vld [vmem:[%s14501_s15 + $0x48] sm:$0xff] }
 0x9a4   :  { %v12232_v50 = vsub.f32 %v12129_v0, %v3404_v1  ;;  %v3476_v17 = vsel %vm1341_vm6, %v3434_v39, 0.0  ;;  %v4287_v1 = vld [vmem:[%s14501_s15 + $0x30] sm:$0xff] }
 0x9a5   :  { %v12236_v26 = vsub.f32 %v12131_v52, %v3403_v40  ;;  %3477 = vadd.xlane.f32.xlu1 %v3476_v17  ;;  %v3473_v41 = vsel %vm1341_vm6, %v3433_v30, 0.0  ;;  %v4282_v52 = vld [vmem:[%s14501_s15 + $0x8] sm:$0xff]  ;;  %v8857_v30 = vpack.c.bf16 %v4287_v1, %v4285_v3 }
 0x9a6   :  { %3474 = vadd.xlane.f32.xlu0 %v3473_v41  ;;  %v3436_v63 = vmul.f32 %v12232_v50, %v12232_v50  ;;  %v8851_v28 = vpack.c.bf16 %v4284_v35, %v4282_v52 }
 0x9a7   :  { %v3435_v5 = vmul.f32 %v12236_v26, %v12236_v26 }
 0x9a8   :  { %v3482_v36 = vsel %vm1341_vm6, %v3436_v63, 0.0  ;;  %8852 = vmatprep.subr.bf16.mxu1 %v8851_v28  ;;  %v4289_v63 = vld [vmem:[%s14501_s15 + $0x40] sm:$0xff] }
 0x9a9   :  { %3483 = vadd.xlane.f32.xlu1 %v3482_v36  ;;  %v3479_v0 = vsel %vm1341_vm6, %v3435_v5, 0.0  ;;  %v4291_v5 = vld [vmem:[%s14501_s15 + $0x50] sm:$0xff]  ;;  %v4294_v36 = vld [vmem:[%s14501_s15 + $0x68] sm:$0xff]  ;;  %v4293_v28 = vld [vmem:[%s14501_s15 + $0x60] sm:$0xff] }
 0x9aa   :  { %3480 = vadd.xlane.f32.xlu0 %v3479_v0  ;;  %v4296_v0 = vld [vmem:[%s14501_s15 + $0x78] sm:$0xff]  ;;  %v8861_v52 = vpack.c.bf16 %v4291_v5, %v4289_v63 }
 0x9ab   :  { %v8863_v35 = vpack.c.bf16 %v4296_v0, %v4294_v36 }
 0x9eb   :  { %v3442_v61 = vpop.xlane.xlu1 %3441 }
 0x9ec   :  { %v3486_v45 = vmul.f32 0.03125, %v3442_v61  ;;  %v3439_v46 = vpop.xlane.xlu0 %3438  ;;  %v4295_v61 = vld [vmem:[%s14501_s15 + $0x70] sm:$0xff] }
 0x9ed   :  { %v3485_v21 = vmul.f32 0.03125, %v3439_v46  ;;  %v1612_v46 = vld [vmem:[%s14499_s13] sm:$0xff] }
 0x9ee   :  { %v3502_v43 = vadd.f32 1e-06, %v3486_v45  ;;  %v8865_v45 = vpack.c.bf16 %v4295_v61, %v4293_v28 }
 0x9ef   :  { %v3501_v18 = vadd.f32 1e-06, %v3485_v21  ;;  %v1613_v21 = vld [vmem:[%s14499_s13 + $0x8] sm:$0xff] }
 0x9f0   :  { %9554 = vrsqrt.f32 %v3502_v43  ;;  %v3445_v60 = vpop.xlane.xlu0 %3444  ;;  %v3448_v32 = vpop.xlane.xlu1 %3447  ;;  %v1614_v43 = vld [vmem:[%s14499_s13 + $0x10] sm:$0xff] }
 0x9f1   :  { %9556 = vrsqrt.f32 %v3501_v18  ;;  %v3487_v7 = vmul.f32 0.03125, %v3445_v60  ;;  %v3488_v34 = vmul.f32 0.03125, %v3448_v32  ;;  %v8835_v18 = vpack.c.bf16 %v1613_v21, %v1612_v46  ;;  %v1615_v60 = vld [vmem:[%s14499_s13 + $0x18] sm:$0xff] }
 0x9f2   :  { %v8839_v32 = vpack.c.bf16 %v1615_v60, %v1614_v43 }
 0x9f3   :  { %v3503_v24 = vadd.f32 1e-06, %v3487_v7  ;;  %v3504_v2 = vadd.f32 1e-06, %v3488_v34  ;;  %v1616_v7 = vld [vmem:[%s14499_s13 + $0x20] sm:$0xff]  ;;  %v1617_v34 = vld [vmem:[%s14499_s13 + $0x28] sm:$0xff]  ;;  %8836 = vmatprep.subr.bf16.mxu0 %v8835_v18 }
 0x9f4   :  { %8838 = vmatpush3.bf16.msra.mxu0 %v8835_v18 }
 0x9f5   :  { %9558 = vrsqrt.f32 %v3503_v24  ;;  %8840 = vmatprep.subr.bf16.mxu0 %v8839_v32  ;;  %v8843_v24 = vpack.c.bf16 %v1617_v34, %v1616_v7 }
 0x9f6   :  { %9560 = vrsqrt.f32 %v3504_v2 }
 0x9f8   :  { %8842 = vmatpush3.bf16.msra.mxu0 %v8839_v32 }
 0x9f9   :  { %8844 = vmatprep.subr.bf16.mxu0 %v8843_v24 }
 0x9fa   :  { %v9555_v29 = vpop.eup %9554 }
 0x9fb   :  { %v9557_v54 = vpop.eup %9556  ;;  %v3534_v10 = vmul.f32 %v9555_v29, %v12138_v9  ;;  %v4286_v9 = vld [vmem:[%s14501_s15 + $0x28] sm:$0xff] }
 0x9fc   :  { %v3533_v31 = vmul.f32 %v9557_v54, %v12141_v38  ;;  %v4288_v38 = vld [vmem:[%s14501_s15 + $0x38] sm:$0xff]  ;;  %8846 = vmatpush3.bf16.msra.mxu0 %v8843_v24 }
 0x9fd   :  { %v3554_v14 = vmul.f32 %v12255_v57, %v3534_v10  ;;  %v8855_v27 = vpack.c.bf16 %v4288_v38, %v4286_v9 }
 0x9fe   :  { %v3553_v33 = vmul.f32 %v12255_v57, %v3533_v31 }
 0x9ff   :  { %v9559_v19 = vpop.eup %9558  ;;  %v12281_v23 = vadd.f32 %v12260_v59, %v3554_v14 }
 0xa00   :  { %v9561_v20 = vpop.eup %9560  ;;  %v12277_v62 = vadd.f32 %v12260_v59, %v3553_v33  ;;  %v3535_v37 = vmul.f32 %v9559_v19, %v12149_v13 }
 0xa01   :  { %14732 = vst [vmem:[#allocation37_spill] sm:$0xff] %v12281_v23  ;;  %v3536_v55 = vmul.f32 %v9561_v20, %v12152_v12  ;;  %v4292_v12 = vld [vmem:[%s14501_s15 + $0x58] sm:$0xff] }
 0xa02   :  { %14731 = vst [vmem:[#allocation29_spill] sm:$0xff] %v12277_v62  ;;  %8199 = vmatprep.mubr.msk.f32.mxu1 %vm1341_vm6, %v12277_v62  ;;  %v3555_v13 = vmul.f32 %v12255_v57, %v3535_v37  ;;  %v8859_v41 = vpack.c.bf16 %v4292_v12, %v4290_v42 }
 0xa03   :  { %8200 = vmatmul.mubr.msk.f32.vlgmr.msra.gmra.mrb[48].mxu1 %vm1341_vm6, %v12281_v23  ;;  %v3556_v39 = vmul.f32 %v12255_v57, %v3536_v55 }
 0xa04   :  { %v12303_v40 = vadd.f32 %v12260_v59, %v3555_v13  ;;  %8854 = vmatpush1.bf16.msra.mxu1 %v8853_v51 }
 0xa05   :  { %v12306_v17 = vadd.f32 %v12260_v59, %v3556_v39  ;;  %8856 = vmatprep.subr.bf16.mxu1 %v8855_v27 }
 0xa06   :  { %14733 = vst [vmem:[#allocation41_spill] sm:$0xff] %v12303_v40  ;;  %8202 = vmatprep.mubr.msk.f32.mxu1 %vm1341_vm6, %v12303_v40 }
 0xa07   :  { %14734 = vst [vmem:[#allocation36_spill] sm:$0xff] %v12306_v17  ;;  %8203 = vmatmul.mubr.msk.f32.gmra.mrb[50].mxu1 %vm1341_vm6, %v12306_v17 }
 0xa08   :  { %8858 = vmatpush1.bf16.msra.mxu1 %v8857_v30 }
 0xa09   :  { %8860 = vmatprep.subr.bf16.mxu1 %v8859_v41 }
 0xa0c   :  { %8862 = vmatpush1.bf16.msra.mxu1 %v8861_v52 }
 0xa0d   :  { %8864 = vmatprep.subr.bf16.mxu1 %v8863_v35 }
 0xa10   :  { %8866 = vmatpush1.bf16.msra.mxu1 %v8865_v45 }
 0xa1f   :  { %v3454_v2 = vpop.xlane.xlu1 %3453 }
 0xa20   :  { %v3490_v53 = vmul.f32 0.03125, %v3454_v2  ;;  %v3451_v29 = vpop.xlane.xlu0 %3450 }
 0xa21   :  { %v3489_v54 = vmul.f32 0.03125, %v3451_v29 }
 0xa22   :  { %v3506_v10 = vadd.f32 1e-06, %v3490_v53 }
 0xa23   :  { %v3505_v31 = vadd.f32 1e-06, %v3489_v54 }
 0xa24   :  { %9562 = vrsqrt.f32 %v3506_v10 }
 0xa25   :  { %9564 = vrsqrt.f32 %v3505_v31 }
 0xa26   :  { %v3460_v14 = vpop.xlane.xlu1 %3459 }
 0xa27   :  { %v3492_v22 = vmul.f32 0.03125, %v3460_v14  ;;  %v3457_v11 = vpop.xlane.xlu0 %3456 }
 0xa28   :  { %v3491_v33 = vmul.f32 0.03125, %v3457_v11 }
 0xa29   :  { %v3508_v9 = vadd.f32 1e-06, %v3492_v22 }
 0xa2a   :  { %v3507_v38 = vadd.f32 1e-06, %v3491_v33  ;;  %v3466_v19 = vpop.xlane.xlu1 %3465 }
 0xa2b   :  { %9566 = vrsqrt.f32 %v3508_v9  ;;  %v3494_v20 = vmul.f32 0.03125, %v3466_v19  ;;  %v3463_v37 = vpop.xlane.xlu0 %3462 }
 0xa2c   :  { %9568 = vrsqrt.f32 %v3507_v38  ;;  %v3493_v51 = vmul.f32 0.03125, %v3463_v37 }
 0xa2d   :  { %v3510_v55 = vadd.f32 1e-06, %v3494_v20 }
 0xa2e   :  { %v9563_v27 = vpop.eup %9562  ;;  %v3509_v3 = vadd.f32 1e-06, %v3493_v51  ;;  %v3472_v1 = vpop.xlane.xlu1 %3471 }
 0xa2f   :  { %v9565_v13 = vpop.eup %9564  ;;  %9570 = vrsqrt.f32 %v3510_v55  ;;  %v3496_v42 = vmul.f32 0.03125, %v3472_v1  ;;  %v3469_v12 = vpop.xlane.xlu0 %3468  ;;  %v3538_v39 = vmul.f32 %v9563_v27, %v12174_v47 }
 0xa30   :  { %9572 = vrsqrt.f32 %v3509_v3  ;;  %v3495_v30 = vmul.f32 0.03125, %v3469_v12  ;;  %v3537_v41 = vmul.f32 %v9565_v13, %v12177_v56 }
 0xa31   :  { %v3512_v63 = vadd.f32 1e-06, %v3496_v42  ;;  %v3558_v5 = vmul.f32 %v12255_v57, %v3538_v39 }
 0xa32   :  { %v3511_v36 = vadd.f32 1e-06, %v3495_v30  ;;  %v3478_v0 = vpop.xlane.xlu1 %3477  ;;  %v3557_v52 = vmul.f32 %v12255_v57, %v3537_v41 }
 0xa33   :  { %9574 = vrsqrt.f32 %v3512_v63  ;;  %v3498_v35 = vmul.f32 0.03125, %v3478_v0  ;;  %v3475_v28 = vpop.xlane.xlu0 %3474  ;;  %v12356_v21 = vadd.f32 %v12260_v59, %v3558_v5  ;;  %v14749_v0 = vld [vmem:[#allocation47_spill] sm:$0xff] }
 0xa34   :  { %9576 = vrsqrt.f32 %v3511_v36  ;;  %v3497_v61 = vmul.f32 0.03125, %v3475_v28  ;;  %v12353_v45 = vadd.f32 %v12260_v59, %v3557_v52 }
 0xa35   :  { %v9567_v47 = vpop.eup %9566  ;;  %v3514_v46 = vadd.f32 1e-06, %v3498_v35  ;;  %14736 = vst [vmem:[#allocation43_spill] sm:$0xff] %v12356_v21  ;;  %v14750_v35 = vld [vmem:[#allocation15_spill] sm:$0xff] }
 0xa36   :  { %14735 = vst [vmem:[#allocation34_spill] sm:$0xff] %v12353_v45  ;;  %v9569_v56 = vpop.eup %9568  ;;  %v3513_v43 = vadd.f32 1e-06, %v3497_v61  ;;  %8205 = vmatprep.mubr.msk.f32.mxu1 %vm1341_vm6, %v12353_v45  ;;  %v3484_v18 = vpop.xlane.xlu1 %3483  ;;  %v3540_v60 = vmul.f32 %v9567_v47, %v12186_v15  ;;  %v1408_v61 = vld [vmem:[%s14747_s4 + $0x10] sm:$0xff]  ;;  %v14751_v47 = vld [vmem:[#allocation33_spill] sm:$0xff] }
 0xa37   :  { %9578 = vrsqrt.f32 %v3514_v46  ;;  %v3500_v32 = vmul.f32 0.03125, %v3484_v18  ;;  %v3481_v7 = vpop.xlane.xlu0 %3480  ;;  %8206 = vmatmul.mubr.msk.f32.gmra.mrb[52].mxu1 %vm1341_vm6, %v12356_v21  ;;  %v3539_v34 = vmul.f32 %v9569_v56, %v12189_v25  ;;  %v12455_v46 = vadd.f32 %v14751_v47, %v1408_v61  ;;  %v1618_v56 = vld [vmem:[%s14499_s13 + $0x30] sm:$0xff]  ;;  %v1409_v18 = vld [vmem:[%s14747_s4 + $0x18] sm:$0xff] }
 0xa38   :  { %9580 = vrsqrt.f32 %v3513_v43  ;;  %v3499_v24 = vmul.f32 0.03125, %v3481_v7  ;;  %v3560_v2 = vmul.f32 %v12255_v57, %v3540_v60  ;;  %v1619_v43 = vld [vmem:[%s14499_s13 + $0x38] sm:$0xff]  ;;  %v14771_v61 = vld [vmem:[#allocation30_spill] sm:$0xff] }
 0xa39   :  { %v9571_v53 = vpop.eup %9570  ;;  %v3516_v29 = vadd.f32 1e-06, %v3500_v32  ;;  %v3559_v54 = vmul.f32 %v12255_v57, %v3539_v34  ;;  %v8847_v60 = vpack.c.bf16 %v1619_v43, %v1618_v56  ;;  %v14752_v32 = vld [vmem:[#allocation23_spill] sm:$0xff]  ;;  %v1410_v34 = vld [vmem:[%s14747_s4 + $0x20] sm:$0xff] }
 0xa3a   :  { %v9573_v10 = vpop.eup %9572  ;;  %v3515_v31 = vadd.f32 1e-06, %v3499_v24  ;;  %v3542_v15 = vmul.f32 %v9571_v53, %v12196_v16  ;;  %v12372_v25 = vadd.f32 %v12260_v59, %v3560_v2  ;;  %v12470_v7 = vadd.f32 %v14752_v32, %v1409_v18  ;;  %v14753_v24 = vld [vmem:[#allocation25_spill] sm:$0xff]  ;;  %v7236_v56 = vld [vmem:[%s14498_s12] ss:$0 sm:$0xff] }
 0xa3b   :  { %9582 = vrsqrt.f32 %v3516_v29  ;;  %v12368_v14 = vadd.f32 %v12260_v59, %v3559_v54  ;;  %v3541_v22 = vmul.f32 %v9573_v10, %v12200_v44  ;;  %8848 = vmatprep.subr.bf16.mxu0 %v8847_v60  ;;  %v12479_v2 = vadd.f32 %v14753_v24, %v1410_v34  ;;  %v1411_v53 = vld [vmem:[%s14747_s4 + $0x28] sm:$0xff]  ;;  %v1412_v10 = vld [vmem:[%s14747_s4 + $0x30] sm:$0xff] }
 0xa3c   :  { %9584 = vrsqrt.f32 %v3515_v31  ;;  %14738 = vst [vmem:[#allocation46_spill] sm:$0xff] %v12372_v25  ;;  %v3562_v11 = vmul.f32 %v12255_v57, %v3542_v15  ;;  %8850 = vmatpush3.bf16.msra.mxu0 %v8847_v60  ;;  %v14754_v29 = vld [vmem:[#allocation17_spill] sm:$0xff]  ;;  %v14755_v31 = vld [vmem:[#allocation48_spill] sm:$0xff] }
 0xa3d   :  { %14737 = vst [vmem:[#allocation40_spill] sm:$0xff] %v12368_v14  ;;  %v9575_v33 = vpop.eup %9574  ;;  %8208 = vmatprep.mubr.msk.f32.mxu1 %vm1341_vm6, %v12368_v14  ;;  %v3561_v9 = vmul.f32 %v12255_v57, %v3541_v22  ;;  %v12488_v54 = vadd.f32 %v14754_v29, %v1411_v53  ;;  %v12497_v15 = vadd.f32 %v14755_v31, %v1412_v10  ;;  %v1413_v22 = vld [vmem:[%s14747_s4 + $0x38] sm:$0xff] }
 0xa3e   :  { %v9577_v38 = vpop.eup %9576  ;;  %8209 = vmatmul.mubr.msk.f32.gmra.mrb[54].mxu1 %vm1341_vm6, %v12372_v25  ;;  %v3544_v16 = vmul.f32 %v9575_v33, %v12208_v8  ;;  %v12386_v20 = vadd.f32 %v12260_v59, %v3562_v11  ;;  %v14756_v11 = vld [vmem:[#allocation21_spill] sm:$0xff] }
 0xa3f   :  { %v12382_v44 = vadd.f32 %v12260_v59, %v3561_v9  ;;  %v3543_v19 = vmul.f32 %v9577_v38, %v12212_v48  ;;  %v12506_v33 = vadd.f32 %v14756_v11, %v1413_v22  ;;  %v1414_v9 = vld [vmem:[%s14747_s4 + $0x40] sm:$0xff] }
 0xa40   :  { %14740 = vst [vmem:[#allocation13_spill] sm:$0xff] %v12386_v20  ;;  %v3564_v37 = vmul.f32 %v12255_v57, %v3544_v16  ;;  %v14757_v38 = vld [vmem:[#allocation20_spill] sm:$0xff] }
 0xa41   :  { %14739 = vst [vmem:[#allocation49_spill] sm:$0xff] %v12382_v44  ;;  %v9579_v51 = vpop.eup %9578  ;;  %8211 = vmatprep.mubr.msk.f32.mxu1 %vm1341_vm6, %v12382_v44  ;;  %v3563_v55 = vmul.f32 %v12255_v57, %v3543_v19  ;;  %v12515_v16 = vadd.f32 %v14757_v38, %v1414_v9  ;;  %v1415_v19 = vld [vmem:[%s14747_s4 + $0x48] sm:$0xff]  ;;  %v4277_v44 = vld [vmem:[%s14494_s8 + $0x60] sm:$0xff] }
 0xa42   :  { %v9581_v27 = vpop.eup %9580  ;;  %8212 = vmatmul.mubr.msk.f32.gmra.mrb[56].mxu1 %vm1341_vm6, %v12386_v20  ;;  %v3546_v8 = vmul.f32 %v9579_v51, %v12220_v58  ;;  %v12400_v1 = vadd.f32 %v12260_v59, %v3564_v37  ;;  %v14759_v37 = vld [vmem:[#allocation32_spill] sm:$0xff] }
 0xa43   :  { %v12396_v3 = vadd.f32 %v12260_v59, %v3563_v55  ;;  %v3545_v48 = vmul.f32 %v9581_v27, %v12224_v6  ;;  %14758 = vst [vmem:[#allocation47_spill] sm:$0xff] %v12515_v16  ;;  %v12524_v51 = vadd.f32 %v14759_v37, %v1415_v19  ;;  %v1416_v55 = vld [vmem:[%s14747_s4 + $0x50] sm:$0xff]  ;;  %v14761_v27 = vld [vmem:[#allocation28_spill] sm:$0xff] }
 0xa44   :  { %14742 = vst [vmem:[#allocation12_spill] sm:$0xff] %v12400_v1  ;;  %v3566_v13 = vmul.f32 %v12255_v57, %v3546_v8  ;;  %v12533_v8 = vadd.f32 %v14761_v27, %v1416_v55 }
 0xa45   :  { %14741 = vst [vmem:[#allocation19_spill] sm:$0xff] %v12396_v3  ;;  %v9583_v42 = vpop.eup %9582  ;;  %8214 = vmatprep.mubr.msk.f32.mxu1 %vm1341_vm6, %v12396_v3  ;;  %v3565_v12 = vmul.f32 %v12255_v57, %v3545_v48  ;;  %14760 = vst [vmem:[#allocation15_spill] sm:$0xff] %v12524_v51  ;;  %v1417_v48 = vld [vmem:[%s14747_s4 + $0x58] sm:$0xff] }
 0xa46   :  { %v9585_v39 = vpop.eup %9584  ;;  %8215 = vmatmul.mubr.msk.f32.gmra.mrb[58].mxu1 %vm1341_vm6, %v12400_v1  ;;  %v3548_v58 = vmul.f32 %v9583_v42, %v12232_v50  ;;  %v12414_v41 = vadd.f32 %v12260_v59, %v3566_v13  ;;  %14762 = vst [vmem:[#allocation33_spill] sm:$0xff] %v12533_v8  ;;  %v14763_v13 = vld [vmem:[#allocation26_spill] sm:$0xff] }
 0xa47   :  { %v12410_v30 = vadd.f32 %v12260_v59, %v3565_v12  ;;  %v3547_v6 = vmul.f32 %v9585_v39, %v12236_v26  ;;  %v1406_v26 = vld [vmem:[%s14747_s4] sm:$0xff]  ;;  %v12542_v42 = vadd.f32 %v14763_v13, %v1417_v48 }
 0xa48   :  { %14744 = vst [vmem:[#allocation22_spill] sm:$0xff] %v12414_v41  ;;  %v3568_v63 = vmul.f32 %v12255_v57, %v3548_v58  ;;  %v12437_v52 = vadd.f32 %v14749_v0, %v1406_v26  ;;  %v1418_v12 = vld [vmem:[%s14747_s4 + $0x60] sm:$0xff]  ;;  %v1420_v26 = vld [vmem:[%s14747_s4 + $0x70] sm:$0xff] }
 0xa49   :  { %14743 = vst [vmem:[#allocation42_spill] sm:$0xff] %v12410_v30  ;;  %8217 = vmatprep.mubr.msk.f32.mxu1 %vm1341_vm6, %v12410_v30  ;;  %v3567_v5 = vmul.f32 %v12255_v57, %v3547_v6  ;;  %v14748_v57 = vmov 0.0   ;;  %14764 = vst [vmem:[#allocation23_spill] sm:$0xff] %v12542_v42  ;;  %v14765_v39 = vld [vmem:[#allocation24_spill] sm:$0xff]  ;;  %v1419_v6 = vld [vmem:[%s14747_s4 + $0x68] sm:$0xff] }
 0xa4a   :  { %8218 = vmatmul.mubr.msk.f32.gmra.mrb[60].mxu1 %vm1341_vm6, %v12414_v41  ;;  %v12426_v36 = vadd.f32 %v12260_v59, %v3568_v63  ;;  %v12551_v58 = vadd.f32 %v14765_v39, %v1418_v12  ;;  %v14767_v63 = vld [vmem:[#allocation35_spill] sm:$0xff] }
 0xa4b   :  { %v12423_v50 = vadd.f32 %v12260_v59, %v3567_v5  ;;  %v1407_v59 = vld [vmem:[%s14747_s4 + $0x8] sm:$0xff]  ;;  %v12560_v5 = vadd.f32 %v14767_v63, %v1419_v6  ;;  %v14769_v0 = vld [vmem:[#allocation27_spill] sm:$0xff] }
 0xa4c   :  { %14746 = vst [vmem:[#allocation18_spill] sm:$0xff] %v12426_v36  ;;  %v12446_v28 = vadd.f32 %v14750_v35, %v1407_v59  ;;  %14766 = vst [vmem:[#allocation25_spill] sm:$0xff] %v12551_v58  ;;  %v12569_v59 = vadd.f32 %v14769_v0, %v1420_v26  ;;  %v1421_v35 = vld [vmem:[%s14747_s4 + $0x78] sm:$0xff] }
 0xa4d   :  { %14745 = vst [vmem:[#allocation14_spill] sm:$0xff] %v12423_v50  ;;  %8220 = vmatprep.mubr.msk.f32.mxu1 %vm1341_vm6, %v12423_v50  ;;  %14768 = vst [vmem:[#allocation17_spill] sm:$0xff] %v12560_v5  ;;  %v12578_v47 = vadd.f32 %v14771_v61, %v1421_v35 }
 0xa4e   :  { %8221 = vmatmul.mubr.msk.f32.gmra.mrb[62].mxu1 %vm1341_vm6, %v12426_v36  ;;  %14770 = vst [vmem:[#allocation48_spill] sm:$0xff] %v12569_v59 }
 0xa4f   :  { %4431 = vmatprep.mubr.f32.mxu1 %v14748_v57  ;;  %14772 = vst [vmem:[#allocation21_spill] sm:$0xff] %v12578_v47 }
 0xa52   :  { %7269 = vmatmul.mubr.msk.f32.vlgmr.msra.gmra.mrb[64].mxu1 %vm1621_vm4, %v12437_v52 }
 0xa53   :  { %4437 = vmatprep.mubr.f32.mxu1 %v14748_v57 }
 0xa56   :  { %7270 = vmatmul.mubr.msk.f32.gmra.mrb[66].mxu1 %vm1621_vm4, %v12446_v28 }
 0xa57   :  { %4443 = vmatprep.mubr.f32.mxu1 %v14748_v57 }
 0xa5a   :  { %7271 = vmatmul.mubr.msk.f32.gmra.mrb[68].mxu1 %vm1621_vm4, %v12455_v46 }
 0xa5b   :  { %4449 = vmatprep.mubr.f32.mxu1 %v14748_v57 }
 0xa5e   :  { %7272 = vmatmul.mubr.msk.f32.gmra.mrb[70].mxu1 %vm1621_vm4, %v12470_v7 }
 0xa5f   :  { %4455 = vmatprep.mubr.f32.mxu1 %v14748_v57 }
 0xa62   :  { %7273 = vmatmul.mubr.msk.f32.gmra.mrb[72].mxu1 %vm1621_vm4, %v12479_v2 }
 0xa63   :  { %4461 = vmatprep.mubr.f32.mxu1 %v14748_v57 }
 0xa66   :  { %7274 = vmatmul.mubr.msk.f32.gmra.mrb[74].mxu1 %vm1621_vm4, %v12488_v54 }
 0xa67   :  { %4467 = vmatprep.mubr.f32.mxu1 %v14748_v57 }
 0xa6a   :  { %7275 = vmatmul.mubr.msk.f32.gmra.mrb[76].mxu1 %vm1621_vm4, %v12497_v15 }
 0xa6b   :  { %4473 = vmatprep.mubr.f32.mxu1 %v14748_v57 }
 0xa6e   :  { %7276 = vmatmul.mubr.msk.f32.gmra.mrb[78].mxu1 %vm1621_vm4, %v12506_v33 }
 0xa6f   :  { %4479 = vmatprep.mubr.f32.mxu1 %v14748_v57 }
 0xa72   :  { %7277 = vmatmul.mubr.msk.f32.gmra.mrb[80].mxu1 %vm1621_vm4, %v12515_v16 }
 0xa73   :  { %4485 = vmatprep.mubr.f32.mxu1 %v14748_v57 }
 0xa76   :  { %7278 = vmatmul.mubr.msk.f32.gmra.mrb[82].mxu1 %vm1621_vm4, %v12524_v51 }
 0xa77   :  { %4491 = vmatprep.mubr.f32.mxu1 %v14748_v57 }
 0xa7a   :  { %7279 = vmatmul.mubr.msk.f32.gmra.mrb[84].mxu1 %vm1621_vm4, %v12533_v8 }
 0xa7b   :  { %4497 = vmatprep.mubr.f32.mxu1 %v14748_v57 }
 0xa7e   :  { %7280 = vmatmul.mubr.msk.f32.gmra.mrb[86].mxu1 %vm1621_vm4, %v12542_v42 }
 0xa7f   :  { %4503 = vmatprep.mubr.f32.mxu1 %v14748_v57 }
 0xa82   :  { %7281 = vmatmul.mubr.msk.f32.gmra.mrb[88].mxu1 %vm1621_vm4, %v12551_v58 }
 0xa83   :  { %4509 = vmatprep.mubr.f32.mxu1 %v14748_v57 }
 0xa86   :  { %7282 = vmatmul.mubr.msk.f32.gmra.mrb[90].mxu1 %vm1621_vm4, %v12560_v5 }
 0xa87   :  { %4515 = vmatprep.mubr.f32.mxu1 %v14748_v57 }
 0xa8a   :  { %7283 = vmatmul.mubr.msk.f32.gmra.mrb[92].mxu1 %vm1621_vm4, %v12569_v59 }
 0xa8b   :  { %4521 = vmatprep.mubr.f32.mxu1 %v14748_v57 }
 0xa8e   :  { %7284 = vmatmul.mubr.msk.f32.gmra.mrb[94].mxu1 %vm1621_vm4, %v12578_v47 }
 0xad6   :  { %v8201_v43 = vpop.f32.mrb[48].mxu1 }
 0xad7   :  { %v3715_v18 = vadd.f32 %v8201_v43, %v7236_v56  ;;  %v3709_v60 = vpop.f32.mrb[49].mxu1 }
 0xad8   :  { %v3710_v32 = vadd.f32 %v7236_v56, %v3709_v60 }
 0xad9   :  { %v3789_v53 = vmax.f32 %v3715_v18, 0.0 }
 0xada   :  { %v3788_v34 = vmax.f32 %v3710_v32, 0.0  ;;  %v8204_v24 = vpop.f32.mrb[50].mxu1 }
 0xadb   :  { %v3725_v29 = vadd.f32 %v8204_v24, %v7236_v56  ;;  %v3719_v10 = vpop.f32.mrb[51].mxu1 }
 0xadc   :  { %v3720_v57 = vadd.f32 %v7236_v56, %v3719_v10  ;;  %8239 = vmatprep.mubr.msk.f32.mxu0 %vm1621_vm4, %v3788_v34 }
 0xadd   :  { %8240 = vmatmul.mubr.msk.f32.vlgmr.msra.gmra.mrb[96].mxu0 %vm1621_vm4, %v3789_v53  ;;  %v3791_v22 = vmax.f32 %v3725_v29, 0.0 }
 0xade   :  { %v3790_v31 = vmax.f32 %v3720_v57, 0.0 }
 0xae0   :  { %8242 = vmatprep.mubr.msk.f32.mxu0 %vm1621_vm4, %v3790_v31 }
 0xae1   :  { %8243 = vmatmul.mubr.msk.f32.gmra.mrb[98].mxu0 %vm1621_vm4, %v3791_v22 }
 0xb0a   :  { %v8207_v11 = vpop.f32.mrb[52].mxu1 }
 0xb0b   :  { %v3735_v9 = vadd.f32 %v8207_v11, %v7236_v56  ;;  %v3729_v38 = vpop.f32.mrb[53].mxu1 }
 0xb0c   :  { %v3730_v19 = vadd.f32 %v7236_v56, %v3729_v38 }
 0xb0d   :  { %v3793_v55 = vmax.f32 %v3735_v9, 0.0 }
 0xb0e   :  { %v3792_v37 = vmax.f32 %v3730_v19, 0.0 }
 0xb10   :  { %8245 = vmatprep.mubr.msk.f32.mxu0 %vm1621_vm4, %v3792_v37 }
 0xb11   :  { %v8210_v27 = vpop.f32.mrb[54].mxu1  ;;  %8246 = vmatmul.mubr.msk.f32.gmra.mrb[100].mxu0 %vm1621_vm4, %v3793_v55 }
 0xb12   :  { %v3745_v48 = vadd.f32 %v8210_v27, %v7236_v56  ;;  %v3739_v13 = vpop.f32.mrb[55].mxu1 }
 0xb13   :  { %v3740_v12 = vadd.f32 %v7236_v56, %v3739_v13 }
 0xb14   :  { %v3795_v63 = vmax.f32 %v3745_v48, 0.0 }
 0xb15   :  { %v3794_v39 = vmax.f32 %v3740_v12, 0.0  ;;  %v8213_v6 = vpop.f32.mrb[56].mxu1 }
 0xb16   :  { %v3755_v26 = vadd.f32 %v8213_v6, %v7236_v56  ;;  %v3749_v0 = vpop.f32.mrb[57].mxu1 }
 0xb17   :  { %v3750_v35 = vadd.f32 %v7236_v56, %v3749_v0  ;;  %8248 = vmatprep.mubr.msk.f32.mxu0 %vm1621_vm4, %v3794_v39 }
 0xb18   :  { %8249 = vmatmul.mubr.msk.f32.gmra.mrb[102].mxu0 %vm1621_vm4, %v3795_v63  ;;  %v3797_v18 = vmax.f32 %v3755_v26, 0.0 }
 0xb19   :  { %v3796_v61 = vmax.f32 %v3750_v35, 0.0  ;;  %v8216_v43 = vpop.f32.mrb[58].mxu1 }
 0xb1a   :  { %v3765_v60 = vadd.f32 %v8216_v43, %v7236_v56  ;;  %v3759_v32 = vpop.f32.mrb[59].mxu1 }
 0xb1b   :  { %v3760_v34 = vadd.f32 %v7236_v56, %v3759_v32  ;;  %8251 = vmatprep.mubr.msk.f32.mxu0 %vm1621_vm4, %v3796_v61 }
 0xb1c   :  { %8252 = vmatmul.mubr.msk.f32.gmra.mrb[104].mxu0 %vm1621_vm4, %v3797_v18  ;;  %v3799_v29 = vmax.f32 %v3765_v60, 0.0 }
 0xb1d   :  { %v3798_v24 = vmax.f32 %v3760_v34, 0.0  ;;  %v8219_v53 = vpop.f32.mrb[60].mxu1 }
 0xb1e   :  { %v3775_v10 = vadd.f32 %v8219_v53, %v7236_v56  ;;  %v3769_v57 = vpop.f32.mrb[61].mxu1 }
 0xb1f   :  { %v3770_v31 = vadd.f32 %v7236_v56, %v3769_v57  ;;  %8254 = vmatprep.mubr.msk.f32.mxu0 %vm1621_vm4, %v3798_v24 }
 0xb20   :  { %8255 = vmatmul.mubr.msk.f32.gmra.mrb[106].mxu0 %vm1621_vm4, %v3799_v29  ;;  %v3801_v9 = vmax.f32 %v3775_v10, 0.0 }
 0xb21   :  { %v3800_v22 = vmax.f32 %v3770_v31, 0.0  ;;  %v8222_v11 = vpop.f32.mrb[62].mxu1 }
 0xb22   :  { %v3785_v38 = vadd.f32 %v8222_v11, %v7236_v56  ;;  %v3779_v19 = vpop.f32.mrb[63].mxu1 }
 0xb23   :  { %v3780_v37 = vadd.f32 %v7236_v56, %v3779_v19  ;;  %8257 = vmatprep.mubr.msk.f32.mxu0 %vm1621_vm4, %v3800_v22 }
 0xb24   :  { %8258 = vmatmul.mubr.msk.f32.gmra.mrb[108].mxu0 %vm1621_vm4, %v3801_v9  ;;  %v3803_v48 = vmax.f32 %v3785_v38, 0.0 }
 0xb25   :  { %v3802_v55 = vmax.f32 %v3780_v37, 0.0  ;;  %v12599_v27 = vpop.f32.mrb[64].mxu1 }
 0xb26   :  { %v12601_v13 = vpop.f32.mrb[65].mxu1 }
 0xb27   :  { %8260 = vmatprep.mubr.msk.f32.mxu0 %vm1621_vm4, %v3802_v55 }
 0xb28   :  { %8261 = vmatmul.mubr.msk.f32.gmra.mrb[110].mxu0 %vm1621_vm4, %v3803_v48 }
 0xb29   :  { %v12605_v12 = vpop.f32.mrb[66].mxu1  ;;  %8295 = vmatprep.mubr.msk.f32.mxu0 %vm1341_vm6, %v12599_v27 }
 0xb2a   :  { %v12611_v56 = vpack.i.bf16 %v12605_v12, %v12599_v27  ;;  %v12613_v39 = vpop.f32.mrb[67].mxu1 }
 0xb2b   :  { %v8915_v63 = vpack.c.bf16 %v12613_v39, %v12601_v13 }
 0xb2c   :  { %9306 = vrot.lane.b32.xlu0 %v12611_v56, %s9926_s6 }
 0xb2d   :  { %v12621_v26 = vpop.f32.mrb[68].mxu1  ;;  %8916 = vmatprep.subr.bf16.mxu1 %v8915_v63 }
 0xb2e   :  { %v12623_v0 = vpop.f32.mrb[69].mxu1  ;;  %8918 = vmatpush3.bf16.msra.mxu1 %v8915_v63 }
 0xb31   :  { %v12625_v35 = vpop.f32.mrb[70].mxu1 }
 0xb32   :  { %v12629_v61 = vpack.i.bf16 %v12625_v35, %v12621_v26  ;;  %v12631_v43 = vpop.f32.mrb[71].mxu1 }
 0xb33   :  { %v8919_v60 = vpack.c.bf16 %v12631_v43, %v12623_v0 }
 0xb34   :  { %9311 = vrot.lane.b32.xlu1 %v12629_v61, %s9926_s6 }
 0xb35   :  { %v12639_v32 = vpop.f32.mrb[72].mxu1  ;;  %8920 = vmatprep.subr.bf16.mxu1 %v8919_v60 }
 0xb36   :  { %v12641_v34 = vpop.f32.mrb[73].mxu1  ;;  %8922 = vmatpush3.bf16.msra.mxu1 %v8919_v60 }
 0xb39   :  { %v12643_v24 = vpop.f32.mrb[74].mxu1 }
 0xb3a   :  { %v9355_v53 = vpack.i.bf16 %v12643_v24, %v12639_v32  ;;  %v12647_v29 = vpop.f32.mrb[75].mxu1 }
 0xb3b   :  { %v8923_v57 = vpack.c.bf16 %v12647_v29, %v12641_v34 }
 0xb3c   :  { %9316 = vrot.lane.b32.xlu1 %v9355_v53, %s9926_s6 }
 0xb3d   :  { %v12654_v31 = vpop.f32.mrb[76].mxu1  ;;  %8924 = vmatprep.subr.bf16.mxu1 %v8923_v57 }
 0xb3e   :  { %v12656_v22 = vpop.f32.mrb[77].mxu1  ;;  %8926 = vmatpush3.bf16.msra.mxu1 %v8923_v57 }
 0xb41   :  { %v12658_v11 = vpop.f32.mrb[78].mxu1 }
 0xb42   :  { %v9360_v9 = vpack.i.bf16 %v12658_v11, %v12654_v31  ;;  %v12662_v38 = vpop.f32.mrb[79].mxu1 }
 0xb43   :  { %v8927_v37 = vpack.c.bf16 %v12662_v38, %v12656_v22 }
 0xb44   :  { %9321 = vrot.lane.b32.xlu0 %v9360_v9, %s9926_s6 }
 0xb45   :  { %v12669_v55 = vpop.f32.mrb[80].mxu1  ;;  %8928 = vmatprep.subr.bf16.mxu1 %v8927_v37 }
 0xb46   :  { %v12671_v48 = vpop.f32.mrb[81].mxu1  ;;  %8930 = vmatpush3.bf16.msra.mxu1 %v8927_v37 }
 0xb49   :  { %v12673_v63 = vpop.f32.mrb[82].mxu1 }
 0xb4a   :  { %v9365_v60 = vpack.i.bf16 %v12673_v63, %v12669_v55  ;;  %v12677_v57 = vpop.f32.mrb[83].mxu1 }
 0xb4b   :  { %v8931_v6 = vpack.c.bf16 %v12677_v57, %v12671_v48 }
 0xb4c   :  { %9326 = vrot.lane.b32.xlu1 %v9365_v60, %s9926_s6 }
 0xb4d   :  { %v12684_v19 = vpop.f32.mrb[84].mxu1  ;;  %8932 = vmatprep.subr.bf16.mxu1 %v8931_v6 }
 0xb4e   :  { %v4495_v18 = vpop.f32.mrb[85].mxu1  ;;  %8934 = vmatpush3.bf16.msra.mxu1 %v8931_v6 }
 0xb51   :  { %v12686_v37 = vpop.f32.mrb[86].mxu1 }
 0xb52   :  { %v9370_v14 = vpack.i.bf16 %v12686_v37, %v12684_v19  ;;  %v4501_v25 = vpop.f32.mrb[87].mxu1 }
 0xb53   :  { %v9410_v45 = vpack.i.bf16 %v4501_v25, %v4495_v18  ;;  %v8935_v21 = vpack.c.bf16 %v4501_v25, %v4495_v18 }
 0xb54   :  { %9331 = vrot.lane.b32.xlu0 %v9370_v14, %s9926_s6 }
 0xb55   :  { %v12691_v10 = vpop.f32.mrb[88].mxu1  ;;  %8936 = vmatprep.subr.bf16.mxu1 %v8935_v21 }
 0xb56   :  { %v12693_v40 = vpop.f32.mrb[89].mxu1  ;;  %8938 = vmatpush3.bf16.msra.mxu1 %v8935_v21 }
 0xb59   :  { %v12695_v17 = vpop.f32.mrb[90].mxu1 }
 0xb5a   :  { %v9375_v6 = vpack.i.bf16 %v12695_v17, %v12691_v10  ;;  %v12699_v62 = vpop.f32.mrb[91].mxu1 }
 0xb5b   :  { %v8939_v25 = vpack.c.bf16 %v12699_v62, %v12693_v40 }
 0xb5c   :  { %9336 = vrot.lane.b32.xlu1 %v9375_v6, %s9926_s6 }
 0xb5d   :  { %v12706_v18 = vpop.f32.mrb[92].mxu1  ;;  %8940 = vmatprep.subr.bf16.mxu1 %v8939_v25 }
 0xb5e   :  { %v12708_v50 = vpop.f32.mrb[93].mxu1  ;;  %8942 = vmatpush3.bf16.msra.mxu1 %v8939_v25 }
 0xb60   :  { %9346 = vrot.lane.b32.xlu1 %v12611_v56, %s9925_s9 }
 0xb61   :  { %v12712_v21 = vpop.f32.mrb[94].mxu1 }
 0xb62   :  { %v9380_v36 = vpack.i.bf16 %v12712_v21, %v12706_v18  ;;  %v12716_v23 = vpop.f32.mrb[95].mxu1 }
 0xb63   :  { %v8943_v41 = vpack.c.bf16 %v12716_v23, %v12708_v50 }
 0xb64   :  { %9356 = vrot.lane.b32.xlu1 %v9355_v53, %s9925_s9  ;;  %9341 = vrot.lane.b32.xlu0 %v9380_v36, %s9926_s6 }
 0xb65   :  { %8944 = vmatprep.subr.bf16.mxu1 %v8943_v41 }
 0xb66   :  { %8946 = vmatpush3.bf16.msra.mxu1 %v8943_v41  ;;  %v14774_v41 = vpack.i.bf16 %v12662_v38, %v12656_v22 }
 0xb68   :  { %9366 = vrot.lane.b32.xlu1 %v9365_v60, %s9925_s9  ;;  %9351 = vrot.lane.b32.xlu0 %v12629_v61, %s9925_s9 }
 0xb6c   :  { %9376 = vrot.lane.b32.xlu1 %v9375_v6, %s9925_s9  ;;  %9361 = vrot.lane.b32.xlu0 %v9360_v9, %s9925_s9 }
 0xb70   :  { %5074 = vrot.lane.b32.xlu1 %v12599_v27, %s9924_s30  ;;  %9371 = vrot.lane.b32.xlu0 %v9370_v14, %s9925_s9  ;;  %v14773_v14 = vpack.i.bf16 %v12631_v43, %v12623_v0  ;;  %v14776_v27 = vpack.i.bf16 %v12647_v29, %v12641_v34  ;;  %v14777_v43 = vpack.i.bf16 %v12677_v57, %v12671_v48 }
 0xb74   :  { %5078 = vrot.lane.b32.xlu1 %v12621_v26, %s9924_s30  ;;  %9381 = vrot.lane.b32.xlu0 %v9380_v36, %s9925_s9  ;;  %v14775_v36 = vpack.i.bf16 %v12613_v39, %v12601_v13 }
 0xb78   :  { %5082 = vrot.lane.b32.xlu1 %v12639_v32, %s9924_s30  ;;  %5076 = vrot.lane.b32.xlu0 %v12605_v12, %s9924_s30 }
 0xb7c   :  { %5086 = vrot.lane.b32.xlu1 %v12654_v31, %s9924_s30  ;;  %5080 = vrot.lane.b32.xlu0 %v12625_v35, %s9924_s30 }
 0xb80   :  { %5090 = vrot.lane.b32.xlu1 %v12669_v55, %s9924_s30  ;;  %5084 = vrot.lane.b32.xlu0 %v12643_v24, %s9924_s30 }
 0xb84   :  { %5094 = vrot.lane.b32.xlu1 %v12684_v19, %s9924_s30  ;;  %5088 = vrot.lane.b32.xlu0 %v12658_v11, %s9924_s30 }
 0xb88   :  { %5098 = vrot.lane.b32.xlu1 %v12691_v10, %s9924_s30  ;;  %5092 = vrot.lane.b32.xlu0 %v12673_v63, %s9924_s30 }
 0xb8c   :  { %5102 = vrot.lane.b32.xlu1 %v12706_v18, %s9924_s30  ;;  %5096 = vrot.lane.b32.xlu0 %v12686_v37, %s9924_s30 }
 0xb90   :  { %9391 = vrot.lane.b32.xlu1 %v14773_v14, %s9924_s30  ;;  %5100 = vrot.lane.b32.xlu0 %v12695_v17, %s9924_s30 }
 0xb94   :  { %9401 = vrot.lane.b32.xlu1 %v14774_v41, %s9924_s30  ;;  %5104 = vrot.lane.b32.xlu0 %v12712_v21, %s9924_s30 }
 0xb98   :  { %9411 = vrot.lane.b32.xlu1 %v9410_v45, %s9924_s30  ;;  %9386 = vrot.lane.b32.xlu0 %v14775_v36, %s9924_s30 }
 0xb9c   :  { %9396 = vrot.lane.b32.xlu0 %v14776_v27, %s9924_s30 }
 0xb9e   :  { %v9307_v56 = vpop.permute.xlu0 %9306 }
 0xb9f   :  { %v9309_v0 = vunpack.i.h.bf16 %v9307_v56  ;;  %v9308_v61 = vunpack.i.l.bf16 %v9307_v56 }
 0xba0   :  { %9406 = vrot.lane.b32.xlu0 %v14777_v43, %s9924_s30 }
 0xba1   :  { %v8867_v53 = vpack.c.bf16 %v9309_v0, %v9308_v61 }
 0xba3   :  { %8869 = vmatprep.subr.msk.bf16.mxu0 %vm11351_vm5, %v8867_v53 }
 0xba4   :  { %8872 = vmatpush3.bf16.xpose.msk.msra.mxu0 %vm11351_vm5, %v8867_v53 }
 0xba6   :  { %v9312_v13 = vpop.permute.xlu1 %9311 }
 0xba7   :  { %v9314_v39 = vunpack.i.h.bf16 %v9312_v13  ;;  %v9313_v22 = vunpack.i.l.bf16 %v9312_v13 }
 0xba9   :  { %v8873_v34 = vpack.c.bf16 %v9314_v39, %v9313_v22 }
 0xbab   :  { %8875 = vmatprep.subr.msk.bf16.mxu0 %vm11351_vm5, %v8873_v34 }
 0xbac   :  { %8878 = vmatpush3.bf16.xpose.msk.msra.mxu0 %vm11351_vm5, %v8873_v34 }
 0xbae   :  { %v9317_v29 = vpop.permute.xlu1 %9316 }
 0xbaf   :  { %v9319_v9 = vunpack.i.h.bf16 %v9317_v29  ;;  %v9318_v38 = vunpack.i.l.bf16 %v9317_v29 }
 0xbb0   :  { %v12792_v48 = vpop.f32.mrb[96].mxu0 }
 0xbb1   :  { %14779 = vst [vmem:[#allocation20_spill] sm:$0xff] %v12792_v48  ;;  %v8879_v60 = vpack.c.bf16 %v9319_v9, %v9318_v38  ;;  %v12794_v57 = vpop.f32.mrb[97].mxu0 }
 0xbb2   :  { %14780 = vst [vmem:[#allocation32_spill] sm:$0xff] %v12794_v57 }
 0xbb3   :  { %8881 = vmatprep.subr.msk.bf16.mxu0 %vm11351_vm5, %v8879_v60 }
 0xbb4   :  { %v12798_v6 = vpop.f32.mrb[98].mxu0  ;;  %8884 = vmatpush3.bf16.xpose.msk.msra.mxu0 %vm11351_vm5, %v8879_v60 }
 0xbb5   :  { %14781 = vst [vmem:[#allocation28_spill] sm:$0xff] %v12798_v6  ;;  %v12802_v25 = vpop.f32.mrb[99].mxu0 }
 0xbb6   :  { %14782 = vst [vmem:[#allocation26_spill] sm:$0xff] %v12802_v25  ;;  %v9322_v14 = vpop.permute.xlu0 %9321 }
 0xbb7   :  { %v9324_v41 = vunpack.i.h.bf16 %v9322_v14  ;;  %v9323_v36 = vunpack.i.l.bf16 %v9322_v14 }
 0xbb9   :  { %v8885_v27 = vpack.c.bf16 %v9324_v41, %v9323_v36 }
 0xbbb   :  { %8887 = vmatprep.subr.msk.bf16.mxu0 %vm11351_vm5, %v8885_v27 }
 0xbbc   :  { %8890 = vmatpush3.bf16.xpose.msk.msra.mxu0 %vm11351_vm5, %v8885_v27 }
 0xbbe   :  { %v9327_v56 = vpop.permute.xlu1 %9326 }
 0xbbf   :  { %v9329_v0 = vunpack.i.h.bf16 %v9327_v56  ;;  %v9328_v61 = vunpack.i.l.bf16 %v9327_v56 }
 0xbc1   :  { %v8891_v43 = vpack.c.bf16 %v9329_v0, %v9328_v61 }
 0xbc3   :  { %8893 = vmatprep.subr.msk.bf16.mxu0 %vm11351_vm5, %v8891_v43 }
 0xbc4   :  { %8896 = vmatpush3.bf16.xpose.msk.msra.mxu0 %vm11351_vm5, %v8891_v43 }
 0xbc6   :  { %v9332_v53 = vpop.permute.xlu0 %9331 }
 0xbc7   :  { %v9334_v13 = vunpack.i.h.bf16 %v9332_v53  ;;  %v9333_v39 = vunpack.i.l.bf16 %v9332_v53 }
 0xbc9   :  { %v8897_v22 = vpack.c.bf16 %v9334_v13, %v9333_v39 }
 0xbcb   :  { %8899 = vmatprep.subr.msk.bf16.mxu0 %vm11351_vm5, %v8897_v22 }
 0xbcc   :  { %8902 = vmatpush3.bf16.xpose.msk.msra.mxu0 %vm11351_vm5, %v8897_v22 }
 0xbce   :  { %v9337_v34 = vpop.permute.xlu1 %9336 }
 0xbcf   :  { %v9339_v29 = vunpack.i.h.bf16 %v9337_v34  ;;  %v9338_v9 = vunpack.i.l.bf16 %v9337_v34 }
 0xbd1   :  { %v8903_v38 = vpack.c.bf16 %v9339_v29, %v9338_v9 }
 0xbd2   :  { %v9347_v60 = vpop.permute.xlu1 %9346 }
 0xbd3   :  { %8905 = vmatprep.subr.msk.bf16.mxu0 %vm11351_vm5, %v8903_v38  ;;  %v9349_v41 = vunpack.i.h.bf16 %v9347_v60  ;;  %v9348_v36 = vunpack.i.l.bf16 %v9347_v60 }
 0xbd4   :  { %8908 = vmatpush3.bf16.xpose.msk.msra.mxu0 %vm11351_vm5, %v8903_v38 }
 0xbd5   :  { %v8947_v53 = vpack.c.bf16 %v9349_v41, %v9348_v36 }
 0xbd6   :  { %v9342_v14 = vpop.permute.xlu0 %9341  ;;  %v9357_v61 = vpop.permute.xlu1 %9356 }
 0xbd7   :  { %v9344_v27 = vunpack.i.h.bf16 %v9342_v14  ;;  %v9343_v56 = vunpack.i.l.bf16 %v9342_v14  ;;  %v9359_v36 = vunpack.i.h.bf16 %v9357_v61 }
 0xbd9   :  { %v8909_v0 = vpack.c.bf16 %v9344_v27, %v9343_v56  ;;  %v9358_v27 = vunpack.i.l.bf16 %v9357_v61 }
 0xbda   :  { %v9352_v43 = vpop.permute.xlu0 %9351  ;;  %v9367_v34 = vpop.permute.xlu1 %9366 }
 0xbdb   :  { %8911 = vmatprep.subr.msk.bf16.mxu0 %vm11351_vm5, %v8909_v0  ;;  %v9354_v39 = vunpack.i.h.bf16 %v9352_v43  ;;  %v9353_v22 = vunpack.i.l.bf16 %v9352_v43 }
 0xbdc   :  { %8914 = vmatpush3.bf16.xpose.msk.msra.mxu0 %vm11351_vm5, %v8909_v0 }
 0xbdd   :  { %8949 = vmatprep.subr.msk.bf16.mxu0 %vm11351_vm5, %v8947_v53  ;;  %v8953_v9 = vpack.c.bf16 %v9354_v39, %v9353_v22 }
 0xbde   :  { %v9362_v13 = vpop.permute.xlu0 %9361  ;;  %v12840_v14 = vpop.permute.xlu1 %9376 }
 0xbdf   :  { %v9363_v61 = vunpack.i.l.bf16 %v9362_v13 }
 0xbe2   :  { %v12826_v29 = vpop.permute.xlu0 %9371  ;;  %v5075_v0 = vpop.permute.xlu1 %5074 }
 0xbe3   :  { %8296 = vmatmul.mubr.msk.f32.vlgmr.msra.gmra.mrb[112].mxu0 %vm1341_vm6, %v12605_v12 }
 0xbe4   :  { %v12830_v38 = vpop.f32.mrb[100].mxu0  ;;  %8298 = vmatprep.mubr.msk.f32.mxu0 %vm1341_vm6, %v12621_v26  ;;  %8952 = vmatpush3.bf16.xpose.msk.msra.mxu0 %vm11351_vm5, %v8947_v53  ;;  %v8959_v26 = vpack.c.bf16 %v9359_v36, %v9358_v27  ;;  %v9368_v36 = vunpack.i.l.bf16 %v9367_v34 }
 0xbe5   :  { %14783 = vst [vmem:[#allocation24_spill] sm:$0xff] %v12830_v38  ;;  %v12836_v60 = vpop.f32.mrb[101].mxu0  ;;  %8955 = vmatprep.subr.msk.bf16.mxu0 %vm11351_vm5, %v8953_v9 }
 0xbe6   :  { %14784 = vst [vmem:[#allocation35_spill] sm:$0xff] %v12836_v60  ;;  %v12842_v41 = vpop.permute.xlu0 %9381 }
 0xbe7   :  { %8299 = vmatmul.mubr.msk.f32.gmra.mrb[114].mxu0 %vm1341_vm6, %v12625_v35 }
 0xbe8   :  { %8301 = vmatprep.mubr.msk.f32.mxu0 %vm1341_vm6, %v12639_v32  ;;  %v9364_v32 = vunpack.i.h.bf16 %v9362_v13 }
 0xbea   :  { %v12848_v12 = vpop.permute.xlu0 %5076  ;;  %v8965_v22 = vpack.c.bf16 %v9364_v32, %v9363_v61 }
 0xbeb   :  { %v12850_v56 = vpop.f32.mrb[102].mxu0  ;;  %8302 = vmatmul.mubr.msk.f32.gmra.mrb[116].mxu0 %vm1341_vm6, %v12643_v24 }
 0xbec   :  { %14785 = vst [vmem:[#allocation27_spill] sm:$0xff] %v12850_v56  ;;  %v12854_v43 = vpop.f32.mrb[103].mxu0  ;;  %8304 = vmatprep.mubr.msk.f32.mxu0 %vm1341_vm6, %v12654_v31  ;;  %8958 = vmatpush3.bf16.xpose.msk.msra.mxu0 %vm11351_vm5, %v8953_v9  ;;  %v12872_v31 = vpop.permute.xlu1 %5078 }
 0xbed   :  { %14786 = vst [vmem:[#allocation30_spill] sm:$0xff] %v12854_v43  ;;  %8961 = vmatprep.subr.msk.bf16.mxu0 %vm11351_vm5, %v8959_v26  ;;  %v9379_v43 = vunpack.i.h.bf16 %v12840_v14 }
 0xbee   :  { %v12862_v35 = vpop.permute.xlu0 %5080 }
 0xbef   :  { %v12864_v53 = vpop.f32.mrb[104].mxu0  ;;  %8305 = vmatmul.mubr.msk.f32.gmra.mrb[118].mxu0 %vm1341_vm6, %v12658_v11 }
 0xbf0   :  { %14787 = vst [vmem:[#allocation31_spill] sm:$0xff] %v12864_v53  ;;  %v12868_v24 = vpop.f32.mrb[105].mxu0  ;;  %8307 = vmatprep.mubr.msk.f32.mxu0 %vm1341_vm6, %v12669_v55  ;;  %v9369_v55 = vunpack.i.h.bf16 %v9367_v34 }
 0xbf1   :  { %14788 = vst [vmem:[#allocation50_spill] sm:$0xff] %v12868_v24 }
 0xbf2   :  { %v12874_v39 = vpop.permute.xlu0 %5084 }
 0xbf3   :  { %v12876_v9 = vpop.f32.mrb[106].mxu0  ;;  %8308 = vmatmul.mubr.msk.f32.gmra.mrb[120].mxu0 %vm1341_vm6, %v12673_v63  ;;  %v5083_v63 = vpop.permute.xlu1 %5082 }
 0xbf4   :  { %14789 = vst [vmem:[#allocation51_spill] sm:$0xff] %v12876_v9  ;;  %v12880_v13 = vpop.f32.mrb[107].mxu0  ;;  %8310 = vmatprep.mubr.msk.f32.mxu0 %vm1341_vm6, %v12684_v19  ;;  %8964 = vmatpush3.bf16.xpose.msk.msra.mxu0 %vm11351_vm5, %v8959_v26  ;;  %v8971_v26 = vpack.c.bf16 %v9369_v55, %v9368_v36  ;;  %v9374_v55 = vunpack.i.h.bf16 %v12826_v29  ;;  %v9373_v36 = vunpack.i.l.bf16 %v12826_v29  ;;  %v9378_v29 = vunpack.i.l.bf16 %v12840_v14 }
 0xbf5   :  { %14790 = vst [vmem:[#allocation52_spill] sm:$0xff] %v12880_v13  ;;  %8967 = vmatprep.subr.msk.bf16.mxu0 %vm11351_vm5, %v8965_v22 }
 0xbf6   :  { %v12888_v11 = vpop.permute.xlu0 %5088  ;;  %v8983_v60 = vpack.c.bf16 %v9379_v43, %v9378_v29 }
 0xbf7   :  { %v12890_v27 = vpop.f32.mrb[108].mxu0  ;;  %8311 = vmatmul.mubr.msk.f32.gmra.mrb[122].mxu0 %vm1341_vm6, %v12686_v37 }
 0xbf8   :  { %14791 = vst [vmem:[#allocation53_spill] sm:$0xff] %v12890_v27  ;;  %v12894_v32 = vpop.f32.mrb[109].mxu0  ;;  %8313 = vmatprep.mubr.msk.f32.mxu0 %vm1341_vm6, %v12691_v10  ;;  %v5087_v10 = vpop.permute.xlu1 %5086  ;;  %v4278_v27 = vld [vmem:[%s14494_s8 + $0x68] sm:$0xff] }
 0xbf9   :  { %14792 = vst [vmem:[#allocation54_spill] sm:$0xff] %v12894_v32 }
 0xbfa   :  { %v12898_v19 = vpop.permute.xlu0 %5092 }
 0xbfb   :  { %v12900_v61 = vpop.f32.mrb[110].mxu0  ;;  %8314 = vmatmul.mubr.msk.f32.gmra.mrb[124].mxu0 %vm1341_vm6, %v12695_v17 }
 0xbfc   :  { %14793 = vst [vmem:[#allocation55_spill] sm:$0xff] %v12900_v61  ;;  %v12904_v34 = vpop.f32.mrb[111].mxu0  ;;  %8316 = vmatprep.mubr.msk.f32.mxu0 %vm1341_vm6, %v12706_v18  ;;  %8970 = vmatpush3.bf16.xpose.msk.msra.mxu0 %vm11351_vm5, %v8965_v22  ;;  %v8977_v18 = vpack.c.bf16 %v9374_v55, %v9373_v36  ;;  %v5091_v30 = vpop.permute.xlu1 %5090  ;;  %v9383_v36 = vunpack.i.l.bf16 %v12842_v41 }
 0xbfd   :  { %14794 = vst [vmem:[#allocation56_spill] sm:$0xff] %v12904_v34  ;;  %8973 = vmatprep.subr.msk.bf16.mxu0 %vm11351_vm5, %v8971_v26 }
 0xbfe   :  { %v12912_v37 = vpop.permute.xlu0 %5096 }
 0xbff   :  { %8317 = vmatmul.mubr.msk.f32.gmra.mrb[126].mxu0 %vm1341_vm6, %v12712_v21 }
 0xc00   :  { %8407 = vmatprep.mubr.msk.f32.mxu0 %vm1341_vm6, %v5075_v0  ;;  %v5095_v56 = vpop.permute.xlu1 %5094 }
 0xc02   :  { %v12919_v17 = vpop.permute.xlu0 %5100 }
 0xc04   :  { %8976 = vmatpush3.bf16.xpose.msk.msra.mxu0 %vm11351_vm5, %v8971_v26  ;;  %v9384_v26 = vunpack.i.h.bf16 %v12842_v41  ;;  %v5099_v14 = vpop.permute.xlu1 %5098 }
 0xc05   :  { %8979 = vmatprep.subr.msk.bf16.mxu0 %vm11351_vm5, %v8977_v18 }
 0xc06   :  { %v12925_v22 = vpop.permute.xlu0 %5104  ;;  %v8989_v25 = vpack.c.bf16 %v9384_v26, %v9383_v36 }
 0xc08   :  { %v5103_v43 = vpop.permute.xlu1 %5102 }
 0xc0a   :  { %v9387_v21 = vpop.permute.xlu0 %9386 }
 0xc0b   :  { %v9389_v0 = vunpack.i.h.bf16 %v9387_v21  ;;  %v9388_v38 = vunpack.i.l.bf16 %v9387_v21 }
 0xc0c   :  { %8982 = vmatpush3.bf16.xpose.msk.msra.mxu0 %vm11351_vm5, %v8977_v18 }
 0xc0d   :  { %v12931_v55 = vpack.c.bf16 %v9389_v0, %v9388_v38  ;;  %8985 = vmatprep.subr.msk.bf16.mxu0 %vm11351_vm5, %v8983_v60  ;;  %v9392_v38 = vpop.permute.xlu1 %9391 }
 0xc0e   :  { %v9394_v18 = vunpack.i.h.bf16 %v9392_v38  ;;  %v9393_v29 = vunpack.i.l.bf16 %v9392_v38  ;;  %v9397_v41 = vpop.permute.xlu0 %9396 }
 0xc0f   :  { %9067 = vmatprep.subr.bf16.mxu1 %v12931_v55  ;;  %v9399_v0 = vunpack.i.h.bf16 %v9397_v41  ;;  %v9398_v26 = vunpack.i.l.bf16 %v9397_v41 }
 0xc10   :  { %v12945_v21 = vpack.c.bf16 %v9394_v18, %v9393_v29 }
 0xc11   :  { %v12953_v36 = vpack.c.bf16 %v9399_v0, %v9398_v26 }
 0xc12   :  { %v9407_v38 = vpop.permute.xlu0 %9406 }
 0xc13   :  { %v9408_v18 = vunpack.i.l.bf16 %v9407_v38 }
 0xc14   :  { %8988 = vmatpush3.bf16.xpose.msk.msra.mxu0 %vm11351_vm5, %v8983_v60  ;;  %v9402_v60 = vpop.permute.xlu1 %9401 }
 0xc15   :  { %8991 = vmatprep.subr.msk.bf16.mxu0 %vm11351_vm5, %v8989_v25  ;;  %v9404_v45 = vunpack.i.h.bf16 %v9402_v60 }
 0xc18   :  { %v9412_v29 = vpop.permute.xlu1 %9411 }
 0xc1c   :  { %8994 = vmatpush3.bf16.xpose.msk.msra.mxu0 %vm11351_vm5, %v8989_v25  ;;  %v9403_v25 = vunpack.i.l.bf16 %v9402_v60  ;;  %v4270_v60 = vld [vmem:[%s14494_s8 + $0x28] sm:$0xff] }
 0xc1d   :  { %8996 = vmatprep.subr.bf16.mxu0 %v12931_v55 }
 0xc23   :  { %8408 = vmatmul.mubr.msk.f32.vlgmr.msra.gmra.mrb[128].mxu0 %vm1341_vm6, %v12848_v12  ;;  %v12960_v12 = vpack.c.bf16 %v9404_v45, %v9403_v25  ;;  %v4269_v45 = vld [vmem:[%s14494_s8 + $0x20] sm:$0xff] }
 0xc24   :  { %8410 = vmatprep.mubr.msk.f32.mxu0 %vm1341_vm6, %v12872_v31  ;;  %8998 = vmatpush3.bf16.msra.mxu0 %v12931_v55  ;;  %v9409_v31 = vunpack.i.h.bf16 %v9407_v38 }
 0xc25   :  { %9000 = vmatprep.subr.bf16.mxu0 %v12945_v21 }
 0xc26   :  { %v12967_v41 = vpack.c.bf16 %v9409_v31, %v9408_v18 }
 0xc27   :  { %8411 = vmatmul.mubr.msk.f32.gmra.mrb[130].mxu0 %vm1341_vm6, %v12862_v35  ;;  %v9414_v35 = vunpack.i.h.bf16 %v9412_v29 }
 0xc28   :  { %8413 = vmatprep.mubr.msk.f32.mxu0 %vm1341_vm6, %v5083_v63  ;;  %9002 = vmatpush3.bf16.msra.mxu0 %v12945_v21  ;;  %v9413_v63 = vunpack.i.l.bf16 %v9412_v29  ;;  %v4272_v29 = vld [vmem:[%s14494_s8 + $0x38] sm:$0xff] }
 0xc29   :  { %9004 = vmatprep.subr.bf16.mxu0 %v12953_v36 }
 0xc2b   :  { %8414 = vmatmul.mubr.msk.f32.gmra.mrb[132].mxu0 %vm1341_vm6, %v12874_v39  ;;  %v12974_v39 = vpack.c.bf16 %v9414_v35, %v9413_v63  ;;  %v4271_v35 = vld [vmem:[%s14494_s8 + $0x30] sm:$0xff] }
 0xc2c   :  { %8416 = vmatprep.mubr.msk.f32.mxu0 %vm1341_vm6, %v5087_v10  ;;  %9006 = vmatpush3.bf16.msra.mxu0 %v12953_v36 }
 0xc2d   :  { %9008 = vmatprep.subr.bf16.mxu0 %v12960_v12 }
 0xc2f   :  { %8417 = vmatmul.mubr.msk.f32.gmra.mrb[134].mxu0 %vm1341_vm6, %v12888_v11 }
 0xc30   :  { %8419 = vmatprep.mubr.msk.f32.mxu0 %vm1341_vm6, %v5091_v30  ;;  %9010 = vmatpush3.bf16.msra.mxu0 %v12960_v12  ;;  %v12993_v30 = vld [vmem:[%s14494_s8 + $0x8] sm:$0xff] }
 0xc31   :  { %9012 = vmatprep.subr.bf16.mxu0 %v12967_v41 }
 0xc33   :  { %8420 = vmatmul.mubr.msk.f32.gmra.mrb[136].mxu0 %vm1341_vm6, %v12898_v19 }
 0xc34   :  { %8422 = vmatprep.mubr.msk.f32.mxu0 %vm1341_vm6, %v5095_v56  ;;  %9014 = vmatpush3.bf16.msra.mxu0 %v12967_v41  ;;  %v12998_v56 = vld [vmem:[%s14494_s8] sm:$0xff] }
 0xc35   :  { %9016 = vmatprep.subr.bf16.mxu0 %v12974_v39 }
 0xc37   :  { %8423 = vmatmul.mubr.msk.f32.gmra.mrb[138].mxu0 %vm1341_vm6, %v12912_v37 }
 0xc38   :  { %8425 = vmatprep.mubr.msk.f32.mxu0 %vm1341_vm6, %v5099_v14  ;;  %9018 = vmatpush3.bf16.msra.mxu0 %v12974_v39 }
 0xc3b   :  { %8426 = vmatmul.mubr.msk.f32.gmra.mrb[140].mxu0 %vm1341_vm6, %v12919_v17  ;;  %v13009_v17 = vld [vmem:[%s14494_s8 + $0x18] sm:$0xff] }
 0xc3c   :  { %8428 = vmatprep.mubr.msk.f32.mxu0 %vm1341_vm6, %v5103_v43 }
 0xc3f   :  { %8429 = vmatmul.mubr.msk.f32.gmra.mrb[142].mxu0 %vm1341_vm6, %v12925_v22  ;;  %v13015_v22 = vld [vmem:[%s14494_s8 + $0x10] sm:$0xff] }
 0xcb6   :  { %v8297_v11 = vpop.f32.mrb[112].mxu0 }
 0xcb7   :  { %v13001_v19 = vadd.f32 %v8297_v11, %v12993_v30  ;;  %v4706_v10 = vpop.f32.mrb[113].mxu0 }
 0xcb8   :  { %v13004_v37 = vadd.f32 %v4706_v10, %v12998_v56 }
 0xcb9   :  { %4787 = vmax.xlane.f32.xlu0 %v13001_v19 }
 0xcba   :  { %v8300_v14 = vpop.f32.mrb[114].mxu0  ;;  %4785 = vmax.xlane.f32.xlu1 %v13004_v37 }
 0xcbb   :  { %v13019_v43 = vadd.f32 %v8300_v14, %v13009_v17  ;;  %v4716_v0 = vpop.f32.mrb[115].mxu0 }
 0xcbc   :  { %v13022_v26 = vadd.f32 %v4716_v0, %v13015_v22  ;;  %v4274_v0 = vld [vmem:[%s14494_s8 + $0x48] sm:$0xff] }
 0xcbe   :  { %v8303_v25 = vpop.f32.mrb[116].mxu0  ;;  %4789 = vmax.xlane.f32.xlu0 %v13022_v26  ;;  %4791 = vmax.xlane.f32.xlu1 %v13019_v43 }
 0xcbf   :  { %v13032_v38 = vadd.f32 %v8303_v25, %v4270_v60  ;;  %v4726_v31 = vpop.f32.mrb[117].mxu0  ;;  %v4273_v25 = vld [vmem:[%s14494_s8 + $0x40] sm:$0xff] }
 0xcc0   :  { %v13034_v18 = vadd.f32 %v4726_v31, %v4269_v45 }
 0xcc2   :  { %v8306_v63 = vpop.f32.mrb[118].mxu0  ;;  %4793 = vmax.xlane.f32.xlu0 %v13034_v18  ;;  %4795 = vmax.xlane.f32.xlu1 %v13032_v38 }
 0xcc3   :  { %v13044_v11 = vadd.f32 %v8306_v63, %v4272_v29  ;;  %v4736_v10 = vpop.f32.mrb[119].mxu0 }
 0xcc4   :  { %v13046_v14 = vadd.f32 %v4736_v10, %v4271_v35  ;;  %v4276_v10 = vld [vmem:[%s14494_s8 + $0x58] sm:$0xff] }
 0xcc6   :  { %v8309_v31 = vpop.f32.mrb[120].mxu0  ;;  %4797 = vmax.xlane.f32.xlu0 %v13046_v14  ;;  %4799 = vmax.xlane.f32.xlu1 %v13044_v11 }
 0xcc7   :  { %v13056_v6 = vadd.f32 %v8309_v31, %v4274_v0  ;;  %v4746_v63 = vpop.f32.mrb[121].mxu0  ;;  %v4275_v31 = vld [vmem:[%s14494_s8 + $0x50] sm:$0xff] }
 0xcc8   :  { %v13058_v57 = vadd.f32 %v4746_v63, %v4273_v25 }
 0xcca   :  { %v8312_v48 = vpop.f32.mrb[122].mxu0  ;;  %4801 = vmax.xlane.f32.xlu0 %v13058_v57  ;;  %4803 = vmax.xlane.f32.xlu1 %v13056_v6 }
 0xccb   :  { %v13065_v34 = vadd.f32 %v8312_v48, %v4276_v10  ;;  %v4756_v61 = vpop.f32.mrb[123].mxu0 }
 0xccc   :  { %v13071_v3 = vadd.f32 %v4756_v61, %v4275_v31  ;;  %v4280_v61 = vld [vmem:[%s14494_s8 + $0x78] sm:$0xff] }
 0xcce   :  { %v8315_v32 = vpop.f32.mrb[124].mxu0  ;;  %4807 = vmax.xlane.f32.xlu0 %v13065_v34 }
 0xccf   :  { %v4766_v63 = vpop.f32.mrb[125].mxu0  ;;  %v13077_v13 = vadd.f32 %v8315_v32, %v4278_v27  ;;  %v4279_v32 = vld [vmem:[%s14494_s8 + $0x70] sm:$0xff] }
 0xcd0   :  { %v13083_v9 = vadd.f32 %v4766_v63, %v4277_v44 }
 0xcd2   :  { %v8318_v1 = vpop.f32.mrb[126].mxu0  ;;  %4805 = vmax.xlane.f32.xlu0 %v13071_v3 }
 0xcd3   :  { %v4776_v48 = vpop.f32.mrb[127].mxu0  ;;  %v13089_v20 = vadd.f32 %v8318_v1, %v4280_v61 }
 0xcd4   :  { %v13095_v24 = vadd.f32 %v4776_v48, %v4279_v32 }
 0xcd6   :  { %4811 = vmax.xlane.f32.xlu0 %v13077_v13 }
 0xcda   :  { %4809 = vmax.xlane.f32.xlu0 %v13083_v9 }
 0xcde   :  { %4815 = vmax.xlane.f32.xlu0 %v13089_v20 }
 0xce2   :  { %4813 = vmax.xlane.f32.xlu0 %v13095_v24 }
 0xcf6   :  { %v8409_v63 = vpop.f32.mrb[128].mxu0 }
 0xcf7   :  { %v13099_v53 = vadd.f32 %v8409_v63, %v12993_v30  ;;  %v5268_v49 = vpop.f32.mrb[129].mxu0 }
 0xcf8   :  { %v13102_v4 = vadd.f32 %v5268_v49, %v12998_v56 }
 0xcf9   :  { %5349 = vmax.xlane.f32.xlu1 %v13099_v53 }
 0xcfa   :  { %v8412_v1 = vpop.f32.mrb[130].mxu0 }
 0xcfb   :  { %v13106_v59 = vadd.f32 %v8412_v1, %v13009_v17  ;;  %v5278_v47 = vpop.f32.mrb[131].mxu0 }
 0xcfc   :  { %v13109_v48 = vadd.f32 %v5278_v47, %v13015_v22 }
 0xcfd   :  { %5347 = vmax.xlane.f32.xlu1 %v13102_v4 }
 0xcfe   :  { %v8415_v58 = vpop.f32.mrb[132].mxu0 }
 0xcff   :  { %v13112_v5 = vadd.f32 %v8415_v58, %v4270_v60  ;;  %v5288_v30 = vpop.f32.mrb[133].mxu0 }
 0xd00   :  { %v13114_v63 = vadd.f32 %v5288_v30, %v4269_v45 }
 0xd01   :  { %5353 = vmax.xlane.f32.xlu1 %v13106_v59 }
 0xd02   :  { %v8418_v49 = vpop.f32.mrb[134].mxu0 }
 0xd03   :  { %v13117_v56 = vadd.f32 %v8418_v49, %v4272_v29  ;;  %v5298_v8 = vpop.f32.mrb[135].mxu0 }
 0xd04   :  { %v13119_v17 = vadd.f32 %v5298_v8, %v4271_v35 }
 0xd05   :  { %5351 = vmax.xlane.f32.xlu1 %v13109_v48 }
 0xd06   :  { %v8421_v47 = vpop.f32.mrb[136].mxu0  ;;  %5359 = vmax.xlane.f32.xlu0 %v13119_v17 }
 0xd07   :  { %v13123_v22 = vadd.f32 %v8421_v47, %v4274_v0  ;;  %v5308_v58 = vpop.f32.mrb[137].mxu0 }
 0xd08   :  { %v13125_v60 = vadd.f32 %v5308_v58, %v4273_v25 }
 0xd09   :  { %5357 = vmax.xlane.f32.xlu1 %v13112_v5 }
 0xd0a   :  { %v8424_v45 = vpop.f32.mrb[138].mxu0  ;;  %5363 = vmax.xlane.f32.xlu0 %v13125_v60 }
 0xd0b   :  { %v13129_v29 = vadd.f32 %v8424_v45, %v4276_v10  ;;  %v5318_v1 = vpop.f32.mrb[139].mxu0 }
 0xd0c   :  { %v13131_v8 = vadd.f32 %v5318_v1, %v4275_v31 }
 0xd0d   :  { %5355 = vmax.xlane.f32.xlu1 %v13114_v63 }
 0xd0e   :  { %v8427_v35 = vpop.f32.mrb[140].mxu0  ;;  %5367 = vmax.xlane.f32.xlu0 %v13131_v8 }
 0xd0f   :  { %v13135_v0 = vadd.f32 %v8427_v35, %v4278_v27  ;;  %v5328_v30 = vpop.f32.mrb[141].mxu0 }
 0xd10   :  { %v13137_v25 = vadd.f32 %v5328_v30, %v4277_v44 }
 0xd11   :  { %5361 = vmax.xlane.f32.xlu1 %v13117_v56 }
 0xd12   :  { %v8430_v49 = vpop.f32.mrb[142].mxu0  ;;  %5371 = vmax.xlane.f32.xlu0 %v13137_v25 }
 0xd13   :  { %v13141_v10 = vadd.f32 %v8430_v49, %v4280_v61  ;;  %v5338_v47 = vpop.f32.mrb[143].mxu0 }
 0xd14   :  { %v13143_v31 = vadd.f32 %v5338_v47, %v4279_v32 }
 0xd15   :  { %5365 = vmax.xlane.f32.xlu1 %v13123_v22 }
 0xd16   :  { %5375 = vmax.xlane.f32.xlu0 %v13143_v31 }
 0xd19   :  { %5369 = vmax.xlane.f32.xlu1 %v13129_v29 }
 0xd1d   :  { %5373 = vmax.xlane.f32.xlu1 %v13135_v0 }
 0xd21   :  { %5377 = vmax.xlane.f32.xlu1 %v13141_v10 }
 0xd46   :  { %v4788_v44 = vpop.xlane.xlu0 %4787 }
 0xd47   :  { %v4818_v27 = vsub.f32 %v13001_v19, %v4788_v44  ;;  %v4786_v58 = vpop.xlane.xlu1 %4785 }
 0xd48   :  { %v4817_v61 = vsub.f32 %v13004_v37, %v4786_v58 }
 0xd49   :  { %v4835_v45 = vmul.f32 1.442695, %v4818_v27 }
 0xd4a   :  { %v4833_v1 = vmul.f32 1.442695, %v4817_v61 }
 0xd4b   :  { %9586 = vpow2.f32 %v4835_v45  ;;  %v4790_v32 = vpop.xlane.xlu0 %4789  ;;  %v4792_v35 = vpop.xlane.xlu1 %4791 }
 0xd4c   :  { %9588 = vpow2.f32 %v4833_v1  ;;  %v4819_v30 = vsub.f32 %v13022_v26, %v4790_v32  ;;  %v4820_v49 = vsub.f32 %v13019_v43, %v4792_v35 }
 0xd4e   :  { %v4837_v47 = vmul.f32 1.442695, %v4819_v30  ;;  %v4839_v42 = vmul.f32 1.442695, %v4820_v49 }
 0xd4f   :  { %v4794_v16 = vpop.xlane.xlu0 %4793  ;;  %v4796_v51 = vpop.xlane.xlu1 %4795 }
 0xd50   :  { %9590 = vpow2.f32 %v4837_v47  ;;  %v4821_v19 = vsub.f32 %v13034_v18, %v4794_v16  ;;  %v4822_v44 = vsub.f32 %v13032_v38, %v4796_v51 }
 0xd51   :  { %9592 = vpow2.f32 %v4839_v42 }
 0xd52   :  { %v4841_v37 = vmul.f32 1.442695, %v4821_v19  ;;  %v4843_v27 = vmul.f32 1.442695, %v4822_v44 }
 0xd53   :  { %v4798_v58 = vpop.xlane.xlu0 %4797  ;;  %v4800_v61 = vpop.xlane.xlu1 %4799 }
 0xd54   :  { %9594 = vpow2.f32 %v4841_v37  ;;  %v4823_v45 = vsub.f32 %v13046_v14, %v4798_v58  ;;  %v4824_v26 = vsub.f32 %v13044_v11, %v4800_v61 }
 0xd55   :  { %v13158_v43 = vpop.eup %9586  ;;  %9596 = vpow2.f32 %v4843_v27 }
 0xd56   :  { %v13160_v1 = vpop.eup %9588  ;;  %v4845_v32 = vmul.f32 1.442695, %v4823_v45  ;;  %v4847_v35 = vmul.f32 1.442695, %v4824_v26  ;;  %4867 = vadd.xlane.f32.xlu1 %v13158_v43 }
 0xd57   :  { %v4802_v16 = vpop.xlane.xlu0 %4801  ;;  %4865 = vadd.xlane.f32.xlu0 %v13160_v1  ;;  %v4804_v51 = vpop.xlane.xlu1 %4803 }
 0xd58   :  { %9598 = vpow2.f32 %v4845_v32  ;;  %v4826_v42 = vsub.f32 %v13056_v6, %v4804_v51  ;;  %v4825_v38 = vsub.f32 %v13058_v57, %v4802_v16 }
 0xd59   :  { %9600 = vpow2.f32 %v4847_v35 }
 0xd5a   :  { %v13166_v18 = vpop.eup %9590  ;;  %v4851_v11 = vmul.f32 1.442695, %v4826_v42  ;;  %v4849_v47 = vmul.f32 1.442695, %v4825_v38 }
 0xd5b   :  { %v13168_v14 = vpop.eup %9592  ;;  %v4808_v30 = vpop.xlane.xlu0 %4807  ;;  %4869 = vadd.xlane.f32.xlu0 %v13166_v18 }
 0xd5c   :  { %v4828_v49 = vsub.f32 %v13065_v34, %v4808_v30  ;;  %4871 = vadd.xlane.f32.xlu1 %v13168_v14  ;;  %9602 = vpow2.f32 %v4851_v11 }
 0xd5e   :  { %v13173_v19 = vpop.eup %9594  ;;  %v4855_v6 = vmul.f32 1.442695, %v4828_v49 }
 0xd5f   :  { %v13175_v44 = vpop.eup %9596  ;;  %v4806_v57 = vpop.xlane.xlu0 %4805  ;;  %4873 = vadd.xlane.f32.xlu0 %v13173_v19 }
 0xd60   :  { %9604 = vpow2.f32 %v4855_v6  ;;  %v4827_v37 = vsub.f32 %v13071_v3, %v4806_v57  ;;  %4875 = vadd.xlane.f32.xlu1 %v13175_v44 }
 0xd61   :  { %9606 = vpow2.f32 %v4849_v47 }
 0xd62   :  { %v13180_v27 = vpop.eup %9598  ;;  %v4853_v34 = vmul.f32 1.442695, %v4827_v37 }
 0xd63   :  { %v13182_v58 = vpop.eup %9600  ;;  %v4812_v61 = vpop.xlane.xlu0 %4811  ;;  %4877 = vadd.xlane.f32.xlu0 %v13180_v27 }
 0xd64   :  { %9608 = vpow2.f32 %v4853_v34  ;;  %v4830_v45 = vsub.f32 %v13077_v13, %v4812_v61  ;;  %4879 = vadd.xlane.f32.xlu1 %v13182_v58  ;;  %v14795_v61 = vpack.i.bf16 %v12716_v23, %v12708_v50 }
 0xd66   :  { %v4859_v26 = vmul.f32 1.442695, %v4830_v45  ;;  %v13187_v32 = vpop.eup %9602 }
 0xd67   :  { %v4810_v3 = vpop.xlane.xlu0 %4809 }
 0xd68   :  { %9610 = vpow2.f32 %v4859_v26  ;;  %v4829_v35 = vsub.f32 %v13083_v9, %v4810_v3  ;;  %4883 = vadd.xlane.f32.xlu1 %v13187_v32 }
 0xd6a   :  { %v13191_v16 = vpop.eup %9604  ;;  %v4857_v51 = vmul.f32 1.442695, %v4829_v35 }
 0xd6b   :  { %v13193_v42 = vpop.eup %9606  ;;  %v4816_v38 = vpop.xlane.xlu0 %4815  ;;  %4887 = vadd.xlane.f32.xlu0 %v13191_v16 }
 0xd6c   :  { %9612 = vpow2.f32 %v4857_v51  ;;  %v4832_v13 = vsub.f32 %v13089_v20, %v4816_v38  ;;  %4881 = vadd.xlane.f32.xlu1 %v13193_v42 }
 0xd6e   :  { %v13198_v11 = vpop.eup %9608  ;;  %v4863_v30 = vmul.f32 1.442695, %v4832_v13 }
 0xd6f   :  { %v4814_v49 = vpop.xlane.xlu0 %4813  ;;  %4885 = vadd.xlane.f32.xlu0 %v13198_v11 }
 0xd70   :  { %9614 = vpow2.f32 %v4863_v30  ;;  %v4831_v9 = vsub.f32 %v13095_v24, %v4814_v49 }
 0xd72   :  { %v13202_v47 = vpop.eup %9610  ;;  %v4861_v6 = vmul.f32 1.442695, %v4831_v9 }
 0xd73   :  { %4891 = vadd.xlane.f32.xlu1 %v13202_v47 }
 0xd74   :  { %9616 = vpow2.f32 %v4861_v6 }
 0xd76   :  { %v13205_v57 = vpop.eup %9612 }
 0xd77   :  { %4889 = vadd.xlane.f32.xlu1 %v13205_v57 }
 0xd7a   :  { %v13208_v20 = vpop.eup %9614 }
 0xd7b   :  { %4895 = vadd.xlane.f32.xlu0 %v13208_v20 }
 0xd7e   :  { %v13211_v37 = vpop.eup %9616 }
 0xd7f   :  { %4893 = vadd.xlane.f32.xlu0 %v13211_v37 }
 0xd86   :  { %v5350_v34 = vpop.xlane.xlu1 %5349 }
 0xd87   :  { %v5380_v24 = vsub.f32 %v13099_v53, %v5350_v34 }
 0xd88   :  { %9421 = vrot.lane.b32.xlu1 %v14795_v61, %s9924_s30 }
 0xd89   :  { %v5397_v45 = vmul.f32 1.442695, %v5380_v24 }
 0xd8a   :  { %v5348_v26 = vpop.xlane.xlu1 %5347 }
 0xd8b   :  { %9618 = vpow2.f32 %v5397_v45  ;;  %v5379_v38 = vsub.f32 %v13102_v4, %v5348_v26 }
 0xd8d   :  { %v5395_v30 = vmul.f32 1.442695, %v5379_v38 }
 0xd8e   :  { %v5354_v3 = vpop.xlane.xlu1 %5353 }
 0xd8f   :  { %v5382_v53 = vsub.f32 %v13106_v59, %v5354_v3  ;;  %9620 = vpow2.f32 %v5395_v30  ;;  %v14796_v59 = vpack.i.bf16 %v12699_v62, %v12693_v40 }
 0xd91   :  { %v5401_v9 = vmul.f32 1.442695, %v5382_v53 }
 0xd92   :  { %v5352_v35 = vpop.xlane.xlu1 %5351 }
 0xd93   :  { %v5381_v23 = vsub.f32 %v13109_v48, %v5352_v35  ;;  %v5360_v50 = vpop.xlane.xlu0 %5359  ;;  %9622 = vpow2.f32 %v5401_v9 }
 0xd94   :  { %v5385_v48 = vsub.f32 %v13119_v17, %v5360_v50 }
 0xd95   :  { %v13219_v51 = vpop.eup %9618  ;;  %v5399_v6 = vmul.f32 1.442695, %v5381_v23 }
 0xd96   :  { %5429 = vadd.xlane.f32.xlu0 %v13219_v51  ;;  %v5358_v13 = vpop.xlane.xlu1 %5357 }
 0xd97   :  { %9624 = vpow2.f32 %v5399_v6  ;;  %v5364_v4 = vpop.xlane.xlu0 %5363  ;;  %v5384_v9 = vsub.f32 %v13112_v5, %v5358_v13 }
 0xd99   :  { %v13227_v26 = vpop.eup %9620 }
 0xd9a   :  { %v5356_v49 = vpop.xlane.xlu1 %5355 }
 0xd9b   :  { %v5383_v34 = vsub.f32 %v13114_v63, %v5356_v49  ;;  %v5368_v38 = vpop.xlane.xlu0 %5367 }
 0xd9c   :  { %v5389_v62 = vsub.f32 %v13131_v8, %v5368_v38 }
 0xd9d   :  { %v5403_v61 = vmul.f32 1.442695, %v5383_v34  ;;  %v13235_v35 = vpop.eup %9622  ;;  %v5405_v34 = vmul.f32 1.442695, %v5384_v9 }
 0xd9e   :  { %v5362_v24 = vpop.xlane.xlu1 %5361  ;;  %v5415_v23 = vmul.f32 1.442695, %v5389_v62 }
 0xd9f   :  { %v5386_v45 = vsub.f32 %v13117_v56, %v5362_v24  ;;  %9626 = vpow2.f32 %v5403_v61  ;;  %v5407_v56 = vmul.f32 1.442695, %v5385_v48  ;;  %v5372_v17 = vpop.xlane.xlu0 %5371  ;;  %v5387_v24 = vsub.f32 %v13125_v60, %v5364_v4 }
 0xda0   :  { %v5391_v50 = vsub.f32 %v13137_v25, %v5372_v17 }
 0xda1   :  { %v5409_v3 = vmul.f32 1.442695, %v5386_v45  ;;  %v13239_v53 = vpop.eup %9624  ;;  %v5411_v5 = vmul.f32 1.442695, %v5387_v24 }
 0xda2   :  { %v5366_v63 = vpop.xlane.xlu1 %5365  ;;  %v5419_v8 = vmul.f32 1.442695, %v5391_v50 }
 0xda3   :  { %9628 = vpow2.f32 %v5409_v3  ;;  %v5388_v30 = vsub.f32 %v13123_v22, %v5366_v63  ;;  %v5376_v4 = vpop.xlane.xlu0 %5375 }
 0xda4   :  { %9630 = vpow2.f32 %v5407_v56  ;;  %v5393_v3 = vsub.f32 %v13143_v31, %v5376_v4 }
 0xda5   :  { %v5413_v40 = vmul.f32 1.442695, %v5388_v30 }
 0xda6   :  { %v5370_v6 = vpop.xlane.xlu1 %5369  ;;  %v5423_v30 = vmul.f32 1.442695, %v5393_v3 }
 0xda7   :  { %9632 = vpow2.f32 %v5413_v40  ;;  %v5390_v13 = vsub.f32 %v13129_v29, %v5370_v6 }
 0xda8   :  { %9634 = vpow2.f32 %v5415_v23 }
 0xda9   :  { %v13243_v49 = vpop.eup %9626  ;;  %9636 = vpow2.f32 %v5405_v34 }
 0xdaa   :  { %9638 = vpow2.f32 %v5419_v8  ;;  %v5374_v25 = vpop.xlane.xlu1 %5373 }
 0xdab   :  { %9640 = vpow2.f32 %v5411_v5  ;;  %v5392_v60 = vsub.f32 %v13135_v0, %v5374_v25 }
 0xdac   :  { %9416 = vrot.lane.b32.xlu0 %v14796_v59, %s9924_s30  ;;  %5427 = vadd.xlane.f32.xlu1 %v13227_v26  ;;  %v5417_v59 = vmul.f32 1.442695, %v5390_v13 }
 0xdad   :  { %v13248_v22 = vpop.eup %9628  ;;  %v5421_v63 = vmul.f32 1.442695, %v5392_v60 }
 0xdae   :  { %v13252_v61 = vpop.eup %9630  ;;  %9642 = vpow2.f32 %v5417_v59  ;;  %v5378_v29 = vpop.xlane.xlu1 %5377 }
 0xdaf   :  { %9644 = vpow2.f32 %v5421_v63  ;;  %v5394_v0 = vsub.f32 %v13141_v10, %v5378_v29 }
 0xdb0   :  { %5433 = vadd.xlane.f32.xlu1 %v13235_v35  ;;  %9646 = vpow2.f32 %v5423_v30 }
 0xdb1   :  { %v13256_v45 = vpop.eup %9632  ;;  %v5425_v31 = vmul.f32 1.442695, %v5394_v0 }
 0xdb2   :  { %v13260_v48 = vpop.eup %9634 }
 0xdb3   :  { %v13264_v38 = vpop.eup %9636  ;;  %9648 = vpow2.f32 %v5425_v31 }
 0xdb4   :  { %5431 = vadd.xlane.f32.xlu1 %v13239_v53  ;;  %v13266_v56 = vpop.eup %9638 }
 0xdb5   :  { %v13271_v62 = vpop.eup %9640 }
 0xdb8   :  { %5435 = vadd.xlane.f32.xlu1 %v13243_v49  ;;  %v13274_v40 = vpop.eup %9642 }
 0xdb9   :  { %v13277_v17 = vpop.eup %9644 }
 0xdba   :  { %v13280_v9 = vpop.eup %9646 }
 0xdbc   :  { %5441 = vadd.xlane.f32.xlu1 %v13248_v22 }
 0xdbd   :  { %v13283_v10 = vpop.eup %9648 }
 0xdc0   :  { %5439 = vadd.xlane.f32.xlu1 %v13252_v61 }
 0xdc4   :  { %5445 = vadd.xlane.f32.xlu1 %v13256_v45 }
 0xdc8   :  { %5447 = vadd.xlane.f32.xlu1 %v13260_v48 }
 0xdcb   :  { %5437 = vadd.xlane.f32.xlu0 %v13264_v38 }
 0xdcc   :  { %5451 = vadd.xlane.f32.xlu1 %v13266_v56 }
 0xdcf   :  { %5443 = vadd.xlane.f32.xlu0 %v13271_v62 }
 0xdd3   :  { %5449 = vadd.xlane.f32.xlu0 %v13274_v40 }
 0xdd7   :  { %5453 = vadd.xlane.f32.xlu0 %v13277_v17 }
 0xddb   :  { %5455 = vadd.xlane.f32.xlu0 %v13280_v9 }
 0xddf   :  { %5457 = vadd.xlane.f32.xlu0 %v13283_v10 }
 0xde3   :  { %v4868_v23 = vpop.xlane.xlu1 %4867 }
 0xde4   :  { %9650 = vrcp.f32 %v4868_v23  ;;  %v4866_v50 = vpop.xlane.xlu0 %4865 }
 0xde5   :  { %9652 = vrcp.f32 %v4866_v50 }
 0xde8   :  { %v4870_v6 = vpop.xlane.xlu0 %4869 }
 0xde9   :  { %9654 = vrcp.f32 %v4870_v6  ;;  %v4872_v34 = vpop.xlane.xlu1 %4871 }
 0xdea   :  { %9656 = vrcp.f32 %v4872_v34 }
 0xdec   :  { %v4874_v24 = vpop.xlane.xlu0 %4873 }
 0xded   :  { %9658 = vrcp.f32 %v4874_v24  ;;  %v4876_v8 = vpop.xlane.xlu1 %4875 }
 0xdee   :  { %v9651_v5 = vpop.eup %9650  ;;  %9660 = vrcp.f32 %v4876_v8 }
 0xdef   :  { %v9653_v13 = vpop.eup %9652  ;;  %v4914_v4 = vmul.f32 %v9651_v5, %v13158_v43 }
 0xdf0   :  { %v4878_v25 = vpop.xlane.xlu0 %4877  ;;  %v4913_v59 = vmul.f32 %v9653_v13, %v13160_v1 }
 0xdf1   :  { %9662 = vrcp.f32 %v4878_v25  ;;  %v4880_v60 = vpop.xlane.xlu1 %4879 }
 0xdf2   :  { %9664 = vrcp.f32 %v4880_v60  ;;  %8351 = vmatprep.mubr.f32.mxu1 %v4913_v59 }
 0xdf3   :  { %v9655_v3 = vpop.eup %9654  ;;  %8352 = vmatmul.mubr.f32.vlgmr.msra.gmra.mrb[96].mxu1 %v4914_v4 }
 0xdf4   :  { %v9657_v63 = vpop.eup %9656  ;;  %9075 = vmatpush3.bf16.msra.mxu1 %v12931_v55  ;;  %v4915_v29 = vmul.f32 %v9655_v3, %v13166_v18 }
 0xdf5   :  { %9068 = vmatprep.subr.bf16.mxu1 %v12945_v21  ;;  %v4884_v30 = vpop.xlane.xlu1 %4883  ;;  %v4916_v0 = vmul.f32 %v9657_v63, %v13168_v14 }
 0xdf6   :  { %8354 = vmatprep.mubr.f32.mxu1 %v4915_v29  ;;  %9666 = vrcp.f32 %v4884_v30 }
 0xdf7   :  { %v9659_v1 = vpop.eup %9658  ;;  %8355 = vmatmul.mubr.f32.gmra.mrb[98].mxu1 %v4916_v0 }
 0xdf8   :  { %v9661_v31 = vpop.eup %9660  ;;  %9076 = vmatpush3.bf16.msra.mxu1 %v12945_v21  ;;  %v4888_v43 = vpop.xlane.xlu0 %4887  ;;  %v4917_v23 = vmul.f32 %v9659_v1, %v13173_v19 }
 0xdf9   :  { %9069 = vmatprep.subr.bf16.mxu1 %v12953_v36  ;;  %v4882_v55 = vpop.xlane.xlu1 %4881  ;;  %v4918_v18 = vmul.f32 %v9661_v31, %v13175_v44 }
 0xdfa   :  { %9668 = vrcp.f32 %v4882_v55  ;;  %8357 = vmatprep.mubr.f32.mxu1 %v4917_v23 }
 0xdfb   :  { %v9663_v50 = vpop.eup %9662  ;;  %8358 = vmatmul.mubr.f32.gmra.mrb[100].mxu1 %v4918_v18  ;;  %9670 = vrcp.f32 %v4888_v43 }
 0xdfc   :  { %v9665_v14 = vpop.eup %9664  ;;  %9077 = vmatpush3.bf16.msra.mxu1 %v12953_v36  ;;  %v4886_v6 = vpop.xlane.xlu0 %4885  ;;  %v4919_v21 = vmul.f32 %v9663_v50, %v13180_v27 }
 0xdfd   :  { %9672 = vrcp.f32 %v4886_v6  ;;  %9070 = vmatprep.subr.bf16.mxu1 %v12960_v12  ;;  %v4920_v19 = vmul.f32 %v9665_v14, %v13182_v58 }
 0xdfe   :  { %8360 = vmatprep.mubr.f32.mxu1 %v4919_v21 }
 0xdff   :  { %8361 = vmatmul.mubr.f32.gmra.mrb[102].mxu1 %v4920_v19 }
 0xe00   :  { %9078 = vmatpush3.bf16.msra.mxu1 %v12960_v12  ;;  %v4892_v44 = vpop.xlane.xlu1 %4891  ;;  %v9667_v34 = vpop.eup %9666 }
 0xe01   :  { %9071 = vmatprep.subr.bf16.mxu1 %v12967_v41  ;;  %9674 = vrcp.f32 %v4892_v44  ;;  %v4922_v58 = vmul.f32 %v9667_v34, %v13187_v32 }
 0xe04   :  { %v9669_v24 = vpop.eup %9668  ;;  %9079 = vmatpush3.bf16.msra.mxu1 %v12967_v41  ;;  %v4890_v36 = vpop.xlane.xlu1 %4889 }
 0xe05   :  { %9072 = vmatprep.subr.bf16.mxu1 %v12974_v39  ;;  %9676 = vrcp.f32 %v4890_v36  ;;  %v4921_v27 = vmul.f32 %v9669_v24, %v13193_v42  ;;  %v9671_v8 = vpop.eup %9670 }
 0xe06   :  { %v4924_v41 = vmul.f32 %v9671_v8, %v13191_v16 }
 0xe07   :  { %v9673_v5 = vpop.eup %9672  ;;  %8363 = vmatprep.mubr.f32.mxu1 %v4921_v27 }
 0xe08   :  { %8364 = vmatmul.mubr.f32.gmra.mrb[104].mxu1 %v4922_v58  ;;  %v4896_v12 = vpop.xlane.xlu0 %4895  ;;  %v4923_v13 = vmul.f32 %v9673_v5, %v13198_v11  ;;  %v9422_v63 = vpop.permute.xlu1 %9421 }
 0xe09   :  { %9080 = vmatpush3.bf16.msra.mxu1 %v12974_v39  ;;  %9678 = vrcp.f32 %v4896_v12  ;;  %v9424_v30 = vunpack.i.h.bf16 %v9422_v63  ;;  %v9423_v0 = vunpack.i.l.bf16 %v9422_v63 }
 0xe0a   :  { %8366 = vmatprep.mubr.f32.mxu1 %v4923_v13 }
 0xe0b   :  { %v9675_v59 = vpop.eup %9674  ;;  %v9023_v43 = vpack.c.bf16 %v9424_v30, %v9423_v0 }
 0xe0c   :  { %8367 = vmatmul.mubr.f32.gmra.mrb[106].mxu1 %v4924_v41  ;;  %v4894_v25 = vpop.xlane.xlu0 %4893  ;;  %v4926_v32 = vmul.f32 %v9675_v59, %v13202_v47 }
 0xe0d   :  { %9680 = vrcp.f32 %v4894_v25 }
 0xe0f   :  { %v9677_v42 = vpop.eup %9676 }
 0xe10   :  { %v4925_v60 = vmul.f32 %v9677_v42, %v13205_v57 }
 0xe12   :  { %8369 = vmatprep.mubr.f32.mxu1 %v4925_v60 }
 0xe13   :  { %8370 = vmatmul.mubr.f32.gmra.mrb[108].mxu1 %v4926_v32  ;;  %v9679_v4 = vpop.eup %9678 }
 0xe14   :  { %v4928_v39 = vmul.f32 %v9679_v4, %v13208_v20 }
 0xe17   :  { %v9681_v3 = vpop.eup %9680 }
 0xe18   :  { %v4927_v11 = vmul.f32 %v9681_v3, %v13211_v37 }
 0xe1a   :  { %8372 = vmatprep.mubr.f32.mxu1 %v4927_v11 }
 0xe1b   :  { %8373 = vmatmul.mubr.f32.gmra.mrb[110].mxu1 %v4928_v39 }
 0xe23   :  { %v5430_v16 = vpop.xlane.xlu0 %5429 }
 0xe24   :  { %9682 = vrcp.f32 %v5430_v16 }
 0xe27   :  { %v9417_v29 = vpop.permute.xlu0 %9416 }
 0xe28   :  { %v9419_v1 = vunpack.i.h.bf16 %v9417_v29  ;;  %v9418_v31 = vunpack.i.l.bf16 %v9417_v29 }
 0xe2a   :  { %v9019_v57 = vpack.c.bf16 %v9419_v1, %v9418_v31 }
 0xe2c   :  { %9020 = vmatprep.subr.bf16.mxu0 %v9019_v57  ;;  %9073 = vmatprep.subr.bf16.mxu1 %v9019_v57 }
 0xe2d   :  { %9022 = vmatpush3.bf16.msra.mxu0 %v9019_v57  ;;  %9081 = vmatpush3.bf16.msra.mxu1 %v9019_v57 }
 0xe2e   :  { %9024 = vmatprep.subr.bf16.mxu0 %v9023_v43  ;;  %9074 = vmatprep.subr.bf16.mxu1 %v9023_v43  ;;  %v9683_v23 = vpop.eup %9682 }
 0xe2f   :  { %v5476_v14 = vmul.f32 %v9683_v23, %v13219_v51 }
 0xe31   :  { %9026 = vmatpush3.bf16.msra.mxu0 %v9023_v43  ;;  %9082 = vmatpush3.bf16.msra.mxu1 %v9023_v43 }
 0xe39   :  { %v5428_v47 = vpop.xlane.xlu1 %5427 }
 0xe3a   :  { %9684 = vrcp.f32 %v5428_v47 }
 0xe3d   :  { %v5434_v20 = vpop.xlane.xlu1 %5433 }
 0xe3e   :  { %9686 = vrcp.f32 %v5434_v20 }
 0xe41   :  { %v5432_v37 = vpop.xlane.xlu1 %5431 }
 0xe42   :  { %9688 = vrcp.f32 %v5432_v37 }
 0xe44   :  { %v9685_v55 = vpop.eup %9684 }
 0xe45   :  { %v5436_v18 = vpop.xlane.xlu1 %5435  ;;  %v5475_v50 = vmul.f32 %v9685_v55, %v13227_v26 }
 0xe46   :  { %9690 = vrcp.f32 %v5436_v18 }
 0xe47   :  { %8463 = vmatprep.mubr.f32.mxu0 %v5475_v50 }
 0xe48   :  { %8464 = vmatmul.mubr.f32.vlgmr.msra.gmra.mrb[144].mxu0 %v5476_v14  ;;  %v9687_v21 = vpop.eup %9686  ;;  %v4297_v14 = vld [vmem:[%s14502_s16] sm:$0xff] }
 0xe49   :  { %v5442_v6 = vpop.xlane.xlu1 %5441  ;;  %v5478_v24 = vmul.f32 %v9687_v21, %v13235_v35  ;;  %v4299_v21 = vld [vmem:[%s14502_s16 + $0x10] sm:$0xff] }
 0xe4a   :  { %9692 = vrcp.f32 %v5442_v6  ;;  %v4298_v6 = vld [vmem:[%s14502_s16 + $0x8] sm:$0xff] }
 0xe4c   :  { %v9689_v19 = vpop.eup %9688 }
 0xe4d   :  { %v5440_v44 = vpop.xlane.xlu1 %5439  ;;  %v5477_v34 = vmul.f32 %v9689_v19, %v13239_v53  ;;  %v9027_v19 = vpack.c.bf16 %v4298_v6, %v4297_v14 }
 0xe4e   :  { %9694 = vrcp.f32 %v5440_v44  ;;  %v4300_v44 = vld [vmem:[%s14502_s16 + $0x18] sm:$0xff] }
 0xe4f   :  { %8466 = vmatprep.mubr.f32.mxu0 %v5477_v34  ;;  %v9031_v34 = vpack.c.bf16 %v4300_v44, %v4299_v21  ;;  %9028 = vmatprep.subr.bf16.mxu1 %v9027_v19 }
 0xe50   :  { %v9691_v36 = vpop.eup %9690  ;;  %8467 = vmatmul.mubr.f32.gmra.mrb[146].mxu0 %v5478_v24  ;;  %v4301_v24 = vld [vmem:[%s14502_s16 + $0x20] sm:$0xff] }
 0xe51   :  { %v5446_v27 = vpop.xlane.xlu1 %5445  ;;  %v5479_v26 = vmul.f32 %v9691_v36, %v13243_v49  ;;  %v4302_v36 = vld [vmem:[%s14502_s16 + $0x28] sm:$0xff] }
 0xe53   :  { %8469 = vmatprep.mubr.f32.mxu0 %v5479_v26  ;;  %v4303_v26 = vld [vmem:[%s14502_s16 + $0x30] sm:$0xff] }
 0xe54   :  { %v9693_v51 = vpop.eup %9692 }
 0xe55   :  { %v5448_v8 = vpop.xlane.xlu1 %5447  ;;  %v5482_v13 = vmul.f32 %v9693_v51, %v13248_v22  ;;  %v4304_v51 = vld [vmem:[%s14502_s16 + $0x38] sm:$0xff] }
 0xe58   :  { %v9695_v58 = vpop.eup %9694  ;;  %v5438_v5 = vpop.xlane.xlu0 %5437 }
 0xe59   :  { %9696 = vrcp.f32 %v5438_v5  ;;  %v5481_v12 = vmul.f32 %v9695_v58, %v13252_v61  ;;  %v5452_v53 = vpop.xlane.xlu1 %5451 }
 0xe5a   :  { %9698 = vrcp.f32 %v5446_v27  ;;  %v9035_v27 = vpack.c.bf16 %v4302_v36, %v4301_v24 }
 0xe5b   :  { %8472 = vmatprep.mubr.f32.mxu1 %v5481_v12  ;;  %9700 = vrcp.f32 %v5448_v8  ;;  %v9039_v8 = vpack.c.bf16 %v4304_v51, %v4303_v26 }
 0xe5c   :  { %v5444_v35 = vpop.xlane.xlu0 %5443  ;;  %8473 = vmatmul.mubr.f32.vlgmr.msra.gmra.mrb[112].mxu1 %v5482_v13 }
 0xe5d   :  { %9702 = vrcp.f32 %v5444_v35  ;;  %9030 = vmatpush3.bf16.msra.mxu1 %v9027_v19 }
 0xe5e   :  { %9704 = vrcp.f32 %v5452_v53  ;;  %9032 = vmatprep.subr.bf16.mxu1 %v9031_v34 }
 0xe60   :  { %v5450_v41 = vpop.xlane.xlu0 %5449 }
 0xe61   :  { %9706 = vrcp.f32 %v5450_v41  ;;  %9034 = vmatpush3.bf16.msra.mxu1 %v9031_v34 }
 0xe62   :  { %9036 = vmatprep.subr.bf16.mxu1 %v9035_v27 }
 0xe63   :  { %v9697_v49 = vpop.eup %9696 }
 0xe64   :  { %v5454_v25 = vpop.xlane.xlu0 %5453  ;;  %v5480_v59 = vmul.f32 %v9697_v49, %v13264_v38  ;;  %v9699_v42 = vpop.eup %9698 }
 0xe65   :  { %9708 = vrcp.f32 %v5454_v25  ;;  %v9701_v60 = vpop.eup %9700  ;;  %v5484_v4 = vmul.f32 %v9699_v42, %v13256_v45  ;;  %9038 = vmatpush3.bf16.msra.mxu1 %v9035_v27 }
 0xe66   :  { %8470 = vmatmul.mubr.f32.gmra.mrb[148].mxu0 %v5480_v59  ;;  %v5485_v11 = vmul.f32 %v9701_v60, %v13260_v48  ;;  %9040 = vmatprep.subr.bf16.mxu1 %v9039_v8 }
 0xe67   :  { %v9703_v61 = vpop.eup %9702 }
 0xe68   :  { %v5456_v22 = vpop.xlane.xlu0 %5455  ;;  %v5483_v32 = vmul.f32 %v9703_v61, %v13271_v62  ;;  %v9705_v3 = vpop.eup %9704 }
 0xe69   :  { %9710 = vrcp.f32 %v5456_v22  ;;  %v5487_v63 = vmul.f32 %v9705_v3, %v13266_v56  ;;  %9042 = vmatpush3.bf16.msra.mxu1 %v9039_v8  ;;  %v14797_v3 = vld [vmem:[#allocation15_spill] sm:$0xff] }
 0xe6a   :  { %8475 = vmatprep.mubr.f32.mxu1 %v5483_v32 }
 0xe6b   :  { %v9707_v39 = vpop.eup %9706  ;;  %8476 = vmatmul.mubr.f32.gmra.mrb[114].mxu1 %v5484_v4 }
 0xe6c   :  { %v5458_v16 = vpop.xlane.xlu0 %5457  ;;  %8478 = vmatprep.mubr.f32.mxu1 %v5485_v11  ;;  %v5486_v38 = vmul.f32 %v9707_v39, %v13274_v40  ;;  %v14798_v11 = vld [vmem:[#allocation47_spill] sm:$0xff] }
 0xe6d   :  { %9712 = vrcp.f32 %v5458_v16  ;;  %v14799_v39 = vld [vmem:[#allocation23_spill] sm:$0xff]  ;;  %v14800_v16 = vld [vmem:[#allocation33_spill] sm:$0xff] }
 0xe6f   :  { %v9709_v29 = vpop.eup %9708  ;;  %8479 = vmatmul.mubr.f32.gmra.mrb[116].mxu1 %v5486_v38  ;;  %v14801_v38 = vld [vmem:[#allocation17_spill] sm:$0xff] }
 0xe70   :  { %8481 = vmatprep.mubr.f32.mxu1 %v5487_v63  ;;  %v5488_v62 = vmul.f32 %v9709_v29, %v13277_v17  ;;  %v14802_v63 = vld [vmem:[#allocation25_spill] sm:$0xff] }
 0xe71   :  { %v14803_v29 = vld [vmem:[#allocation21_spill] sm:$0xff] }
 0xe73   :  { %v9711_v30 = vpop.eup %9710  ;;  %8482 = vmatmul.mubr.f32.gmra.mrb[118].mxu1 %v5488_v62  ;;  %v14804_v62 = vld [vmem:[#allocation48_spill] sm:$0xff] }
 0xe74   :  { %v5489_v45 = vmul.f32 %v9711_v30, %v13280_v9 }
 0xe76   :  { %8484 = vmatprep.mubr.f32.mxu1 %v5489_v45 }
 0xe77   :  { %v9713_v48 = vpop.eup %9712 }
 0xe78   :  { %v5490_v0 = vmul.f32 %v9713_v48, %v13283_v10 }
 0xe7a   :  { %8485 = vmatmul.mubr.f32.gmra.mrb[120].mxu1 %v5490_v0 }
 0xec6   :  { %v13329_v1 = vpop.f32.mrb[96].mxu1 }
 0xec7   :  { %v13331_v40 = vpop.f32.mrb[97].mxu1 }
 0xeca   :  { %v13333_v31 = vpop.f32.mrb[98].mxu1 }
 0xecb   :  { %v13335_v56 = vpop.f32.mrb[99].mxu1 }
 0xece   :  { %v13337_v57 = vpop.f32.mrb[100].mxu1 }
 0xecf   :  { %v13339_v17 = vpop.f32.mrb[101].mxu1 }
 0xed2   :  { %v13341_v43 = vpop.f32.mrb[102].mxu1 }
 0xed3   :  { %v13343_v9 = vpop.f32.mrb[103].mxu1 }
 0xedb   :  { %v13345_v47 = vpop.f32.mrb[104].mxu1 }
 0xedc   :  { %v13347_v10 = vpop.f32.mrb[105].mxu1 }
 0xedf   :  { %v13349_v20 = vpop.f32.mrb[106].mxu1 }
 0xee0   :  { %v13351_v37 = vpop.f32.mrb[107].mxu1 }
 0xee6   :  { %v13353_v23 = vpop.f32.mrb[108].mxu1 }
 0xee7   :  { %v13355_v55 = vpop.f32.mrb[109].mxu1 }
 0xeee   :  { %v13357_v18 = vpop.f32.mrb[110].mxu1 }
 0xeef   :  { %v13359_v50 = vpop.f32.mrb[111].mxu1 }
 0xf1b   :  { %v8465_v58 = vpop.f32.mrb[144].mxu0 }
 0xf1c   :  { %5718 = vrot.lane.b32.xlu1 %v8465_v58, %s9925_s9  ;;  %v5621_v5 = vpop.f32.mrb[145].mxu0 }
 0xf1d   :  { %5716 = vrot.lane.b32.xlu0 %v5621_v5, %s9925_s9 }
 0xf23   :  { %v8468_v12 = vpop.f32.mrb[146].mxu0 }
 0xf24   :  { %v5631_v13 = vpop.f32.mrb[147].mxu0 }
 0xf25   :  { %5720 = vrot.lane.b32.xlu0 %v5631_v13, %s9925_s9 }
 0xf29   :  { %5722 = vrot.lane.b32.xlu0 %v8468_v12, %s9925_s9 }
 0xf2f   :  { %v8474_v35 = vpop.f32.mrb[112].mxu1 }
 0xf30   :  { %v5651_v53 = vpop.f32.mrb[113].mxu1 }
 0xf39   :  { %v8471_v41 = vpop.f32.mrb[148].mxu0 }
 0xf3a   :  { %5726 = vrot.lane.b32.xlu0 %v8471_v41, %s9925_s9  ;;  %v5641_v49 = vpop.f32.mrb[149].mxu0 }
 0xf3b   :  { %5724 = vrot.lane.b32.xlu1 %v5641_v49, %s9925_s9 }
 0xf3e   :  { %v8477_v25 = vpop.f32.mrb[114].mxu1  ;;  %5730 = vrot.lane.b32.xlu0 %v8474_v35, %s9925_s9 }
 0xf3f   :  { %v5661_v59 = vpop.f32.mrb[115].mxu1  ;;  %5728 = vrot.lane.b32.xlu1 %v5651_v53, %s9925_s9 }
 0xf42   :  { %v8480_v42 = vpop.f32.mrb[116].mxu1  ;;  %5734 = vrot.lane.b32.xlu0 %v8477_v25, %s9925_s9 }
 0xf43   :  { %v5671_v60 = vpop.f32.mrb[117].mxu1  ;;  %5732 = vrot.lane.b32.xlu1 %v5661_v59, %s9925_s9 }
 0xf46   :  { %v8483_v61 = vpop.f32.mrb[118].mxu1  ;;  %5738 = vrot.lane.b32.xlu0 %v8480_v42, %s9925_s9 }
 0xf47   :  { %v5681_v22 = vpop.f32.mrb[119].mxu1  ;;  %5736 = vrot.lane.b32.xlu1 %v5671_v60, %s9925_s9 }
 0xf4a   :  { %5742 = vrot.lane.b32.xlu0 %v8483_v61, %s9925_s9 }
 0xf4b   :  { %5740 = vrot.lane.b32.xlu1 %v5681_v22, %s9925_s9 }
 0xf4d   :  { %v8486_v32 = vpop.f32.mrb[120].mxu1 }
 0xf4e   :  { %v5691_v4 = vpop.f32.mrb[121].mxu1  ;;  %5746 = vrot.lane.b32.xlu0 %v8486_v32, %s9925_s9 }
 0xf4f   :  { %5744 = vrot.lane.b32.xlu1 %v5691_v4, %s9925_s9 }
 0xf52   :  { %5782 = vrot.lane.b32.xlu0 %v12446_v28, %s9924_s30 }
 0xf53   :  { %5780 = vrot.lane.b32.xlu1 %v12437_v52, %s9924_s30 }
 0xf56   :  { %5786 = vrot.lane.b32.xlu0 %v12470_v7, %s9924_s30 }
 0xf57   :  { %5784 = vrot.lane.b32.xlu1 %v12455_v46, %s9924_s30 }
 0xf5a   :  { %5790 = vrot.lane.b32.xlu0 %v12488_v54, %s9924_s30 }
 0xf5b   :  { %5788 = vrot.lane.b32.xlu1 %v12479_v2, %s9924_s30 }
 0xf5e   :  { %5794 = vrot.lane.b32.xlu0 %v12506_v33, %s9924_s30 }
 0xf5f   :  { %5792 = vrot.lane.b32.xlu1 %v12497_v15, %s9924_s30 }
 0xf62   :  { %5798 = vrot.lane.b32.xlu0 %v14797_v3, %s9924_s30 }
 0xf63   :  { %5796 = vrot.lane.b32.xlu1 %v14798_v11, %s9924_s30 }
 0xf66   :  { %5802 = vrot.lane.b32.xlu0 %v14799_v39, %s9924_s30 }
 0xf67   :  { %5800 = vrot.lane.b32.xlu1 %v14800_v16, %s9924_s30 }
 0xf6a   :  { %5806 = vrot.lane.b32.xlu0 %v14801_v38, %s9924_s30 }
 0xf6b   :  { %5804 = vrot.lane.b32.xlu1 %v14802_v63, %s9924_s30 }
 0xf6e   :  { %5810 = vrot.lane.b32.xlu0 %v14803_v29, %s9924_s30 }
 0xf6f   :  { %5808 = vrot.lane.b32.xlu1 %v14804_v62, %s9924_s30 }
 0xf8e   :  { %v5719_v30 = vpop.permute.xlu1 %5718 }
 0xf8f   :  { %v5717_v45 = vpop.permute.xlu0 %5716  ;;  %v5765_v0 = vsel %vm1341_vm6, %v13329_v1, %v5719_v30 }
 0xf90   :  { %v5764_v48 = vsel %vm1341_vm6, %v13331_v40, %v5717_v45 }
 0xf91   :  { %8503 = vmatprep.mubr.msk.f32.mxu1 %vm1621_vm4, %v5764_v48 }
 0xf92   :  { %8504 = vmatmul.mubr.msk.f32.vlgmr.msra.gmra.mrb[122].mxu1 %vm1621_vm4, %v5765_v0 }
 0xf97   :  { %v5721_v14 = vpop.permute.xlu0 %5720 }
 0xf98   :  { %v5766_v6 = vsel %vm1341_vm6, %v13335_v56, %v5721_v14 }
 0xf99   :  { %8506 = vmatprep.mubr.msk.f32.mxu1 %vm1621_vm4, %v5766_v6 }
 0xf9b   :  { %v5723_v21 = vpop.permute.xlu0 %5722 }
 0xf9c   :  { %v5767_v19 = vsel %vm1341_vm6, %v13333_v31, %v5723_v21 }
 0xf9d   :  { %8507 = vmatmul.mubr.msk.f32.gmra.mrb[124].mxu1 %vm1621_vm4, %v5767_v19 }
 0xfac   :  { %v5727_v40 = vpop.permute.xlu0 %5726 }
 0xfad   :  { %v5725_v44 = vpop.permute.xlu1 %5724  ;;  %v5769_v34 = vsel %vm1341_vm6, %v13337_v57, %v5727_v40 }
 0xfae   :  { %v5768_v1 = vsel %vm1341_vm6, %v13339_v17, %v5725_v44 }
 0xfaf   :  { %8509 = vmatprep.mubr.msk.f32.mxu1 %vm1621_vm4, %v5768_v1 }
 0xfb0   :  { %v5731_v24 = vpop.permute.xlu0 %5730  ;;  %8510 = vmatmul.mubr.msk.f32.gmra.mrb[126].mxu1 %vm1621_vm4, %v5769_v34 }
 0xfb1   :  { %v5729_v56 = vpop.permute.xlu1 %5728  ;;  %v5771_v31 = vsel %vm1341_vm6, %v13341_v43, %v5731_v24 }
 0xfb2   :  { %v5770_v36 = vsel %vm1341_vm6, %v13343_v9, %v5729_v56 }
 0xfb3   :  { %8512 = vmatprep.mubr.msk.f32.mxu1 %vm1621_vm4, %v5770_v36 }
 0xfb4   :  { %v5735_v27 = vpop.permute.xlu0 %5734  ;;  %8513 = vmatmul.mubr.msk.f32.gmra.mrb[128].mxu1 %vm1621_vm4, %v5771_v31 }
 0xfb5   :  { %v5733_v17 = vpop.permute.xlu1 %5732  ;;  %v5773_v26 = vsel %vm1341_vm6, %v13345_v47, %v5735_v27 }
 0xfb6   :  { %v5772_v57 = vsel %vm1341_vm6, %v13347_v10, %v5733_v17 }
 0xfb7   :  { %8515 = vmatprep.mubr.msk.f32.mxu1 %vm1621_vm4, %v5772_v57 }
 0xfb8   :  { %v5739_v51 = vpop.permute.xlu0 %5738  ;;  %8516 = vmatmul.mubr.msk.f32.gmra.mrb[130].mxu1 %vm1621_vm4, %v5773_v26 }
 0xfb9   :  { %v5737_v9 = vpop.permute.xlu1 %5736  ;;  %v5775_v8 = vsel %vm1341_vm6, %v13349_v20, %v5739_v51 }
 0xfba   :  { %v5774_v43 = vsel %vm1341_vm6, %v13351_v37, %v5737_v9 }
 0xfbb   :  { %8518 = vmatprep.mubr.msk.f32.mxu1 %vm1621_vm4, %v5774_v43 }
 0xfbc   :  { %v5743_v58 = vpop.permute.xlu0 %5742  ;;  %8519 = vmatmul.mubr.msk.f32.gmra.mrb[132].mxu1 %vm1621_vm4, %v5775_v8 }
 0xfbd   :  { %v5741_v10 = vpop.permute.xlu1 %5740  ;;  %v5777_v5 = vsel %vm1341_vm6, %v13353_v23, %v5743_v58 }
 0xfbe   :  { %v5776_v47 = vsel %vm1341_vm6, %v13355_v55, %v5741_v10 }
 0xfbf   :  { %8521 = vmatprep.mubr.msk.f32.mxu1 %vm1621_vm4, %v5776_v47 }
 0xfc0   :  { %v5747_v12 = vpop.permute.xlu0 %5746  ;;  %8522 = vmatmul.mubr.msk.f32.gmra.mrb[134].mxu1 %vm1621_vm4, %v5777_v5 }
 0xfc1   :  { %v5745_v37 = vpop.permute.xlu1 %5744  ;;  %v5779_v13 = vsel %vm1341_vm6, %v13357_v18, %v5747_v12 }
 0xfc2   :  { %v5778_v20 = vsel %vm1341_vm6, %v13359_v50, %v5745_v37 }
 0xfc3   :  { %8524 = vmatprep.mubr.msk.f32.mxu1 %vm1621_vm4, %v5778_v20 }
 0xfc4   :  { %8525 = vmatmul.mubr.msk.f32.gmra.mrb[136].mxu1 %vm1621_vm4, %v5779_v13  ;;  %v5783_v55 = vpop.permute.xlu0 %5782 }
 0xfc5   :  { %v5781_v35 = vpop.permute.xlu1 %5780  ;;  %v5829_v23 = vadd.f32 %v5783_v55, %v12446_v28 }
 0xfc6   :  { %v5828_v53 = vadd.f32 %v5781_v35, %v12437_v52 }
 0xfc8   :  { %v5787_v42 = vpop.permute.xlu0 %5786 }
 0xfc9   :  { %v5785_v60 = vpop.permute.xlu1 %5784  ;;  %v5831_v28 = vadd.f32 %v5787_v42, %v12470_v7 }
 0xfca   :  { %v5830_v52 = vadd.f32 %v5785_v60, %v12455_v46 }
 0xfcc   :  { %v5791_v48 = vpop.permute.xlu0 %5790 }
 0xfcd   :  { %v5789_v0 = vpop.permute.xlu1 %5788  ;;  %v5833_v46 = vadd.f32 %v5791_v48, %v12488_v54 }
 0xfce   :  { %v5832_v19 = vadd.f32 %v5789_v0, %v12479_v2 }
 0xfd0   :  { %v5795_v14 = vpop.permute.xlu0 %5794 }
 0xfd1   :  { %v5793_v7 = vpop.permute.xlu1 %5792  ;;  %v5835_v24 = vadd.f32 %v5795_v14, %v12506_v33 }
 0xfd2   :  { %v5834_v36 = vadd.f32 %v5793_v7, %v12497_v15 }
 0xfd4   :  { %v5799_v6 = vpop.permute.xlu0 %5798 }
 0xfd5   :  { %v5797_v21 = vpop.permute.xlu1 %5796  ;;  %v5837_v33 = vadd.f32 %v5799_v6, %v14797_v3 }
 0xfd6   :  { %v5836_v15 = vadd.f32 %v5797_v21, %v14798_v11 }
 0xfd8   :  { %v5803_v31 = vpop.permute.xlu0 %5802 }
 0xfd9   :  { %v5801_v2 = vpop.permute.xlu1 %5800  ;;  %v5839_v5 = vadd.f32 %v5803_v31, %v14799_v39 }
 0xfda   :  { %v5838_v11 = vadd.f32 %v5801_v2, %v14800_v16 }
 0xfdc   :  { %v5807_v10 = vpop.permute.xlu0 %5806 }
 0xfdd   :  { %v5805_v3 = vpop.permute.xlu1 %5804 }
0x1065   :  { %v8505_v41 = vpop.f32.mrb[122].mxu1 }
0x1066   :  { %v13483_v49 = vadd.f32 %v8505_v41, %v5829_v23  ;;  %v5958_v25 = vpop.f32.mrb[123].mxu1  ;;  %v5841_v23 = vadd.f32 %v5807_v10, %v14801_v38  ;;  %v5811_v41 = vpop.permute.xlu0 %5810 }
0x1067   :  { %v13485_v59 = vadd.f32 %v5958_v25, %v5828_v53  ;;  %v5840_v53 = vadd.f32 %v5805_v3, %v14802_v63  ;;  %v5843_v38 = vadd.f32 %v5811_v41, %v14803_v29 }
0x1068   :  { %v6040_v50 = vsel %vm1341_vm6, %v13483_v49, 0.0 }
0x1069   :  { %6041 = vadd.xlane.f32.xlu0 %v6040_v50  ;;  %v6037_v18 = vsel %vm1341_vm6, %v13485_v59, 0.0  ;;  %v5809_v50 = vpop.permute.xlu1 %5808 }
0x106a   :  { %6038 = vadd.xlane.f32.xlu1 %v6037_v18  ;;  %v5842_v63 = vadd.f32 %v5809_v50, %v14804_v62 }
0x1070   :  { %v8508_v61 = vpop.f32.mrb[124].mxu1 }
0x1071   :  { %v13493_v22 = vadd.f32 %v8508_v61, %v5831_v28  ;;  %v5968_v32 = vpop.f32.mrb[125].mxu1 }
0x1072   :  { %v13495_v4 = vadd.f32 %v5968_v32, %v5830_v52 }
0x1073   :  { %v6046_v30 = vsel %vm1341_vm6, %v13493_v22, 0.0 }
0x1074   :  { %6047 = vadd.xlane.f32.xlu1 %v6046_v30  ;;  %v6043_v45 = vsel %vm1341_vm6, %v13495_v4, 0.0 }
0x1075   :  { %6044 = vadd.xlane.f32.xlu0 %v6043_v45 }
0x1083   :  { %v8511_v40 = vpop.f32.mrb[126].mxu1 }
0x1084   :  { %v13503_v44 = vadd.f32 %v8511_v40, %v5833_v46  ;;  %v5978_v1 = vpop.f32.mrb[127].mxu1 }
0x1085   :  { %v13505_v34 = vadd.f32 %v5978_v1, %v5832_v19 }
0x1086   :  { %v6052_v56 = vsel %vm1341_vm6, %v13503_v44, 0.0 }
0x1087   :  { %v8514_v27 = vpop.f32.mrb[128].mxu1  ;;  %6053 = vadd.xlane.f32.xlu1 %v6052_v56  ;;  %v6049_v54 = vsel %vm1341_vm6, %v13505_v34, 0.0 }
0x1088   :  { %v13513_v17 = vadd.f32 %v8514_v27, %v5835_v24  ;;  %v5988_v57 = vpop.f32.mrb[129].mxu1  ;;  %6050 = vadd.xlane.f32.xlu0 %v6049_v54 }
0x1089   :  { %v13515_v26 = vadd.f32 %v5988_v57, %v5834_v36 }
0x108a   :  { %v6058_v51 = vsel %vm1341_vm6, %v13513_v17, 0.0 }
0x108b   :  { %v8517_v9 = vpop.f32.mrb[130].mxu1  ;;  %6059 = vadd.xlane.f32.xlu1 %v6058_v51  ;;  %v6055_v43 = vsel %vm1341_vm6, %v13515_v26, 0.0 }
0x108c   :  { %v13523_v8 = vadd.f32 %v8517_v9, %v5837_v33  ;;  %v5998_v58 = vpop.f32.mrb[131].mxu1  ;;  %6056 = vadd.xlane.f32.xlu0 %v6055_v43 }
0x108d   :  { %v13525_v47 = vadd.f32 %v5998_v58, %v5836_v15 }
0x108e   :  { %v6064_v12 = vsel %vm1341_vm6, %v13523_v8, 0.0 }
0x108f   :  { %v8520_v37 = vpop.f32.mrb[132].mxu1  ;;  %6065 = vadd.xlane.f32.xlu1 %v6064_v12  ;;  %v6061_v20 = vsel %vm1341_vm6, %v13525_v47, 0.0 }
0x1090   :  { %v13533_v13 = vadd.f32 %v8520_v37, %v5839_v5  ;;  %v6008_v55 = vpop.f32.mrb[133].mxu1  ;;  %6062 = vadd.xlane.f32.xlu0 %v6061_v20  ;;  %v4306_v37 = vld [vmem:[#allocation7 + $0x8] sm:$0xff] }
0x1091   :  { %v13535_v35 = vadd.f32 %v6008_v55, %v5838_v11  ;;  %v4305_v11 = vld [vmem:[#allocation7] sm:$0xff] }
0x1092   :  { %v6070_v39 = vsel %vm1341_vm6, %v13533_v13, 0.0  ;;  %v9043_v55 = vpack.c.bf16 %v4306_v37, %v4305_v11  ;;  %v4313_v11 = vld [vmem:[%s14505_s19 + $0x18] sm:$0xff] }
0x1093   :  { %v8523_v16 = vpop.f32.mrb[134].mxu1  ;;  %6071 = vadd.xlane.f32.xlu1 %v6070_v39  ;;  %v6067_v25 = vsel %vm1341_vm6, %v13535_v35, 0.0 }
0x1094   :  { %v13543_v18 = vadd.f32 %v8523_v16, %v5841_v23  ;;  %v6018_v42 = vpop.f32.mrb[135].mxu1  ;;  %6068 = vadd.xlane.f32.xlu0 %v6067_v25  ;;  %9044 = vmatprep.subr.bf16.mxu0 %v9043_v55  ;;  %v4307_v25 = vld [vmem:[#allocation7 + $0x10] sm:$0xff] }
0x1095   :  { %v13545_v60 = vadd.f32 %v6018_v42, %v5840_v53  ;;  %9046 = vmatpush3.bf16.msra.mxu0 %v9043_v55  ;;  %v4315_v55 = vld [vmem:[%s14505_s19 + $0x28] sm:$0xff] }
0x1096   :  { %v6076_v28 = vsel %vm1341_vm6, %v13543_v18, 0.0 }
0x1097   :  { %v8526_v52 = vpop.f32.mrb[136].mxu1  ;;  %6077 = vadd.xlane.f32.xlu1 %v6076_v28  ;;  %v6073_v61 = vsel %vm1341_vm6, %v13545_v60, 0.0 }
0x1098   :  { %v13553_v32 = vadd.f32 %v8526_v52, %v5843_v38  ;;  %v6028_v30 = vpop.f32.mrb[137].mxu1  ;;  %6074 = vadd.xlane.f32.xlu0 %v6073_v61 }
0x1099   :  { %v13555_v45 = vadd.f32 %v6028_v30, %v5842_v63 }
0x109a   :  { %v6082_v48 = vsel %vm1341_vm6, %v13553_v32, 0.0 }
0x109b   :  { %6083 = vadd.xlane.f32.xlu1 %v6082_v48  ;;  %v6079_v29 = vsel %vm1341_vm6, %v13555_v45, 0.0 }
0x109c   :  { %6080 = vadd.xlane.f32.xlu0 %v6079_v29 }
0x10f6   :  { %v6042_v62 = vpop.xlane.xlu0 %6041 }
0x10f7   :  { %v6086_v0 = vmul.f32 0.03125, %v6042_v62  ;;  %v6039_v14 = vpop.xlane.xlu1 %6038 }
0x10f8   :  { %v6085_v7 = vmul.f32 0.03125, %v6039_v14 }
0x10f9   :  { %v13562_v6 = vsub.f32 %v13483_v49, %v6086_v0 }
0x10fa   :  { %v13565_v46 = vsub.f32 %v13485_v59, %v6085_v7 }
0x10fb   :  { %v6118_v21 = vmul.f32 %v13562_v6, %v13562_v6 }
0x10fc   :  { %v6117_v19 = vmul.f32 %v13565_v46, %v13565_v46 }
0x10fd   :  { %v6136_v40 = vsel %vm1341_vm6, %v6118_v21, 0.0 }
0x10fe   :  { %6137 = vadd.xlane.f32.xlu1 %v6136_v40  ;;  %v6133_v1 = vsel %vm1341_vm6, %v6117_v19, 0.0 }
0x10ff   :  { %6134 = vadd.xlane.f32.xlu0 %v6133_v1 }
0x1101   :  { %v6048_v24 = vpop.xlane.xlu1 %6047 }
0x1102   :  { %v6088_v56 = vmul.f32 0.03125, %v6048_v24  ;;  %v6045_v36 = vpop.xlane.xlu0 %6044 }
0x1103   :  { %v6087_v49 = vmul.f32 0.03125, %v6045_v36 }
0x1104   :  { %v13574_v31 = vsub.f32 %v13493_v22, %v6088_v56 }
0x1105   :  { %v13577_v59 = vsub.f32 %v13495_v4, %v6087_v49 }
0x1106   :  { %v6120_v27 = vmul.f32 %v13574_v31, %v13574_v31 }
0x1107   :  { %v6119_v54 = vmul.f32 %v13577_v59, %v13577_v59 }
0x1108   :  { %v6142_v2 = vsel %vm1341_vm6, %v6120_v27, 0.0 }
0x1109   :  { %6143 = vadd.xlane.f32.xlu1 %v6142_v2  ;;  %v6139_v57 = vsel %vm1341_vm6, %v6119_v54, 0.0 }
0x110a   :  { %6140 = vadd.xlane.f32.xlu0 %v6139_v57 }
0x1114   :  { %v6054_v33 = vpop.xlane.xlu1 %6053 }
0x1115   :  { %v6090_v51 = vmul.f32 0.03125, %v6054_v33  ;;  %v6051_v15 = vpop.xlane.xlu0 %6050 }
0x1116   :  { %v6089_v22 = vmul.f32 0.03125, %v6051_v15 }
0x1117   :  { %v13586_v9 = vsub.f32 %v13503_v44, %v6090_v51 }
0x1118   :  { %v13589_v4 = vsub.f32 %v13505_v34, %v6089_v22  ;;  %v6060_v43 = vpop.xlane.xlu1 %6059 }
0x1119   :  { %v6092_v58 = vmul.f32 0.03125, %v6060_v43  ;;  %v6057_v10 = vpop.xlane.xlu0 %6056  ;;  %v6122_v5 = vmul.f32 %v13586_v9, %v13586_v9 }
0x111a   :  { %v6091_v3 = vmul.f32 0.03125, %v6057_v10  ;;  %v6121_v12 = vmul.f32 %v13589_v4, %v13589_v4 }
0x111b   :  { %v13596_v20 = vsub.f32 %v13513_v17, %v6092_v58  ;;  %v6148_v44 = vsel %vm1341_vm6, %v6122_v5, 0.0  ;;  %v4308_v17 = vld [vmem:[#allocation7 + $0x18] sm:$0xff]  ;;  %v4311_v5 = vld [vmem:[%s14505_s19 + $0x8] sm:$0xff] }
0x111c   :  { %v13600_v34 = vsub.f32 %v13515_v26, %v6091_v3  ;;  %6149 = vadd.xlane.f32.xlu1 %v6148_v44  ;;  %v6066_v23 = vpop.xlane.xlu1 %6065  ;;  %v6145_v39 = vsel %vm1341_vm6, %v6121_v12, 0.0  ;;  %v9047_v26 = vpack.c.bf16 %v4308_v17, %v4307_v25  ;;  %v4312_v3 = vld [vmem:[%s14505_s19 + $0x10] sm:$0xff]  ;;  %v4314_v44 = vld [vmem:[%s14505_s19 + $0x20] sm:$0xff] }
0x111d   :  { %v6094_v53 = vmul.f32 0.03125, %v6066_v23  ;;  %v6063_v41 = vpop.xlane.xlu0 %6062  ;;  %6146 = vadd.xlane.f32.xlu0 %v6145_v39  ;;  %v6124_v16 = vmul.f32 %v13596_v20, %v13596_v20  ;;  %v9055_v37 = vpack.c.bf16 %v4313_v11, %v4312_v3  ;;  %v9059_v23 = vpack.c.bf16 %v4315_v55, %v4314_v44 }
0x111e   :  { %v6093_v50 = vmul.f32 0.03125, %v6063_v41  ;;  %v6123_v42 = vmul.f32 %v13600_v34, %v13600_v34  ;;  %9048 = vmatprep.subr.bf16.mxu0 %v9047_v26 }
0x111f   :  { %v13608_v38 = vsub.f32 %v13523_v8, %v6094_v53  ;;  %v6154_v28 = vsel %vm1341_vm6, %v6124_v16, 0.0  ;;  %9050 = vmatpush3.bf16.msra.mxu0 %v9047_v26 }
0x1120   :  { %v13612_v63 = vsub.f32 %v13525_v47, %v6093_v50  ;;  %6155 = vadd.xlane.f32.xlu1 %v6154_v28  ;;  %v6072_v52 = vpop.xlane.xlu1 %6071  ;;  %v6151_v61 = vsel %vm1341_vm6, %v6123_v42, 0.0  ;;  %v13678_v50 = vld [vmem:[%s14805_s28] sm:$0x1f] }
0x1121   :  { %v6096_v30 = vmul.f32 0.03125, %v6072_v52  ;;  %v6069_v48 = vpop.xlane.xlu0 %6068  ;;  %6152 = vadd.xlane.f32.xlu0 %v6151_v61  ;;  %v6126_v29 = vmul.f32 %v13608_v38, %v13608_v38  ;;  %v14806_v61 = vld [vmem:[#allocation16_spill] sm:$0xff] }
0x1122   :  { %v6095_v62 = vmul.f32 0.03125, %v6069_v48  ;;  %v6125_v8 = vmul.f32 %v13612_v63, %v13612_v63 }
0x1123   :  { %v13620_v0 = vsub.f32 %v13533_v13, %v6096_v30  ;;  %v6160_v47 = vsel %vm1341_vm6, %v6126_v29, 0.0  ;;  %v13682_v30 = vrot.slane %v13678_v50, %v14806_v61 }
0x1124   :  { %v13624_v14 = vsub.f32 %v13535_v35, %v6095_v62  ;;  %6161 = vadd.xlane.f32.xlu1 %v6160_v47  ;;  %v6078_v7 = vpop.xlane.xlu1 %6077  ;;  %v6157_v21 = vsel %vm1341_vm6, %v6125_v8, 0.0 }
0x1125   :  { %v6098_v19 = vmul.f32 0.03125, %v6078_v7  ;;  %v6075_v40 = vpop.xlane.xlu0 %6074  ;;  %6158 = vadd.xlane.f32.xlu0 %v6157_v21  ;;  %v6128_v1 = vmul.f32 %v13620_v0, %v13620_v0  ;;  %v14807_v21 = vld [vmem:[#allocation45_spill] sm:$0xff] }
0x1126   :  { %v6097_v24 = vmul.f32 0.03125, %v6075_v40  ;;  %v6127_v13 = vmul.f32 %v13624_v14, %v13624_v14 }
0x1127   :  { %v13632_v56 = vsub.f32 %v13543_v18, %v6098_v19  ;;  %v6166_v35 = vsel %vm1341_vm6, %v6128_v1, 0.0  ;;  %v13688_v19 = vrot.slane %v13678_v50, %v14807_v21 }
0x1128   :  { %v13636_v36 = vsub.f32 %v13545_v60, %v6097_v24  ;;  %6167 = vadd.xlane.f32.xlu1 %v6166_v35  ;;  %v6084_v49 = vpop.xlane.xlu1 %6083  ;;  %v6163_v27 = vsel %vm1341_vm6, %v6127_v13, 0.0 }
0x1129   :  { %v6100_v54 = vmul.f32 0.03125, %v6084_v49  ;;  %v6081_v2 = vpop.xlane.xlu0 %6080  ;;  %6164 = vadd.xlane.f32.xlu0 %v6163_v27  ;;  %v6130_v57 = vmul.f32 %v13632_v56, %v13632_v56 }
0x112a   :  { %v6099_v33 = vmul.f32 0.03125, %v6081_v2  ;;  %v6129_v18 = vmul.f32 %v13636_v36, %v13636_v36 }
0x112b   :  { %v13644_v51 = vsub.f32 %v13553_v32, %v6100_v54  ;;  %v6172_v60 = vsel %vm1341_vm6, %v6130_v57, 0.0 }
0x112c   :  { %v13648_v15 = vsub.f32 %v13555_v45, %v6099_v33  ;;  %6173 = vadd.xlane.f32.xlu1 %v6172_v60  ;;  %v6169_v22 = vsel %vm1341_vm6, %v6129_v18, 0.0  ;;  %v4310_v45 = vld [vmem:[%s14505_s19] sm:$0xff] }
0x112d   :  { %6170 = vadd.xlane.f32.xlu0 %v6169_v22  ;;  %v6132_v43 = vmul.f32 %v13644_v51, %v13644_v51  ;;  %v9051_v12 = vpack.c.bf16 %v4311_v5, %v4310_v45 }
0x112e   :  { %v6131_v58 = vmul.f32 %v13648_v15, %v13648_v15 }
0x112f   :  { %v6178_v10 = vsel %vm1341_vm6, %v6132_v43, 0.0  ;;  %9052 = vmatprep.subr.bf16.mxu1 %v9051_v12 }
0x1130   :  { %6179 = vadd.xlane.f32.xlu1 %v6178_v10  ;;  %v6175_v32 = vsel %vm1341_vm6, %v6131_v58, 0.0  ;;  %9054 = vmatpush3.bf16.msra.mxu1 %v9051_v12 }
0x1131   :  { %6176 = vadd.xlane.f32.xlu0 %v6175_v32  ;;  %9056 = vmatprep.subr.bf16.mxu1 %v9055_v37 }
0x1134   :  { %9058 = vmatpush3.bf16.msra.mxu1 %v9055_v37 }
0x1135   :  { %9060 = vmatprep.subr.bf16.mxu1 %v9059_v23 }
0x1138   :  { %9062 = vmatpush3.bf16.msra.mxu1 %v9059_v23 }
0x118b   :  { %v6138_v39 = vpop.xlane.xlu1 %6137 }
0x118c   :  { %v6182_v53 = vmul.f32 0.03125, %v6138_v39  ;;  %v6135_v41 = vpop.xlane.xlu0 %6134 }
0x118d   :  { %v6181_v16 = vmul.f32 0.03125, %v6135_v41 }
0x118e   :  { %v6198_v25 = vadd.f32 1e-06, %v6182_v53 }
0x118f   :  { %v6197_v17 = vadd.f32 1e-06, %v6181_v16 }
0x1190   :  { %9714 = vrsqrt.f32 %v6198_v25 }
0x1191   :  { %9716 = vrsqrt.f32 %v6197_v17 }
0x1196   :  { %v6144_v42 = vpop.xlane.xlu1 %6143 }
0x1197   :  { %v6184_v26 = vmul.f32 0.03125, %v6144_v42  ;;  %v6141_v28 = vpop.xlane.xlu0 %6140 }
0x1198   :  { %v6183_v52 = vmul.f32 0.03125, %v6141_v28 }
0x1199   :  { %v6200_v48 = vadd.f32 1e-06, %v6184_v26 }
0x119a   :  { %v9715_v29 = vpop.eup %9714  ;;  %v6199_v62 = vadd.f32 1e-06, %v6183_v52 }
0x119b   :  { %v9717_v8 = vpop.eup %9716  ;;  %v6230_v47 = vmul.f32 %v9715_v29, %v13562_v6  ;;  %9718 = vrsqrt.f32 %v6200_v48 }
0x119c   :  { %9720 = vrsqrt.f32 %v6199_v62  ;;  %v6229_v7 = vmul.f32 %v9717_v8, %v13565_v46 }
0x119d   :  { %v6250_v40 = vmul.f32 %v13682_v30, %v6230_v47 }
0x119e   :  { %v6249_v1 = vmul.f32 %v13682_v30, %v6229_v7 }
0x119f   :  { %v13696_v13 = vadd.f32 %v13688_v19, %v6250_v40 }
0x11a0   :  { %v13693_v24 = vadd.f32 %v13688_v19, %v6249_v1 }
0x11a2   :  { %8535 = vmatprep.mubr.msk.f32.mxu0 %vm1341_vm6, %v13693_v24 }
0x11a3   :  { %8536 = vmatmul.mubr.msk.f32.vlgmr.msra.gmra.mrb[150].mxu0 %vm1341_vm6, %v13696_v13 }
0x11a5   :  { %v9719_v6 = vpop.eup %9718 }
0x11a6   :  { %v9721_v46 = vpop.eup %9720  ;;  %v6232_v35 = vmul.f32 %v9719_v6, %v13574_v31 }
0x11a7   :  { %v6231_v49 = vmul.f32 %v9721_v46, %v13577_v59 }
0x11a8   :  { %v6252_v27 = vmul.f32 %v13682_v30, %v6232_v35 }
0x11a9   :  { %v6150_v54 = vpop.xlane.xlu1 %6149  ;;  %v6251_v2 = vmul.f32 %v13682_v30, %v6231_v49 }
0x11aa   :  { %v6186_v57 = vmul.f32 0.03125, %v6150_v54  ;;  %v6147_v33 = vpop.xlane.xlu0 %6146  ;;  %v13710_v43 = vadd.f32 %v13688_v19, %v6252_v27 }
0x11ab   :  { %v6185_v18 = vmul.f32 0.03125, %v6147_v33  ;;  %v13707_v60 = vadd.f32 %v13688_v19, %v6251_v2 }
0x11ac   :  { %v6202_v22 = vadd.f32 1e-06, %v6186_v57 }
0x11ad   :  { %v6201_v58 = vadd.f32 1e-06, %v6185_v18  ;;  %8538 = vmatprep.mubr.msk.f32.mxu0 %vm1341_vm6, %v13707_v60  ;;  %v6156_v31 = vpop.xlane.xlu1 %6155 }
0x11ae   :  { %9722 = vrsqrt.f32 %v6202_v22  ;;  %v6188_v59 = vmul.f32 0.03125, %v6156_v31  ;;  %v6153_v10 = vpop.xlane.xlu0 %6152  ;;  %8539 = vmatmul.mubr.msk.f32.gmra.mrb[152].mxu0 %vm1341_vm6, %v13710_v43 }
0x11af   :  { %9724 = vrsqrt.f32 %v6201_v58  ;;  %v6187_v32 = vmul.f32 0.03125, %v6153_v10 }
0x11b0   :  { %v6204_v45 = vadd.f32 1e-06, %v6188_v59 }
0x11b1   :  { %v6203_v5 = vadd.f32 1e-06, %v6187_v32  ;;  %v6162_v3 = vpop.xlane.xlu1 %6161 }
0x11b2   :  { %9726 = vrsqrt.f32 %v6204_v45  ;;  %v6190_v12 = vmul.f32 0.03125, %v6162_v3  ;;  %v6159_v11 = vpop.xlane.xlu0 %6158 }
0x11b3   :  { %9728 = vrsqrt.f32 %v6203_v5  ;;  %v6189_v37 = vmul.f32 0.03125, %v6159_v11 }
0x11b4   :  { %v6206_v44 = vadd.f32 1e-06, %v6190_v12 }
0x11b5   :  { %v6205_v55 = vadd.f32 1e-06, %v6189_v37  ;;  %v6168_v23 = vpop.xlane.xlu1 %6167 }
0x11b6   :  { %9730 = vrsqrt.f32 %v6206_v44  ;;  %v6192_v39 = vmul.f32 0.03125, %v6168_v23  ;;  %v6165_v53 = vpop.xlane.xlu0 %6164 }
0x11b7   :  { %9732 = vrsqrt.f32 %v6205_v55  ;;  %v6191_v41 = vmul.f32 0.03125, %v6165_v53 }
0x11b8   :  { %v9723_v16 = vpop.eup %9722  ;;  %v6208_v25 = vadd.f32 1e-06, %v6192_v39 }
0x11b9   :  { %v9725_v17 = vpop.eup %9724  ;;  %v6207_v42 = vadd.f32 1e-06, %v6191_v41  ;;  %v6174_v26 = vpop.xlane.xlu1 %6173  ;;  %v6234_v28 = vmul.f32 %v9723_v16, %v13586_v9 }
0x11ba   :  { %9734 = vrsqrt.f32 %v6208_v25  ;;  %v6194_v52 = vmul.f32 0.03125, %v6174_v26  ;;  %v6171_v61 = vpop.xlane.xlu0 %6170  ;;  %v6233_v48 = vmul.f32 %v9725_v17, %v13589_v4 }
0x11bb   :  { %9736 = vrsqrt.f32 %v6207_v42  ;;  %v6193_v29 = vmul.f32 0.03125, %v6171_v61  ;;  %v6254_v62 = vmul.f32 %v13682_v30, %v6234_v28 }
0x11bc   :  { %v9727_v8 = vpop.eup %9726  ;;  %v6210_v47 = vadd.f32 1e-06, %v6194_v52  ;;  %v6253_v7 = vmul.f32 %v13682_v30, %v6233_v48 }
0x11bd   :  { %v9729_v21 = vpop.eup %9728  ;;  %v6209_v40 = vadd.f32 1e-06, %v6193_v29  ;;  %v6180_v1 = vpop.xlane.xlu1 %6179  ;;  %v6236_v6 = vmul.f32 %v9727_v8, %v13596_v20  ;;  %v13726_v27 = vadd.f32 %v13688_v19, %v6254_v62 }
0x11be   :  { %9738 = vrsqrt.f32 %v6210_v47  ;;  %v6196_v9 = vmul.f32 0.03125, %v6180_v1  ;;  %v6177_v46 = vpop.xlane.xlu0 %6176  ;;  %v13722_v35 = vadd.f32 %v13688_v19, %v6253_v7  ;;  %v6235_v4 = vmul.f32 %v9729_v21, %v13600_v34 }
0x11bf   :  { %9740 = vrsqrt.f32 %v6209_v40  ;;  %v6195_v49 = vmul.f32 0.03125, %v6177_v46  ;;  %v6256_v54 = vmul.f32 %v13682_v30, %v6236_v6 }
0x11c0   :  { %v9731_v2 = vpop.eup %9730  ;;  %v6212_v57 = vadd.f32 1e-06, %v6196_v9  ;;  %8541 = vmatprep.mubr.msk.f32.mxu0 %vm1341_vm6, %v13722_v35  ;;  %v6255_v20 = vmul.f32 %v13682_v30, %v6235_v4 }
0x11c1   :  { %v9733_v33 = vpop.eup %9732  ;;  %v6211_v18 = vadd.f32 1e-06, %v6195_v49  ;;  %8542 = vmatmul.mubr.msk.f32.gmra.mrb[154].mxu0 %vm1341_vm6, %v13726_v27  ;;  %v6238_v34 = vmul.f32 %v9731_v2, %v13608_v38  ;;  %v13740_v31 = vadd.f32 %v13688_v19, %v6256_v54 }
0x11c2   :  { %9742 = vrsqrt.f32 %v6212_v57  ;;  %v13736_v22 = vadd.f32 %v13688_v19, %v6255_v20  ;;  %v6237_v58 = vmul.f32 %v9733_v33, %v13612_v63 }
0x11c3   :  { %9744 = vrsqrt.f32 %v6211_v18  ;;  %v6258_v59 = vmul.f32 %v13682_v30, %v6238_v34 }
0x11c4   :  { %v9735_v10 = vpop.eup %9734  ;;  %8544 = vmatprep.mubr.msk.f32.mxu0 %vm1341_vm6, %v13736_v22  ;;  %v6257_v32 = vmul.f32 %v13682_v30, %v6237_v58 }
0x11c5   :  { %v9737_v45 = vpop.eup %9736  ;;  %8545 = vmatmul.mubr.msk.f32.gmra.mrb[156].mxu0 %vm1341_vm6, %v13740_v31  ;;  %v6240_v38 = vmul.f32 %v9735_v10, %v13620_v0  ;;  %v13754_v3 = vadd.f32 %v13688_v19, %v6258_v59 }
0x11c6   :  { %v13750_v63 = vadd.f32 %v13688_v19, %v6257_v32  ;;  %v6239_v5 = vmul.f32 %v9737_v45, %v13624_v14 }
0x11c7   :  { %v6260_v12 = vmul.f32 %v13682_v30, %v6240_v38 }
0x11c8   :  { %v9739_v11 = vpop.eup %9738  ;;  %8547 = vmatprep.mubr.msk.f32.mxu0 %vm1341_vm6, %v13750_v63  ;;  %v6259_v37 = vmul.f32 %v13682_v30, %v6239_v5 }
0x11c9   :  { %v9741_v44 = vpop.eup %9740  ;;  %8548 = vmatmul.mubr.msk.f32.gmra.mrb[158].mxu0 %vm1341_vm6, %v13754_v3  ;;  %v6242_v0 = vmul.f32 %v9739_v11, %v13632_v56  ;;  %v13768_v23 = vadd.f32 %v13688_v19, %v6260_v12 }
0x11ca   :  { %v13764_v55 = vadd.f32 %v13688_v19, %v6259_v37  ;;  %v6241_v14 = vmul.f32 %v9741_v44, %v13636_v36 }
0x11cb   :  { %v6262_v39 = vmul.f32 %v13682_v30, %v6242_v0 }
0x11cc   :  { %v9743_v53 = vpop.eup %9742  ;;  %8550 = vmatprep.mubr.msk.f32.mxu0 %vm1341_vm6, %v13764_v55  ;;  %v6261_v41 = vmul.f32 %v13682_v30, %v6241_v14 }
0x11cd   :  { %v9745_v16 = vpop.eup %9744  ;;  %8551 = vmatmul.mubr.msk.f32.gmra.mrb[160].mxu0 %vm1341_vm6, %v13768_v23  ;;  %v6244_v56 = vmul.f32 %v9743_v53, %v13644_v51  ;;  %v13782_v17 = vadd.f32 %v13688_v19, %v6262_v39 }
0x11ce   :  { %v13778_v25 = vadd.f32 %v13688_v19, %v6261_v41  ;;  %v6243_v36 = vmul.f32 %v9745_v16, %v13648_v15  ;;  %v4316_v15 = vld [vmem:[%s14505_s19 + $0x30] sm:$0xff] }
0x11cf   :  { %v6264_v42 = vmul.f32 %v13682_v30, %v6244_v56 }
0x11d0   :  { %8553 = vmatprep.mubr.msk.f32.mxu0 %vm1341_vm6, %v13778_v25  ;;  %v6263_v26 = vmul.f32 %v13682_v30, %v6243_v36  ;;  %v4317_v30 = vld [vmem:[%s14505_s19 + $0x38] sm:$0xff] }
0x11d1   :  { %8554 = vmatmul.mubr.msk.f32.gmra.mrb[162].mxu0 %vm1341_vm6, %v13782_v17  ;;  %v13794_v28 = vadd.f32 %v13688_v19, %v6264_v42  ;;  %v9063_v52 = vpack.c.bf16 %v4317_v30, %v4316_v15 }
0x11d2   :  { %v13791_v51 = vadd.f32 %v13688_v19, %v6263_v26  ;;  %v7365_v19 = vld [vmem:[%s14808_s20] ss:$0 sm:$0xff] }
0x11d3   :  { %9064 = vmatprep.subr.bf16.mxu1 %v9063_v52 }
0x11d4   :  { %8556 = vmatprep.mubr.msk.f32.mxu0 %vm1341_vm6, %v13791_v51  ;;  %9066 = vmatpush3.bf16.msra.mxu1 %v9063_v52 }
0x11d5   :  { %8557 = vmatmul.mubr.msk.f32.gmra.mrb[164].mxu0 %vm1341_vm6, %v13794_v28 }
0x1276   :  { %v8537_v61 = vpop.f32.mrb[150].mxu0 }
0x1277   :  { %v6411_v48 = vadd.f32 %v8537_v61, %v7365_v19  ;;  %v6405_v29 = vpop.f32.mrb[151].mxu0 }
0x1278   :  { %v6406_v62 = vadd.f32 %v7365_v19, %v6405_v29 }
0x1279   :  { %v6485_v47 = vmax.f32 %v6411_v48, 0.0 }
0x127a   :  { %v6484_v8 = vmax.f32 %v6406_v62, 0.0 }
0x127c   :  { %8575 = vmatprep.mubr.msk.f32.mxu1 %vm1621_vm4, %v6484_v8 }
0x127d   :  { %8576 = vmatmul.mubr.msk.f32.vlgmr.msra.gmra.mrb[138].mxu1 %vm1621_vm4, %v6485_v47 }
0x1281   :  { %v8540_v7 = vpop.f32.mrb[152].mxu0 }
0x1282   :  { %v6421_v21 = vadd.f32 %v8540_v7, %v7365_v19  ;;  %v6415_v40 = vpop.f32.mrb[153].mxu0 }
0x1283   :  { %v6416_v1 = vadd.f32 %v7365_v19, %v6415_v40 }
0x1284   :  { %v6487_v9 = vmax.f32 %v6421_v21, 0.0 }
0x1285   :  { %v6486_v6 = vmax.f32 %v6416_v1, 0.0  ;;  %v14809_v1 = vld [vmem:[#allocation38_spill] sm:$0xff] }
0x1287   :  { %8578 = vmatprep.mubr.msk.f32.mxu1 %vm1621_vm4, %v6486_v6  ;;  %v13843_v6 = vrot.slane %v13678_v50, %v14809_v1 }
0x1288   :  { %8579 = vmatmul.mubr.msk.f32.gmra.mrb[140].mxu1 %vm1621_vm4, %v6487_v9 }
0x1294   :  { %v8543_v46 = vpop.f32.mrb[154].mxu0 }
0x1295   :  { %v6431_v4 = vadd.f32 %v8543_v46, %v7365_v19  ;;  %v6425_v49 = vpop.f32.mrb[155].mxu0 }
0x1296   :  { %v6426_v54 = vadd.f32 %v7365_v19, %v6425_v49 }
0x1297   :  { %v6489_v20 = vmax.f32 %v6431_v4, 0.0 }
0x1298   :  { %v6488_v2 = vmax.f32 %v6426_v54, 0.0  ;;  %v8546_v57 = vpop.f32.mrb[156].mxu0 }
0x1299   :  { %v6441_v33 = vadd.f32 %v8546_v57, %v7365_v19  ;;  %v6435_v18 = vpop.f32.mrb[157].mxu0 }
0x129a   :  { %v6436_v34 = vadd.f32 %v7365_v19, %v6435_v18  ;;  %8581 = vmatprep.mubr.msk.f32.mxu1 %vm1621_vm4, %v6488_v2 }
0x129b   :  { %8582 = vmatmul.mubr.msk.f32.gmra.mrb[142].mxu1 %vm1621_vm4, %v6489_v20  ;;  %v6491_v10 = vmax.f32 %v6441_v33, 0.0 }
0x129c   :  { %v6490_v58 = vmax.f32 %v6436_v34, 0.0  ;;  %v8549_v59 = vpop.f32.mrb[158].mxu0 }
0x129d   :  { %v6451_v32 = vadd.f32 %v8549_v59, %v7365_v19  ;;  %v6445_v45 = vpop.f32.mrb[159].mxu0 }
0x129e   :  { %v6446_v38 = vadd.f32 %v7365_v19, %v6445_v45  ;;  %8584 = vmatprep.mubr.msk.f32.mxu1 %vm1621_vm4, %v6490_v58 }
0x129f   :  { %8585 = vmatmul.mubr.msk.f32.gmra.mrb[144].mxu1 %vm1621_vm4, %v6491_v10  ;;  %v6493_v11 = vmax.f32 %v6451_v32, 0.0 }
0x12a0   :  { %v6492_v5 = vmax.f32 %v6446_v38, 0.0  ;;  %v8552_v12 = vpop.f32.mrb[160].mxu0 }
0x12a1   :  { %v6461_v37 = vadd.f32 %v8552_v12, %v7365_v19  ;;  %v6455_v44 = vpop.f32.mrb[161].mxu0 }
0x12a2   :  { %v6456_v0 = vadd.f32 %v7365_v19, %v6455_v44  ;;  %8587 = vmatprep.mubr.msk.f32.mxu1 %vm1621_vm4, %v6492_v5 }
0x12a3   :  { %8588 = vmatmul.mubr.msk.f32.gmra.mrb[146].mxu1 %vm1621_vm4, %v6493_v11  ;;  %v6495_v53 = vmax.f32 %v6461_v37, 0.0  ;;  %v14810_v37 = vld [vmem:[#allocation31_spill] sm:$0xff] }
0x12a4   :  { %v6494_v14 = vmax.f32 %v6456_v0, 0.0  ;;  %v8555_v39 = vpop.f32.mrb[162].mxu0 }
0x12a5   :  { %v6471_v41 = vadd.f32 %v8555_v39, %v7365_v19  ;;  %v6465_v16 = vpop.f32.mrb[163].mxu0 }
0x12a6   :  { %v6466_v56 = vadd.f32 %v7365_v19, %v6465_v16  ;;  %8590 = vmatprep.mubr.msk.f32.mxu1 %vm1621_vm4, %v6494_v14 }
0x12a7   :  { %8591 = vmatmul.mubr.msk.f32.gmra.mrb[148].mxu1 %vm1621_vm4, %v6495_v53  ;;  %v6497_v26 = vmax.f32 %v6471_v41, 0.0  ;;  %v14811_v53 = vld [vmem:[#allocation50_spill] sm:$0xff] }
0x12a8   :  { %v6496_v36 = vmax.f32 %v6466_v56, 0.0  ;;  %v8558_v42 = vpop.f32.mrb[164].mxu0 }
0x12a9   :  { %v6481_v15 = vadd.f32 %v8558_v42, %v7365_v19  ;;  %v6475_v30 = vpop.f32.mrb[165].mxu0 }
0x12aa   :  { %v6476_v52 = vadd.f32 %v7365_v19, %v6475_v30  ;;  %8593 = vmatprep.mubr.msk.f32.mxu1 %vm1621_vm4, %v6496_v36  ;;  %v14812_v36 = vld [vmem:[#allocation13_spill] sm:$0xff] }
0x12ab   :  { %8594 = vmatmul.mubr.msk.f32.gmra.mrb[150].mxu1 %vm1621_vm4, %v6497_v26  ;;  %v6499_v48 = vmax.f32 %v6481_v15, 0.0  ;;  %v14813_v26 = vld [vmem:[#allocation51_spill] sm:$0xff] }
0x12ac   :  { %v6498_v61 = vmax.f32 %v6476_v52, 0.0  ;;  %v14814_v52 = vld [vmem:[#allocation49_spill] sm:$0xff] }
0x12ae   :  { %8596 = vmatprep.mubr.msk.f32.mxu1 %vm1621_vm4, %v6498_v61 }
0x12af   :  { %8597 = vmatmul.mubr.msk.f32.gmra.mrb[152].mxu1 %vm1621_vm4, %v6499_v48  ;;  %v14815_v48 = vld [vmem:[#allocation52_spill] sm:$0xff] }
0x1350   :  { %v13825_v29 = vpop.f32.mrb[138].mxu1 }
0x1351   :  { %v13827_v62 = vpop.f32.mrb[139].mxu1 }
0x135b   :  { %v13829_v8 = vpop.f32.mrb[140].mxu1 }
0x135c   :  { %v13831_v47 = vpop.f32.mrb[141].mxu1 }
0x136e   :  { %v13833_v7 = vpop.f32.mrb[142].mxu1 }
0x136f   :  { %v13835_v19 = vpop.f32.mrb[143].mxu1 }
0x1372   :  { %v13837_v21 = vpop.f32.mrb[144].mxu1 }
0x1373   :  { %v13839_v40 = vpop.f32.mrb[145].mxu1 }
0x1376   :  { %v8589_v9 = vpop.f32.mrb[146].mxu1 }
0x1377   :  { %v6664_v46 = vadd.f32 %v8589_v9, %v13843_v6  ;;  %v6658_v4 = vpop.f32.mrb[147].mxu1 }
0x1378   :  { %v6659_v49 = vadd.f32 %v6658_v4, %v13843_v6 }
0x1379   :  { %v13848_v54 = vadd.f32 %v6664_v46, %v13754_v3  ;;  %v14817_v46 = vld [vmem:[#allocation53_spill] sm:$0xff] }
0x137a   :  { %v13851_v2 = vadd.f32 %v6659_v49, %v13750_v63  ;;  %v8592_v57 = vpop.f32.mrb[148].mxu1 }
0x137b   :  { %v6674_v20 = vadd.f32 %v8592_v57, %v13843_v6  ;;  %v6668_v33 = vpop.f32.mrb[149].mxu1  ;;  %v6740_v50 = vsel %vm1341_vm6, %v13848_v54, 0.0  ;;  %v14818_v57 = vld [vmem:[#allocation19_spill] sm:$0xff] }
0x137c   :  { %v6669_v18 = vadd.f32 %v6668_v33, %v13843_v6  ;;  %6741 = vadd.xlane.f32.xlu1 %v6740_v50  ;;  %v6737_v34 = vsel %vm1341_vm6, %v13851_v2, 0.0  ;;  %v14819_v33 = vld [vmem:[#allocation54_spill] sm:$0xff] }
0x137d   :  { %v13860_v58 = vadd.f32 %v6674_v20, %v13768_v23  ;;  %6738 = vadd.xlane.f32.xlu0 %v6737_v34  ;;  %v13874_v23 = vld [vmem:[%s14500_s14] sm:$0x1f]  ;;  %v14820_v34 = vld [vmem:[#allocation22_spill] sm:$0xff] }
0x137e   :  { %v13863_v63 = vadd.f32 %v6669_v18, %v13764_v55  ;;  %v8595_v3 = vpop.f32.mrb[150].mxu1  ;;  %v13878_v55 = vrot.slane %v13874_v23, %v14809_v1  ;;  %v14816_v1 = vld [vmem:[#allocation12_spill] sm:$0xff] }
0x137f   :  { %v6684_v59 = vadd.f32 %v8595_v3, %v13843_v6  ;;  %v6678_v10 = vpop.f32.mrb[151].mxu1  ;;  %v6746_v32 = vsel %vm1341_vm6, %v13860_v58, 0.0 }
0x1380   :  { %v6679_v45 = vadd.f32 %v6678_v10, %v13843_v6  ;;  %6747 = vadd.xlane.f32.xlu1 %v6746_v32  ;;  %v6743_v38 = vsel %vm1341_vm6, %v13863_v63, 0.0  ;;  %v3968_v44 = vadd.f32 %v14810_v37, %v13878_v55  ;;  %v3963_v41 = vadd.f32 %v14811_v53, %v13878_v55 }
0x1381   :  { %v13881_v5 = vadd.f32 %v6684_v59, %v13782_v17  ;;  %6744 = vadd.xlane.f32.xlu0 %v6743_v38  ;;  %v3978_v15 = vadd.f32 %v14813_v26, %v13878_v55  ;;  %v3988_v4 = vadd.f32 %v14817_v46, %v13878_v55  ;;  %v3983_v50 = vadd.f32 %v14819_v33, %v13878_v55  ;;  %v14821_v59 = vld [vmem:[#allocation55_spill] sm:$0xff] }
0x1382   :  { %v13884_v12 = vadd.f32 %v6679_v45, %v13778_v25  ;;  %v8598_v11 = vpop.f32.mrb[152].mxu1  ;;  %v13903_v42 = vadd.f32 %v3968_v44, %v14812_v36  ;;  %v13910_v61 = vadd.f32 %v3963_v41, %v14814_v52  ;;  %v3998_v10 = vadd.f32 %v14821_v59, %v13878_v55  ;;  %v14822_v45 = vld [vmem:[#allocation42_spill] sm:$0xff] }
0x1383   :  { %v6694_v0 = vadd.f32 %v8598_v11, %v13843_v6  ;;  %v6688_v14 = vpop.f32.mrb[153].mxu1  ;;  %v6752_v39 = vsel %vm1341_vm6, %v13881_v5, 0.0  ;;  %v13917_v9 = vadd.f32 %v3978_v15, %v14816_v1  ;;  %v13931_v3 = vadd.f32 %v3988_v4, %v14820_v34  ;;  %v14823_v11 = vld [vmem:[#allocation56_spill] sm:$0xff]  ;;  %v14825_v41 = vld [vmem:[#allocation14_spill] sm:$0xff]  ;;  %v14830_v34 = vld [vmem:[#allocation29_spill] sm:$0xff] }
0x1384   :  { %v6689_v17 = vadd.f32 %v6688_v14, %v13843_v6  ;;  %6753 = vadd.xlane.f32.xlu1 %v6752_v39  ;;  %v6749_v25 = vsel %vm1341_vm6, %v13884_v12, 0.0  ;;  %v4044_v49 = vsel %vm1341_vm6, %v13903_v42, 0.0  ;;  %v4041_v18 = vsel %vm1341_vm6, %v13910_v61, 0.0 }
0x1385   :  { %v13897_v16 = vadd.f32 %v6694_v0, %v13794_v28  ;;  %6750 = vadd.xlane.f32.xlu0 %v6749_v25  ;;  %v3973_v28 = vadd.f32 %v14815_v48, %v13878_v55  ;;  %v4050_v32 = vsel %vm1341_vm6, %v13917_v9, 0.0  ;;  %v13938_v38 = vadd.f32 %v3983_v50, %v14822_v45  ;;  %v14824_v0 = vld [vmem:[#allocation18_spill] sm:$0xff]  ;;  %v14832_v45 = vld [vmem:[#allocation36_spill] sm:$0xff] }
0x1386   :  { %v13900_v56 = vadd.f32 %v6689_v17, %v13791_v51  ;;  %v3993_v37 = vadd.f32 %v14823_v11, %v13878_v55  ;;  %v13945_v14 = vadd.f32 %v3998_v10, %v14824_v0  ;;  %v6624_v39 = vadd.f32 %v13825_v29, %v13843_v6 }
0x1387   :  { %v6758_v30 = vsel %vm1341_vm6, %v13897_v16, 0.0  ;;  %v13924_v20 = vadd.f32 %v3973_v28, %v14818_v57  ;;  %v4056_v53 = vsel %vm1341_vm6, %v13931_v3, 0.0  ;;  %v6619_v25 = vadd.f32 %v13827_v62, %v13843_v6 }
0x1388   :  { %6759 = vadd.xlane.f32.xlu1 %v6758_v30  ;;  %v6755_v51 = vsel %vm1341_vm6, %v13900_v56, 0.0  ;;  %v13952_v17 = vadd.f32 %v3993_v37, %v14825_v41  ;;  %v4053_v36 = vsel %vm1341_vm6, %v13938_v38, 0.0  ;;  %v13959_v26 = vadd.f32 %v6624_v39, %v13696_v13  ;;  %v14833_v37 = vld [vmem:[#allocation24_spill] sm:$0xff]  ;;  %v14834_v39 = vld [vmem:[#allocation41_spill] sm:$0xff]  ;;  %v14835_v41 = vld [vmem:[#allocation35_spill] sm:$0xff] }
0x1389   :  { %6756 = vadd.xlane.f32.xlu0 %v6755_v51  ;;  %v4047_v44 = vsel %vm1341_vm6, %v13924_v20, 0.0  ;;  %v6634_v29 = vadd.f32 %v13829_v8, %v13843_v6  ;;  %v4062_v15 = vsel %vm1341_vm6, %v13945_v14, 0.0  ;;  %v13966_v30 = vadd.f32 %v6619_v25, %v13693_v24 }
0x138a   :  { %v6629_v62 = vadd.f32 %v13831_v47, %v13843_v6  ;;  %v4059_v52 = vsel %vm1341_vm6, %v13952_v17, 0.0  ;;  %v6644_v8 = vadd.f32 %v13833_v7, %v13843_v6  ;;  %v6716_v48 = vsel %vm1341_vm6, %v13959_v26, 0.0 }
0x138b   :  { %v13973_v13 = vadd.f32 %v6634_v29, %v13710_v43  ;;  %v6639_v47 = vadd.f32 %v13835_v19, %v13843_v6  ;;  %v6713_v28 = vsel %vm1341_vm6, %v13966_v30, 0.0  ;;  %v6654_v7 = vadd.f32 %v13837_v21, %v13843_v6  ;;  %v14836_v29 = vld [vmem:[#allocation43_spill] sm:$0xff] }
0x138c   :  { %4045 = vadd.xlane.f32.xlu1 %v4044_v49  ;;  %v13980_v24 = vadd.f32 %v6629_v62, %v13707_v60  ;;  %v13987_v43 = vadd.f32 %v6644_v8, %v13726_v27  ;;  %v6649_v19 = vadd.f32 %v13839_v40, %v13843_v6  ;;  %v14826_v27 = vld [vmem:[#allocation20_spill] sm:$0xff]  ;;  %v14828_v6 = vld [vmem:[#allocation37_spill] sm:$0xff]  ;;  %v3943_v25 = vadd.f32 %v14835_v41, %v13878_v55  ;;  %v14837_v62 = vld [vmem:[#allocation27_spill] sm:$0xff] }
0x138d   :  { %4042 = vadd.xlane.f32.xlu0 %v4041_v18  ;;  %v6722_v51 = vsel %vm1341_vm6, %v13973_v13, 0.0  ;;  %v13994_v60 = vadd.f32 %v6639_v47, %v13722_v35  ;;  %v3928_v46 = vadd.f32 %v14826_v27, %v13878_v55  ;;  %v14003_v4 = vadd.f32 %v6654_v7, %v13740_v31  ;;  %v14827_v35 = vld [vmem:[#allocation32_spill] sm:$0xff] }
0x138e   :  { %v6719_v1 = vsel %vm1341_vm6, %v13980_v24, 0.0  ;;  %v6728_v21 = vsel %vm1341_vm6, %v13987_v43, 0.0  ;;  %v3923_v49 = vadd.f32 %v14827_v35, %v13878_v55  ;;  %v14010_v57 = vadd.f32 %v6649_v19, %v13736_v22  ;;  %v14829_v31 = vld [vmem:[#allocation28_spill] sm:$0xff]  ;;  %v14831_v22 = vld [vmem:[#allocation26_spill] sm:$0xff] }
0x138f   :  { %v6725_v40 = vsel %vm1341_vm6, %v13994_v60, 0.0  ;;  %v14015_v33 = vadd.f32 %v3928_v46, %v14828_v6  ;;  %v3938_v50 = vadd.f32 %v14829_v31, %v13878_v55  ;;  %v6734_v18 = vsel %vm1341_vm6, %v14003_v4, 0.0  ;;  %v14840_v19 = vld [vmem:[#allocation46_spill] sm:$0xff]  ;;  %v14841_v46 = vld [vmem:[#allocation40_spill] sm:$0xff] }
0x1390   :  { %4051 = vadd.xlane.f32.xlu1 %v4050_v32  ;;  %v14022_v59 = vadd.f32 %v3923_v49, %v14830_v34  ;;  %v3933_v10 = vadd.f32 %v14831_v22, %v13878_v55  ;;  %v6731_v32 = vsel %vm1341_vm6, %v14010_v57, 0.0 }
0x1391   :  { %4048 = vadd.xlane.f32.xlu0 %v4047_v44  ;;  %v14029_v11 = vadd.f32 %v3938_v50, %v14832_v45  ;;  %v3948_v44 = vadd.f32 %v14833_v37, %v13878_v55  ;;  %v4020_v0 = vsel %vm1341_vm6, %v14015_v33, 0.0 }
0x1393   :  { %v4026_v8 = vsel %vm1341_vm6, %v14029_v11, 0.0 }
0x1394   :  { %4057 = vadd.xlane.f32.xlu1 %v4056_v53  ;;  %v14036_v53 = vadd.f32 %v3933_v10, %v14834_v39 }
0x1395   :  { %4054 = vadd.xlane.f32.xlu0 %v4053_v36  ;;  %v4017_v36 = vsel %vm1341_vm6, %v14022_v59, 0.0 }
0x1398   :  { %4063 = vadd.xlane.f32.xlu1 %v4062_v15  ;;  %v14043_v15 = vadd.f32 %v3948_v44, %v14836_v29 }
0x1399   :  { %4060 = vadd.xlane.f32.xlu0 %v4059_v52  ;;  %v3958_v52 = vadd.f32 %v14837_v62, %v13878_v55 }
0x139a   :  { %v4032_v27 = vsel %vm1341_vm6, %v14043_v15, 0.0 }
0x139c   :  { %6717 = vadd.xlane.f32.xlu1 %v6716_v48  ;;  %v14838_v48 = vld [vmem:[#allocation34_spill] sm:$0xff] }
0x139d   :  { %6714 = vadd.xlane.f32.xlu0 %v6713_v28  ;;  %v14050_v47 = vadd.f32 %v3943_v25, %v14838_v48  ;;  %v14839_v28 = vld [vmem:[#allocation30_spill] sm:$0xff] }
0x139e   :  { %v3953_v7 = vadd.f32 %v14839_v28, %v13878_v55 }
0x139f   :  { %v4029_v35 = vsel %vm1341_vm6, %v14050_v47, 0.0 }
0x13a0   :  { %6723 = vadd.xlane.f32.xlu1 %v6722_v51  ;;  %v4023_v51 = vsel %vm1341_vm6, %v14036_v53, 0.0 }
0x13a1   :  { %6720 = vadd.xlane.f32.xlu0 %v6719_v1  ;;  %v14057_v1 = vadd.f32 %v3958_v52, %v14840_v19 }
0x13a3   :  { %v4038_v55 = vsel %vm1341_vm6, %v14057_v1, 0.0 }
0x13a4   :  { %6729 = vadd.xlane.f32.xlu1 %v6728_v21  ;;  %v14062_v21 = vadd.f32 %v3953_v7, %v14841_v46 }
0x13a5   :  { %6726 = vadd.xlane.f32.xlu0 %v6725_v40 }
0x13a6   :  { %v4035_v49 = vsel %vm1341_vm6, %v14062_v21, 0.0 }
0x13a8   :  { %6735 = vadd.xlane.f32.xlu1 %v6734_v18 }
0x13a9   :  { %6732 = vadd.xlane.f32.xlu0 %v6731_v32 }
0x13ac   :  { %4021 = vadd.xlane.f32.xlu1 %v4020_v0 }
0x13ad   :  { %4018 = vadd.xlane.f32.xlu0 %v4017_v36 }
0x13b0   :  { %4027 = vadd.xlane.f32.xlu1 %v4026_v8 }
0x13b1   :  { %4024 = vadd.xlane.f32.xlu0 %v4023_v51 }
0x13b4   :  { %4033 = vadd.xlane.f32.xlu1 %v4032_v27 }
0x13b5   :  { %4030 = vadd.xlane.f32.xlu0 %v4029_v35 }
0x13b8   :  { %4039 = vadd.xlane.f32.xlu1 %v4038_v55 }
0x13b9   :  { %4036 = vadd.xlane.f32.xlu0 %v4035_v49 }
0x1409   :  { %v6742_v40 = vpop.xlane.xlu1 %6741 }
0x140a   :  { %v6739_v6 = vpop.xlane.xlu0 %6738  ;;  %v6770_v46 = vmul.f32 0.03125, %v6742_v40 }
0x140b   :  { %v6769_v55 = vmul.f32 0.03125, %v6739_v6 }
0x140d   :  { %v6748_v31 = vpop.xlane.xlu1 %6747 }
0x140e   :  { %v6745_v50 = vpop.xlane.xlu0 %6744  ;;  %v6772_v6 = vmul.f32 0.03125, %v6748_v31 }
0x1411   :  { %v6754_v18 = vpop.xlane.xlu1 %6753 }
0x1412   :  { %v6751_v34 = vpop.xlane.xlu0 %6750 }
0x1415   :  { %v14070_v22 = vpop.xlane.xlu1 %6759 }
0x1416   :  { %v14072_v10 = vpop.xlane.xlu0 %6756 }
0x1419   :  { %v4046_v32 = vpop.xlane.xlu1 %4045 }
0x141a   :  { %v4074_v45 = vmul.f32 0.03125, %v4046_v32  ;;  %v4043_v37 = vpop.xlane.xlu0 %4042 }
0x141b   :  { %v4073_v44 = vmul.f32 0.03125, %v4043_v37 }
0x141c   :  { %v14075_v0 = vsub.f32 %v13903_v42, %v4074_v45 }
0x141d   :  { %v14078_v39 = vsub.f32 %v13910_v61, %v4073_v44  ;;  %v4052_v41 = vpop.xlane.xlu1 %4051 }
0x141e   :  { %v4076_v25 = vmul.f32 0.03125, %v4052_v41  ;;  %v4049_v36 = vpop.xlane.xlu0 %4048  ;;  %v4106_v29 = vmul.f32 %v14075_v0, %v14075_v0 }
0x141f   :  { %v4075_v62 = vmul.f32 0.03125, %v4049_v36  ;;  %v4105_v52 = vmul.f32 %v14078_v39, %v14078_v39 }
0x1420   :  { %v14085_v8 = vsub.f32 %v13917_v9, %v4076_v25  ;;  %v4140_v48 = vsel %vm1341_vm6, %v4106_v29, 0.0  ;;  %v14109_v25 = vsub.f32 %v13848_v54, %v6770_v46  ;;  %v14116_v29 = vsub.f32 %v13851_v2, %v6769_v55 }
0x1421   :  { %v14089_v42 = vsub.f32 %v13924_v20, %v4075_v62  ;;  %4141 = vadd.xlane.f32.xlu1 %v4140_v48  ;;  %v4058_v61 = vpop.xlane.xlu1 %4057  ;;  %v4137_v28 = vsel %vm1341_vm6, %v4105_v52, 0.0  ;;  %v6771_v62 = vmul.f32 0.03125, %v6745_v50  ;;  %v6774_v2 = vmul.f32 0.03125, %v6754_v18 }
0x1422   :  { %v4078_v7 = vmul.f32 0.03125, %v4058_v61  ;;  %v4055_v51 = vpop.xlane.xlu0 %4054  ;;  %4138 = vadd.xlane.f32.xlu0 %v4137_v28  ;;  %v4108_v19 = vmul.f32 %v14085_v8, %v14085_v8  ;;  %v14127_v28 = vsub.f32 %v13860_v58, %v6772_v6  ;;  %v6776_v46 = vmul.f32 0.03125, %v14070_v22 }
0x1423   :  { %v4077_v27 = vmul.f32 0.03125, %v4055_v51  ;;  %v4107_v9 = vmul.f32 %v14089_v42, %v14089_v42  ;;  %v6773_v51 = vmul.f32 0.03125, %v6751_v34  ;;  %v14139_v18 = vsub.f32 %v13881_v5, %v6774_v2 }
0x1424   :  { %v14097_v35 = vsub.f32 %v13931_v3, %v4078_v7  ;;  %v4146_v20 = vsel %vm1341_vm6, %v4108_v19, 0.0  ;;  %v14133_v7 = vsub.f32 %v13863_v63, %v6771_v62  ;;  %v6804_v63 = vmul.f32 %v14127_v28, %v14127_v28 }
0x1425   :  { %v14101_v49 = vsub.f32 %v13938_v38, %v4077_v27  ;;  %4147 = vadd.xlane.f32.xlu1 %v4146_v20  ;;  %v4064_v32 = vpop.xlane.xlu1 %4063  ;;  %v4143_v45 = vsel %vm1341_vm6, %v4107_v9, 0.0  ;;  %v6801_v9 = vmul.f32 %v14116_v29, %v14116_v29  ;;  %v14146_v34 = vsub.f32 %v13884_v12, %v6773_v51 }
0x1426   :  { %v4080_v37 = vmul.f32 0.03125, %v4064_v32  ;;  %4144 = vadd.xlane.f32.xlu0 %v4143_v45  ;;  %v4061_v44 = vpop.xlane.xlu0 %4060  ;;  %v4110_v41 = vmul.f32 %v14097_v35, %v14097_v35  ;;  %v6775_v55 = vmul.f32 0.03125, %v14072_v10  ;;  %v6803_v5 = vmul.f32 %v14133_v7, %v14133_v7 }
0x1427   :  { %v4079_v40 = vmul.f32 0.03125, %v4061_v44  ;;  %v4109_v3 = vmul.f32 %v14101_v49, %v14101_v49  ;;  %v6833_v45 = vsel %vm1341_vm6, %v6801_v9, 0.0  ;;  %v14153_v22 = vsub.f32 %v13897_v16, %v6776_v46 }
0x1428   :  { %v14112_v38 = vsub.f32 %v13945_v14, %v4080_v37  ;;  %v4152_v36 = vsel %vm1341_vm6, %v4110_v41, 0.0  ;;  %v6842_v41 = vsel %vm1341_vm6, %v6804_v63, 0.0  ;;  %v6806_v12 = vmul.f32 %v14139_v18, %v14139_v18 }
0x1429   :  { %v14119_v52 = vsub.f32 %v13952_v17, %v4079_v40  ;;  %4153 = vadd.xlane.f32.xlu1 %v4152_v36  ;;  %v6718_v48 = vpop.xlane.xlu1 %6717  ;;  %v4149_v61 = vsel %vm1341_vm6, %v4109_v3, 0.0  ;;  %v6802_v17 = vmul.f32 %v14109_v25, %v14109_v25  ;;  %v14159_v10 = vsub.f32 %v13900_v56, %v6775_v55 }
0x142a   :  { %4150 = vadd.xlane.f32.xlu0 %v4149_v61  ;;  %v6715_v54 = vpop.xlane.xlu0 %6714  ;;  %v4112_v31 = vmul.f32 %v14112_v38, %v14112_v38  ;;  %v6762_v44 = vmul.f32 0.03125, %v6718_v48  ;;  %v6839_v3 = vsel %vm1341_vm6, %v6803_v5, 0.0  ;;  %v6805_v6 = vmul.f32 %v14146_v34, %v14146_v34 }
0x142b   :  { %v4111_v14 = vmul.f32 %v14119_v52, %v14119_v52  ;;  %v6836_v20 = vsel %vm1341_vm6, %v6802_v17, 0.0  ;;  %v6761_v40 = vmul.f32 0.03125, %v6715_v54  ;;  %v6848_v61 = vsel %vm1341_vm6, %v6806_v12, 0.0 }
0x142c   :  { %v4158_v50 = vsel %vm1341_vm6, %v4112_v31, 0.0  ;;  %v14165_v16 = vsub.f32 %v13959_v26, %v6762_v44  ;;  %v6808_v56 = vmul.f32 %v14153_v22, %v14153_v22  ;;  %v6807_v2 = vmul.f32 %v14159_v10, %v14159_v10 }
0x142d   :  { %4159 = vadd.xlane.f32.xlu1 %v4158_v50  ;;  %v6724_v19 = vpop.xlane.xlu1 %6723  ;;  %v4155_v27 = vsel %vm1341_vm6, %v4111_v14, 0.0  ;;  %v14171_v54 = vsub.f32 %v13966_v30, %v6761_v40  ;;  %v6845_v14 = vsel %vm1341_vm6, %v6805_v6, 0.0 }
0x142e   :  { %4156 = vadd.xlane.f32.xlu0 %v4155_v27  ;;  %v6721_v58 = vpop.xlane.xlu0 %6720  ;;  %v6764_v62 = vmul.f32 0.03125, %v6724_v19  ;;  %v6854_v17 = vsel %vm1341_vm6, %v6808_v56, 0.0  ;;  %v6794_v51 = vmul.f32 %v14165_v16, %v14165_v16  ;;  %v6851_v9 = vsel %vm1341_vm6, %v6807_v2, 0.0 }
0x142f   :  { %v6763_v31 = vmul.f32 0.03125, %v6721_v58  ;;  %v6793_v58 = vmul.f32 %v14171_v54, %v14171_v54 }
0x1430   :  { %v14177_v26 = vsub.f32 %v13973_v13, %v6764_v62  ;;  %v6812_v63 = vsel %vm1341_vm6, %v6794_v51, 0.0 }
0x1431   :  { %6837 = vadd.xlane.f32.xlu1 %v6836_v20  ;;  %v6730_v32 = vpop.xlane.xlu1 %6729  ;;  %v14183_v30 = vsub.f32 %v13980_v24, %v6763_v31 }
0x1432   :  { %6834 = vadd.xlane.f32.xlu0 %v6833_v45  ;;  %v6727_v37 = vpop.xlane.xlu0 %6726  ;;  %v6766_v50 = vmul.f32 0.03125, %v6730_v32  ;;  %v6796_v24 = vmul.f32 %v14177_v26, %v14177_v26  ;;  %v6809_v45 = vsel %vm1341_vm6, %v6793_v58, 0.0 }
0x1433   :  { %v6765_v19 = vmul.f32 0.03125, %v6727_v37  ;;  %v6795_v5 = vmul.f32 %v14183_v30, %v14183_v30 }
0x1434   :  { %v14189_v13 = vsub.f32 %v13987_v43, %v6766_v50  ;;  %v6818_v12 = vsel %vm1341_vm6, %v6796_v24, 0.0 }
0x1435   :  { %6843 = vadd.xlane.f32.xlu1 %v6842_v41  ;;  %v6736_v36 = vpop.xlane.xlu1 %6735  ;;  %v14195_v55 = vsub.f32 %v13994_v60, %v6765_v19  ;;  %v6815_v6 = vsel %vm1341_vm6, %v6795_v5, 0.0 }
0x1436   :  { %6840 = vadd.xlane.f32.xlu0 %v6839_v3  ;;  %v6733_v48 = vpop.xlane.xlu0 %6732  ;;  %v6768_v20 = vmul.f32 0.03125, %v6736_v36  ;;  %v6798_v60 = vmul.f32 %v14189_v13, %v14189_v13 }
0x1437   :  { %v6767_v32 = vmul.f32 0.03125, %v6733_v48  ;;  %v6797_v36 = vmul.f32 %v14195_v55, %v14195_v55 }
0x1438   :  { %v14201_v43 = vsub.f32 %v14003_v4, %v6768_v20  ;;  %v6824_v48 = vsel %vm1341_vm6, %v6798_v60, 0.0 }
0x1439   :  { %6849 = vadd.xlane.f32.xlu1 %v6848_v61  ;;  %v4022_v27 = vpop.xlane.xlu1 %4021  ;;  %v14207_v40 = vsub.f32 %v14010_v57, %v6767_v32 }
0x143a   :  { %6846 = vadd.xlane.f32.xlu0 %v6845_v14  ;;  %v4019_v46 = vpop.xlane.xlu0 %4018  ;;  %v4066_v3 = vmul.f32 0.03125, %v4022_v27  ;;  %v6800_v61 = vmul.f32 %v14201_v43, %v14201_v43  ;;  %v6821_v14 = vsel %vm1341_vm6, %v6797_v36, 0.0 }
0x143b   :  { %v4065_v44 = vmul.f32 0.03125, %v4019_v46  ;;  %v6799_v2 = vmul.f32 %v14207_v40, %v14207_v40 }
0x143c   :  { %v14219_v57 = vsub.f32 %v14015_v33, %v4066_v3  ;;  %v6830_v51 = vsel %vm1341_vm6, %v6800_v61, 0.0 }
0x143d   :  { %6855 = vadd.xlane.f32.xlu1 %v6854_v17  ;;  %v4028_v37 = vpop.xlane.xlu1 %4027  ;;  %v14213_v4 = vsub.f32 %v14022_v59, %v4065_v44 }
0x143e   :  { %6852 = vadd.xlane.f32.xlu0 %v6851_v9  ;;  %v4025_v41 = vpop.xlane.xlu0 %4024  ;;  %v4068_v62 = vmul.f32 0.03125, %v4028_v37  ;;  %v6827_v9 = vsel %vm1341_vm6, %v6799_v2, 0.0  ;;  %v4098_v58 = vmul.f32 %v14219_v57, %v14219_v57 }
0x143f   :  { %v4067_v56 = vmul.f32 0.03125, %v4025_v41  ;;  %v4097_v33 = vmul.f32 %v14213_v4, %v14213_v4 }
0x1440   :  { %v14225_v59 = vsub.f32 %v14029_v11, %v4068_v62 }
0x1441   :  { %6813 = vadd.xlane.f32.xlu1 %v6812_v63  ;;  %v4034_v31 = vpop.xlane.xlu1 %4033  ;;  %v14231_v19 = vsub.f32 %v14036_v53, %v4067_v56  ;;  %v4113_v46 = vsel %vm1341_vm6, %v4097_v33, 0.0  ;;  %v4116_v53 = vsel %vm1341_vm6, %v4098_v58, 0.0 }
0x1442   :  { %6810 = vadd.xlane.f32.xlu0 %v6809_v45  ;;  %v4031_v50 = vpop.xlane.xlu0 %4030  ;;  %v4070_v17 = vmul.f32 0.03125, %v4034_v31  ;;  %v4100_v20 = vmul.f32 %v14225_v59, %v14225_v59 }
0x1443   :  { %v4069_v27 = vmul.f32 0.03125, %v4031_v50  ;;  %v4099_v24 = vmul.f32 %v14231_v19, %v14231_v19 }
0x1444   :  { %v14237_v11 = vsub.f32 %v14043_v15, %v4070_v17  ;;  %v4122_v32 = vsel %vm1341_vm6, %v4100_v20, 0.0 }
0x1445   :  { %6819 = vadd.xlane.f32.xlu1 %v6818_v12  ;;  %v14243_v63 = vsub.f32 %v14050_v47, %v4069_v27  ;;  %v4119_v45 = vsel %vm1341_vm6, %v4099_v24, 0.0  ;;  %v14256_v44 = vpop.xlane.xlu1 %4039 }
0x1446   :  { %6816 = vadd.xlane.f32.xlu0 %v6815_v6  ;;  %v4102_v15 = vmul.f32 %v14237_v11, %v14237_v11  ;;  %v14258_v41 = vpop.xlane.xlu0 %4036 }
0x1447   :  { %14842 = vst [vmem:[#allocation15_spill] sm:$0xff] %v14243_v63  ;;  %v4101_v5 = vmul.f32 %v14243_v63, %v14243_v63 }
0x1448   :  { %v4128_v47 = vsel %vm1341_vm6, %v4102_v15, 0.0 }
0x1449   :  { %6825 = vadd.xlane.f32.xlu1 %v6824_v48  ;;  %v4125_v37 = vsel %vm1341_vm6, %v4101_v5, 0.0 }
0x144a   :  { %6822 = vadd.xlane.f32.xlu0 %v6821_v14 }
0x144d   :  { %6831 = vadd.xlane.f32.xlu1 %v6830_v51 }
0x144e   :  { %6828 = vadd.xlane.f32.xlu0 %v6827_v9 }
0x1451   :  { %4114 = vadd.xlane.f32.xlu1 %v4113_v46 }
0x1452   :  { %4117 = vadd.xlane.f32.xlu0 %v4116_v53 }
0x1455   :  { %4123 = vadd.xlane.f32.xlu1 %v4122_v32 }
0x1456   :  { %4120 = vadd.xlane.f32.xlu0 %v4119_v45 }
0x1459   :  { %4129 = vadd.xlane.f32.xlu1 %v4128_v47 }
0x145a   :  { %4126 = vadd.xlane.f32.xlu0 %v4125_v37 }
0x14ae   :  { %v14260_v12 = vpop.xlane.xlu1 %4141 }
0x14af   :  { %v14262_v60 = vpop.xlane.xlu0 %4138 }
0x14b2   :  { %v14264_v3 = vpop.xlane.xlu1 %4147 }
0x14b3   :  { %v14266_v6 = vpop.xlane.xlu0 %4144 }
0x14b6   :  { %v14268_v36 = vpop.xlane.xlu1 %4153 }
0x14b7   :  { %v14270_v62 = vpop.xlane.xlu0 %4150 }
0x14ba   :  { %v14272_v48 = vpop.xlane.xlu1 %4159 }
0x14bb   :  { %v14274_v61 = vpop.xlane.xlu0 %4156 }
0x14be   :  { %v6838_v56 = vpop.xlane.xlu1 %6837 }
0x14bf   :  { %v6866_v31 = vmul.f32 0.03125, %v6838_v56  ;;  %v6835_v14 = vpop.xlane.xlu0 %6834 }
0x14c0   :  { %v6865_v2 = vmul.f32 0.03125, %v6835_v14  ;;  %v14843_v14 = vld [vmem:[#allocation39_spill] sm:$0xff] }
0x14c1   :  { %v6882_v50 = vadd.f32 1e-06, %v6866_v31  ;;  %v9816_v31 = vld [vmem:[%s14805_s28] sm:$0x1f] }
0x14c2   :  { %v6881_v17 = vadd.f32 1e-06, %v6865_v2  ;;  %v6844_v51 = vpop.xlane.xlu1 %6843  ;;  %v14280_v2 = vrot.slane %v9816_v31, %v14843_v14 }
0x14c3   :  { %9746 = vrsqrt.f32 %v6882_v50  ;;  %v6868_v33 = vmul.f32 0.03125, %v6844_v51  ;;  %v6841_v27 = vpop.xlane.xlu0 %6840 }
0x14c4   :  { %9748 = vrsqrt.f32 %v6881_v17  ;;  %v6867_v9 = vmul.f32 0.03125, %v6841_v27 }
0x14c5   :  { %v6884_v58 = vadd.f32 1e-06, %v6868_v33 }
0x14c6   :  { %v6883_v46 = vadd.f32 1e-06, %v6867_v9  ;;  %v6850_v20 = vpop.xlane.xlu1 %6849 }
0x14c7   :  { %9750 = vrsqrt.f32 %v6884_v58  ;;  %v6870_v53 = vmul.f32 0.03125, %v6850_v20  ;;  %v6847_v24 = vpop.xlane.xlu0 %6846  ;;  %v14844_v58 = vld [vmem:[#allocation44_spill] sm:$0xff] }
0x14c8   :  { %9752 = vrsqrt.f32 %v6883_v46  ;;  %v6869_v32 = vmul.f32 0.03125, %v6847_v24  ;;  %v14284_v46 = vrot.slane %v9816_v31, %v14844_v58 }
0x14c9   :  { %v6886_v15 = vadd.f32 1e-06, %v6870_v53 }
0x14ca   :  { %v6885_v45 = vadd.f32 1e-06, %v6869_v32  ;;  %v6856_v5 = vpop.xlane.xlu1 %6855 }
0x14cb   :  { %9754 = vrsqrt.f32 %v6886_v15  ;;  %v6872_v47 = vmul.f32 0.03125, %v6856_v5  ;;  %v6853_v37 = vpop.xlane.xlu0 %6852 }
0x14cc   :  { %9756 = vrsqrt.f32 %v6885_v45  ;;  %v6871_v56 = vmul.f32 0.03125, %v6853_v37 }
0x14cd   :  { %v9747_v50 = vpop.eup %9746  ;;  %v6888_v17 = vadd.f32 1e-06, %v6872_v47 }
0x14ce   :  { %v9749_v51 = vpop.eup %9748  ;;  %v6887_v33 = vadd.f32 1e-06, %v6871_v56  ;;  %v6814_v27 = vpop.xlane.xlu1 %6813  ;;  %v6914_v9 = vmul.f32 %v9747_v50, %v14109_v25 }
0x14cf   :  { %9758 = vrsqrt.f32 %v6888_v17  ;;  %v6858_v20 = vmul.f32 0.03125, %v6814_v27  ;;  %v6811_v53 = vpop.xlane.xlu0 %6810  ;;  %v6913_v24 = vmul.f32 %v9749_v51, %v14116_v29 }
0x14d0   :  { %9760 = vrsqrt.f32 %v6887_v33  ;;  %v6857_v32 = vmul.f32 0.03125, %v6811_v53  ;;  %v6934_v15 = vmul.f32 %v14280_v2, %v6914_v9 }
0x14d1   :  { %v9751_v45 = vpop.eup %9750  ;;  %v6874_v5 = vadd.f32 1e-06, %v6858_v20  ;;  %v6933_v47 = vmul.f32 %v14280_v2, %v6913_v24 }
0x14d2   :  { %v9753_v37 = vpop.eup %9752  ;;  %v6873_v56 = vadd.f32 1e-06, %v6857_v32  ;;  %v6820_v63 = vpop.xlane.xlu1 %6819  ;;  %v6954_v25 = vadd.f32 %v14284_v46, %v6934_v15  ;;  %v6916_v31 = vmul.f32 %v9751_v45, %v14127_v28 }
0x14d3   :  { %9762 = vrsqrt.f32 %v6874_v5  ;;  %v6860_v50 = vmul.f32 0.03125, %v6820_v63  ;;  %v6817_v17 = vpop.xlane.xlu0 %6816  ;;  %v6953_v29 = vadd.f32 %v14284_v46, %v6933_v47  ;;  %v6915_v51 = vmul.f32 %v9753_v37, %v14133_v7 }
0x14d4   :  { %9764 = vrsqrt.f32 %v6873_v56  ;;  %v6859_v33 = vmul.f32 0.03125, %v6817_v17  ;;  %6995 = vrot.lane.b32.xlu1 %v6954_v25, %s9925_s9  ;;  %v6936_v27 = vmul.f32 %v14280_v2, %v6916_v31 }
0x14d5   :  { %v9755_v9 = vpop.eup %9754  ;;  %v6876_v20 = vadd.f32 1e-06, %v6860_v50  ;;  %6993 = vrot.lane.b32.xlu0 %v6953_v29, %s9925_s9  ;;  %v6935_v53 = vmul.f32 %v14280_v2, %v6915_v51 }
0x14d6   :  { %v9757_v28 = vpop.eup %9756  ;;  %v6875_v24 = vadd.f32 1e-06, %v6859_v33  ;;  %v6826_v63 = vpop.xlane.xlu1 %6825  ;;  %v6956_v32 = vadd.f32 %v14284_v46, %v6936_v27  ;;  %v6918_v15 = vmul.f32 %v9755_v9, %v14139_v18 }
0x14d7   :  { %9766 = vrsqrt.f32 %v6876_v20  ;;  %v6862_v7 = vmul.f32 0.03125, %v6826_v63  ;;  %v6823_v45 = vpop.xlane.xlu0 %6822  ;;  %v6955_v5 = vadd.f32 %v14284_v46, %v6935_v53  ;;  %v6917_v47 = vmul.f32 %v9757_v28, %v14146_v34 }
0x14d8   :  { %9768 = vrsqrt.f32 %v6875_v24  ;;  %v6861_v37 = vmul.f32 0.03125, %v6823_v45  ;;  %v6938_v56 = vmul.f32 %v14280_v2, %v6918_v15 }
0x14d9   :  { %v9759_v25 = vpop.eup %9758  ;;  %v6878_v31 = vadd.f32 1e-06, %v6862_v7  ;;  %6999 = vrot.lane.b32.xlu0 %v6956_v32, %s9925_s9  ;;  %6997 = vrot.lane.b32.xlu1 %v6955_v5, %s9925_s9  ;;  %v6937_v50 = vmul.f32 %v14280_v2, %v6917_v47 }
0x14da   :  { %v9761_v18 = vpop.eup %9760  ;;  %v6877_v17 = vadd.f32 1e-06, %v6861_v37  ;;  %v6832_v29 = vpop.xlane.xlu1 %6831  ;;  %v6958_v51 = vadd.f32 %v14284_v46, %v6938_v56  ;;  %v6920_v33 = vmul.f32 %v9759_v25, %v14153_v22 }
0x14db   :  { %9770 = vrsqrt.f32 %v6878_v31  ;;  %v6864_v34 = vmul.f32 0.03125, %v6832_v29  ;;  %v6829_v27 = vpop.xlane.xlu0 %6828  ;;  %v6957_v9 = vadd.f32 %v14284_v46, %v6937_v50  ;;  %v6919_v20 = vmul.f32 %v9761_v18, %v14159_v10 }
0x14dc   :  { %9772 = vrsqrt.f32 %v6877_v17  ;;  %v6863_v53 = vmul.f32 0.03125, %v6829_v27  ;;  %v6940_v28 = vmul.f32 %v14280_v2, %v6920_v33 }
0x14dd   :  { %v9763_v24 = vpop.eup %9762  ;;  %v6880_v63 = vadd.f32 1e-06, %v6864_v34  ;;  %7003 = vrot.lane.b32.xlu0 %v6958_v51, %s9925_s9  ;;  %7001 = vrot.lane.b32.xlu1 %v6957_v9, %s9925_s9  ;;  %v6939_v32 = vmul.f32 %v14280_v2, %v6919_v20 }
0x14de   :  { %v9765_v22 = vpop.eup %9764  ;;  %v6879_v15 = vadd.f32 1e-06, %v6863_v53  ;;  %v6960_v7 = vadd.f32 %v14284_v46, %v6940_v28  ;;  %v6906_v45 = vmul.f32 %v9763_v24, %v14165_v16 }
0x14df   :  { %9774 = vrsqrt.f32 %v6880_v63  ;;  %v6959_v10 = vadd.f32 %v14284_v46, %v6939_v32  ;;  %v6905_v5 = vmul.f32 %v9765_v22, %v14171_v54 }
0x14e0   :  { %9776 = vrsqrt.f32 %v6879_v15  ;;  %v6926_v47 = vmul.f32 %v14280_v2, %v6906_v45 }
0x14e1   :  { %v9767_v37 = vpop.eup %9766  ;;  %7007 = vrot.lane.b32.xlu0 %v6960_v7, %s9925_s9  ;;  %7005 = vrot.lane.b32.xlu1 %v6959_v10, %s9925_s9  ;;  %v6925_v56 = vmul.f32 %v14280_v2, %v6905_v5  ;;  %v4071_v7 = vmul.f32 0.03125, %v14258_v41  ;;  %v4072_v10 = vmul.f32 0.03125, %v14256_v44  ;;  %v4172_v44 = vmul.f32 0.03125, %v14264_v3 }
0x14e2   :  { %v9769_v25 = vpop.eup %9768  ;;  %v6946_v31 = vadd.f32 %v14284_v46, %v6926_v47  ;;  %v6908_v16 = vmul.f32 %v9767_v37, %v14177_v26  ;;  %v4171_v47 = vmul.f32 0.03125, %v14266_v6  ;;  %v4175_v3 = vmul.f32 0.03125, %v14274_v61  ;;  %v14373_v6 = vpop.xlane.xlu0 %4117 }
0x14e3   :  { %v6945_v50 = vadd.f32 %v14284_v46, %v6925_v56  ;;  %v6907_v18 = vmul.f32 %v9769_v25, %v14183_v30  ;;  %v14343_v45 = vsub.f32 %v14062_v21, %v4071_v7  ;;  %v4169_v21 = vmul.f32 0.03125, %v14262_v60 }
0x14e4   :  { %v6928_v54 = vmul.f32 %v14280_v2, %v6908_v16  ;;  %v4188_v56 = vadd.f32 1e-06, %v4172_v44  ;;  %v4187_v25 = vadd.f32 1e-06, %v4171_v47  ;;  %v4173_v16 = vmul.f32 0.03125, %v14270_v62 }
0x14e5   :  { %v9771_v17 = vpop.eup %9770  ;;  %v6927_v29 = vmul.f32 %v14280_v2, %v6907_v18  ;;  %v4185_v37 = vadd.f32 1e-06, %v4169_v21  ;;  %v14371_v18 = vpop.xlane.xlu1 %4114  ;;  %v14382_v61 = vrot.slane %v13874_v23, %v14843_v14 }
0x14e6   :  { %v9773_v51 = vpop.eup %9772  ;;  %v6948_v33 = vadd.f32 %v14284_v46, %v6928_v54  ;;  %v6910_v34 = vmul.f32 %v9771_v17, %v14189_v13  ;;  %v4189_v60 = vadd.f32 1e-06, %v4173_v16  ;;  %v4191_v17 = vadd.f32 1e-06, %v4175_v3 }
0x14e7   :  { %v6947_v27 = vadd.f32 %v14284_v46, %v6927_v29  ;;  %v6909_v9 = vmul.f32 %v9773_v51, %v14195_v55 }
0x14e8   :  { %v6930_v26 = vmul.f32 %v14280_v2, %v6910_v34 }
0x14e9   :  { %v9775_v20 = vpop.eup %9774  ;;  %v6929_v53 = vmul.f32 %v14280_v2, %v6909_v9  ;;  %v14375_v62 = vpop.xlane.xlu1 %4123 }
0x14ea   :  { %v9777_v30 = vpop.eup %9776  ;;  %v6950_v28 = vadd.f32 %v14284_v46, %v6930_v26  ;;  %v6912_v24 = vmul.f32 %v9775_v20, %v14201_v43  ;;  %v4103_v43 = vmul.f32 %v14343_v45, %v14343_v45  ;;  %v14388_v26 = vrot.slane %v13874_v23, %v14844_v58 }
0x14eb   :  { %v6949_v63 = vadd.f32 %v14284_v46, %v6929_v53  ;;  %v6911_v32 = vmul.f32 %v9777_v30, %v14207_v40  ;;  %v14349_v40 = vsub.f32 %v14057_v1, %v4072_v10  ;;  %v4170_v1 = vmul.f32 0.03125, %v14260_v12 }
0x14ec   :  { %v6932_v13 = vmul.f32 %v14280_v2, %v6912_v24  ;;  %v4131_v5 = vsel %vm1341_vm6, %v4103_v43, 0.0  ;;  %v4176_v12 = vmul.f32 0.03125, %v14272_v48 }
0x14ed   :  { %v6931_v22 = vmul.f32 %v14280_v2, %v6911_v32  ;;  %v4104_v2 = vmul.f32 %v14349_v40, %v14349_v40  ;;  %v4186_v41 = vadd.f32 1e-06, %v4170_v1 }
0x14ee   :  { %v6952_v55 = vadd.f32 %v14284_v46, %v6932_v13  ;;  %v4192_v54 = vadd.f32 1e-06, %v4176_v12 }
0x14ef   :  { %v6951_v15 = vadd.f32 %v14284_v46, %v6931_v22  ;;  %v4134_v46 = vsel %vm1341_vm6, %v4104_v2, 0.0  ;;  %9778 = vrsqrt.f32 %v4186_v41 }
0x14f0   :  { %9780 = vrsqrt.f32 %v4185_v37 }
0x14f1   :  { %9782 = vrsqrt.f32 %v4188_v56 }
0x14f2   :  { %9784 = vrsqrt.f32 %v4187_v25 }
0x1500   :  { %4132 = vadd.xlane.f32.xlu0 %v4131_v5 }
0x1505   :  { %4135 = vadd.xlane.f32.xlu1 %v4134_v46 }
0x1516   :  { %6979 = vrot.lane.b32.xlu1 %v6946_v31, %s9925_s9  ;;  %6977 = vrot.lane.b32.xlu0 %v6945_v50, %s9925_s9  ;;  %v4174_v31 = vmul.f32 0.03125, %v14268_v36  ;;  %v9779_v36 = vpop.eup %9778 }
0x1517   :  { %v9781_v29 = vpop.eup %9780  ;;  %v4218_v48 = vmul.f32 %v9779_v36, %v14075_v0  ;;  %v4162_v36 = vmul.f32 0.03125, %v14373_v6 }
0x1518   :  { %v4190_v50 = vadd.f32 1e-06, %v4174_v31  ;;  %v9783_v51 = vpop.eup %9782 }
0x1519   :  { %v9785_v34 = vpop.eup %9784  ;;  %v4238_v9 = vmul.f32 %v14382_v61, %v4218_v48  ;;  %v4220_v53 = vmul.f32 %v9783_v51, %v14085_v8  ;;  %v4178_v48 = vadd.f32 1e-06, %v4162_v36 }
0x151a   :  { %6983 = vrot.lane.b32.xlu0 %v6948_v33, %s9925_s9  ;;  %6981 = vrot.lane.b32.xlu1 %v6947_v27, %s9925_s9  ;;  %9786 = vrsqrt.f32 %v4190_v50  ;;  %v14377_v33 = vpop.xlane.xlu0 %4120  ;;  %v4217_v27 = vmul.f32 %v9781_v29, %v14078_v39  ;;  %v4219_v20 = vmul.f32 %v9785_v34, %v14089_v42  ;;  %v4164_v34 = vmul.f32 0.03125, %v14375_v62 }
0x151b   :  { %9788 = vrsqrt.f32 %v4189_v60  ;;  %v4240_v32 = vmul.f32 %v14382_v61, %v4220_v53 }
0x151c   :  { %9790 = vrsqrt.f32 %v4192_v54  ;;  %v4237_v0 = vmul.f32 %v14382_v61, %v4217_v27  ;;  %v4239_v39 = vmul.f32 %v14382_v61, %v4219_v20  ;;  %v4180_v20 = vadd.f32 1e-06, %v4164_v34 }
0x151d   :  { %9792 = vrsqrt.f32 %v4191_v17  ;;  %v4260_v43 = vadd.f32 %v14388_v26, %v4240_v32  ;;  %v4161_v17 = vmul.f32 0.03125, %v14371_v18 }
0x151e   :  { %6987 = vrot.lane.b32.xlu0 %v6950_v28, %s9925_s9  ;;  %6985 = vrot.lane.b32.xlu1 %v6949_v63, %s9925_s9  ;;  %v4130_v28 = vpop.xlane.xlu1 %4129  ;;  %v4127_v14 = vpop.xlane.xlu0 %4126  ;;  %v4258_v63 = vadd.f32 %v14388_v26, %v4238_v9  ;;  %v4257_v23 = vadd.f32 %v14388_v26, %v4237_v0  ;;  %v4259_v10 = vadd.f32 %v14388_v26, %v4239_v39  ;;  %v4163_v9 = vmul.f32 0.03125, %v14377_v33 }
0x151f   :  { %v4177_v29 = vadd.f32 1e-06, %v4161_v17  ;;  %v4166_v53 = vmul.f32 0.03125, %v4130_v28  ;;  %v4165_v0 = vmul.f32 0.03125, %v4127_v14 }
0x1521   :  { %9794 = vrsqrt.f32 %v4177_v29  ;;  %v4182_v6 = vadd.f32 1e-06, %v4166_v53  ;;  %v4181_v32 = vadd.f32 1e-06, %v4165_v0 }
0x1522   :  { %6991 = vrot.lane.b32.xlu0 %v6952_v55, %s9925_s9  ;;  %6989 = vrot.lane.b32.xlu1 %v6951_v15, %s9925_s9  ;;  %9796 = vrsqrt.f32 %v4178_v48  ;;  %s9927_s9 = smov [#allocation8]  }
0x1523   :  { %9798 = vrsqrt.f32 %v4180_v20 }
0x1524   :  { %v9787_v30 = vpop.eup %9786 }
0x1525   :  { %v9789_v24 = vpop.eup %9788  ;;  %v4222_v8 = vmul.f32 %v9787_v30, %v14097_v35  ;;  %v4179_v30 = vadd.f32 1e-06, %v4163_v9 }
0x1526   :  { %v9791_v13 = vpop.eup %9790  ;;  %v4221_v42 = vmul.f32 %v9789_v24, %v14101_v49 }
0x1527   :  { %v9793_v58 = vpop.eup %9792  ;;  %v4242_v49 = vmul.f32 %v14382_v61, %v4222_v8  ;;  %v4224_v2 = vmul.f32 %v9791_v13, %v14112_v38  ;;  %9800 = vrsqrt.f32 %v4179_v30 }
0x1528   :  { %v4241_v5 = vmul.f32 %v14382_v61, %v4221_v42  ;;  %v4223_v35 = vmul.f32 %v9793_v58, %v14119_v52  ;;  %9802 = vrsqrt.f32 %v4182_v6 }
0x1529   :  { %v4262_v47 = vadd.f32 %v14388_v26, %v4242_v49  ;;  %v4244_v52 = vmul.f32 %v14382_v61, %v4224_v2  ;;  %9804 = vrsqrt.f32 %v4181_v32 }
0x152a   :  { %v4261_v41 = vadd.f32 %v14388_v26, %v4241_v5  ;;  %v4243_v37 = vmul.f32 %v14382_v61, %v4223_v35 }
0x152b   :  { %v4264_v50 = vadd.f32 %v14388_v26, %v4244_v52  ;;  %v9795_v33 = vpop.eup %9794 }
0x152c   :  { %v4263_v16 = vadd.f32 %v14388_v26, %v4243_v37  ;;  %v9797_v42 = vpop.eup %9796  ;;  %v4209_v28 = vmul.f32 %v9795_v33, %v14213_v4  ;;  %v14845_v37 = vld [vmem:[#allocation15_spill] sm:$0xff] }
0x152d   :  { %v4210_v14 = vmul.f32 %v9797_v42, %v14219_v57  ;;  %v9799_v58 = vpop.eup %9798 }
0x152e   :  { %v4212_v5 = vmul.f32 %v9799_v58, %v14225_v59 }
0x1546   :  { %v6996_v22 = vpop.permute.xlu1 %6995 }
0x1547   :  { %v7034_v55 = vsel %vm1341_vm6, %v4258_v63, %v6996_v22  ;;  %v6994_v15 = vpop.permute.xlu0 %6993 }
0x1548   :  { %v7033_v7 = vsel %vm1341_vm6, %v4257_v23, %v6994_v15  ;;  %7051 = vrot.lane.b32.xlu0 %v7034_v55, %s9926_s6  ;;  %v9801_v15 = vpop.eup %9800 }
0x1549   :  { %7049 = vrot.lane.b32.xlu1 %v7033_v7, %s9926_s6  ;;  %v4229_v7 = vmul.f32 %v14382_v61, %v4209_v28  ;;  %v4211_v49 = vmul.f32 %v9801_v15, %v14231_v19 }
0x154b   :  { %v6998_v46 = vpop.permute.xlu1 %6997  ;;  %v7000_v1 = vpop.permute.xlu0 %6999  ;;  %v4249_v57 = vadd.f32 %v14388_v26, %v4229_v7 }
0x154c   :  { %v7035_v21 = vsel %vm1341_vm6, %v4259_v10, %v6998_v46  ;;  %v7036_v44 = vsel %vm1341_vm6, %v4260_v43, %v7000_v1  ;;  %v4230_v10 = vmul.f32 %v14382_v61, %v4210_v14  ;;  %v9803_v43 = vpop.eup %9802 }
0x154d   :  { %7053 = vrot.lane.b32.xlu1 %v7035_v21, %s9926_s6  ;;  %7055 = vrot.lane.b32.xlu0 %v7036_v44, %s9926_s6  ;;  %v9805_v35 = vpop.eup %9804  ;;  %v4232_v44 = vmul.f32 %v14382_v61, %v4212_v5 }
0x154e   :  { %v4250_v21 = vadd.f32 %v14388_v26, %v4230_v10  ;;  %v4213_v52 = vmul.f32 %v9805_v35, %v14845_v37 }
0x154f   :  { %v7002_v56 = vpop.permute.xlu1 %7001  ;;  %v7004_v38 = vpop.permute.xlu0 %7003 }
0x1550   :  { %v7037_v25 = vsel %vm1341_vm6, %v4261_v41, %v7002_v56  ;;  %v7038_v31 = vsel %vm1341_vm6, %v4262_v47, %v7004_v38  ;;  %v4214_v41 = vmul.f32 %v9803_v43, %v14237_v11  ;;  %v4231_v47 = vmul.f32 %v14382_v61, %v4211_v49 }
0x1551   :  { %7057 = vrot.lane.b32.xlu1 %v7037_v25, %s9926_s6  ;;  %7059 = vrot.lane.b32.xlu0 %v7038_v31, %s9926_s6  ;;  %v4252_v11 = vadd.f32 %v14388_v26, %v4232_v44 }
0x1553   :  { %v7006_v12 = vpop.permute.xlu1 %7005  ;;  %v7008_v60 = vpop.permute.xlu0 %7007 }
0x1554   :  { %v7039_v3 = vsel %vm1341_vm6, %v4263_v16, %v7006_v12  ;;  %v7040_v54 = vsel %vm1341_vm6, %v4264_v50, %v7008_v60  ;;  %v4234_v12 = vmul.f32 %v14382_v61, %v4214_v41  ;;  %v4251_v60 = vadd.f32 %v14388_v26, %v4231_v47 }
0x1555   :  { %7061 = vrot.lane.b32.xlu1 %v7039_v3, %s9926_s6  ;;  %7063 = vrot.lane.b32.xlu0 %v7040_v54, %s9926_s6  ;;  %v4233_v3 = vmul.f32 %v14382_v61, %v4213_v52  ;;  %s7094_s6 = sshll.u32 %s9927_s9, 4  ;;  %s7095_s6 = int_to_ptr.vmem [resolvable:$true] %s7094_s6 }
0x1556   :  { %v4254_v34 = vadd.f32 %v14388_v26, %v4234_v12  ;;  %s9883_s27 = scalar_lea.vmem %s7095_s6, 1024  ;;  %p9888_p11 = scmp.lt.s32.totalorder %s7095_s6, %s7095_s6 }
0x1557   :  { %p9884_p10 = scmp.ne.s32.totalorder %s7095_s6, %s9883_s27  ;;  %p9889_p12 = scmp.lt.s32.totalorder %s9883_s27, %s9883_s27 }
0x1559   :  { %p9890_p13 = por %p9889_p12, %p9888_p11 }
0x155b   :  { %p9891_p0 = pnand %p9890_p13, %p9884_p10 }
0x158d   :  { %v4133_v51 = vpop.xlane.xlu0 %4132 }
0x158e   :  { %v4167_v63 = vmul.f32 0.03125, %v4133_v51 }
0x1590   :  { %v4183_v13 = vadd.f32 1e-06, %v4167_v63 }
0x1591   :  { %v6978_v24 = vpop.permute.xlu0 %6977 }
0x1592   :  { %v4136_v27 = vpop.xlane.xlu1 %4135  ;;  %9806 = vrsqrt.f32 %v4183_v13  ;;  %v7025_v56 = vsel %vm1341_vm6, %v4249_v57, %v6978_v24 }
0x1593   :  { %v4168_v18 = vmul.f32 0.03125, %v4136_v27  ;;  %v4253_v27 = vadd.f32 %v14388_v26, %v4233_v3 }
0x1595   :  { %v4184_v22 = vadd.f32 1e-06, %v4168_v18  ;;  %v6984_v62 = vpop.permute.xlu0 %6983 }
0x1596   :  { %v6980_v39 = vpop.permute.xlu1 %6979  ;;  %v7028_v54 = vsel %vm1341_vm6, %v4252_v11, %v6984_v62 }
0x1597   :  { %9808 = vrsqrt.f32 %v4184_v22  ;;  %v7026_v59 = vsel %vm1341_vm6, %v4250_v21, %v6980_v39 }
0x1599   :  { %v6988_v8 = vpop.permute.xlu0 %6987 }
0x159a   :  { %v6982_v23 = vpop.permute.xlu1 %6981  ;;  %v7030_v9 = vsel %vm1341_vm6, %v4254_v34, %v6988_v8 }
0x159c   :  { %v9807_v46 = vpop.eup %9806 }
0x159d   :  { %v6992_v2 = vpop.permute.xlu0 %6991  ;;  %v4215_v25 = vmul.f32 %v9807_v46, %v14343_v45 }
0x159e   :  { %v6986_v55 = vpop.permute.xlu1 %6985 }
0x159f   :  { %v4235_v17 = vmul.f32 %v14382_v61, %v4215_v25  ;;  %v7029_v53 = vsel %vm1341_vm6, %v4253_v27, %v6986_v55 }
0x15a1   :  { %v9809_v4 = vpop.eup %9808 }
0x15a2   :  { %v6990_v1 = vpop.permute.xlu1 %6989  ;;  %v4216_v38 = vmul.f32 %v9809_v4, %v14349_v40  ;;  %v7027_v40 = vsel %vm1341_vm6, %v4251_v60, %v6982_v23 }
0x15a4   :  { %v4236_v45 = vmul.f32 %v14382_v61, %v4216_v38  ;;  %v4255_v61 = vadd.f32 %v14388_v26, %v4235_v17 }
0x15a6   :  { %v4256_v20 = vadd.f32 %v14388_v26, %v4236_v45  ;;  %v7031_v18 = vsel %vm1341_vm6, %v4255_v61, %v6990_v1 }
0x15a8   :  { %v7032_v39 = vsel %vm1341_vm6, %v4256_v20, %v6992_v2 }
0x15ba   :  { %v7052_v19 = vpop.permute.xlu0 %7051 }
0x15bb   :  { %v7074_v31 = vsel %vm1621_vm4, %v7026_v59, %v7052_v19  ;;  %v7050_v16 = vpop.permute.xlu1 %7049 }
0x15bc   :  { %7082 = vst [vmem:[#allocation8 + $0x8] sm:$0xff] %v7074_v31  ;;  %v7073_v50 = vsel %vm1621_vm4, %v7025_v56, %v7050_v16 }
0x15bd   :  { %7081 = vst [vmem:[#allocation8] sm:$0xff] %v7073_v50 }
0x15bf   :  { %v7054_v36 = vpop.permute.xlu1 %7053  ;;  %v7056_v29 = vpop.permute.xlu0 %7055 }
0x15c0   :  { %v7075_v51 = vsel %vm1621_vm4, %v7027_v40, %v7054_v36  ;;  %v7076_v48 = vsel %vm1621_vm4, %v7028_v54, %v7056_v29 }
0x15c1   :  { %7083 = vst [vmem:[#allocation8 + $0x10] sm:$0xff] %v7075_v51  ;;  %7084 = vst [vmem:[#allocation8 + $0x18] sm:$0xff] %v7076_v48 }
0x15c3   :  { %v7058_v30 = vpop.permute.xlu1 %7057  ;;  %v7060_v0 = vpop.permute.xlu0 %7059 }
0x15c4   :  { %v7077_v24 = vsel %vm1621_vm4, %v7029_v53, %v7058_v30  ;;  %v7078_v63 = vsel %vm1621_vm4, %v7030_v9, %v7060_v0 }
0x15c5   :  { %7085 = vst [vmem:[#allocation8 + $0x20] sm:$0xff] %v7077_v24  ;;  %7086 = vst [vmem:[#allocation8 + $0x28] sm:$0xff] %v7078_v63 }
0x15c7   :  { %v7062_v6 = vpop.permute.xlu1 %7061  ;;  %v7064_v32 = vpop.permute.xlu0 %7063 }
0x15c8   :  { %v7079_v13 = vsel %vm1621_vm4, %v7031_v18, %v7062_v6  ;;  %v7080_v26 = vsel %vm1621_vm4, %v7032_v39, %v7064_v32 }
0x15c9   :  { %7087 = vst [vmem:[#allocation8 + $0x30] sm:$0xff] %v7079_v13  ;;  %7088 = vst [vmem:[#allocation8 + $0x38] sm:$0xff] %v7080_v26 }
0x15ca   :  { %9894 = shalt.err (!%p9891_p0)
}
0x15cb   :  { %s14846_s29 = sld [smem:[#allocation65_spill]] }
0x15d1   :  { %s9895_s0 = scalar_lea.hbm %s14846_s29, 1024 }
0x15d2   :  { %p9896_p1 = scmp.ne.s32.totalorder %s14846_s29, %s9895_s0  ;;  %p9899_p2 = scmp.lt.u32.totalorder %s9895_s0, %s14846_s29 }
0x15d4   :  { %p9901_p3 = pnand %p9899_p2, %p9896_p1 }
0x15d6   :  { %9904 = shalt.err (!%p9901_p3)
}
0x15d7   :  { %7100 = dma.vmem_to_hbm [thread:$0]  %s7095_s6, 1024, %s14846_s29, [#allocation4], %s9912_s22, %s9912_s22, %s9913_s23  }
0x15d8   :  { %9909 = dma.done.wait [#allocation4], 1024  }
0x15d9   :  { %9910 = vsyncadd [#allocation4], 4294966272 }
0x15da   :  { %7104 = vsyncpa [#allocation3], 1 }
0x15db   :  { %7105 = vsyncpa [#allocation6], 1 }
0x15dc   :  { %7106 = vsyncpa [#allocation4], 1 }

</bundles_post_ra>
